<compile_context>
chip_gen: v7x
topology: tpu7x:2x2x1
jax: 0.10.0
libtpu: 0.0.40
codegen_flags: <defaults>
</compile_context>

<pallas_src>
import functools

import jax
import jax.numpy as jnp
from jax import lax
from jax.experimental import pallas as pl
from jax.experimental.pallas import tpu as pltpu


# ------------------------------ Pallas kernel --------------------------------


def _fused_bilstm_kernel(
    x_ref,                         # (T*B, E)   time-major input, row (t*B + b)
    wih0_ref, whh0_ref, b0_ref,    # (E, 8H), (H, 8H), (1, 8H)   layer 0, [fwd|bwd]
    wih1_ref, whh1_ref, b1_ref,    # (2H, 8H), (H, 8H), (1, 8H)  layer 1, [fwd|bwd]
    wih2_ref, whh2_ref, b2_ref,    # (2H, 4H), (H, 4H), (1, 4H)  layer 2, bwd only
    out_ref,                       # (B, H)     h_n[-1]
    seq0_ref,                      # (T*B, 2H)  scratch: layer-0 output [fwd|bwd]
    seq1_ref,                      # (T*B, 2H)  scratch: layer-1 output [fwd|bwd]
    pre_ref,                       # (T*B, 8H)  scratch: hoisted gate pre-activations
    *, T, B, H,
):
    f32 = jnp.float32
    G = 4 * H  # gate width per direction (PyTorch gate order i, f, g, o)

    def gate_math(gates, c):
        i_g = jax.nn.sigmoid(gates[:, 0 * H:1 * H])
        f_g = jax.nn.sigmoid(gates[:, 1 * H:2 * H])
        g_g = jnp.tanh(gates[:, 2 * H:3 * H])
        o_g = jax.nn.sigmoid(gates[:, 3 * H:4 * H])
        c_new = f_g * c + i_g * g_g
        h_new = o_g * jnp.tanh(c_new)
        return h_new, c_new

    def bidir_layer(x_flat, wih_ref, whh_ref, b_ref, seq_ref):
        # Hoisted input projection for the whole sequence and BOTH directions:
        # one (T*B, D_in) @ (D_in, 8H) MXU matmul, bias folded in.
        # Columns [:4H] are the forward gates' input term, [4H:] the backward's.
        pre_ref[...] = (
            jnp.dot(x_flat, wih_ref[...], preferred_element_type=f32) + b_ref[...]
        )
        whh = whh_ref[...]                                     # (H, 8H)

        # Stacked recurrent state: rows [:B] = forward dir, rows [B:] = backward.
        h = jnp.zeros((2 * B, H), f32)
        c = jnp.zeros((2 * B, H), f32)
        for t in range(T):                                     # static, fully unrolled
            rf = t * B                                         # fwd consumes time t
            rb = (T - 1 - t) * B                               # bwd consumes time T-1-t
            # Single recurrent matmul for both directions per step.
            rec = jnp.dot(h, whh, preferred_element_type=f32)  # (2B, 8H)
            gates = jnp.concatenate(
                [pre_ref[pl.ds(rf, B), :G] + rec[:B, :G],
                 pre_ref[pl.ds(rb, B), G:] + rec[B:, G:]],
                axis=0,
            )                                                  # (2B, 4H)
            h, c = gate_math(gates, c)
            # Next layer's input at time s is [h_fwd(s) | h_bwd(s)].
            seq_ref[pl.ds(rf, B), :H] = h[:B]
            seq_ref[pl.ds(rb, B), H:] = h[B:]

    # Layers 0 and 1: full bidirectional, sequence kept in VMEM scratch.
    bidir_layer(x_ref[...], wih0_ref, whh0_ref, b0_ref, seq0_ref)
    bidir_layer(seq0_ref[...], wih1_ref, whh1_ref, b1_ref, seq1_ref)

    # Layer 2: only the backward direction feeds h_n[-1]; forward dir + full
    # output sequence would be dead work, so they are skipped entirely.
    pre_ref[:, :G] = (
        jnp.dot(seq1_ref[...], wih2_ref[...], preferred_element_type=f32)
        + b2_ref[...]
    )
    whh2 = whh2_ref[...]                                       # (H, 4H)
    h = jnp.zeros((B, H), f32)
    c = jnp.zeros((B, H), f32)
    for t in range(T):
        rb = (T - 1 - t) * B
        gates = pre_ref[pl.ds(rb, B), :G] + jnp.dot(
            h, whh2, preferred_element_type=f32
        )
        h, c = gate_math(gates, c)
    out_ref[...] = h                                           # state after time 0


def lstm_layer_forward(X, packed, hidden_size):
    """Equivalent of LSTMLayer.forward: returns h_n[-1], shape (batch, hidden)."""
    B, T, E = X.shape
    H = hidden_size
    # (batch, seq, emb) -> time-major (seq, batch, emb) -> flat (T*B, emb)
    x = jnp.transpose(X, (1, 0, 2)).reshape(T * B, E)
    kernel = functools.partial(_fused_bilstm_kernel, T=T, B=B, H=H)
    return pl.pallas_call(
        kernel,
        out_shape=jax.ShapeDtypeStruct((B, H), jnp.float32),
        scratch_shapes=[
            pltpu.VMEM((T * B, 2 * H), jnp.float32),   # layer-0 output sequence
            pltpu.VMEM((T * B, 2 * H), jnp.float32),   # layer-1 output sequence
            pltpu.VMEM((T * B, 8 * H), jnp.float32),   # gate pre-activations
        ],
    )(x, *packed)


# --------------------------------- params ------------------------------------


def init_params(key, embedding_size, hidden_size, num_layers):
    """Synthetic nn.LSTM weights (bidirectional), PyTorch shapes per direction:
    W_ih (4H, D_in), W_hh (4H, H), b_ih (4H,), b_hh (4H,)."""
    H = hidden_size
    k = 1.0 / jnp.sqrt(jnp.float32(H))
    params = []
    for layer in range(num_layers):
        d_in = embedding_size if layer == 0 else 2 * hidden_size
        dirs = []
        for _direction in range(2):
            key, k1, k2, k3, k4 = jax.random.split(key, 5)
            w_ih = jax.random.uniform(k1, (4 * H, d_in), jnp.float32, -k, k)
            w_hh = jax.random.uniform(k2, (4 * H, H), jnp.float32, -k, k)
            b_ih = jax.random.uniform(k3, (4 * H,), jnp.float32, -k, k)
            b_hh = jax.random.uniform(k4, (4 * H,), jnp.float32, -k, k)
            dirs.append((w_ih, w_hh, b_ih, b_hh))
        params.append(tuple(dirs))
    return params


def pack_params(params):
    """Pack raw per-(layer, direction) weights into the fused kernel layout:
    transposed, directions concatenated along N, biases pre-summed & folded."""
    (l0f, l0b), (l1f, l1b), (l2f, l2b) = params
    del l2f  # last-layer forward direction is never used for h_n[-1]

    def both(fd, bd):
        w_ih_f, w_hh_f, bi_f, bh_f = fd
        w_ih_b, w_hh_b, bi_b, bh_b = bd
        wih = jnp.concatenate([w_ih_f.T, w_ih_b.T], axis=1)        # (D_in, 8H)
        whh = jnp.concatenate([w_hh_f.T, w_hh_b.T], axis=1)        # (H, 8H)
        bias = jnp.concatenate([bi_f + bh_f, bi_b + bh_b])[None]   # (1, 8H)
        return wih, whh, bias

    wih0, whh0, bias0 = both(l0f, l0b)
    wih1, whh1, bias1 = both(l1f, l1b)
    w_ih_b2, w_hh_b2, bi_b2, bh_b2 = l2b
    wih2 = w_ih_b2.T                                               # (2H, 4H)
    whh2 = w_hh_b2.T                                               # (H, 4H)
    bias2 = (bi_b2 + bh_b2)[None]                                  # (1, 4H)
    return (wih0, whh0, bias0, wih1, whh1, bias1, wih2, whh2, bias2)


# ------------------------ pure-JAX reference (check) --------------------------


def _lstm_dir_ref(x_seq, w_ih, w_hh, b_ih, b_hh):
    B = x_seq.shape[1]
    H = w_hh.shape[1]

    def step(carry, x):
        h, c = carry
        gates = x @ w_ih.T + h @ w_hh.T + b_ih + b_hh
        i_g, f_g, g_g, o_g = jnp.split(gates, 4, axis=-1)
        i_g = jax.nn.sigmoid(i_g)
        f_g = jax.nn.sigmoid(f_g)
        g_g = jnp.tanh(g_g)
        o_g = jax.nn.sigmoid(o_g)
        c = f_g * c + i_g * g_g
        h = o_g * jnp.tanh(c)
        return (h, c), h

    init = (jnp.zeros((B, H), jnp.float32), jnp.zeros((B, H), jnp.float32))
    (h_fin, _), ys = lax.scan(step, init, x_seq)
    return ys, h_fin


def lstm_layer_forward_ref(X, params):
    x = jnp.transpose(X, (1, 0, 2))  # (T, B, E)
    n = len(params)
    for layer, (fwd, bwd) in enumerate(params):
        ys_f, _ = _lstm_dir_ref(x, *fwd)
        ys_b_rev, h_b = _lstm_dir_ref(jnp.flip(x, axis=0), *bwd)
        if layer == n - 1:
            # h_n[-1] == final hidden of the last layer's reverse direction.
            return h_b
        x = jnp.concatenate([ys_f, jnp.flip(ys_b_rev, axis=0)], axis=-1)


# ----------------------------------- main -------------------------------------


if __name__ == "__main__":
    EMB = 128
    HID = 128
    NUM_LAYERS = 3
    BATCH = 8   # 8 rows fills a full sublane group; all row slabs tile-aligned
    SEQ = 8

    key = jax.random.PRNGKey(0)
    key, kx = jax.random.split(key)
    # X: (batch, seq, embedding) — what the PyTorch module gets before transpose(0,1)
    X = jax.random.normal(kx, (BATCH, SEQ, EMB), jnp.float32)

    params = init_params(key, EMB, HID, NUM_LAYERS)
    packed = pack_params(params)

    out = jax.block_until_ready(lstm_layer_forward(X, packed, HID))
    ref = jax.block_until_ready(lstm_layer_forward_ref(X, params))

    assert out.shape == (BATCH, HID), out.shape
    max_err = float(jnp.max(jnp.abs(out - ref)))
    assert jnp.allclose(out, ref, atol=1e-5, rtol=1e-5), max_err

    print("KERNEL_OK")
</pallas_src>

<mosaic_0001>
module attributes {stable_mosaic.version = 11 : i64} {
  func.func @_fused_bilstm_kernel(%arg0: memref<64x128xf32, #tpu.memory_space<vmem>>, %arg1: memref<128x1024xf32, #tpu.memory_space<vmem>>, %arg2: memref<128x1024xf32, #tpu.memory_space<vmem>>, %arg3: memref<1x1024xf32, #tpu.memory_space<vmem>>, %arg4: memref<256x1024xf32, #tpu.memory_space<vmem>>, %arg5: memref<128x1024xf32, #tpu.memory_space<vmem>>, %arg6: memref<1x1024xf32, #tpu.memory_space<vmem>>, %arg7: memref<256x512xf32, #tpu.memory_space<vmem>>, %arg8: memref<128x512xf32, #tpu.memory_space<vmem>>, %arg9: memref<1x512xf32, #tpu.memory_space<vmem>>, %arg10: memref<8x128xf32, #tpu.memory_space<vmem>>, %arg11: memref<64x256xf32, #tpu.memory_space<vmem>>, %arg12: memref<64x256xf32, #tpu.memory_space<vmem>>, %arg13: memref<64x1024xf32, #tpu.memory_space<vmem>>) attributes {dimension_semantics = [], scalar_prefetch = 0 : i64, scratch_operands = 3 : i64, tpu.core_type = #tpu.core_type<tc>} {
    %c0 = arith.constant 0 : index
    %c0_0 = arith.constant 0 : index
    %0 = vector.load %arg0[%c0, %c0_0] : memref<64x128xf32, #tpu.memory_space<vmem>>, vector<64x128xf32>
    %c0_1 = arith.constant 0 : index
    %c0_2 = arith.constant 0 : index
    %1 = vector.load %arg1[%c0_1, %c0_2] : memref<128x1024xf32, #tpu.memory_space<vmem>>, vector<128x1024xf32>
    %cst = arith.constant dense<0.000000e+00> : vector<64x1024xf32>
    %2 = tpu.matmul %0, %1, %cst {dimension_numbers = #tpu.dot_dimension_numbers<[1], [0], [0], [1], [0, 0, 1, 1], [], []>} : vector<64x128xf32>, vector<128x1024xf32>, vector<64x1024xf32> -> vector<64x1024xf32>
    %c0_3 = arith.constant 0 : index
    %c0_4 = arith.constant 0 : index
    %3 = vector.load %arg3[%c0_3, %c0_4] : memref<1x1024xf32, #tpu.memory_space<vmem>>, vector<1x1024xf32>
    %4 = vector.broadcast %3 : vector<1x1024xf32> to vector<64x1024xf32>
    %5 = arith.addf %2, %4 : vector<64x1024xf32>
    %c0_5 = arith.constant 0 : index
    %c0_6 = arith.constant 0 : index
    %6 = vector.load %arg13[%c0_5, %c0_6] : memref<64x1024xf32, #tpu.memory_space<vmem>>, vector<64x1024xf32>
    tpu.vector_store %arg13[%c0_5, %c0_6], %5 {strides = array<i32>} : memref<64x1024xf32, #tpu.memory_space<vmem>>, vector<64x1024xf32>,
    %c0_7 = arith.constant 0 : index
    %c0_8 = arith.constant 0 : index
    %7 = vector.load %arg2[%c0_7, %c0_8] : memref<128x1024xf32, #tpu.memory_space<vmem>>, vector<128x1024xf32>
    %cst_9 = arith.constant 0.000000e+00 : f32
    %8 = vector.broadcast %cst_9 : f32 to vector<16x128xf32>
    %cst_10 = arith.constant 0.000000e+00 : f32
    %9 = vector.broadcast %cst_10 : f32 to vector<16x128xf32>
    %cst_11 = arith.constant dense<0.000000e+00> : vector<16x1024xf32>
    %10 = tpu.matmul %8, %7, %cst_11 {dimension_numbers = #tpu.dot_dimension_numbers<[1], [0], [0], [1], [0, 0, 1, 1], [], []>} : vector<16x128xf32>, vector<128x1024xf32>, vector<16x1024xf32> -> vector<16x1024xf32>
    %c0_12 = arith.constant 0 : index
    %c0_13 = arith.constant 0 : index
    %11 = vector.load %arg13[%c0_12, %c0_13] : memref<64x1024xf32, #tpu.memory_space<vmem>>, vector<8x512xf32>
    %12 = vector.extract_strided_slice %10 {offsets = [0, 0], sizes = [8, 512], strides = [1, 1]} : vector<16x1024xf32> to vector<8x512xf32>
    %13 = arith.addf %11, %12 : vector<8x512xf32>
    %c56 = arith.constant 56 : index
    %c512 = arith.constant 512 : index
    %14 = vector.load %arg13[%c56, %c512] : memref<64x1024xf32, #tpu.memory_space<vmem>>, vector<8x512xf32>
    %15 = vector.extract_strided_slice %10 {offsets = [8, 512], sizes = [8, 512], strides = [1, 1]} : vector<16x1024xf32> to vector<8x512xf32>
    %16 = arith.addf %14, %15 : vector<8x512xf32>
    %17 = tpu.concatenate %13, %16 in 0 : vector<8x512xf32>, vector<8x512xf32> -> vector<16x512xf32>
    %18 = vector.extract_strided_slice %17 {offsets = [0, 0], sizes = [16, 128], strides = [1, 1]} : vector<16x512xf32> to vector<16x128xf32>
    %19 = arith.negf %18 : vector<16x128xf32>
    %20 = math.exp %19 : vector<16x128xf32>
    %cst_14 = arith.constant 1.000000e+00 : f32
    %21 = vector.broadcast %cst_14 : f32 to vector<16x128xf32>
    %22 = arith.addf %21, %20 : vector<16x128xf32>
    %23 = arith.divf %21, %22 : vector<16x128xf32>
    %24 = vector.extract_strided_slice %17 {offsets = [0, 128], sizes = [16, 128], strides = [1, 1]} : vector<16x512xf32> to vector<16x128xf32>
    %25 = arith.negf %24 : vector<16x128xf32>
    %26 = math.exp %25 : vector<16x128xf32>
    %cst_15 = arith.constant 1.000000e+00 : f32
    %27 = vector.broadcast %cst_15 : f32 to vector<16x128xf32>
    %28 = arith.addf %27, %26 : vector<16x128xf32>
    %29 = arith.divf %27, %28 : vector<16x128xf32>
    %30 = vector.extract_strided_slice %17 {offsets = [0, 256], sizes = [16, 128], strides = [1, 1]} : vector<16x512xf32> to vector<16x128xf32>
    %31 = math.tanh %30 : vector<16x128xf32>
    %32 = vector.extract_strided_slice %17 {offsets = [0, 384], sizes = [16, 128], strides = [1, 1]} : vector<16x512xf32> to vector<16x128xf32>
    %33 = arith.negf %32 : vector<16x128xf32>
    %34 = math.exp %33 : vector<16x128xf32>
    %cst_16 = arith.constant 1.000000e+00 : f32
    %35 = vector.broadcast %cst_16 : f32 to vector<16x128xf32>
    %36 = arith.addf %35, %34 : vector<16x128xf32>
    %37 = arith.divf %35, %36 : vector<16x128xf32>
    %38 = arith.mulf %29, %9 : vector<16x128xf32>
    %39 = arith.mulf %23, %31 : vector<16x128xf32>
    %40 = arith.addf %38, %39 : vector<16x128xf32>
    %41 = math.tanh %40 : vector<16x128xf32>
    %42 = arith.mulf %37, %41 : vector<16x128xf32>
    %43 = vector.extract_strided_slice %42 {offsets = [0, 0], sizes = [8, 128], strides = [1, 1]} : vector<16x128xf32> to vector<8x128xf32>
    %c0_17 = arith.constant 0 : index
    %c0_18 = arith.constant 0 : index
    %44 = vector.load %arg11[%c0_17, %c0_18] : memref<64x256xf32, #tpu.memory_space<vmem>>, vector<8x128xf32>
    tpu.vector_store %arg11[%c0_17, %c0_18], %43 {strides = array<i32>} : memref<64x256xf32, #tpu.memory_space<vmem>>, vector<8x128xf32>,
    %45 = vector.extract_strided_slice %42 {offsets = [8, 0], sizes = [8, 128], strides = [1, 1]} : vector<16x128xf32> to vector<8x128xf32>
    %c56_19 = arith.constant 56 : index
    %c128 = arith.constant 128 : index
    %46 = vector.load %arg11[%c56_19, %c128] : memref<64x256xf32, #tpu.memory_space<vmem>>, vector<8x128xf32>
    tpu.vector_store %arg11[%c56_19, %c128], %45 {strides = array<i32>} : memref<64x256xf32, #tpu.memory_space<vmem>>, vector<8x128xf32>,
    %cst_20 = arith.constant dense<0.000000e+00> : vector<16x1024xf32>
    %47 = tpu.matmul %42, %7, %cst_20 {dimension_numbers = #tpu.dot_dimension_numbers<[1], [0], [0], [1], [0, 0, 1, 1], [], []>} : vector<16x128xf32>, vector<128x1024xf32>, vector<16x1024xf32> -> vector<16x1024xf32>
    %c8 = arith.constant 8 : index
    %c0_21 = arith.constant 0 : index
    %48 = vector.load %arg13[%c8, %c0_21] : memref<64x1024xf32, #tpu.memory_space<vmem>>, vector<8x512xf32>
    %49 = vector.extract_strided_slice %47 {offsets = [0, 0], sizes = [8, 512], strides = [1, 1]} : vector<16x1024xf32> to vector<8x512xf32>
    %50 = arith.addf %48, %49 : vector<8x512xf32>
    %c48 = arith.constant 48 : index
    %c512_22 = arith.constant 512 : index
    %51 = vector.load %arg13[%c48, %c512_22] : memref<64x1024xf32, #tpu.memory_space<vmem>>, vector<8x512xf32>
    %52 = vector.extract_strided_slice %47 {offsets = [8, 512], sizes = [8, 512], strides = [1, 1]} : vector<16x1024xf32> to vector<8x512xf32>
    %53 = arith.addf %51, %52 : vector<8x512xf32>
    %54 = tpu.concatenate %50, %53 in 0 : vector<8x512xf32>, vector<8x512xf32> -> vector<16x512xf32>
    %55 = vector.extract_strided_slice %54 {offsets = [0, 0], sizes = [16, 128], strides = [1, 1]} : vector<16x512xf32> to vector<16x128xf32>
    %56 = arith.negf %55 : vector<16x128xf32>
    %57 = math.exp %56 : vector<16x128xf32>
    %cst_23 = arith.constant 1.000000e+00 : f32
    %58 = vector.broadcast %cst_23 : f32 to vector<16x128xf32>
    %59 = arith.addf %58, %57 : vector<16x128xf32>
    %60 = arith.divf %58, %59 : vector<16x128xf32>
    %61 = vector.extract_strided_slice %54 {offsets = [0, 128], sizes = [16, 128], strides = [1, 1]} : vector<16x512xf32> to vector<16x128xf32>
    %62 = arith.negf %61 : vector<16x128xf32>
    %63 = math.exp %62 : vector<16x128xf32>
    %cst_24 = arith.constant 1.000000e+00 : f32
    %64 = vector.broadcast %cst_24 : f32 to vector<16x128xf32>
    %65 = arith.addf %64, %63 : vector<16x128xf32>
    %66 = arith.divf %64, %65 : vector<16x128xf32>
    %67 = vector.extract_strided_slice %54 {offsets = [0, 256], sizes = [16, 128], strides = [1, 1]} : vector<16x512xf32> to vector<16x128xf32>
    %68 = math.tanh %67 : vector<16x128xf32>
    %69 = vector.extract_strided_slice %54 {offsets = [0, 384], sizes = [16, 128], strides = [1, 1]} : vector<16x512xf32> to vector<16x128xf32>
    %70 = arith.negf %69 : vector<16x128xf32>
    %71 = math.exp %70 : vector<16x128xf32>
    %cst_25 = arith.constant 1.000000e+00 : f32
    %72 = vector.broadcast %cst_25 : f32 to vector<16x128xf32>
    %73 = arith.addf %72, %71 : vector<16x128xf32>
    %74 = arith.divf %72, %73 : vector<16x128xf32>
    %75 = arith.mulf %66, %40 : vector<16x128xf32>
    %76 = arith.mulf %60, %68 : vector<16x128xf32>
    %77 = arith.addf %75, %76 : vector<16x128xf32>
    %78 = math.tanh %77 : vector<16x128xf32>
    %79 = arith.mulf %74, %78 : vector<16x128xf32>
    %80 = vector.extract_strided_slice %79 {offsets = [0, 0], sizes = [8, 128], strides = [1, 1]} : vector<16x128xf32> to vector<8x128xf32>
    %c8_26 = arith.constant 8 : index
    %c0_27 = arith.constant 0 : index
    %81 = vector.load %arg11[%c8_26, %c0_27] : memref<64x256xf32, #tpu.memory_space<vmem>>, vector<8x128xf32>
    tpu.vector_store %arg11[%c8_26, %c0_27], %80 {strides = array<i32>} : memref<64x256xf32, #tpu.memory_space<vmem>>, vector<8x128xf32>,
    %82 = vector.extract_strided_slice %79 {offsets = [8, 0], sizes = [8, 128], strides = [1, 1]} : vector<16x128xf32> to vector<8x128xf32>
    %c48_28 = arith.constant 48 : index
    %c128_29 = arith.constant 128 : index
    %83 = vector.load %arg11[%c48_28, %c128_29] : memref<64x256xf32, #tpu.memory_space<vmem>>, vector<8x128xf32>
    tpu.vector_store %arg11[%c48_28, %c128_29], %82 {strides = array<i32>} : memref<64x256xf32, #tpu.memory_space<vmem>>, vector<8x128xf32>,
    %cst_30 = arith.constant dense<0.000000e+00> : vector<16x1024xf32>
    %84 = tpu.matmul %79, %7, %cst_30 {dimension_numbers = #tpu.dot_dimension_numbers<[1], [0], [0], [1], [0, 0, 1, 1], [], []>} : vector<16x128xf32>, vector<128x1024xf32>, vector<16x1024xf32> -> vector<16x1024xf32>
    %c16 = arith.constant 16 : index
    %c0_31 = arith.constant 0 : index
    %85 = vector.load %arg13[%c16, %c0_31] : memref<64x1024xf32, #tpu.memory_space<vmem>>, vector<8x512xf32>
    %86 = vector.extract_strided_slice %84 {offsets = [0, 0], sizes = [8, 512], strides = [1, 1]} : vector<16x1024xf32> to vector<8x512xf32>
    %87 = arith.addf %85, %86 : vector<8x512xf32>
    %c40 = arith.constant 40 : index
    %c512_32 = arith.constant 512 : index
    %88 = vector.load %arg13[%c40, %c512_32] : memref<64x1024xf32, #tpu.memory_space<vmem>>, vector<8x512xf32>
    %89 = vector.extract_strided_slice %84 {offsets = [8, 512], sizes = [8, 512], strides = [1, 1]} : vector<16x1024xf32> to vector<8x512xf32>
    %90 = arith.addf %88, %89 : vector<8x512xf32>
    %91 = tpu.concatenate %87, %90 in 0 : vector<8x512xf32>, vector<8x512xf32> -> vector<16x512xf32>
    %92 = vector.extract_strided_slice %91 {offsets = [0, 0], sizes = [16, 128], strides = [1, 1]} : vector<16x512xf32> to vector<16x128xf32>
    %93 = arith.negf %92 : vector<16x128xf32>
    %94 = math.exp %93 : vector<16x128xf32>
    %cst_33 = arith.constant 1.000000e+00 : f32
    %95 = vector.broadcast %cst_33 : f32 to vector<16x128xf32>
    %96 = arith.addf %95, %94 : vector<16x128xf32>
    %97 = arith.divf %95, %96 : vector<16x128xf32>
    %98 = vector.extract_strided_slice %91 {offsets = [0, 128], sizes = [16, 128], strides = [1, 1]} : vector<16x512xf32> to vector<16x128xf32>
    %99 = arith.negf %98 : vector<16x128xf32>
    %100 = math.exp %99 : vector<16x128xf32>
    %cst_34 = arith.constant 1.000000e+00 : f32
    %101 = vector.broadcast %cst_34 : f32 to vector<16x128xf32>
    %102 = arith.addf %101, %100 : vector<16x128xf32>
    %103 = arith.divf %101, %102 : vector<16x128xf32>
    %104 = vector.extract_strided_slice %91 {offsets = [0, 256], sizes = [16, 128], strides = [1, 1]} : vector<16x512xf32> to vector<16x128xf32>
    %105 = math.tanh %104 : vector<16x128xf32>
    %106 = vector.extract_strided_slice %91 {offsets = [0, 384], sizes = [16, 128], strides = [1, 1]} : vector<16x512xf32> to vector<16x128xf32>
    %107 = arith.negf %106 : vector<16x128xf32>
    %108 = math.exp %107 : vector<16x128xf32>
    %cst_35 = arith.constant 1.000000e+00 : f32
    %109 = vector.broadcast %cst_35 : f32 to vector<16x128xf32>
    %110 = arith.addf %109, %108 : vector<16x128xf32>
    %111 = arith.divf %109, %110 : vector<16x128xf32>
    %112 = arith.mulf %103, %77 : vector<16x128xf32>
    %113 = arith.mulf %97, %105 : vector<16x128xf32>
    %114 = arith.addf %112, %113 : vector<16x128xf32>
    %115 = math.tanh %114 : vector<16x128xf32>
    %116 = arith.mulf %111, %115 : vector<16x128xf32>
    %117 = vector.extract_strided_slice %116 {offsets = [0, 0], sizes = [8, 128], strides = [1, 1]} : vector<16x128xf32> to vector<8x128xf32>
    %c16_36 = arith.constant 16 : index
    %c0_37 = arith.constant 0 : index
    %118 = vector.load %arg11[%c16_36, %c0_37] : memref<64x256xf32, #tpu.memory_space<vmem>>, vector<8x128xf32>
    tpu.vector_store %arg11[%c16_36, %c0_37], %117 {strides = array<i32>} : memref<64x256xf32, #tpu.memory_space<vmem>>, vector<8x128xf32>,
    %119 = vector.extract_strided_slice %116 {offsets = [8, 0], sizes = [8, 128], strides = [1, 1]} : vector<16x128xf32> to vector<8x128xf32>
    %c40_38 = arith.constant 40 : index
    %c128_39 = arith.constant 128 : index
    %120 = vector.load %arg11[%c40_38, %c128_39] : memref<64x256xf32, #tpu.memory_space<vmem>>, vector<8x128xf32>
    tpu.vector_store %arg11[%c40_38, %c128_39], %119 {strides = array<i32>} : memref<64x256xf32, #tpu.memory_space<vmem>>, vector<8x128xf32>,
    %cst_40 = arith.constant dense<0.000000e+00> : vector<16x1024xf32>
    %121 = tpu.matmul %116, %7, %cst_40 {dimension_numbers = #tpu.dot_dimension_numbers<[1], [0], [0], [1], [0, 0, 1, 1], [], []>} : vector<16x128xf32>, vector<128x1024xf32>, vector<16x1024xf32> -> vector<16x1024xf32>
    %c24 = arith.constant 24 : index
    %c0_41 = arith.constant 0 : index
    %122 = vector.load %arg13[%c24, %c0_41] : memref<64x1024xf32, #tpu.memory_space<vmem>>, vector<8x512xf32>
    %123 = vector.extract_strided_slice %121 {offsets = [0, 0], sizes = [8, 512], strides = [1, 1]} : vector<16x1024xf32> to vector<8x512xf32>
    %124 = arith.addf %122, %123 : vector<8x512xf32>
    %c32 = arith.constant 32 : index
    %c512_42 = arith.constant 512 : index
    %125 = vector.load %arg13[%c32, %c512_42] : memref<64x1024xf32, #tpu.memory_space<vmem>>, vector<8x512xf32>
    %126 = vector.extract_strided_slice %121 {offsets = [8, 512], sizes = [8, 512], strides = [1, 1]} : vector<16x1024xf32> to vector<8x512xf32>
    %127 = arith.addf %125, %126 : vector<8x512xf32>
    %128 = tpu.concatenate %124, %127 in 0 : vector<8x512xf32>, vector<8x512xf32> -> vector<16x512xf32>
    %129 = vector.extract_strided_slice %128 {offsets = [0, 0], sizes = [16, 128], strides = [1, 1]} : vector<16x512xf32> to vector<16x128xf32>
    %130 = arith.negf %129 : vector<16x128xf32>
    %131 = math.exp %130 : vector<16x128xf32>
    %cst_43 = arith.constant 1.000000e+00 : f32
    %132 = vector.broadcast %cst_43 : f32 to vector<16x128xf32>
    %133 = arith.addf %132, %131 : vector<16x128xf32>
    %134 = arith.divf %132, %133 : vector<16x128xf32>
    %135 = vector.extract_strided_slice %128 {offsets = [0, 128], sizes = [16, 128], strides = [1, 1]} : vector<16x512xf32> to vector<16x128xf32>
    %136 = arith.negf %135 : vector<16x128xf32>
    %137 = math.exp %136 : vector<16x128xf32>
    %cst_44 = arith.constant 1.000000e+00 : f32
    %138 = vector.broadcast %cst_44 : f32 to vector<16x128xf32>
    %139 = arith.addf %138, %137 : vector<16x128xf32>
    %140 = arith.divf %138, %139 : vector<16x128xf32>
    %141 = vector.extract_strided_slice %128 {offsets = [0, 256], sizes = [16, 128], strides = [1, 1]} : vector<16x512xf32> to vector<16x128xf32>
    %142 = math.tanh %141 : vector<16x128xf32>
    %143 = vector.extract_strided_slice %128 {offsets = [0, 384], sizes = [16, 128], strides = [1, 1]} : vector<16x512xf32> to vector<16x128xf32>
    %144 = arith.negf %143 : vector<16x128xf32>
    %145 = math.exp %144 : vector<16x128xf32>
    %cst_45 = arith.constant 1.000000e+00 : f32
    %146 = vector.broadcast %cst_45 : f32 to vector<16x128xf32>
    %147 = arith.addf %146, %145 : vector<16x128xf32>
    %148 = arith.divf %146, %147 : vector<16x128xf32>
    %149 = arith.mulf %140, %114 : vector<16x128xf32>
    %150 = arith.mulf %134, %142 : vector<16x128xf32>
    %151 = arith.addf %149, %150 : vector<16x128xf32>
    %152 = math.tanh %151 : vector<16x128xf32>
    %153 = arith.mulf %148, %152 : vector<16x128xf32>
    %154 = vector.extract_strided_slice %153 {offsets = [0, 0], sizes = [8, 128], strides = [1, 1]} : vector<16x128xf32> to vector<8x128xf32>
    %c24_46 = arith.constant 24 : index
    %c0_47 = arith.constant 0 : index
    %155 = vector.load %arg11[%c24_46, %c0_47] : memref<64x256xf32, #tpu.memory_space<vmem>>, vector<8x128xf32>
    tpu.vector_store %arg11[%c24_46, %c0_47], %154 {strides = array<i32>} : memref<64x256xf32, #tpu.memory_space<vmem>>, vector<8x128xf32>,
    %156 = vector.extract_strided_slice %153 {offsets = [8, 0], sizes = [8, 128], strides = [1, 1]} : vector<16x128xf32> to vector<8x128xf32>
    %c32_48 = arith.constant 32 : index
    %c128_49 = arith.constant 128 : index
    %157 = vector.load %arg11[%c32_48, %c128_49] : memref<64x256xf32, #tpu.memory_space<vmem>>, vector<8x128xf32>
    tpu.vector_store %arg11[%c32_48, %c128_49], %156 {strides = array<i32>} : memref<64x256xf32, #tpu.memory_space<vmem>>, vector<8x128xf32>,
    %cst_50 = arith.constant dense<0.000000e+00> : vector<16x1024xf32>
    %158 = tpu.matmul %153, %7, %cst_50 {dimension_numbers = #tpu.dot_dimension_numbers<[1], [0], [0], [1], [0, 0, 1, 1], [], []>} : vector<16x128xf32>, vector<128x1024xf32>, vector<16x1024xf32> -> vector<16x1024xf32>
    %c32_51 = arith.constant 32 : index
    %c0_52 = arith.constant 0 : index
    %159 = vector.load %arg13[%c32_51, %c0_52] : memref<64x1024xf32, #tpu.memory_space<vmem>>, vector<8x512xf32>
    %160 = vector.extract_strided_slice %158 {offsets = [0, 0], sizes = [8, 512], strides = [1, 1]} : vector<16x1024xf32> to vector<8x512xf32>
    %161 = arith.addf %159, %160 : vector<8x512xf32>
    %c24_53 = arith.constant 24 : index
    %c512_54 = arith.constant 512 : index
    %162 = vector.load %arg13[%c24_53, %c512_54] : memref<64x1024xf32, #tpu.memory_space<vmem>>, vector<8x512xf32>
    %163 = vector.extract_strided_slice %158 {offsets = [8, 512], sizes = [8, 512], strides = [1, 1]} : vector<16x1024xf32> to vector<8x512xf32>
    %164 = arith.addf %162, %163 : vector<8x512xf32>
    %165 = tpu.concatenate %161, %164 in 0 : vector<8x512xf32>, vector<8x512xf32> -> vector<16x512xf32>
    %166 = vector.extract_strided_slice %165 {offsets = [0, 0], sizes = [16, 128], strides = [1, 1]} : vector<16x512xf32> to vector<16x128xf32>
    %167 = arith.negf %166 : vector<16x128xf32>
    %168 = math.exp %167 : vector<16x128xf32>
    %cst_55 = arith.constant 1.000000e+00 : f32
    %169 = vector.broadcast %cst_55 : f32 to vector<16x128xf32>
    %170 = arith.addf %169, %168 : vector<16x128xf32>
    %171 = arith.divf %169, %170 : vector<16x128xf32>
    %172 = vector.extract_strided_slice %165 {offsets = [0, 128], sizes = [16, 128], strides = [1, 1]} : vector<16x512xf32> to vector<16x128xf32>
    %173 = arith.negf %172 : vector<16x128xf32>
    %174 = math.exp %173 : vector<16x128xf32>
    %cst_56 = arith.constant 1.000000e+00 : f32
    %175 = vector.broadcast %cst_56 : f32 to vector<16x128xf32>
    %176 = arith.addf %175, %174 : vector<16x128xf32>
    %177 = arith.divf %175, %176 : vector<16x128xf32>
    %178 = vector.extract_strided_slice %165 {offsets = [0, 256], sizes = [16, 128], strides = [1, 1]} : vector<16x512xf32> to vector<16x128xf32>
    %179 = math.tanh %178 : vector<16x128xf32>
    %180 = vector.extract_strided_slice %165 {offsets = [0, 384], sizes = [16, 128], strides = [1, 1]} : vector<16x512xf32> to vector<16x128xf32>
    %181 = arith.negf %180 : vector<16x128xf32>
    %182 = math.exp %181 : vector<16x128xf32>
    %cst_57 = arith.constant 1.000000e+00 : f32
    %183 = vector.broadcast %cst_57 : f32 to vector<16x128xf32>
    %184 = arith.addf %183, %182 : vector<16x128xf32>
    %185 = arith.divf %183, %184 : vector<16x128xf32>
    %186 = arith.mulf %177, %151 : vector<16x128xf32>
    %187 = arith.mulf %171, %179 : vector<16x128xf32>
    %188 = arith.addf %186, %187 : vector<16x128xf32>
    %189 = math.tanh %188 : vector<16x128xf32>
    %190 = arith.mulf %185, %189 : vector<16x128xf32>
    %191 = vector.extract_strided_slice %190 {offsets = [0, 0], sizes = [8, 128], strides = [1, 1]} : vector<16x128xf32> to vector<8x128xf32>
    %c32_58 = arith.constant 32 : index
    %c0_59 = arith.constant 0 : index
    %192 = vector.load %arg11[%c32_58, %c0_59] : memref<64x256xf32, #tpu.memory_space<vmem>>, vector<8x128xf32>
    tpu.vector_store %arg11[%c32_58, %c0_59], %191 {strides = array<i32>} : memref<64x256xf32, #tpu.memory_space<vmem>>, vector<8x128xf32>,
    %193 = vector.extract_strided_slice %190 {offsets = [8, 0], sizes = [8, 128], strides = [1, 1]} : vector<16x128xf32> to vector<8x128xf32>
    %c24_60 = arith.constant 24 : index
    %c128_61 = arith.constant 128 : index
    %194 = vector.load %arg11[%c24_60, %c128_61] : memref<64x256xf32, #tpu.memory_space<vmem>>, vector<8x128xf32>
    tpu.vector_store %arg11[%c24_60, %c128_61], %193 {strides = array<i32>} : memref<64x256xf32, #tpu.memory_space<vmem>>, vector<8x128xf32>,
    %cst_62 = arith.constant dense<0.000000e+00> : vector<16x1024xf32>
    %195 = tpu.matmul %190, %7, %cst_62 {dimension_numbers = #tpu.dot_dimension_numbers<[1], [0], [0], [1], [0, 0, 1, 1], [], []>} : vector<16x128xf32>, vector<128x1024xf32>, vector<16x1024xf32> -> vector<16x1024xf32>
    %c40_63 = arith.constant 40 : index
    %c0_64 = arith.constant 0 : index
    %196 = vector.load %arg13[%c40_63, %c0_64] : memref<64x1024xf32, #tpu.memory_space<vmem>>, vector<8x512xf32>
    %197 = vector.extract_strided_slice %195 {offsets = [0, 0], sizes = [8, 512], strides = [1, 1]} : vector<16x1024xf32> to vector<8x512xf32>
    %198 = arith.addf %196, %197 : vector<8x512xf32>
    %c16_65 = arith.constant 16 : index
    %c512_66 = arith.constant 512 : index
    %199 = vector.load %arg13[%c16_65, %c512_66] : memref<64x1024xf32, #tpu.memory_space<vmem>>, vector<8x512xf32>
    %200 = vector.extract_strided_slice %195 {offsets = [8, 512], sizes = [8, 512], strides = [1, 1]} : vector<16x1024xf32> to vector<8x512xf32>
    %201 = arith.addf %199, %200 : vector<8x512xf32>
    %202 = tpu.concatenate %198, %201 in 0 : vector<8x512xf32>, vector<8x512xf32> -> vector<16x512xf32>
    %203 = vector.extract_strided_slice %202 {offsets = [0, 0], sizes = [16, 128], strides = [1, 1]} : vector<16x512xf32> to vector<16x128xf32>
    %204 = arith.negf %203 : vector<16x128xf32>
    %205 = math.exp %204 : vector<16x128xf32>
    %cst_67 = arith.constant 1.000000e+00 : f32
    %206 = vector.broadcast %cst_67 : f32 to vector<16x128xf32>
    %207 = arith.addf %206, %205 : vector<16x128xf32>
    %208 = arith.divf %206, %207 : vector<16x128xf32>
    %209 = vector.extract_strided_slice %202 {offsets = [0, 128], sizes = [16, 128], strides = [1, 1]} : vector<16x512xf32> to vector<16x128xf32>
    %210 = arith.negf %209 : vector<16x128xf32>
    %211 = math.exp %210 : vector<16x128xf32>
    %cst_68 = arith.constant 1.000000e+00 : f32
    %212 = vector.broadcast %cst_68 : f32 to vector<16x128xf32>
    %213 = arith.addf %212, %211 : vector<16x128xf32>
    %214 = arith.divf %212, %213 : vector<16x128xf32>
    %215 = vector.extract_strided_slice %202 {offsets = [0, 256], sizes = [16, 128], strides = [1, 1]} : vector<16x512xf32> to vector<16x128xf32>
    %216 = math.tanh %215 : vector<16x128xf32>
    %217 = vector.extract_strided_slice %202 {offsets = [0, 384], sizes = [16, 128], strides = [1, 1]} : vector<16x512xf32> to vector<16x128xf32>
    %218 = arith.negf %217 : vector<16x128xf32>
    %219 = math.exp %218 : vector<16x128xf32>
    %cst_69 = arith.constant 1.000000e+00 : f32
    %220 = vector.broadcast %cst_69 : f32 to vector<16x128xf32>
    %221 = arith.addf %220, %219 : vector<16x128xf32>
    %222 = arith.divf %220, %221 : vector<16x128xf32>
    %223 = arith.mulf %214, %188 : vector<16x128xf32>
    %224 = arith.mulf %208, %216 : vector<16x128xf32>
    %225 = arith.addf %223, %224 : vector<16x128xf32>
    %226 = math.tanh %225 : vector<16x128xf32>
    %227 = arith.mulf %222, %226 : vector<16x128xf32>
    %228 = vector.extract_strided_slice %227 {offsets = [0, 0], sizes = [8, 128], strides = [1, 1]} : vector<16x128xf32> to vector<8x128xf32>
    %c40_70 = arith.constant 40 : index
    %c0_71 = arith.constant 0 : index
    %229 = vector.load %arg11[%c40_70, %c0_71] : memref<64x256xf32, #tpu.memory_space<vmem>>, vector<8x128xf32>
    tpu.vector_store %arg11[%c40_70, %c0_71], %228 {strides = array<i32>} : memref<64x256xf32, #tpu.memory_space<vmem>>, vector<8x128xf32>,
    %230 = vector.extract_strided_slice %227 {offsets = [8, 0], sizes = [8, 128], strides = [1, 1]} : vector<16x128xf32> to vector<8x128xf32>
    %c16_72 = arith.constant 16 : index
    %c128_73 = arith.constant 128 : index
    %231 = vector.load %arg11[%c16_72, %c128_73] : memref<64x256xf32, #tpu.memory_space<vmem>>, vector<8x128xf32>
    tpu.vector_store %arg11[%c16_72, %c128_73], %230 {strides = array<i32>} : memref<64x256xf32, #tpu.memory_space<vmem>>, vector<8x128xf32>,
    %cst_74 = arith.constant dense<0.000000e+00> : vector<16x1024xf32>
    %232 = tpu.matmul %227, %7, %cst_74 {dimension_numbers = #tpu.dot_dimension_numbers<[1], [0], [0], [1], [0, 0, 1, 1], [], []>} : vector<16x128xf32>, vector<128x1024xf32>, vector<16x1024xf32> -> vector<16x1024xf32>
    %c48_75 = arith.constant 48 : index
    %c0_76 = arith.constant 0 : index
    %233 = vector.load %arg13[%c48_75, %c0_76] : memref<64x1024xf32, #tpu.memory_space<vmem>>, vector<8x512xf32>
    %234 = vector.extract_strided_slice %232 {offsets = [0, 0], sizes = [8, 512], strides = [1, 1]} : vector<16x1024xf32> to vector<8x512xf32>
    %235 = arith.addf %233, %234 : vector<8x512xf32>
    %c8_77 = arith.constant 8 : index
    %c512_78 = arith.constant 512 : index
    %236 = vector.load %arg13[%c8_77, %c512_78] : memref<64x1024xf32, #tpu.memory_space<vmem>>, vector<8x512xf32>
    %237 = vector.extract_strided_slice %232 {offsets = [8, 512], sizes = [8, 512], strides = [1, 1]} : vector<16x1024xf32> to vector<8x512xf32>
    %238 = arith.addf %236, %237 : vector<8x512xf32>
    %239 = tpu.concatenate %235, %238 in 0 : vector<8x512xf32>, vector<8x512xf32> -> vector<16x512xf32>
    %240 = vector.extract_strided_slice %239 {offsets = [0, 0], sizes = [16, 128], strides = [1, 1]} : vector<16x512xf32> to vector<16x128xf32>
    %241 = arith.negf %240 : vector<16x128xf32>
    %242 = math.exp %241 : vector<16x128xf32>
    %cst_79 = arith.constant 1.000000e+00 : f32
    %243 = vector.broadcast %cst_79 : f32 to vector<16x128xf32>
    %244 = arith.addf %243, %242 : vector<16x128xf32>
    %245 = arith.divf %243, %244 : vector<16x128xf32>
    %246 = vector.extract_strided_slice %239 {offsets = [0, 128], sizes = [16, 128], strides = [1, 1]} : vector<16x512xf32> to vector<16x128xf32>
    %247 = arith.negf %246 : vector<16x128xf32>
    %248 = math.exp %247 : vector<16x128xf32>
    %cst_80 = arith.constant 1.000000e+00 : f32
    %249 = vector.broadcast %cst_80 : f32 to vector<16x128xf32>
    %250 = arith.addf %249, %248 : vector<16x128xf32>
    %251 = arith.divf %249, %250 : vector<16x128xf32>
    %252 = vector.extract_strided_slice %239 {offsets = [0, 256], sizes = [16, 128], strides = [1, 1]} : vector<16x512xf32> to vector<16x128xf32>
    %253 = math.tanh %252 : vector<16x128xf32>
    %254 = vector.extract_strided_slice %239 {offsets = [0, 384], sizes = [16, 128], strides = [1, 1]} : vector<16x512xf32> to vector<16x128xf32>
    %255 = arith.negf %254 : vector<16x128xf32>
    %256 = math.exp %255 : vector<16x128xf32>
    %cst_81 = arith.constant 1.000000e+00 : f32
    %257 = vector.broadcast %cst_81 : f32 to vector<16x128xf32>
    %258 = arith.addf %257, %256 : vector<16x128xf32>
    %259 = arith.divf %257, %258 : vector<16x128xf32>
    %260 = arith.mulf %251, %225 : vector<16x128xf32>
    %261 = arith.mulf %245, %253 : vector<16x128xf32>
    %262 = arith.addf %260, %261 : vector<16x128xf32>
    %263 = math.tanh %262 : vector<16x128xf32>
    %264 = arith.mulf %259, %263 : vector<16x128xf32>
    %265 = vector.extract_strided_slice %264 {offsets = [0, 0], sizes = [8, 128], strides = [1, 1]} : vector<16x128xf32> to vector<8x128xf32>
    %c48_82 = arith.constant 48 : index
    %c0_83 = arith.constant 0 : index
    %266 = vector.load %arg11[%c48_82, %c0_83] : memref<64x256xf32, #tpu.memory_space<vmem>>, vector<8x128xf32>
    tpu.vector_store %arg11[%c48_82, %c0_83], %265 {strides = array<i32>} : memref<64x256xf32, #tpu.memory_space<vmem>>, vector<8x128xf32>,
    %267 = vector.extract_strided_slice %264 {offsets = [8, 0], sizes = [8, 128], strides = [1, 1]} : vector<16x128xf32> to vector<8x128xf32>
    %c8_84 = arith.constant 8 : index
    %c128_85 = arith.constant 128 : index
    %268 = vector.load %arg11[%c8_84, %c128_85] : memref<64x256xf32, #tpu.memory_space<vmem>>, vector<8x128xf32>
    tpu.vector_store %arg11[%c8_84, %c128_85], %267 {strides = array<i32>} : memref<64x256xf32, #tpu.memory_space<vmem>>, vector<8x128xf32>,
    %cst_86 = arith.constant dense<0.000000e+00> : vector<16x1024xf32>
    %269 = tpu.matmul %264, %7, %cst_86 {dimension_numbers = #tpu.dot_dimension_numbers<[1], [0], [0], [1], [0, 0, 1, 1], [], []>} : vector<16x128xf32>, vector<128x1024xf32>, vector<16x1024xf32> -> vector<16x1024xf32>
    %c56_87 = arith.constant 56 : index
    %c0_88 = arith.constant 0 : index
    %270 = vector.load %arg13[%c56_87, %c0_88] : memref<64x1024xf32, #tpu.memory_space<vmem>>, vector<8x512xf32>
    %271 = vector.extract_strided_slice %269 {offsets = [0, 0], sizes = [8, 512], strides = [1, 1]} : vector<16x1024xf32> to vector<8x512xf32>
    %272 = arith.addf %270, %271 : vector<8x512xf32>
    %c0_89 = arith.constant 0 : index
    %c512_90 = arith.constant 512 : index
    %273 = vector.load %arg13[%c0_89, %c512_90] : memref<64x1024xf32, #tpu.memory_space<vmem>>, vector<8x512xf32>
    %274 = vector.extract_strided_slice %269 {offsets = [8, 512], sizes = [8, 512], strides = [1, 1]} : vector<16x1024xf32> to vector<8x512xf32>
    %275 = arith.addf %273, %274 : vector<8x512xf32>
    %276 = tpu.concatenate %272, %275 in 0 : vector<8x512xf32>, vector<8x512xf32> -> vector<16x512xf32>
    %277 = vector.extract_strided_slice %276 {offsets = [0, 0], sizes = [16, 128], strides = [1, 1]} : vector<16x512xf32> to vector<16x128xf32>
    %278 = arith.negf %277 : vector<16x128xf32>
    %279 = math.exp %278 : vector<16x128xf32>
    %cst_91 = arith.constant 1.000000e+00 : f32
    %280 = vector.broadcast %cst_91 : f32 to vector<16x128xf32>
    %281 = arith.addf %280, %279 : vector<16x128xf32>
    %282 = arith.divf %280, %281 : vector<16x128xf32>
    %283 = vector.extract_strided_slice %276 {offsets = [0, 128], sizes = [16, 128], strides = [1, 1]} : vector<16x512xf32> to vector<16x128xf32>
    %284 = arith.negf %283 : vector<16x128xf32>
    %285 = math.exp %284 : vector<16x128xf32>
    %cst_92 = arith.constant 1.000000e+00 : f32
    %286 = vector.broadcast %cst_92 : f32 to vector<16x128xf32>
    %287 = arith.addf %286, %285 : vector<16x128xf32>
    %288 = arith.divf %286, %287 : vector<16x128xf32>
    %289 = vector.extract_strided_slice %276 {offsets = [0, 256], sizes = [16, 128], strides = [1, 1]} : vector<16x512xf32> to vector<16x128xf32>
    %290 = math.tanh %289 : vector<16x128xf32>
    %291 = vector.extract_strided_slice %276 {offsets = [0, 384], sizes = [16, 128], strides = [1, 1]} : vector<16x512xf32> to vector<16x128xf32>
    %292 = arith.negf %291 : vector<16x128xf32>
    %293 = math.exp %292 : vector<16x128xf32>
    %cst_93 = arith.constant 1.000000e+00 : f32
    %294 = vector.broadcast %cst_93 : f32 to vector<16x128xf32>
    %295 = arith.addf %294, %293 : vector<16x128xf32>
    %296 = arith.divf %294, %295 : vector<16x128xf32>
    %297 = arith.mulf %288, %262 : vector<16x128xf32>
    %298 = arith.mulf %282, %290 : vector<16x128xf32>
    %299 = arith.addf %297, %298 : vector<16x128xf32>
    %300 = math.tanh %299 : vector<16x128xf32>
    %301 = arith.mulf %296, %300 : vector<16x128xf32>
    %302 = vector.extract_strided_slice %301 {offsets = [0, 0], sizes = [8, 128], strides = [1, 1]} : vector<16x128xf32> to vector<8x128xf32>
    %c56_94 = arith.constant 56 : index
    %c0_95 = arith.constant 0 : index
    %303 = vector.load %arg11[%c56_94, %c0_95] : memref<64x256xf32, #tpu.memory_space<vmem>>, vector<8x128xf32>
    tpu.vector_store %arg11[%c56_94, %c0_95], %302 {strides = array<i32>} : memref<64x256xf32, #tpu.memory_space<vmem>>, vector<8x128xf32>,
    %304 = vector.extract_strided_slice %301 {offsets = [8, 0], sizes = [8, 128], strides = [1, 1]} : vector<16x128xf32> to vector<8x128xf32>
    %c0_96 = arith.constant 0 : index
    %c128_97 = arith.constant 128 : index
    %305 = vector.load %arg11[%c0_96, %c128_97] : memref<64x256xf32, #tpu.memory_space<vmem>>, vector<8x128xf32>
    tpu.vector_store %arg11[%c0_96, %c128_97], %304 {strides = array<i32>} : memref<64x256xf32, #tpu.memory_space<vmem>>, vector<8x128xf32>,
    %c0_98 = arith.constant 0 : index
    %c0_99 = arith.constant 0 : index
    %306 = vector.load %arg11[%c0_98, %c0_99] : memref<64x256xf32, #tpu.memory_space<vmem>>, vector<64x256xf32>
    %c0_100 = arith.constant 0 : index
    %c0_101 = arith.constant 0 : index
    %307 = vector.load %arg4[%c0_100, %c0_101] : memref<256x1024xf32, #tpu.memory_space<vmem>>, vector<256x1024xf32>
    %cst_102 = arith.constant dense<0.000000e+00> : vector<64x1024xf32>
    %308 = tpu.matmul %306, %307, %cst_102 {dimension_numbers = #tpu.dot_dimension_numbers<[1], [0], [0], [1], [0, 0, 1, 1], [], []>} : vector<64x256xf32>, vector<256x1024xf32>, vector<64x1024xf32> -> vector<64x1024xf32>
    %c0_103 = arith.constant 0 : index
    %c0_104 = arith.constant 0 : index
    %309 = vector.load %arg6[%c0_103, %c0_104] : memref<1x1024xf32, #tpu.memory_space<vmem>>, vector<1x1024xf32>
    %310 = vector.broadcast %309 : vector<1x1024xf32> to vector<64x1024xf32>
    %311 = arith.addf %308, %310 : vector<64x1024xf32>
    %c0_105 = arith.constant 0 : index
    %c0_106 = arith.constant 0 : index
    %312 = vector.load %arg13[%c0_105, %c0_106] : memref<64x1024xf32, #tpu.memory_space<vmem>>, vector<64x1024xf32>
    tpu.vector_store %arg13[%c0_105, %c0_106], %311 {strides = array<i32>} : memref<64x1024xf32, #tpu.memory_space<vmem>>, vector<64x1024xf32>,
    %c0_107 = arith.constant 0 : index
    %c0_108 = arith.constant 0 : index
    %313 = vector.load %arg5[%c0_107, %c0_108] : memref<128x1024xf32, #tpu.memory_space<vmem>>, vector<128x1024xf32>
    %cst_109 = arith.constant 0.000000e+00 : f32
    %314 = vector.broadcast %cst_109 : f32 to vector<16x128xf32>
    %cst_110 = arith.constant 0.000000e+00 : f32
    %315 = vector.broadcast %cst_110 : f32 to vector<16x128xf32>
    %cst_111 = arith.constant dense<0.000000e+00> : vector<16x1024xf32>
    %316 = tpu.matmul %314, %313, %cst_111 {dimension_numbers = #tpu.dot_dimension_numbers<[1], [0], [0], [1], [0, 0, 1, 1], [], []>} : vector<16x128xf32>, vector<128x1024xf32>, vector<16x1024xf32> -> vector<16x1024xf32>
    %c0_112 = arith.constant 0 : index
    %c0_113 = arith.constant 0 : index
    %317 = vector.load %arg13[%c0_112, %c0_113] : memref<64x1024xf32, #tpu.memory_space<vmem>>, vector<8x512xf32>
    %318 = vector.extract_strided_slice %316 {offsets = [0, 0], sizes = [8, 512], strides = [1, 1]} : vector<16x1024xf32> to vector<8x512xf32>
    %319 = arith.addf %317, %318 : vector<8x512xf32>
    %c56_114 = arith.constant 56 : index
    %c512_115 = arith.constant 512 : index
    %320 = vector.load %arg13[%c56_114, %c512_115] : memref<64x1024xf32, #tpu.memory_space<vmem>>, vector<8x512xf32>
    %321 = vector.extract_strided_slice %316 {offsets = [8, 512], sizes = [8, 512], strides = [1, 1]} : vector<16x1024xf32> to vector<8x512xf32>
    %322 = arith.addf %320, %321 : vector<8x512xf32>
    %323 = tpu.concatenate %319, %322 in 0 : vector<8x512xf32>, vector<8x512xf32> -> vector<16x512xf32>
    %324 = vector.extract_strided_slice %323 {offsets = [0, 0], sizes = [16, 128], strides = [1, 1]} : vector<16x512xf32> to vector<16x128xf32>
    %325 = arith.negf %324 : vector<16x128xf32>
    %326 = math.exp %325 : vector<16x128xf32>
    %cst_116 = arith.constant 1.000000e+00 : f32
    %327 = vector.broadcast %cst_116 : f32 to vector<16x128xf32>
    %328 = arith.addf %327, %326 : vector<16x128xf32>
    %329 = arith.divf %327, %328 : vector<16x128xf32>
    %330 = vector.extract_strided_slice %323 {offsets = [0, 128], sizes = [16, 128], strides = [1, 1]} : vector<16x512xf32> to vector<16x128xf32>
    %331 = arith.negf %330 : vector<16x128xf32>
    %332 = math.exp %331 : vector<16x128xf32>
    %cst_117 = arith.constant 1.000000e+00 : f32
    %333 = vector.broadcast %cst_117 : f32 to vector<16x128xf32>
    %334 = arith.addf %333, %332 : vector<16x128xf32>
    %335 = arith.divf %333, %334 : vector<16x128xf32>
    %336 = vector.extract_strided_slice %323 {offsets = [0, 256], sizes = [16, 128], strides = [1, 1]} : vector<16x512xf32> to vector<16x128xf32>
    %337 = math.tanh %336 : vector<16x128xf32>
    %338 = vector.extract_strided_slice %323 {offsets = [0, 384], sizes = [16, 128], strides = [1, 1]} : vector<16x512xf32> to vector<16x128xf32>
    %339 = arith.negf %338 : vector<16x128xf32>
    %340 = math.exp %339 : vector<16x128xf32>
    %cst_118 = arith.constant 1.000000e+00 : f32
    %341 = vector.broadcast %cst_118 : f32 to vector<16x128xf32>
    %342 = arith.addf %341, %340 : vector<16x128xf32>
    %343 = arith.divf %341, %342 : vector<16x128xf32>
    %344 = arith.mulf %335, %315 : vector<16x128xf32>
    %345 = arith.mulf %329, %337 : vector<16x128xf32>
    %346 = arith.addf %344, %345 : vector<16x128xf32>
    %347 = math.tanh %346 : vector<16x128xf32>
    %348 = arith.mulf %343, %347 : vector<16x128xf32>
    %349 = vector.extract_strided_slice %348 {offsets = [0, 0], sizes = [8, 128], strides = [1, 1]} : vector<16x128xf32> to vector<8x128xf32>
    %c0_119 = arith.constant 0 : index
    %c0_120 = arith.constant 0 : index
    %350 = vector.load %arg12[%c0_119, %c0_120] : memref<64x256xf32, #tpu.memory_space<vmem>>, vector<8x128xf32>
    tpu.vector_store %arg12[%c0_119, %c0_120], %349 {strides = array<i32>} : memref<64x256xf32, #tpu.memory_space<vmem>>, vector<8x128xf32>,
    %351 = vector.extract_strided_slice %348 {offsets = [8, 0], sizes = [8, 128], strides = [1, 1]} : vector<16x128xf32> to vector<8x128xf32>
    %c56_121 = arith.constant 56 : index
    %c128_122 = arith.constant 128 : index
    %352 = vector.load %arg12[%c56_121, %c128_122] : memref<64x256xf32, #tpu.memory_space<vmem>>, vector<8x128xf32>
    tpu.vector_store %arg12[%c56_121, %c128_122], %351 {strides = array<i32>} : memref<64x256xf32, #tpu.memory_space<vmem>>, vector<8x128xf32>,
    %cst_123 = arith.constant dense<0.000000e+00> : vector<16x1024xf32>
    %353 = tpu.matmul %348, %313, %cst_123 {dimension_numbers = #tpu.dot_dimension_numbers<[1], [0], [0], [1], [0, 0, 1, 1], [], []>} : vector<16x128xf32>, vector<128x1024xf32>, vector<16x1024xf32> -> vector<16x1024xf32>
    %c8_124 = arith.constant 8 : index
    %c0_125 = arith.constant 0 : index
    %354 = vector.load %arg13[%c8_124, %c0_125] : memref<64x1024xf32, #tpu.memory_space<vmem>>, vector<8x512xf32>
    %355 = vector.extract_strided_slice %353 {offsets = [0, 0], sizes = [8, 512], strides = [1, 1]} : vector<16x1024xf32> to vector<8x512xf32>
    %356 = arith.addf %354, %355 : vector<8x512xf32>
    %c48_126 = arith.constant 48 : index
    %c512_127 = arith.constant 512 : index
    %357 = vector.load %arg13[%c48_126, %c512_127] : memref<64x1024xf32, #tpu.memory_space<vmem>>, vector<8x512xf32>
    %358 = vector.extract_strided_slice %353 {offsets = [8, 512], sizes = [8, 512], strides = [1, 1]} : vector<16x1024xf32> to vector<8x512xf32>
    %359 = arith.addf %357, %358 : vector<8x512xf32>
    %360 = tpu.concatenate %356, %359 in 0 : vector<8x512xf32>, vector<8x512xf32> -> vector<16x512xf32>
    %361 = vector.extract_strided_slice %360 {offsets = [0, 0], sizes = [16, 128], strides = [1, 1]} : vector<16x512xf32> to vector<16x128xf32>
    %362 = arith.negf %361 : vector<16x128xf32>
    %363 = math.exp %362 : vector<16x128xf32>
    %cst_128 = arith.constant 1.000000e+00 : f32
    %364 = vector.broadcast %cst_128 : f32 to vector<16x128xf32>
    %365 = arith.addf %364, %363 : vector<16x128xf32>
    %366 = arith.divf %364, %365 : vector<16x128xf32>
    %367 = vector.extract_strided_slice %360 {offsets = [0, 128], sizes = [16, 128], strides = [1, 1]} : vector<16x512xf32> to vector<16x128xf32>
    %368 = arith.negf %367 : vector<16x128xf32>
    %369 = math.exp %368 : vector<16x128xf32>
    %cst_129 = arith.constant 1.000000e+00 : f32
    %370 = vector.broadcast %cst_129 : f32 to vector<16x128xf32>
    %371 = arith.addf %370, %369 : vector<16x128xf32>
    %372 = arith.divf %370, %371 : vector<16x128xf32>
    %373 = vector.extract_strided_slice %360 {offsets = [0, 256], sizes = [16, 128], strides = [1, 1]} : vector<16x512xf32> to vector<16x128xf32>
    %374 = math.tanh %373 : vector<16x128xf32>
    %375 = vector.extract_strided_slice %360 {offsets = [0, 384], sizes = [16, 128], strides = [1, 1]} : vector<16x512xf32> to vector<16x128xf32>
    %376 = arith.negf %375 : vector<16x128xf32>
    %377 = math.exp %376 : vector<16x128xf32>
    %cst_130 = arith.constant 1.000000e+00 : f32
    %378 = vector.broadcast %cst_130 : f32 to vector<16x128xf32>
    %379 = arith.addf %378, %377 : vector<16x128xf32>
    %380 = arith.divf %378, %379 : vector<16x128xf32>
    %381 = arith.mulf %372, %346 : vector<16x128xf32>
    %382 = arith.mulf %366, %374 : vector<16x128xf32>
    %383 = arith.addf %381, %382 : vector<16x128xf32>
    %384 = math.tanh %383 : vector<16x128xf32>
    %385 = arith.mulf %380, %384 : vector<16x128xf32>
    %386 = vector.extract_strided_slice %385 {offsets = [0, 0], sizes = [8, 128], strides = [1, 1]} : vector<16x128xf32> to vector<8x128xf32>
    %c8_131 = arith.constant 8 : index
    %c0_132 = arith.constant 0 : index
    %387 = vector.load %arg12[%c8_131, %c0_132] : memref<64x256xf32, #tpu.memory_space<vmem>>, vector<8x128xf32>
    tpu.vector_store %arg12[%c8_131, %c0_132], %386 {strides = array<i32>} : memref<64x256xf32, #tpu.memory_space<vmem>>, vector<8x128xf32>,
    %388 = vector.extract_strided_slice %385 {offsets = [8, 0], sizes = [8, 128], strides = [1, 1]} : vector<16x128xf32> to vector<8x128xf32>
    %c48_133 = arith.constant 48 : index
    %c128_134 = arith.constant 128 : index
    %389 = vector.load %arg12[%c48_133, %c128_134] : memref<64x256xf32, #tpu.memory_space<vmem>>, vector<8x128xf32>
    tpu.vector_store %arg12[%c48_133, %c128_134], %388 {strides = array<i32>} : memref<64x256xf32, #tpu.memory_space<vmem>>, vector<8x128xf32>,
    %cst_135 = arith.constant dense<0.000000e+00> : vector<16x1024xf32>
    %390 = tpu.matmul %385, %313, %cst_135 {dimension_numbers = #tpu.dot_dimension_numbers<[1], [0], [0], [1], [0, 0, 1, 1], [], []>} : vector<16x128xf32>, vector<128x1024xf32>, vector<16x1024xf32> -> vector<16x1024xf32>
    %c16_136 = arith.constant 16 : index
    %c0_137 = arith.constant 0 : index
    %391 = vector.load %arg13[%c16_136, %c0_137] : memref<64x1024xf32, #tpu.memory_space<vmem>>, vector<8x512xf32>
    %392 = vector.extract_strided_slice %390 {offsets = [0, 0], sizes = [8, 512], strides = [1, 1]} : vector<16x1024xf32> to vector<8x512xf32>
    %393 = arith.addf %391, %392 : vector<8x512xf32>
    %c40_138 = arith.constant 40 : index
    %c512_139 = arith.constant 512 : index
    %394 = vector.load %arg13[%c40_138, %c512_139] : memref<64x1024xf32, #tpu.memory_space<vmem>>, vector<8x512xf32>
    %395 = vector.extract_strided_slice %390 {offsets = [8, 512], sizes = [8, 512], strides = [1, 1]} : vector<16x1024xf32> to vector<8x512xf32>
    %396 = arith.addf %394, %395 : vector<8x512xf32>
    %397 = tpu.concatenate %393, %396 in 0 : vector<8x512xf32>, vector<8x512xf32> -> vector<16x512xf32>
    %398 = vector.extract_strided_slice %397 {offsets = [0, 0], sizes = [16, 128], strides = [1, 1]} : vector<16x512xf32> to vector<16x128xf32>
    %399 = arith.negf %398 : vector<16x128xf32>
    %400 = math.exp %399 : vector<16x128xf32>
    %cst_140 = arith.constant 1.000000e+00 : f32
    %401 = vector.broadcast %cst_140 : f32 to vector<16x128xf32>
    %402 = arith.addf %401, %400 : vector<16x128xf32>
    %403 = arith.divf %401, %402 : vector<16x128xf32>
    %404 = vector.extract_strided_slice %397 {offsets = [0, 128], sizes = [16, 128], strides = [1, 1]} : vector<16x512xf32> to vector<16x128xf32>
    %405 = arith.negf %404 : vector<16x128xf32>
    %406 = math.exp %405 : vector<16x128xf32>
    %cst_141 = arith.constant 1.000000e+00 : f32
    %407 = vector.broadcast %cst_141 : f32 to vector<16x128xf32>
    %408 = arith.addf %407, %406 : vector<16x128xf32>
    %409 = arith.divf %407, %408 : vector<16x128xf32>
    %410 = vector.extract_strided_slice %397 {offsets = [0, 256], sizes = [16, 128], strides = [1, 1]} : vector<16x512xf32> to vector<16x128xf32>
    %411 = math.tanh %410 : vector<16x128xf32>
    %412 = vector.extract_strided_slice %397 {offsets = [0, 384], sizes = [16, 128], strides = [1, 1]} : vector<16x512xf32> to vector<16x128xf32>
    %413 = arith.negf %412 : vector<16x128xf32>
    %414 = math.exp %413 : vector<16x128xf32>
    %cst_142 = arith.constant 1.000000e+00 : f32
    %415 = vector.broadcast %cst_142 : f32 to vector<16x128xf32>
    %416 = arith.addf %415, %414 : vector<16x128xf32>
    %417 = arith.divf %415, %416 : vector<16x128xf32>
    %418 = arith.mulf %409, %383 : vector<16x128xf32>
    %419 = arith.mulf %403, %411 : vector<16x128xf32>
    %420 = arith.addf %418, %419 : vector<16x128xf32>
    %421 = math.tanh %420 : vector<16x128xf32>
    %422 = arith.mulf %417, %421 : vector<16x128xf32>
    %423 = vector.extract_strided_slice %422 {offsets = [0, 0], sizes = [8, 128], strides = [1, 1]} : vector<16x128xf32> to vector<8x128xf32>
    %c16_143 = arith.constant 16 : index
    %c0_144 = arith.constant 0 : index
    %424 = vector.load %arg12[%c16_143, %c0_144] : memref<64x256xf32, #tpu.memory_space<vmem>>, vector<8x128xf32>
    tpu.vector_store %arg12[%c16_143, %c0_144], %423 {strides = array<i32>} : memref<64x256xf32, #tpu.memory_space<vmem>>, vector<8x128xf32>,
    %425 = vector.extract_strided_slice %422 {offsets = [8, 0], sizes = [8, 128], strides = [1, 1]} : vector<16x128xf32> to vector<8x128xf32>
    %c40_145 = arith.constant 40 : index
    %c128_146 = arith.constant 128 : index
    %426 = vector.load %arg12[%c40_145, %c128_146] : memref<64x256xf32, #tpu.memory_space<vmem>>, vector<8x128xf32>
    tpu.vector_store %arg12[%c40_145, %c128_146], %425 {strides = array<i32>} : memref<64x256xf32, #tpu.memory_space<vmem>>, vector<8x128xf32>,
    %cst_147 = arith.constant dense<0.000000e+00> : vector<16x1024xf32>
    %427 = tpu.matmul %422, %313, %cst_147 {dimension_numbers = #tpu.dot_dimension_numbers<[1], [0], [0], [1], [0, 0, 1, 1], [], []>} : vector<16x128xf32>, vector<128x1024xf32>, vector<16x1024xf32> -> vector<16x1024xf32>
    %c24_148 = arith.constant 24 : index
    %c0_149 = arith.constant 0 : index
    %428 = vector.load %arg13[%c24_148, %c0_149] : memref<64x1024xf32, #tpu.memory_space<vmem>>, vector<8x512xf32>
    %429 = vector.extract_strided_slice %427 {offsets = [0, 0], sizes = [8, 512], strides = [1, 1]} : vector<16x1024xf32> to vector<8x512xf32>
    %430 = arith.addf %428, %429 : vector<8x512xf32>
    %c32_150 = arith.constant 32 : index
    %c512_151 = arith.constant 512 : index
    %431 = vector.load %arg13[%c32_150, %c512_151] : memref<64x1024xf32, #tpu.memory_space<vmem>>, vector<8x512xf32>
    %432 = vector.extract_strided_slice %427 {offsets = [8, 512], sizes = [8, 512], strides = [1, 1]} : vector<16x1024xf32> to vector<8x512xf32>
    %433 = arith.addf %431, %432 : vector<8x512xf32>
    %434 = tpu.concatenate %430, %433 in 0 : vector<8x512xf32>, vector<8x512xf32> -> vector<16x512xf32>
    %435 = vector.extract_strided_slice %434 {offsets = [0, 0], sizes = [16, 128], strides = [1, 1]} : vector<16x512xf32> to vector<16x128xf32>
    %436 = arith.negf %435 : vector<16x128xf32>
    %437 = math.exp %436 : vector<16x128xf32>
    %cst_152 = arith.constant 1.000000e+00 : f32
    %438 = vector.broadcast %cst_152 : f32 to vector<16x128xf32>
    %439 = arith.addf %438, %437 : vector<16x128xf32>
    %440 = arith.divf %438, %439 : vector<16x128xf32>
    %441 = vector.extract_strided_slice %434 {offsets = [0, 128], sizes = [16, 128], strides = [1, 1]} : vector<16x512xf32> to vector<16x128xf32>
    %442 = arith.negf %441 : vector<16x128xf32>
    %443 = math.exp %442 : vector<16x128xf32>
    %cst_153 = arith.constant 1.000000e+00 : f32
    %444 = vector.broadcast %cst_153 : f32 to vector<16x128xf32>
    %445 = arith.addf %444, %443 : vector<16x128xf32>
    %446 = arith.divf %444, %445 : vector<16x128xf32>
    %447 = vector.extract_strided_slice %434 {offsets = [0, 256], sizes = [16, 128], strides = [1, 1]} : vector<16x512xf32> to vector<16x128xf32>
    %448 = math.tanh %447 : vector<16x128xf32>
    %449 = vector.extract_strided_slice %434 {offsets = [0, 384], sizes = [16, 128], strides = [1, 1]} : vector<16x512xf32> to vector<16x128xf32>
    %450 = arith.negf %449 : vector<16x128xf32>
    %451 = math.exp %450 : vector<16x128xf32>
    %cst_154 = arith.constant 1.000000e+00 : f32
    %452 = vector.broadcast %cst_154 : f32 to vector<16x128xf32>
    %453 = arith.addf %452, %451 : vector<16x128xf32>
    %454 = arith.divf %452, %453 : vector<16x128xf32>
    %455 = arith.mulf %446, %420 : vector<16x128xf32>
    %456 = arith.mulf %440, %448 : vector<16x128xf32>
    %457 = arith.addf %455, %456 : vector<16x128xf32>
    %458 = math.tanh %457 : vector<16x128xf32>
    %459 = arith.mulf %454, %458 : vector<16x128xf32>
    %460 = vector.extract_strided_slice %459 {offsets = [0, 0], sizes = [8, 128], strides = [1, 1]} : vector<16x128xf32> to vector<8x128xf32>
    %c24_155 = arith.constant 24 : index
    %c0_156 = arith.constant 0 : index
    %461 = vector.load %arg12[%c24_155, %c0_156] : memref<64x256xf32, #tpu.memory_space<vmem>>, vector<8x128xf32>
    tpu.vector_store %arg12[%c24_155, %c0_156], %460 {strides = array<i32>} : memref<64x256xf32, #tpu.memory_space<vmem>>, vector<8x128xf32>,
    %462 = vector.extract_strided_slice %459 {offsets = [8, 0], sizes = [8, 128], strides = [1, 1]} : vector<16x128xf32> to vector<8x128xf32>
    %c32_157 = arith.constant 32 : index
    %c128_158 = arith.constant 128 : index
    %463 = vector.load %arg12[%c32_157, %c128_158] : memref<64x256xf32, #tpu.memory_space<vmem>>, vector<8x128xf32>
    tpu.vector_store %arg12[%c32_157, %c128_158], %462 {strides = array<i32>} : memref<64x256xf32, #tpu.memory_space<vmem>>, vector<8x128xf32>,
    %cst_159 = arith.constant dense<0.000000e+00> : vector<16x1024xf32>
    %464 = tpu.matmul %459, %313, %cst_159 {dimension_numbers = #tpu.dot_dimension_numbers<[1], [0], [0], [1], [0, 0, 1, 1], [], []>} : vector<16x128xf32>, vector<128x1024xf32>, vector<16x1024xf32> -> vector<16x1024xf32>
    %c32_160 = arith.constant 32 : index
    %c0_161 = arith.constant 0 : index
    %465 = vector.load %arg13[%c32_160, %c0_161] : memref<64x1024xf32, #tpu.memory_space<vmem>>, vector<8x512xf32>
    %466 = vector.extract_strided_slice %464 {offsets = [0, 0], sizes = [8, 512], strides = [1, 1]} : vector<16x1024xf32> to vector<8x512xf32>
    %467 = arith.addf %465, %466 : vector<8x512xf32>
    %c24_162 = arith.constant 24 : index
    %c512_163 = arith.constant 512 : index
    %468 = vector.load %arg13[%c24_162, %c512_163] : memref<64x1024xf32, #tpu.memory_space<vmem>>, vector<8x512xf32>
    %469 = vector.extract_strided_slice %464 {offsets = [8, 512], sizes = [8, 512], strides = [1, 1]} : vector<16x1024xf32> to vector<8x512xf32>
    %470 = arith.addf %468, %469 : vector<8x512xf32>
    %471 = tpu.concatenate %467, %470 in 0 : vector<8x512xf32>, vector<8x512xf32> -> vector<16x512xf32>
    %472 = vector.extract_strided_slice %471 {offsets = [0, 0], sizes = [16, 128], strides = [1, 1]} : vector<16x512xf32> to vector<16x128xf32>
    %473 = arith.negf %472 : vector<16x128xf32>
    %474 = math.exp %473 : vector<16x128xf32>
    %cst_164 = arith.constant 1.000000e+00 : f32
    %475 = vector.broadcast %cst_164 : f32 to vector<16x128xf32>
    %476 = arith.addf %475, %474 : vector<16x128xf32>
    %477 = arith.divf %475, %476 : vector<16x128xf32>
    %478 = vector.extract_strided_slice %471 {offsets = [0, 128], sizes = [16, 128], strides = [1, 1]} : vector<16x512xf32> to vector<16x128xf32>
    %479 = arith.negf %478 : vector<16x128xf32>
    %480 = math.exp %479 : vector<16x128xf32>
    %cst_165 = arith.constant 1.000000e+00 : f32
    %481 = vector.broadcast %cst_165 : f32 to vector<16x128xf32>
    %482 = arith.addf %481, %480 : vector<16x128xf32>
    %483 = arith.divf %481, %482 : vector<16x128xf32>
    %484 = vector.extract_strided_slice %471 {offsets = [0, 256], sizes = [16, 128], strides = [1, 1]} : vector<16x512xf32> to vector<16x128xf32>
    %485 = math.tanh %484 : vector<16x128xf32>
    %486 = vector.extract_strided_slice %471 {offsets = [0, 384], sizes = [16, 128], strides = [1, 1]} : vector<16x512xf32> to vector<16x128xf32>
    %487 = arith.negf %486 : vector<16x128xf32>
    %488 = math.exp %487 : vector<16x128xf32>
    %cst_166 = arith.constant 1.000000e+00 : f32
    %489 = vector.broadcast %cst_166 : f32 to vector<16x128xf32>
    %490 = arith.addf %489, %488 : vector<16x128xf32>
    %491 = arith.divf %489, %490 : vector<16x128xf32>
    %492 = arith.mulf %483, %457 : vector<16x128xf32>
    %493 = arith.mulf %477, %485 : vector<16x128xf32>
    %494 = arith.addf %492, %493 : vector<16x128xf32>
    %495 = math.tanh %494 : vector<16x128xf32>
    %496 = arith.mulf %491, %495 : vector<16x128xf32>
    %497 = vector.extract_strided_slice %496 {offsets = [0, 0], sizes = [8, 128], strides = [1, 1]} : vector<16x128xf32> to vector<8x128xf32>
    %c32_167 = arith.constant 32 : index
    %c0_168 = arith.constant 0 : index
    %498 = vector.load %arg12[%c32_167, %c0_168] : memref<64x256xf32, #tpu.memory_space<vmem>>, vector<8x128xf32>
    tpu.vector_store %arg12[%c32_167, %c0_168], %497 {strides = array<i32>} : memref<64x256xf32, #tpu.memory_space<vmem>>, vector<8x128xf32>,
    %499 = vector.extract_strided_slice %496 {offsets = [8, 0], sizes = [8, 128], strides = [1, 1]} : vector<16x128xf32> to vector<8x128xf32>
    %c24_169 = arith.constant 24 : index
    %c128_170 = arith.constant 128 : index
    %500 = vector.load %arg12[%c24_169, %c128_170] : memref<64x256xf32, #tpu.memory_space<vmem>>, vector<8x128xf32>
    tpu.vector_store %arg12[%c24_169, %c128_170], %499 {strides = array<i32>} : memref<64x256xf32, #tpu.memory_space<vmem>>, vector<8x128xf32>,
    %cst_171 = arith.constant dense<0.000000e+00> : vector<16x1024xf32>
    %501 = tpu.matmul %496, %313, %cst_171 {dimension_numbers = #tpu.dot_dimension_numbers<[1], [0], [0], [1], [0, 0, 1, 1], [], []>} : vector<16x128xf32>, vector<128x1024xf32>, vector<16x1024xf32> -> vector<16x1024xf32>
    %c40_172 = arith.constant 40 : index
    %c0_173 = arith.constant 0 : index
    %502 = vector.load %arg13[%c40_172, %c0_173] : memref<64x1024xf32, #tpu.memory_space<vmem>>, vector<8x512xf32>
    %503 = vector.extract_strided_slice %501 {offsets = [0, 0], sizes = [8, 512], strides = [1, 1]} : vector<16x1024xf32> to vector<8x512xf32>
    %504 = arith.addf %502, %503 : vector<8x512xf32>
    %c16_174 = arith.constant 16 : index
    %c512_175 = arith.constant 512 : index
    %505 = vector.load %arg13[%c16_174, %c512_175] : memref<64x1024xf32, #tpu.memory_space<vmem>>, vector<8x512xf32>
    %506 = vector.extract_strided_slice %501 {offsets = [8, 512], sizes = [8, 512], strides = [1, 1]} : vector<16x1024xf32> to vector<8x512xf32>
    %507 = arith.addf %505, %506 : vector<8x512xf32>
    %508 = tpu.concatenate %504, %507 in 0 : vector<8x512xf32>, vector<8x512xf32> -> vector<16x512xf32>
    %509 = vector.extract_strided_slice %508 {offsets = [0, 0], sizes = [16, 128], strides = [1, 1]} : vector<16x512xf32> to vector<16x128xf32>
    %510 = arith.negf %509 : vector<16x128xf32>
    %511 = math.exp %510 : vector<16x128xf32>
    %cst_176 = arith.constant 1.000000e+00 : f32
    %512 = vector.broadcast %cst_176 : f32 to vector<16x128xf32>
    %513 = arith.addf %512, %511 : vector<16x128xf32>
    %514 = arith.divf %512, %513 : vector<16x128xf32>
    %515 = vector.extract_strided_slice %508 {offsets = [0, 128], sizes = [16, 128], strides = [1, 1]} : vector<16x512xf32> to vector<16x128xf32>
    %516 = arith.negf %515 : vector<16x128xf32>
    %517 = math.exp %516 : vector<16x128xf32>
    %cst_177 = arith.constant 1.000000e+00 : f32
    %518 = vector.broadcast %cst_177 : f32 to vector<16x128xf32>
    %519 = arith.addf %518, %517 : vector<16x128xf32>
    %520 = arith.divf %518, %519 : vector<16x128xf32>
    %521 = vector.extract_strided_slice %508 {offsets = [0, 256], sizes = [16, 128], strides = [1, 1]} : vector<16x512xf32> to vector<16x128xf32>
    %522 = math.tanh %521 : vector<16x128xf32>
    %523 = vector.extract_strided_slice %508 {offsets = [0, 384], sizes = [16, 128], strides = [1, 1]} : vector<16x512xf32> to vector<16x128xf32>
    %524 = arith.negf %523 : vector<16x128xf32>
    %525 = math.exp %524 : vector<16x128xf32>
    %cst_178 = arith.constant 1.000000e+00 : f32
    %526 = vector.broadcast %cst_178 : f32 to vector<16x128xf32>
    %527 = arith.addf %526, %525 : vector<16x128xf32>
    %528 = arith.divf %526, %527 : vector<16x128xf32>
    %529 = arith.mulf %520, %494 : vector<16x128xf32>
    %530 = arith.mulf %514, %522 : vector<16x128xf32>
    %531 = arith.addf %529, %530 : vector<16x128xf32>
    %532 = math.tanh %531 : vector<16x128xf32>
    %533 = arith.mulf %528, %532 : vector<16x128xf32>
    %534 = vector.extract_strided_slice %533 {offsets = [0, 0], sizes = [8, 128], strides = [1, 1]} : vector<16x128xf32> to vector<8x128xf32>
    %c40_179 = arith.constant 40 : index
    %c0_180 = arith.constant 0 : index
    %535 = vector.load %arg12[%c40_179, %c0_180] : memref<64x256xf32, #tpu.memory_space<vmem>>, vector<8x128xf32>
    tpu.vector_store %arg12[%c40_179, %c0_180], %534 {strides = array<i32>} : memref<64x256xf32, #tpu.memory_space<vmem>>, vector<8x128xf32>,
    %536 = vector.extract_strided_slice %533 {offsets = [8, 0], sizes = [8, 128], strides = [1, 1]} : vector<16x128xf32> to vector<8x128xf32>
    %c16_181 = arith.constant 16 : index
    %c128_182 = arith.constant 128 : index
    %537 = vector.load %arg12[%c16_181, %c128_182] : memref<64x256xf32, #tpu.memory_space<vmem>>, vector<8x128xf32>
    tpu.vector_store %arg12[%c16_181, %c128_182], %536 {strides = array<i32>} : memref<64x256xf32, #tpu.memory_space<vmem>>, vector<8x128xf32>,
    %cst_183 = arith.constant dense<0.000000e+00> : vector<16x1024xf32>
    %538 = tpu.matmul %533, %313, %cst_183 {dimension_numbers = #tpu.dot_dimension_numbers<[1], [0], [0], [1], [0, 0, 1, 1], [], []>} : vector<16x128xf32>, vector<128x1024xf32>, vector<16x1024xf32> -> vector<16x1024xf32>
    %c48_184 = arith.constant 48 : index
    %c0_185 = arith.constant 0 : index
    %539 = vector.load %arg13[%c48_184, %c0_185] : memref<64x1024xf32, #tpu.memory_space<vmem>>, vector<8x512xf32>
    %540 = vector.extract_strided_slice %538 {offsets = [0, 0], sizes = [8, 512], strides = [1, 1]} : vector<16x1024xf32> to vector<8x512xf32>
    %541 = arith.addf %539, %540 : vector<8x512xf32>
    %c8_186 = arith.constant 8 : index
    %c512_187 = arith.constant 512 : index
    %542 = vector.load %arg13[%c8_186, %c512_187] : memref<64x1024xf32, #tpu.memory_space<vmem>>, vector<8x512xf32>
    %543 = vector.extract_strided_slice %538 {offsets = [8, 512], sizes = [8, 512], strides = [1, 1]} : vector<16x1024xf32> to vector<8x512xf32>
    %544 = arith.addf %542, %543 : vector<8x512xf32>
    %545 = tpu.concatenate %541, %544 in 0 : vector<8x512xf32>, vector<8x512xf32> -> vector<16x512xf32>
    %546 = vector.extract_strided_slice %545 {offsets = [0, 0], sizes = [16, 128], strides = [1, 1]} : vector<16x512xf32> to vector<16x128xf32>
    %547 = arith.negf %546 : vector<16x128xf32>
    %548 = math.exp %547 : vector<16x128xf32>
    %cst_188 = arith.constant 1.000000e+00 : f32
    %549 = vector.broadcast %cst_188 : f32 to vector<16x128xf32>
    %550 = arith.addf %549, %548 : vector<16x128xf32>
    %551 = arith.divf %549, %550 : vector<16x128xf32>
    %552 = vector.extract_strided_slice %545 {offsets = [0, 128], sizes = [16, 128], strides = [1, 1]} : vector<16x512xf32> to vector<16x128xf32>
    %553 = arith.negf %552 : vector<16x128xf32>
    %554 = math.exp %553 : vector<16x128xf32>
    %cst_189 = arith.constant 1.000000e+00 : f32
    %555 = vector.broadcast %cst_189 : f32 to vector<16x128xf32>
    %556 = arith.addf %555, %554 : vector<16x128xf32>
    %557 = arith.divf %555, %556 : vector<16x128xf32>
    %558 = vector.extract_strided_slice %545 {offsets = [0, 256], sizes = [16, 128], strides = [1, 1]} : vector<16x512xf32> to vector<16x128xf32>
    %559 = math.tanh %558 : vector<16x128xf32>
    %560 = vector.extract_strided_slice %545 {offsets = [0, 384], sizes = [16, 128], strides = [1, 1]} : vector<16x512xf32> to vector<16x128xf32>
    %561 = arith.negf %560 : vector<16x128xf32>
    %562 = math.exp %561 : vector<16x128xf32>
    %cst_190 = arith.constant 1.000000e+00 : f32
    %563 = vector.broadcast %cst_190 : f32 to vector<16x128xf32>
    %564 = arith.addf %563, %562 : vector<16x128xf32>
    %565 = arith.divf %563, %564 : vector<16x128xf32>
    %566 = arith.mulf %557, %531 : vector<16x128xf32>
    %567 = arith.mulf %551, %559 : vector<16x128xf32>
    %568 = arith.addf %566, %567 : vector<16x128xf32>
    %569 = math.tanh %568 : vector<16x128xf32>
    %570 = arith.mulf %565, %569 : vector<16x128xf32>
    %571 = vector.extract_strided_slice %570 {offsets = [0, 0], sizes = [8, 128], strides = [1, 1]} : vector<16x128xf32> to vector<8x128xf32>
    %c48_191 = arith.constant 48 : index
    %c0_192 = arith.constant 0 : index
    %572 = vector.load %arg12[%c48_191, %c0_192] : memref<64x256xf32, #tpu.memory_space<vmem>>, vector<8x128xf32>
    tpu.vector_store %arg12[%c48_191, %c0_192], %571 {strides = array<i32>} : memref<64x256xf32, #tpu.memory_space<vmem>>, vector<8x128xf32>,
    %573 = vector.extract_strided_slice %570 {offsets = [8, 0], sizes = [8, 128], strides = [1, 1]} : vector<16x128xf32> to vector<8x128xf32>
    %c8_193 = arith.constant 8 : index
    %c128_194 = arith.constant 128 : index
    %574 = vector.load %arg12[%c8_193, %c128_194] : memref<64x256xf32, #tpu.memory_space<vmem>>, vector<8x128xf32>
    tpu.vector_store %arg12[%c8_193, %c128_194], %573 {strides = array<i32>} : memref<64x256xf32, #tpu.memory_space<vmem>>, vector<8x128xf32>,
    %cst_195 = arith.constant dense<0.000000e+00> : vector<16x1024xf32>
    %575 = tpu.matmul %570, %313, %cst_195 {dimension_numbers = #tpu.dot_dimension_numbers<[1], [0], [0], [1], [0, 0, 1, 1], [], []>} : vector<16x128xf32>, vector<128x1024xf32>, vector<16x1024xf32> -> vector<16x1024xf32>
    %c56_196 = arith.constant 56 : index
    %c0_197 = arith.constant 0 : index
    %576 = vector.load %arg13[%c56_196, %c0_197] : memref<64x1024xf32, #tpu.memory_space<vmem>>, vector<8x512xf32>
    %577 = vector.extract_strided_slice %575 {offsets = [0, 0], sizes = [8, 512], strides = [1, 1]} : vector<16x1024xf32> to vector<8x512xf32>
    %578 = arith.addf %576, %577 : vector<8x512xf32>
    %c0_198 = arith.constant 0 : index
    %c512_199 = arith.constant 512 : index
    %579 = vector.load %arg13[%c0_198, %c512_199] : memref<64x1024xf32, #tpu.memory_space<vmem>>, vector<8x512xf32>
    %580 = vector.extract_strided_slice %575 {offsets = [8, 512], sizes = [8, 512], strides = [1, 1]} : vector<16x1024xf32> to vector<8x512xf32>
    %581 = arith.addf %579, %580 : vector<8x512xf32>
    %582 = tpu.concatenate %578, %581 in 0 : vector<8x512xf32>, vector<8x512xf32> -> vector<16x512xf32>
    %583 = vector.extract_strided_slice %582 {offsets = [0, 0], sizes = [16, 128], strides = [1, 1]} : vector<16x512xf32> to vector<16x128xf32>
    %584 = arith.negf %583 : vector<16x128xf32>
    %585 = math.exp %584 : vector<16x128xf32>
    %cst_200 = arith.constant 1.000000e+00 : f32
    %586 = vector.broadcast %cst_200 : f32 to vector<16x128xf32>
    %587 = arith.addf %586, %585 : vector<16x128xf32>
    %588 = arith.divf %586, %587 : vector<16x128xf32>
    %589 = vector.extract_strided_slice %582 {offsets = [0, 128], sizes = [16, 128], strides = [1, 1]} : vector<16x512xf32> to vector<16x128xf32>
    %590 = arith.negf %589 : vector<16x128xf32>
    %591 = math.exp %590 : vector<16x128xf32>
    %cst_201 = arith.constant 1.000000e+00 : f32
    %592 = vector.broadcast %cst_201 : f32 to vector<16x128xf32>
    %593 = arith.addf %592, %591 : vector<16x128xf32>
    %594 = arith.divf %592, %593 : vector<16x128xf32>
    %595 = vector.extract_strided_slice %582 {offsets = [0, 256], sizes = [16, 128], strides = [1, 1]} : vector<16x512xf32> to vector<16x128xf32>
    %596 = math.tanh %595 : vector<16x128xf32>
    %597 = vector.extract_strided_slice %582 {offsets = [0, 384], sizes = [16, 128], strides = [1, 1]} : vector<16x512xf32> to vector<16x128xf32>
    %598 = arith.negf %597 : vector<16x128xf32>
    %599 = math.exp %598 : vector<16x128xf32>
    %cst_202 = arith.constant 1.000000e+00 : f32
    %600 = vector.broadcast %cst_202 : f32 to vector<16x128xf32>
    %601 = arith.addf %600, %599 : vector<16x128xf32>
    %602 = arith.divf %600, %601 : vector<16x128xf32>
    %603 = arith.mulf %594, %568 : vector<16x128xf32>
    %604 = arith.mulf %588, %596 : vector<16x128xf32>
    %605 = arith.addf %603, %604 : vector<16x128xf32>
    %606 = math.tanh %605 : vector<16x128xf32>
    %607 = arith.mulf %602, %606 : vector<16x128xf32>
    %608 = vector.extract_strided_slice %607 {offsets = [0, 0], sizes = [8, 128], strides = [1, 1]} : vector<16x128xf32> to vector<8x128xf32>
    %c56_203 = arith.constant 56 : index
    %c0_204 = arith.constant 0 : index
    %609 = vector.load %arg12[%c56_203, %c0_204] : memref<64x256xf32, #tpu.memory_space<vmem>>, vector<8x128xf32>
    tpu.vector_store %arg12[%c56_203, %c0_204], %608 {strides = array<i32>} : memref<64x256xf32, #tpu.memory_space<vmem>>, vector<8x128xf32>,
    %610 = vector.extract_strided_slice %607 {offsets = [8, 0], sizes = [8, 128], strides = [1, 1]} : vector<16x128xf32> to vector<8x128xf32>
    %c0_205 = arith.constant 0 : index
    %c128_206 = arith.constant 128 : index
    %611 = vector.load %arg12[%c0_205, %c128_206] : memref<64x256xf32, #tpu.memory_space<vmem>>, vector<8x128xf32>
    tpu.vector_store %arg12[%c0_205, %c128_206], %610 {strides = array<i32>} : memref<64x256xf32, #tpu.memory_space<vmem>>, vector<8x128xf32>,
    %c0_207 = arith.constant 0 : index
    %c0_208 = arith.constant 0 : index
    %612 = vector.load %arg12[%c0_207, %c0_208] : memref<64x256xf32, #tpu.memory_space<vmem>>, vector<64x256xf32>
    %c0_209 = arith.constant 0 : index
    %c0_210 = arith.constant 0 : index
    %613 = vector.load %arg7[%c0_209, %c0_210] : memref<256x512xf32, #tpu.memory_space<vmem>>, vector<256x512xf32>
    %cst_211 = arith.constant dense<0.000000e+00> : vector<64x512xf32>
    %614 = tpu.matmul %612, %613, %cst_211 {dimension_numbers = #tpu.dot_dimension_numbers<[1], [0], [0], [1], [0, 0, 1, 1], [], []>} : vector<64x256xf32>, vector<256x512xf32>, vector<64x512xf32> -> vector<64x512xf32>
    %c0_212 = arith.constant 0 : index
    %c0_213 = arith.constant 0 : index
    %615 = vector.load %arg9[%c0_212, %c0_213] : memref<1x512xf32, #tpu.memory_space<vmem>>, vector<1x512xf32>
    %616 = vector.broadcast %615 : vector<1x512xf32> to vector<64x512xf32>
    %617 = arith.addf %614, %616 : vector<64x512xf32>
    %c0_214 = arith.constant 0 : index
    %c0_215 = arith.constant 0 : index
    %618 = vector.load %arg13[%c0_214, %c0_215] : memref<64x1024xf32, #tpu.memory_space<vmem>>, vector<64x512xf32>
    tpu.vector_store %arg13[%c0_214, %c0_215], %617 {strides = array<i32>} : memref<64x1024xf32, #tpu.memory_space<vmem>>, vector<64x512xf32>,
    %c0_216 = arith.constant 0 : index
    %c0_217 = arith.constant 0 : index
    %619 = vector.load %arg8[%c0_216, %c0_217] : memref<128x512xf32, #tpu.memory_space<vmem>>, vector<128x512xf32>
    %cst_218 = arith.constant 0.000000e+00 : f32
    %620 = vector.broadcast %cst_218 : f32 to vector<8x128xf32>
    %cst_219 = arith.constant 0.000000e+00 : f32
    %621 = vector.broadcast %cst_219 : f32 to vector<8x128xf32>
    %c56_220 = arith.constant 56 : index
    %c0_221 = arith.constant 0 : index
    %622 = vector.load %arg13[%c56_220, %c0_221] : memref<64x1024xf32, #tpu.memory_space<vmem>>, vector<8x512xf32>
    %cst_222 = arith.constant dense<0.000000e+00> : vector<8x512xf32>
    %623 = tpu.matmul %620, %619, %cst_222 {dimension_numbers = #tpu.dot_dimension_numbers<[1], [0], [0], [1], [0, 0, 1, 1], [], []>} : vector<8x128xf32>, vector<128x512xf32>, vector<8x512xf32> -> vector<8x512xf32>
    %624 = arith.addf %622, %623 : vector<8x512xf32>
    %625 = vector.extract_strided_slice %624 {offsets = [0, 0], sizes = [8, 128], strides = [1, 1]} : vector<8x512xf32> to vector<8x128xf32>
    %626 = arith.negf %625 : vector<8x128xf32>
    %627 = math.exp %626 : vector<8x128xf32>
    %cst_223 = arith.constant 1.000000e+00 : f32
    %628 = vector.broadcast %cst_223 : f32 to vector<8x128xf32>
    %629 = arith.addf %628, %627 : vector<8x128xf32>
    %630 = arith.divf %628, %629 : vector<8x128xf32>
    %631 = vector.extract_strided_slice %624 {offsets = [0, 128], sizes = [8, 128], strides = [1, 1]} : vector<8x512xf32> to vector<8x128xf32>
    %632 = arith.negf %631 : vector<8x128xf32>
    %633 = math.exp %632 : vector<8x128xf32>
    %cst_224 = arith.constant 1.000000e+00 : f32
    %634 = vector.broadcast %cst_224 : f32 to vector<8x128xf32>
    %635 = arith.addf %634, %633 : vector<8x128xf32>
    %636 = arith.divf %634, %635 : vector<8x128xf32>
    %637 = vector.extract_strided_slice %624 {offsets = [0, 256], sizes = [8, 128], strides = [1, 1]} : vector<8x512xf32> to vector<8x128xf32>
    %638 = math.tanh %637 : vector<8x128xf32>
    %639 = vector.extract_strided_slice %624 {offsets = [0, 384], sizes = [8, 128], strides = [1, 1]} : vector<8x512xf32> to vector<8x128xf32>
    %640 = arith.negf %639 : vector<8x128xf32>
    %641 = math.exp %640 : vector<8x128xf32>
    %cst_225 = arith.constant 1.000000e+00 : f32
    %642 = vector.broadcast %cst_225 : f32 to vector<8x128xf32>
    %643 = arith.addf %642, %641 : vector<8x128xf32>
    %644 = arith.divf %642, %643 : vector<8x128xf32>
    %645 = arith.mulf %636, %621 : vector<8x128xf32>
    %646 = arith.mulf %630, %638 : vector<8x128xf32>
    %647 = arith.addf %645, %646 : vector<8x128xf32>
    %648 = math.tanh %647 : vector<8x128xf32>
    %649 = arith.mulf %644, %648 : vector<8x128xf32>
    %c48_226 = arith.constant 48 : index
    %c0_227 = arith.constant 0 : index
    %650 = vector.load %arg13[%c48_226, %c0_227] : memref<64x1024xf32, #tpu.memory_space<vmem>>, vector<8x512xf32>
    %cst_228 = arith.constant dense<0.000000e+00> : vector<8x512xf32>
    %651 = tpu.matmul %649, %619, %cst_228 {dimension_numbers = #tpu.dot_dimension_numbers<[1], [0], [0], [1], [0, 0, 1, 1], [], []>} : vector<8x128xf32>, vector<128x512xf32>, vector<8x512xf32> -> vector<8x512xf32>
    %652 = arith.addf %650, %651 : vector<8x512xf32>
    %653 = vector.extract_strided_slice %652 {offsets = [0, 0], sizes = [8, 128], strides = [1, 1]} : vector<8x512xf32> to vector<8x128xf32>
    %654 = arith.negf %653 : vector<8x128xf32>
    %655 = math.exp %654 : vector<8x128xf32>
    %cst_229 = arith.constant 1.000000e+00 : f32
    %656 = vector.broadcast %cst_229 : f32 to vector<8x128xf32>
    %657 = arith.addf %656, %655 : vector<8x128xf32>
    %658 = arith.divf %656, %657 : vector<8x128xf32>
    %659 = vector.extract_strided_slice %652 {offsets = [0, 128], sizes = [8, 128], strides = [1, 1]} : vector<8x512xf32> to vector<8x128xf32>
    %660 = arith.negf %659 : vector<8x128xf32>
    %661 = math.exp %660 : vector<8x128xf32>
    %cst_230 = arith.constant 1.000000e+00 : f32
    %662 = vector.broadcast %cst_230 : f32 to vector<8x128xf32>
    %663 = arith.addf %662, %661 : vector<8x128xf32>
    %664 = arith.divf %662, %663 : vector<8x128xf32>
    %665 = vector.extract_strided_slice %652 {offsets = [0, 256], sizes = [8, 128], strides = [1, 1]} : vector<8x512xf32> to vector<8x128xf32>
    %666 = math.tanh %665 : vector<8x128xf32>
    %667 = vector.extract_strided_slice %652 {offsets = [0, 384], sizes = [8, 128], strides = [1, 1]} : vector<8x512xf32> to vector<8x128xf32>
    %668 = arith.negf %667 : vector<8x128xf32>
    %669 = math.exp %668 : vector<8x128xf32>
    %cst_231 = arith.constant 1.000000e+00 : f32
    %670 = vector.broadcast %cst_231 : f32 to vector<8x128xf32>
    %671 = arith.addf %670, %669 : vector<8x128xf32>
    %672 = arith.divf %670, %671 : vector<8x128xf32>
    %673 = arith.mulf %664, %647 : vector<8x128xf32>
    %674 = arith.mulf %658, %666 : vector<8x128xf32>
    %675 = arith.addf %673, %674 : vector<8x128xf32>
    %676 = math.tanh %675 : vector<8x128xf32>
    %677 = arith.mulf %672, %676 : vector<8x128xf32>
    %c40_232 = arith.constant 40 : index
    %c0_233 = arith.constant 0 : index
    %678 = vector.load %arg13[%c40_232, %c0_233] : memref<64x1024xf32, #tpu.memory_space<vmem>>, vector<8x512xf32>
    %cst_234 = arith.constant dense<0.000000e+00> : vector<8x512xf32>
    %679 = tpu.matmul %677, %619, %cst_234 {dimension_numbers = #tpu.dot_dimension_numbers<[1], [0], [0], [1], [0, 0, 1, 1], [], []>} : vector<8x128xf32>, vector<128x512xf32>, vector<8x512xf32> -> vector<8x512xf32>
    %680 = arith.addf %678, %679 : vector<8x512xf32>
    %681 = vector.extract_strided_slice %680 {offsets = [0, 0], sizes = [8, 128], strides = [1, 1]} : vector<8x512xf32> to vector<8x128xf32>
    %682 = arith.negf %681 : vector<8x128xf32>
    %683 = math.exp %682 : vector<8x128xf32>
    %cst_235 = arith.constant 1.000000e+00 : f32
    %684 = vector.broadcast %cst_235 : f32 to vector<8x128xf32>
    %685 = arith.addf %684, %683 : vector<8x128xf32>
    %686 = arith.divf %684, %685 : vector<8x128xf32>
    %687 = vector.extract_strided_slice %680 {offsets = [0, 128], sizes = [8, 128], strides = [1, 1]} : vector<8x512xf32> to vector<8x128xf32>
    %688 = arith.negf %687 : vector<8x128xf32>
    %689 = math.exp %688 : vector<8x128xf32>
    %cst_236 = arith.constant 1.000000e+00 : f32
    %690 = vector.broadcast %cst_236 : f32 to vector<8x128xf32>
    %691 = arith.addf %690, %689 : vector<8x128xf32>
    %692 = arith.divf %690, %691 : vector<8x128xf32>
    %693 = vector.extract_strided_slice %680 {offsets = [0, 256], sizes = [8, 128], strides = [1, 1]} : vector<8x512xf32> to vector<8x128xf32>
    %694 = math.tanh %693 : vector<8x128xf32>
    %695 = vector.extract_strided_slice %680 {offsets = [0, 384], sizes = [8, 128], strides = [1, 1]} : vector<8x512xf32> to vector<8x128xf32>
    %696 = arith.negf %695 : vector<8x128xf32>
    %697 = math.exp %696 : vector<8x128xf32>
    %cst_237 = arith.constant 1.000000e+00 : f32
    %698 = vector.broadcast %cst_237 : f32 to vector<8x128xf32>
    %699 = arith.addf %698, %697 : vector<8x128xf32>
    %700 = arith.divf %698, %699 : vector<8x128xf32>
    %701 = arith.mulf %692, %675 : vector<8x128xf32>
    %702 = arith.mulf %686, %694 : vector<8x128xf32>
    %703 = arith.addf %701, %702 : vector<8x128xf32>
    %704 = math.tanh %703 : vector<8x128xf32>
    %705 = arith.mulf %700, %704 : vector<8x128xf32>
    %c32_238 = arith.constant 32 : index
    %c0_239 = arith.constant 0 : index
    %706 = vector.load %arg13[%c32_238, %c0_239] : memref<64x1024xf32, #tpu.memory_space<vmem>>, vector<8x512xf32>
    %cst_240 = arith.constant dense<0.000000e+00> : vector<8x512xf32>
    %707 = tpu.matmul %705, %619, %cst_240 {dimension_numbers = #tpu.dot_dimension_numbers<[1], [0], [0], [1], [0, 0, 1, 1], [], []>} : vector<8x128xf32>, vector<128x512xf32>, vector<8x512xf32> -> vector<8x512xf32>
    %708 = arith.addf %706, %707 : vector<8x512xf32>
    %709 = vector.extract_strided_slice %708 {offsets = [0, 0], sizes = [8, 128], strides = [1, 1]} : vector<8x512xf32> to vector<8x128xf32>
    %710 = arith.negf %709 : vector<8x128xf32>
    %711 = math.exp %710 : vector<8x128xf32>
    %cst_241 = arith.constant 1.000000e+00 : f32
    %712 = vector.broadcast %cst_241 : f32 to vector<8x128xf32>
    %713 = arith.addf %712, %711 : vector<8x128xf32>
    %714 = arith.divf %712, %713 : vector<8x128xf32>
    %715 = vector.extract_strided_slice %708 {offsets = [0, 128], sizes = [8, 128], strides = [1, 1]} : vector<8x512xf32> to vector<8x128xf32>
    %716 = arith.negf %715 : vector<8x128xf32>
    %717 = math.exp %716 : vector<8x128xf32>
    %cst_242 = arith.constant 1.000000e+00 : f32
    %718 = vector.broadcast %cst_242 : f32 to vector<8x128xf32>
    %719 = arith.addf %718, %717 : vector<8x128xf32>
    %720 = arith.divf %718, %719 : vector<8x128xf32>
    %721 = vector.extract_strided_slice %708 {offsets = [0, 256], sizes = [8, 128], strides = [1, 1]} : vector<8x512xf32> to vector<8x128xf32>
    %722 = math.tanh %721 : vector<8x128xf32>
    %723 = vector.extract_strided_slice %708 {offsets = [0, 384], sizes = [8, 128], strides = [1, 1]} : vector<8x512xf32> to vector<8x128xf32>
    %724 = arith.negf %723 : vector<8x128xf32>
    %725 = math.exp %724 : vector<8x128xf32>
    %cst_243 = arith.constant 1.000000e+00 : f32
    %726 = vector.broadcast %cst_243 : f32 to vector<8x128xf32>
    %727 = arith.addf %726, %725 : vector<8x128xf32>
    %728 = arith.divf %726, %727 : vector<8x128xf32>
    %729 = arith.mulf %720, %703 : vector<8x128xf32>
    %730 = arith.mulf %714, %722 : vector<8x128xf32>
    %731 = arith.addf %729, %730 : vector<8x128xf32>
    %732 = math.tanh %731 : vector<8x128xf32>
    %733 = arith.mulf %728, %732 : vector<8x128xf32>
    %c24_244 = arith.constant 24 : index
    %c0_245 = arith.constant 0 : index
    %734 = vector.load %arg13[%c24_244, %c0_245] : memref<64x1024xf32, #tpu.memory_space<vmem>>, vector<8x512xf32>
    %cst_246 = arith.constant dense<0.000000e+00> : vector<8x512xf32>
    %735 = tpu.matmul %733, %619, %cst_246 {dimension_numbers = #tpu.dot_dimension_numbers<[1], [0], [0], [1], [0, 0, 1, 1], [], []>} : vector<8x128xf32>, vector<128x512xf32>, vector<8x512xf32> -> vector<8x512xf32>
    %736 = arith.addf %734, %735 : vector<8x512xf32>
    %737 = vector.extract_strided_slice %736 {offsets = [0, 0], sizes = [8, 128], strides = [1, 1]} : vector<8x512xf32> to vector<8x128xf32>
    %738 = arith.negf %737 : vector<8x128xf32>
    %739 = math.exp %738 : vector<8x128xf32>
    %cst_247 = arith.constant 1.000000e+00 : f32
    %740 = vector.broadcast %cst_247 : f32 to vector<8x128xf32>
    %741 = arith.addf %740, %739 : vector<8x128xf32>
    %742 = arith.divf %740, %741 : vector<8x128xf32>
    %743 = vector.extract_strided_slice %736 {offsets = [0, 128], sizes = [8, 128], strides = [1, 1]} : vector<8x512xf32> to vector<8x128xf32>
    %744 = arith.negf %743 : vector<8x128xf32>
    %745 = math.exp %744 : vector<8x128xf32>
    %cst_248 = arith.constant 1.000000e+00 : f32
    %746 = vector.broadcast %cst_248 : f32 to vector<8x128xf32>
    %747 = arith.addf %746, %745 : vector<8x128xf32>
    %748 = arith.divf %746, %747 : vector<8x128xf32>
    %749 = vector.extract_strided_slice %736 {offsets = [0, 256], sizes = [8, 128], strides = [1, 1]} : vector<8x512xf32> to vector<8x128xf32>
    %750 = math.tanh %749 : vector<8x128xf32>
    %751 = vector.extract_strided_slice %736 {offsets = [0, 384], sizes = [8, 128], strides = [1, 1]} : vector<8x512xf32> to vector<8x128xf32>
    %752 = arith.negf %751 : vector<8x128xf32>
    %753 = math.exp %752 : vector<8x128xf32>
    %cst_249 = arith.constant 1.000000e+00 : f32
    %754 = vector.broadcast %cst_249 : f32 to vector<8x128xf32>
    %755 = arith.addf %754, %753 : vector<8x128xf32>
    %756 = arith.divf %754, %755 : vector<8x128xf32>
    %757 = arith.mulf %748, %731 : vector<8x128xf32>
    %758 = arith.mulf %742, %750 : vector<8x128xf32>
    %759 = arith.addf %757, %758 : vector<8x128xf32>
    %760 = math.tanh %759 : vector<8x128xf32>
    %761 = arith.mulf %756, %760 : vector<8x128xf32>
    %c16_250 = arith.constant 16 : index
    %c0_251 = arith.constant 0 : index
    %762 = vector.load %arg13[%c16_250, %c0_251] : memref<64x1024xf32, #tpu.memory_space<vmem>>, vector<8x512xf32>
    %cst_252 = arith.constant dense<0.000000e+00> : vector<8x512xf32>
    %763 = tpu.matmul %761, %619, %cst_252 {dimension_numbers = #tpu.dot_dimension_numbers<[1], [0], [0], [1], [0, 0, 1, 1], [], []>} : vector<8x128xf32>, vector<128x512xf32>, vector<8x512xf32> -> vector<8x512xf32>
    %764 = arith.addf %762, %763 : vector<8x512xf32>
    %765 = vector.extract_strided_slice %764 {offsets = [0, 0], sizes = [8, 128], strides = [1, 1]} : vector<8x512xf32> to vector<8x128xf32>
    %766 = arith.negf %765 : vector<8x128xf32>
    %767 = math.exp %766 : vector<8x128xf32>
    %cst_253 = arith.constant 1.000000e+00 : f32
    %768 = vector.broadcast %cst_253 : f32 to vector<8x128xf32>
    %769 = arith.addf %768, %767 : vector<8x128xf32>
    %770 = arith.divf %768, %769 : vector<8x128xf32>
    %771 = vector.extract_strided_slice %764 {offsets = [0, 128], sizes = [8, 128], strides = [1, 1]} : vector<8x512xf32> to vector<8x128xf32>
    %772 = arith.negf %771 : vector<8x128xf32>
    %773 = math.exp %772 : vector<8x128xf32>
    %cst_254 = arith.constant 1.000000e+00 : f32
    %774 = vector.broadcast %cst_254 : f32 to vector<8x128xf32>
    %775 = arith.addf %774, %773 : vector<8x128xf32>
    %776 = arith.divf %774, %775 : vector<8x128xf32>
    %777 = vector.extract_strided_slice %764 {offsets = [0, 256], sizes = [8, 128], strides = [1, 1]} : vector<8x512xf32> to vector<8x128xf32>
    %778 = math.tanh %777 : vector<8x128xf32>
    %779 = vector.extract_strided_slice %764 {offsets = [0, 384], sizes = [8, 128], strides = [1, 1]} : vector<8x512xf32> to vector<8x128xf32>
    %780 = arith.negf %779 : vector<8x128xf32>
    %781 = math.exp %780 : vector<8x128xf32>
    %cst_255 = arith.constant 1.000000e+00 : f32
    %782 = vector.broadcast %cst_255 : f32 to vector<8x128xf32>
    %783 = arith.addf %782, %781 : vector<8x128xf32>
    %784 = arith.divf %782, %783 : vector<8x128xf32>
    %785 = arith.mulf %776, %759 : vector<8x128xf32>
    %786 = arith.mulf %770, %778 : vector<8x128xf32>
    %787 = arith.addf %785, %786 : vector<8x128xf32>
    %788 = math.tanh %787 : vector<8x128xf32>
    %789 = arith.mulf %784, %788 : vector<8x128xf32>
    %c8_256 = arith.constant 8 : index
    %c0_257 = arith.constant 0 : index
    %790 = vector.load %arg13[%c8_256, %c0_257] : memref<64x1024xf32, #tpu.memory_space<vmem>>, vector<8x512xf32>
    %cst_258 = arith.constant dense<0.000000e+00> : vector<8x512xf32>
    %791 = tpu.matmul %789, %619, %cst_258 {dimension_numbers = #tpu.dot_dimension_numbers<[1], [0], [0], [1], [0, 0, 1, 1], [], []>} : vector<8x128xf32>, vector<128x512xf32>, vector<8x512xf32> -> vector<8x512xf32>
    %792 = arith.addf %790, %791 : vector<8x512xf32>
    %793 = vector.extract_strided_slice %792 {offsets = [0, 0], sizes = [8, 128], strides = [1, 1]} : vector<8x512xf32> to vector<8x128xf32>
    %794 = arith.negf %793 : vector<8x128xf32>
    %795 = math.exp %794 : vector<8x128xf32>
    %cst_259 = arith.constant 1.000000e+00 : f32
    %796 = vector.broadcast %cst_259 : f32 to vector<8x128xf32>
    %797 = arith.addf %796, %795 : vector<8x128xf32>
    %798 = arith.divf %796, %797 : vector<8x128xf32>
    %799 = vector.extract_strided_slice %792 {offsets = [0, 128], sizes = [8, 128], strides = [1, 1]} : vector<8x512xf32> to vector<8x128xf32>
    %800 = arith.negf %799 : vector<8x128xf32>
    %801 = math.exp %800 : vector<8x128xf32>
    %cst_260 = arith.constant 1.000000e+00 : f32
    %802 = vector.broadcast %cst_260 : f32 to vector<8x128xf32>
    %803 = arith.addf %802, %801 : vector<8x128xf32>
    %804 = arith.divf %802, %803 : vector<8x128xf32>
    %805 = vector.extract_strided_slice %792 {offsets = [0, 256], sizes = [8, 128], strides = [1, 1]} : vector<8x512xf32> to vector<8x128xf32>
    %806 = math.tanh %805 : vector<8x128xf32>
    %807 = vector.extract_strided_slice %792 {offsets = [0, 384], sizes = [8, 128], strides = [1, 1]} : vector<8x512xf32> to vector<8x128xf32>
    %808 = arith.negf %807 : vector<8x128xf32>
    %809 = math.exp %808 : vector<8x128xf32>
    %cst_261 = arith.constant 1.000000e+00 : f32
    %810 = vector.broadcast %cst_261 : f32 to vector<8x128xf32>
    %811 = arith.addf %810, %809 : vector<8x128xf32>
    %812 = arith.divf %810, %811 : vector<8x128xf32>
    %813 = arith.mulf %804, %787 : vector<8x128xf32>
    %814 = arith.mulf %798, %806 : vector<8x128xf32>
    %815 = arith.addf %813, %814 : vector<8x128xf32>
    %816 = math.tanh %815 : vector<8x128xf32>
    %817 = arith.mulf %812, %816 : vector<8x128xf32>
    %c0_262 = arith.constant 0 : index
    %c0_263 = arith.constant 0 : index
    %818 = vector.load %arg13[%c0_262, %c0_263] : memref<64x1024xf32, #tpu.memory_space<vmem>>, vector<8x512xf32>
    %cst_264 = arith.constant dense<0.000000e+00> : vector<8x512xf32>
    %819 = tpu.matmul %817, %619, %cst_264 {dimension_numbers = #tpu.dot_dimension_numbers<[1], [0], [0], [1], [0, 0, 1, 1], [], []>} : vector<8x128xf32>, vector<128x512xf32>, vector<8x512xf32> -> vector<8x512xf32>
    %820 = arith.addf %818, %819 : vector<8x512xf32>
    %821 = vector.extract_strided_slice %820 {offsets = [0, 0], sizes = [8, 128], strides = [1, 1]} : vector<8x512xf32> to vector<8x128xf32>
    %822 = arith.negf %821 : vector<8x128xf32>
    %823 = math.exp %822 : vector<8x128xf32>
    %cst_265 = arith.constant 1.000000e+00 : f32
    %824 = vector.broadcast %cst_265 : f32 to vector<8x128xf32>
    %825 = arith.addf %824, %823 : vector<8x128xf32>
    %826 = arith.divf %824, %825 : vector<8x128xf32>
    %827 = vector.extract_strided_slice %820 {offsets = [0, 128], sizes = [8, 128], strides = [1, 1]} : vector<8x512xf32> to vector<8x128xf32>
    %828 = arith.negf %827 : vector<8x128xf32>
    %829 = math.exp %828 : vector<8x128xf32>
    %cst_266 = arith.constant 1.000000e+00 : f32
    %830 = vector.broadcast %cst_266 : f32 to vector<8x128xf32>
    %831 = arith.addf %830, %829 : vector<8x128xf32>
    %832 = arith.divf %830, %831 : vector<8x128xf32>
    %833 = vector.extract_strided_slice %820 {offsets = [0, 256], sizes = [8, 128], strides = [1, 1]} : vector<8x512xf32> to vector<8x128xf32>
    %834 = math.tanh %833 : vector<8x128xf32>
    %835 = vector.extract_strided_slice %820 {offsets = [0, 384], sizes = [8, 128], strides = [1, 1]} : vector<8x512xf32> to vector<8x128xf32>
    %836 = arith.negf %835 : vector<8x128xf32>
    %837 = math.exp %836 : vector<8x128xf32>
    %cst_267 = arith.constant 1.000000e+00 : f32
    %838 = vector.broadcast %cst_267 : f32 to vector<8x128xf32>
    %839 = arith.addf %838, %837 : vector<8x128xf32>
    %840 = arith.divf %838, %839 : vector<8x128xf32>
    %841 = arith.mulf %832, %815 : vector<8x128xf32>
    %842 = arith.mulf %826, %834 : vector<8x128xf32>
    %843 = arith.addf %841, %842 : vector<8x128xf32>
    %844 = math.tanh %843 : vector<8x128xf32>
    %845 = arith.mulf %840, %844 : vector<8x128xf32>
    %c0_268 = arith.constant 0 : index
    %c0_269 = arith.constant 0 : index
    %846 = vector.load %arg10[%c0_268, %c0_269] : memref<8x128xf32, #tpu.memory_space<vmem>>, vector<8x128xf32>
    tpu.vector_store %arg10[%c0_268, %c0_269], %845 {strides = array<i32>} : memref<8x128xf32, #tpu.memory_space<vmem>>, vector<8x128xf32>,
    return
  }
}

</mosaic_0001>

<bundles_post_ra>
// kernel: tpu_custom_call.1
= control target key start
LH: loop header
LB: loop body
LE: loop exit
PB: predicated region body
PF: predicated region fallthrough
CT: control target
= control target key end

     0   :  { %15 = vsyncpa [#allocation6], 0  ;;  %s16721_s0 = inlined_call_operand.hbm [shape: f32[64,128], index: 0, kind: input, shape index: {}]   ;;  %s16722_s1 = inlined_call_operand.hbm [shape: f32[128,1024], index: 1, kind: input, shape index: {}]   ;;  %s16723_s2 = inlined_call_operand.hbm [shape: f32[128,1024], index: 2, kind: input, shape index: {}]   ;;  %s16724_s3 = inlined_call_operand.vmem [shape: f32[1,1024], index: 3, kind: input, shape index: {}]   ;;  %s16725_s4 = inlined_call_operand.hbm [shape: f32[256,1024], index: 4, kind: input, shape index: {}]   ;;  %s16726_s5 = inlined_call_operand.hbm [shape: f32[128,1024], index: 5, kind: input, shape index: {}]   ;;  %s16727_s6 = inlined_call_operand.vmem [shape: f32[1,1024], index: 6, kind: input, shape index: {}]   ;;  %s16728_s7 = inlined_call_operand.hbm [shape: f32[256,512], index: 7, kind: input, shape index: {}]   ;;  %s16729_s8 = inlined_call_operand.hbm [shape: f32[128,512], index: 8, kind: input, shape index: {}]   ;;  %s16730_s9 = inlined_call_operand.vmem [shape: f32[1,512], index: 9, kind: input, shape index: {}]   ;;  %s16731_s10 = inlined_call_operand.hbm [shape: f32[8,128], index: 10, kind: output, shape index: {}]  }
   0x1   :  { %16 = vsyncpa [#allocation9], 0 }
   0x2   :  { %17 = vsyncpa [#allocation12], 0 }
   0x3   :  { %18 = vsyncpa [#allocation15], 0 }
   0x4   :  { %19 = vsyncpa [#allocation7], 0  ;;  %s14019_s13 = smov [#allocation8]   ;;  %s13833_s17 = scalar_lea.hbm %s16722_s1, 16384 }
   0x5   :  { %s37_s14 = sshll.u32 %s14019_s13, 4  ;;  %p13834_p0 = scmp.ne.s32.totalorder %s16722_s1, %s13833_s17  ;;  %s38_s14 = int_to_ptr.vmem [resolvable:$true] %s37_s14 }
   0x6   :  { %p13837_p1 = scmp.lt.u32.totalorder %s13833_s17, %s16722_s1 }
   0x8   :  { %p13839_p2 = pnand %p13837_p1, %p13834_p0 }
   0xa   :  { %13842 = shalt.err (!%p13839_p2)
}
   0xb   :  { %s13843_s22 = scalar_lea.vmem %s38_s14, 16384  ;;  %p13848_p4 = scmp.lt.s32.totalorder %s38_s14, %s38_s14 }
   0xc   :  { %p13844_p3 = scmp.ne.s32.totalorder %s38_s14, %s13843_s22  ;;  %p13849_p5 = scmp.lt.s32.totalorder %s13843_s22, %s13843_s22 }
   0xe   :  { %p13850_p6 = por %p13849_p5, %p13848_p4 }
  0x10   :  { %p13851_p7 = pnand %p13850_p6, %p13844_p3 }
  0x12   :  { %13854 = shalt.err (!%p13851_p7)
}
  0x13   :  { %s14020_s23 = smov 1024   ;;  %s14021_s24 = smov 64  }
  0x14   :  { %43 = dma.hbm_to_vmem [thread:$0]  %s16722_s1, 16384, %s38_s14, [#allocation9], %s14020_s23, %s14020_s23, %s14021_s24  }
  0x15   :  { %s14022_s27 = smov [#allocation11]   ;;  %s14023_s29 = smov [#allocation14]  }
  0x16   :  { %s63_s28 = sshll.u32 %s14022_s27, 4  ;;  %s89_s30 = sshll.u32 %s14023_s29, 4  ;;  %s64_s28 = int_to_ptr.vmem [resolvable:$true] %s63_s28  ;;  %s90_s30 = int_to_ptr.vmem [resolvable:$true] %s89_s30 }
  0x17   :  { %s13855_s13 = scalar_lea.hbm %s16725_s4, 32768 }
  0x18   :  { %p13856_p8 = scmp.ne.s32.totalorder %s16725_s4, %s13855_s13  ;;  %p13859_p9 = scmp.lt.u32.totalorder %s13855_s13, %s16725_s4 }
  0x1a   :  { %p13861_p10 = pnand %p13859_p9, %p13856_p8 }
  0x1c   :  { %13864 = shalt.err (!%p13861_p10)
}
  0x1d   :  { %s13865_s1 = scalar_lea.vmem %s64_s28, 32768  ;;  %p13870_p12 = scmp.lt.s32.totalorder %s64_s28, %s64_s28 }
  0x1e   :  { %p13866_p11 = scmp.ne.s32.totalorder %s64_s28, %s13865_s1  ;;  %p13871_p13 = scmp.lt.s32.totalorder %s13865_s1, %s13865_s1 }
  0x20   :  { %p13872_p0 = por %p13871_p13, %p13870_p12 }
  0x22   :  { %p13873_p1 = pnand %p13872_p0, %p13866_p11 }
  0x24   :  { %13876 = shalt.err (!%p13873_p1)
}
  0x25   :  { %69 = dma.hbm_to_vmem [thread:$0]  %s16725_s4, 32768, %s64_s28, [#allocation12], %s14020_s23, %s14020_s23, %s14021_s24  }
  0x26   :  { %s13877_s22 = scalar_lea.hbm %s16728_s7, 16384 }
  0x27   :  { %p13878_p2 = scmp.ne.s32.totalorder %s16728_s7, %s13877_s22  ;;  %p13881_p3 = scmp.lt.u32.totalorder %s13877_s22, %s16728_s7 }
  0x29   :  { %p13883_p4 = pnand %p13881_p3, %p13878_p2 }
  0x2b   :  { %13886 = shalt.err (!%p13883_p4)
}
  0x2c   :  { %s13887_s11 = scalar_lea.vmem %s90_s30, 16384  ;;  %p13892_p6 = scmp.lt.s32.totalorder %s90_s30, %s90_s30 }
  0x2d   :  { %p13888_p5 = scmp.ne.s32.totalorder %s90_s30, %s13887_s11  ;;  %p13893_p7 = scmp.lt.s32.totalorder %s13887_s11, %s13887_s11 }
  0x2f   :  { %p13894_p8 = por %p13893_p7, %p13892_p6 }
  0x31   :  { %p13895_p9 = pnand %p13894_p8, %p13888_p5 }
  0x33   :  { %13898 = shalt.err (!%p13895_p9)
}
  0x34   :  { %s14024_s4 = smov 512   ;;  %s14025_s28 = smov 32  }
  0x35   :  { %95 = dma.hbm_to_vmem [thread:$0]  %s16728_s7, 16384, %s90_s30, [#allocation15], %s14024_s4, %s14024_s4, %s14025_s28  }
  0x36   :  { %s14026_s15 = smov [#allocation5]   ;;  %s13899_s1 = scalar_lea.hbm %s16721_s0, 1024 }
  0x37   :  { %s25_s16 = sshll.u32 %s14026_s15, 4  ;;  %p13900_p10 = scmp.ne.s32.totalorder %s16721_s0, %s13899_s1  ;;  %s26_s16 = int_to_ptr.vmem [resolvable:$true] %s25_s16 }
  0x38   :  { %p13903_p11 = scmp.lt.u32.totalorder %s13899_s1, %s16721_s0 }
  0x3a   :  { %p13905_p12 = pnand %p13903_p11, %p13900_p10 }
  0x3c   :  { %13908 = shalt.err (!%p13905_p12)
}
  0x3d   :  { %s13909_s22 = scalar_lea.vmem %s26_s16, 1024  ;;  %p13914_p0 = scmp.lt.s32.totalorder %s26_s16, %s26_s16 }
  0x3e   :  { %p13910_p13 = scmp.ne.s32.totalorder %s26_s16, %s13909_s22  ;;  %p13915_p1 = scmp.lt.s32.totalorder %s13909_s22, %s13909_s22 }
  0x40   :  { %p13916_p2 = por %p13915_p1, %p13914_p0 }
  0x42   :  { %p13917_p3 = pnand %p13916_p2, %p13910_p13 }
  0x44   :  { %13920 = shalt.err (!%p13917_p3)
}
  0x45   :  { %s14027_s7 = smov 128   ;;  %s14028_s30 = smov 8  }
  0x46   :  { %31 = dma.hbm_to_vmem [thread:$0]  %s16721_s0, 1024, %s26_s16, [#allocation6], %s14027_s7, %s14027_s7, %s14028_s30  }
  0x47   :  { %s14029_s27 = smov [#allocation10]   ;;  %s14030_s11 = smov [#allocation13]  }
  0x48   :  { %s49_s29 = sshll.u32 %s14029_s27, 4  ;;  %s75_s12 = sshll.u32 %s14030_s11, 4  ;;  %s50_s29 = int_to_ptr.vmem [resolvable:$true] %s49_s29  ;;  %s14146_s12 = int_to_ptr.vmem [resolvable:$true] %s75_s12 }
  0x49   :  { %s13921_s17 = scalar_lea.hbm %s16723_s2, 16384 }
  0x4a   :  { %p13922_p4 = scmp.ne.s32.totalorder %s16723_s2, %s13921_s17  ;;  %p13925_p5 = scmp.lt.u32.totalorder %s13921_s17, %s16723_s2 }
  0x4c   :  { %p13927_p6 = pnand %p13925_p5, %p13922_p4 }
  0x4e   :  { %13930 = shalt.err (!%p13927_p6)
}
  0x4f   :  { %s13931_s0 = scalar_lea.vmem %s50_s29, 16384  ;;  %p13936_p8 = scmp.lt.s32.totalorder %s50_s29, %s50_s29 }
  0x50   :  { %p13932_p7 = scmp.ne.s32.totalorder %s50_s29, %s13931_s0  ;;  %p13937_p9 = scmp.lt.s32.totalorder %s13931_s0, %s13931_s0 }
  0x52   :  { %p13938_p10 = por %p13937_p9, %p13936_p8 }
  0x54   :  { %p13939_p11 = pnand %p13938_p10, %p13932_p7 }
  0x56   :  { %13942 = shalt.err (!%p13939_p11)
}
  0x57   :  { %55 = dma.hbm_to_vmem [thread:$0]  %s16723_s2, 16384, %s50_s29, [#allocation9], %s14020_s23, %s14020_s23, %s14021_s24  }
  0x58   :  { %s13943_s7 = scalar_lea.hbm %s16726_s5, 16384 }
  0x59   :  { %p13944_p12 = scmp.ne.s32.totalorder %s16726_s5, %s13943_s7  ;;  %p13947_p13 = scmp.lt.u32.totalorder %s13943_s7, %s16726_s5 }
  0x5b   :  { %p13949_p0 = pnand %p13947_p13, %p13944_p12 }
  0x5d   :  { %13952 = shalt.err (!%p13949_p0)
}
  0x5e   :  { %s13953_s11 = scalar_lea.vmem %s14146_s12, 16384  ;;  %p13958_p2 = scmp.lt.s32.totalorder %s14146_s12, %s14146_s12 }
  0x5f   :  { %p13954_p1 = scmp.ne.s32.totalorder %s14146_s12, %s13953_s11  ;;  %p13959_p3 = scmp.lt.s32.totalorder %s13953_s11, %s13953_s11 }
  0x61   :  { %p13960_p4 = por %p13959_p3, %p13958_p2 }
  0x63   :  { %p13961_p5 = pnand %p13960_p4, %p13954_p1 }
  0x65   :  { %13964 = shalt.err (!%p13961_p5)
}
  0x66   :  { %81 = dma.hbm_to_vmem [thread:$0]  %s16726_s5, 16384, %s14146_s12, [#allocation12], %s14020_s23, %s14020_s23, %s14021_s24  }
  0x67   :  { %s14031_s13 = smov [#allocation16]   ;;  %s13965_s1 = scalar_lea.hbm %s16729_s8, 8192 }
  0x68   :  { %s101_s15 = sshll.u32 %s14031_s13, 4  ;;  %p13966_p6 = scmp.ne.s32.totalorder %s16729_s8, %s13965_s1  ;;  %s102_s15 = int_to_ptr.vmem [resolvable:$true] %s101_s15 }
  0x69   :  { %p13969_p7 = scmp.lt.u32.totalorder %s13965_s1, %s16729_s8 }
  0x6b   :  { %p13971_p8 = pnand %p13969_p7, %p13966_p6 }
  0x6d   :  { %13974 = shalt.err (!%p13971_p8)
}
  0x6e   :  { %s13975_s20 = scalar_lea.vmem %s102_s15, 8192  ;;  %p13980_p10 = scmp.lt.s32.totalorder %s102_s15, %s102_s15 }
  0x6f   :  { %p13976_p9 = scmp.ne.s32.totalorder %s102_s15, %s13975_s20  ;;  %p13981_p11 = scmp.lt.s32.totalorder %s13975_s20, %s13975_s20 }
  0x71   :  { %p13982_p12 = por %p13981_p11, %p13980_p10 }
  0x73   :  { %p13983_p13 = pnand %p13982_p12, %p13976_p9 }
  0x75   :  { %13986 = shalt.err (!%p13983_p13)
}
  0x76   :  { %107 = dma.hbm_to_vmem [thread:$0]  %s16729_s8, 8192, %s102_s15, [#allocation15], %s14024_s4, %s14024_s4, %s14025_s28  }
  0x77   :  { %14009 = dma.done.wait [#allocation6], 1024  }
  0x78   :  { %14010 = vsyncadd [#allocation6], 4294966272 }
  0x79   :  { %14011 = dma.done.wait [#allocation9], 32768  }
  0x7a   :  { %14012 = vsyncadd [#allocation9], 4294934528 }
  0x7b   :  { %14013 = dma.done.wait [#allocation12], 49152  }
  0x7c   :  { %14014 = vsyncadd [#allocation12], 4294918144 }
  0x7d   :  { %14015 = dma.done.wait [#allocation15], 24576  }
  0x7e   :  { %14016 = vsyncadd [#allocation15], 4294942720  ;;  %v16732_v0 = vmov 0.0   ;;  %v140_v1 = vld [vmem:[#allocation8 + $0x8] sm:$0xff]  ;;  %v142_v3 = vld [vmem:[#allocation8 + $0x18] sm:$0xff] }
  0x7f   :  { %373 = vmatprep.mubr.f32.mxu0 %v16732_v0  ;;  %486 = vmatprep.mubr.f32.mxu1 %v16732_v0  ;;  %v148_v2 = vld [vmem:[#allocation8 + $0x48] sm:$0xff]  ;;  %v150_v5 = vld [vmem:[#allocation8 + $0x58] sm:$0xff]  ;;  %v139_v6 = vld [vmem:[#allocation8] sm:$0xff] }
  0x80   :  { %v9786_v4 = vpack.c.bf16 %v148_v2, %v140_v1  ;;  %v147_v7 = vld [vmem:[#allocation8 + $0x40] sm:$0xff]  ;;  %v9818_v8 = vpack.c.bf16 %v150_v5, %v142_v3  ;;  %v141_v10 = vld [vmem:[#allocation8 + $0x10] sm:$0xff]  ;;  %v156_v12 = vld [vmem:[#allocation8 + $0x88] sm:$0xff] }
  0x81   :  { %v9788_v9 = vpack.c.bf16 %v147_v7, %v139_v6  ;;  %v149_v11 = vld [vmem:[#allocation8 + $0x50] sm:$0xff]  ;;  %v164_v14 = vld [vmem:[#allocation8 + $0xc8] sm:$0xff]  ;;  %v158_v15 = vld [vmem:[#allocation8 + $0x98] sm:$0xff] }
  0x82   :  { %9787 = vmatprep.subr.bf16.mxu0 %v9786_v4  ;;  %v9820_v13 = vpack.c.bf16 %v149_v11, %v141_v10  ;;  %v166_v16 = vld [vmem:[#allocation8 + $0xd8] sm:$0xff]  ;;  %9819 = vmatprep.subr.bf16.mxu1 %v9818_v8  ;;  %v9790_v17 = vpack.c.bf16 %v164_v14, %v156_v12  ;;  %v155_v19 = vld [vmem:[#allocation8 + $0x80] sm:$0xff]  ;;  %v157_v21 = vld [vmem:[#allocation8 + $0x90] sm:$0xff] }
  0x83   :  { %9789 = vmatpush1.bf16.msra.mxu0 %v9788_v9  ;;  %v9822_v18 = vpack.c.bf16 %v166_v16, %v158_v15  ;;  %v163_v20 = vld [vmem:[#allocation8 + $0xc0] sm:$0xff]  ;;  %v165_v23 = vld [vmem:[#allocation8 + $0xd0] sm:$0xff]  ;;  %v172_v24 = vld [vmem:[#allocation8 + $0x108] sm:$0xff] }
  0x84   :  { %9821 = vmatpush1.bf16.msra.mxu1 %v9820_v13  ;;  %v9792_v22 = vpack.c.bf16 %v163_v20, %v155_v19  ;;  %v180_v25 = vld [vmem:[#allocation8 + $0x148] sm:$0xff]  ;;  %9791 = vmatprep.subr.bf16.mxu0 %v9790_v17  ;;  %v9824_v26 = vpack.c.bf16 %v165_v23, %v157_v21  ;;  %v174_v28 = vld [vmem:[#allocation8 + $0x118] sm:$0xff]  ;;  %v171_v30 = vld [vmem:[#allocation8 + $0x100] sm:$0xff] }
  0x85   :  { %9823 = vmatprep.subr.bf16.mxu1 %v9822_v18  ;;  %v9794_v27 = vpack.c.bf16 %v180_v25, %v172_v24  ;;  %v182_v29 = vld [vmem:[#allocation8 + $0x158] sm:$0xff]  ;;  %v179_v32 = vld [vmem:[#allocation8 + $0x140] sm:$0xff]  ;;  %v173_v33 = vld [vmem:[#allocation8 + $0x110] sm:$0xff] }
  0x86   :  { %v9826_v31 = vpack.c.bf16 %v182_v29, %v174_v28  ;;  %v181_v34 = vld [vmem:[#allocation8 + $0x150] sm:$0xff]  ;;  %v9796_v35 = vpack.c.bf16 %v179_v32, %v171_v30  ;;  %v188_v36 = vld [vmem:[#allocation8 + $0x188] sm:$0xff]  ;;  %v190_v38 = vld [vmem:[#allocation8 + $0x198] sm:$0xff] }
  0x87   :  { %9793 = vmatpush1.bf16.msra.mxu0 %v9792_v22  ;;  %v196_v37 = vld [vmem:[#allocation8 + $0x1c8] sm:$0xff]  ;;  %v9828_v39 = vpack.c.bf16 %v181_v34, %v173_v33  ;;  %v198_v41 = vld [vmem:[#allocation8 + $0x1d8] sm:$0xff]  ;;  %v187_v42 = vld [vmem:[#allocation8 + $0x180] sm:$0xff] }
  0x88   :  { %9825 = vmatpush1.bf16.msra.mxu1 %v9824_v26  ;;  %9795 = vmatprep.subr.bf16.mxu0 %v9794_v27  ;;  %v9798_v40 = vpack.c.bf16 %v196_v37, %v188_v36  ;;  %v195_v43 = vld [vmem:[#allocation8 + $0x1c0] sm:$0xff]  ;;  %v9830_v44 = vpack.c.bf16 %v198_v41, %v190_v38  ;;  %v189_v45 = vld [vmem:[#allocation8 + $0x190] sm:$0xff]  ;;  %v204_v47 = vld [vmem:[#allocation8 + $0x208] sm:$0xff] }
  0x89   :  { %9827 = vmatprep.subr.bf16.mxu1 %v9826_v31  ;;  %v197_v46 = vld [vmem:[#allocation8 + $0x1d0] sm:$0xff]  ;;  %v212_v48 = vld [vmem:[#allocation8 + $0x248] sm:$0xff]  ;;  %v206_v49 = vld [vmem:[#allocation8 + $0x218] sm:$0xff]  ;;  %v9800_v51 = vpack.c.bf16 %v195_v43, %v187_v42 }
  0x8a   :  { %v214_v50 = vld [vmem:[#allocation8 + $0x258] sm:$0xff]  ;;  %v9832_v52 = vpack.c.bf16 %v197_v46, %v189_v45  ;;  %v9802_v53 = vpack.c.bf16 %v212_v48, %v204_v47  ;;  %v203_v54 = vld [vmem:[#allocation8 + $0x200] sm:$0xff]  ;;  %v205_v56 = vld [vmem:[#allocation8 + $0x210] sm:$0xff] }
  0x8b   :  { %9797 = vmatpush1.bf16.msra.mxu0 %v9796_v35  ;;  %v211_v55 = vld [vmem:[#allocation8 + $0x240] sm:$0xff]  ;;  %v9834_v57 = vpack.c.bf16 %v214_v50, %v206_v49  ;;  %v213_v58 = vld [vmem:[#allocation8 + $0x250] sm:$0xff]  ;;  %v220_v59 = vld [vmem:[#allocation8 + $0x288] sm:$0xff] }
  0x8c   :  { %9829 = vmatpush1.bf16.msra.mxu1 %v9828_v39  ;;  %9799 = vmatprep.subr.bf16.mxu0 %v9798_v40  ;;  %v228_v60 = vld [vmem:[#allocation8 + $0x2c8] sm:$0xff]  ;;  %v222_v61 = vld [vmem:[#allocation8 + $0x298] sm:$0xff]  ;;  %v9804_v63 = vpack.c.bf16 %v211_v55, %v203_v54  ;;  %v9836_v1 = vpack.c.bf16 %v213_v58, %v205_v56  ;;  %v219_v3 = vld [vmem:[#allocation8 + $0x280] sm:$0xff] }
  0x8d   :  { %9831 = vmatprep.subr.bf16.mxu1 %v9830_v44  ;;  %v230_v62 = vld [vmem:[#allocation8 + $0x2d8] sm:$0xff]  ;;  %v9806_v2 = vpack.c.bf16 %v228_v60, %v220_v59  ;;  %v227_v4 = vld [vmem:[#allocation8 + $0x2c0] sm:$0xff]  ;;  %v221_v5 = vld [vmem:[#allocation8 + $0x290] sm:$0xff] }
  0x8e   :  { %v9838_v6 = vpack.c.bf16 %v230_v62, %v222_v61  ;;  %v229_v7 = vld [vmem:[#allocation8 + $0x2d0] sm:$0xff]  ;;  %v236_v8 = vld [vmem:[#allocation8 + $0x308] sm:$0xff]  ;;  %v238_v10 = vld [vmem:[#allocation8 + $0x318] sm:$0xff]  ;;  %v9808_v12 = vpack.c.bf16 %v227_v4, %v219_v3 }
  0x8f   :  { %9801 = vmatpush1.bf16.msra.mxu0 %v9800_v51  ;;  %v244_v9 = vld [vmem:[#allocation8 + $0x348] sm:$0xff]  ;;  %v246_v11 = vld [vmem:[#allocation8 + $0x358] sm:$0xff]  ;;  %v9840_v13 = vpack.c.bf16 %v229_v7, %v221_v5  ;;  %v235_v15 = vld [vmem:[#allocation8 + $0x300] sm:$0xff] }
  0x90   :  { %9833 = vmatpush1.bf16.msra.mxu1 %v9832_v52  ;;  %9803 = vmatprep.subr.bf16.mxu0 %v9802_v53  ;;  %v9810_v14 = vpack.c.bf16 %v244_v9, %v236_v8  ;;  %v243_v16 = vld [vmem:[#allocation8 + $0x340] sm:$0xff]  ;;  %v237_v17 = vld [vmem:[#allocation8 + $0x310] sm:$0xff]  ;;  %v9842_v18 = vpack.c.bf16 %v246_v11, %v238_v10  ;;  %v252_v20 = vld [vmem:[#allocation8 + $0x388] sm:$0xff] }
  0x91   :  { %9835 = vmatprep.subr.bf16.mxu1 %v9834_v57  ;;  %v245_v19 = vld [vmem:[#allocation8 + $0x350] sm:$0xff]  ;;  %v260_v21 = vld [vmem:[#allocation8 + $0x3c8] sm:$0xff]  ;;  %v254_v22 = vld [vmem:[#allocation8 + $0x398] sm:$0xff]  ;;  %v9812_v24 = vpack.c.bf16 %v243_v16, %v235_v15 }
  0x92   :  { %v262_v23 = vld [vmem:[#allocation8 + $0x3d8] sm:$0xff]  ;;  %v9844_v25 = vpack.c.bf16 %v245_v19, %v237_v17  ;;  %v9814_v26 = vpack.c.bf16 %v260_v21, %v252_v20  ;;  %v251_v27 = vld [vmem:[#allocation8 + $0x380] sm:$0xff]  ;;  %v253_v29 = vld [vmem:[#allocation8 + $0x390] sm:$0xff] }
  0x93   :  { %9805 = vmatpush1.bf16.msra.mxu0 %v9804_v63  ;;  %v259_v28 = vld [vmem:[#allocation8 + $0x3c0] sm:$0xff]  ;;  %v9846_v30 = vpack.c.bf16 %v262_v23, %v254_v22  ;;  %v261_v31 = vld [vmem:[#allocation8 + $0x3d0] sm:$0xff]  ;;  %v144_v32 = vld [vmem:[#allocation8 + $0x28] sm:$0xff] }
  0x94   :  { %9837 = vmatpush1.bf16.msra.mxu1 %v9836_v1  ;;  %9807 = vmatprep.subr.bf16.mxu0 %v9806_v2  ;;  %v152_v33 = vld [vmem:[#allocation8 + $0x68] sm:$0xff]  ;;  %v146_v34 = vld [vmem:[#allocation8 + $0x38] sm:$0xff]  ;;  %v9816_v36 = vpack.c.bf16 %v259_v28, %v251_v27  ;;  %v9848_v37 = vpack.c.bf16 %v261_v31, %v253_v29  ;;  %v143_v39 = vld [vmem:[#allocation8 + $0x20] sm:$0xff] }
  0x95   :  { %9839 = vmatprep.subr.bf16.mxu1 %v9838_v6  ;;  %v154_v35 = vld [vmem:[#allocation8 + $0x78] sm:$0xff]  ;;  %v9850_v38 = vpack.c.bf16 %v152_v33, %v144_v32  ;;  %v151_v40 = vld [vmem:[#allocation8 + $0x60] sm:$0xff]  ;;  %v145_v42 = vld [vmem:[#allocation8 + $0x30] sm:$0xff] }
  0x96   :  { %v9882_v41 = vpack.c.bf16 %v154_v35, %v146_v34  ;;  %v153_v43 = vld [vmem:[#allocation8 + $0x70] sm:$0xff]  ;;  %v160_v44 = vld [vmem:[#allocation8 + $0xa8] sm:$0xff]  ;;  %v14200_v46 = vld [vmem:[#allocation5] sm:$0xff]  ;;  %v9852_v47 = vpack.c.bf16 %v151_v40, %v143_v39 }
  0x97   :  { %9809 = vmatpush1.bf16.msra.mxu0 %v9808_v12  ;;  %v168_v45 = vld [vmem:[#allocation8 + $0xe8] sm:$0xff]  ;;  %v162_v48 = vld [vmem:[#allocation8 + $0xb8] sm:$0xff]  ;;  %v9884_v50 = vpack.c.bf16 %v153_v43, %v145_v42  ;;  %v159_v51 = vld [vmem:[#allocation8 + $0xa0] sm:$0xff] }
  0x98   :  { %9841 = vmatpush1.bf16.msra.mxu1 %v9840_v13  ;;  %9811 = vmatprep.subr.bf16.mxu0 %v9810_v14  ;;  %v170_v49 = vld [vmem:[#allocation8 + $0xf8] sm:$0xff]  ;;  %v167_v52 = vld [vmem:[#allocation8 + $0xe0] sm:$0xff]  ;;  %v9854_v53 = vpack.c.bf16 %v168_v45, %v160_v44  ;;  %v161_v54 = vld [vmem:[#allocation8 + $0xb0] sm:$0xff] }
  0x99   :  { %9843 = vmatprep.subr.bf16.mxu1 %v9842_v18  ;;  %v169_v55 = vld [vmem:[#allocation8 + $0xf0] sm:$0xff]  ;;  %v9886_v56 = vpack.c.bf16 %v170_v49, %v162_v48  ;;  %v176_v57 = vld [vmem:[#allocation8 + $0x128] sm:$0xff]  ;;  %v9856_v60 = vpack.c.bf16 %v167_v52, %v159_v51  ;;  %v178_v61 = vld [vmem:[#allocation8 + $0x138] sm:$0xff] }
  0x9a   :  { %v184_v58 = vld [vmem:[#allocation8 + $0x168] sm:$0xff]  ;;  %v186_v62 = vld [vmem:[#allocation8 + $0x178] sm:$0xff]  ;;  %v9888_v63 = vpack.c.bf16 %v169_v55, %v161_v54  ;;  %v175_v1 = vld [vmem:[#allocation8 + $0x120] sm:$0xff] }
  0x9b   :  { %9813 = vmatpush1.bf16.msra.mxu0 %v9812_v24  ;;  %v14204_v59 = vld [vmem:[#allocation5 + $0x8] sm:$0xff]  ;;  %v183_v2 = vld [vmem:[#allocation8 + $0x160] sm:$0xff]  ;;  %v9858_v3 = vpack.c.bf16 %v184_v58, %v176_v57  ;;  %v177_v4 = vld [vmem:[#allocation8 + $0x130] sm:$0xff]  ;;  %v9890_v6 = vpack.c.bf16 %v186_v62, %v178_v61 }
  0x9c   :  { %9845 = vmatpush1.bf16.msra.mxu1 %v9844_v25  ;;  %9815 = vmatprep.subr.bf16.mxu0 %v9814_v26  ;;  %v185_v5 = vld [vmem:[#allocation8 + $0x170] sm:$0xff]  ;;  %v192_v7 = vld [vmem:[#allocation8 + $0x1a8] sm:$0xff]  ;;  %v9860_v10 = vpack.c.bf16 %v183_v2, %v175_v1  ;;  %v194_v11 = vld [vmem:[#allocation8 + $0x1b8] sm:$0xff] }
  0x9d   :  { %9847 = vmatprep.subr.bf16.mxu1 %v9846_v30  ;;  %v200_v8 = vld [vmem:[#allocation8 + $0x1e8] sm:$0xff]  ;;  %v14210_v9 = vld [vmem:[#allocation5 + $0x10] sm:$0xff]  ;;  %v202_v12 = vld [vmem:[#allocation8 + $0x1f8] sm:$0xff]  ;;  %v9892_v13 = vpack.c.bf16 %v185_v5, %v177_v4 }
  0x9e   :  { %v191_v14 = vld [vmem:[#allocation8 + $0x1a0] sm:$0xff]  ;;  %v9862_v16 = vpack.c.bf16 %v200_v8, %v192_v7  ;;  %v193_v17 = vld [vmem:[#allocation8 + $0x1b0] sm:$0xff]  ;;  %v9894_v19 = vpack.c.bf16 %v202_v12, %v194_v11  ;;  %v208_v20 = vld [vmem:[#allocation8 + $0x228] sm:$0xff] }
  0x9f   :  { %9817 = vmatpush1.bf16.msra.mxu0 %v9816_v36  ;;  %v199_v15 = vld [vmem:[#allocation8 + $0x1e0] sm:$0xff]  ;;  %v201_v18 = vld [vmem:[#allocation8 + $0x1f0] sm:$0xff]  ;;  %v216_v21 = vld [vmem:[#allocation8 + $0x268] sm:$0xff] }
  0xa0   :  { %9849 = vmatpush1.bf16.msra.mxu1 %v9848_v37  ;;  %9851 = vmatprep.subr.bf16.mxu0 %v9850_v38  ;;  %v14216_v22 = vld [vmem:[#allocation5 + $0x18] sm:$0xff]  ;;  %v9864_v23 = vpack.c.bf16 %v199_v15, %v191_v14  ;;  %v9896_v26 = vpack.c.bf16 %v201_v18, %v193_v17  ;;  %v207_v27 = vld [vmem:[#allocation8 + $0x220] sm:$0xff]  ;;  %v9866_v29 = vpack.c.bf16 %v216_v21, %v208_v20  ;;  %v209_v30 = vld [vmem:[#allocation8 + $0x230] sm:$0xff] }
  0xa1   :  { %9883 = vmatprep.subr.bf16.mxu1 %v9882_v41  ;;  %v210_v24 = vld [vmem:[#allocation8 + $0x238] sm:$0xff]  ;;  %v215_v28 = vld [vmem:[#allocation8 + $0x260] sm:$0xff]  ;;  %v217_v31 = vld [vmem:[#allocation8 + $0x270] sm:$0xff] }
  0xa2   :  { %374 = vmatmul.mubr.f32.vlgmr.msra.gmra.mrb[0].mxu0 %v14200_v46  ;;  %v218_v25 = vld [vmem:[#allocation8 + $0x278] sm:$0xff]  ;;  %v224_v33 = vld [vmem:[#allocation8 + $0x2a8] sm:$0xff]  ;;  %v14222_v35 = vld [vmem:[#allocation5 + $0x20] sm:$0xff]  ;;  %v9868_v36 = vpack.c.bf16 %v215_v28, %v207_v27  ;;  %v9900_v39 = vpack.c.bf16 %v217_v31, %v209_v30 }
  0xa3   :  { %487 = vmatmul.mubr.f32.vlgmr.msra.gmra.mrb[0].mxu1 %v14200_v46  ;;  %9853 = vmatpush1.bf16.msra.mxu0 %v9852_v47  ;;  %v9898_v32 = vpack.c.bf16 %v218_v25, %v210_v24  ;;  %v232_v34 = vld [vmem:[#allocation8 + $0x2e8] sm:$0xff]  ;;  %v226_v37 = vld [vmem:[#allocation8 + $0x2b8] sm:$0xff]  ;;  %v223_v40 = vld [vmem:[#allocation8 + $0x2a0] sm:$0xff] }
  0xa4   :  { %9885 = vmatpush1.bf16.msra.mxu1 %v9884_v50  ;;  %379 = vmatprep.mubr.f32.mxu0 %v16732_v0  ;;  %v234_v38 = vld [vmem:[#allocation8 + $0x2f8] sm:$0xff]  ;;  %v231_v41 = vld [vmem:[#allocation8 + $0x2e0] sm:$0xff]  ;;  %v9870_v42 = vpack.c.bf16 %v232_v34, %v224_v33  ;;  %v225_v43 = vld [vmem:[#allocation8 + $0x2b0] sm:$0xff] }
  0xa5   :  { %492 = vmatprep.mubr.f32.mxu1 %v16732_v0  ;;  %9855 = vmatprep.subr.bf16.mxu0 %v9854_v53  ;;  %v233_v44 = vld [vmem:[#allocation8 + $0x2f0] sm:$0xff]  ;;  %v9902_v45 = vpack.c.bf16 %v234_v38, %v226_v37  ;;  %v240_v47 = vld [vmem:[#allocation8 + $0x328] sm:$0xff]  ;;  %v9872_v50 = vpack.c.bf16 %v231_v41, %v223_v40  ;;  %v242_v51 = vld [vmem:[#allocation8 + $0x338] sm:$0xff] }
  0xa6   :  { %380 = vmatmul.mubr.f32.gmra.mrb[2].mxu0 %v14204_v59  ;;  %9887 = vmatprep.subr.bf16.mxu1 %v9886_v56  ;;  %v248_v48 = vld [vmem:[#allocation8 + $0x368] sm:$0xff]  ;;  %v250_v52 = vld [vmem:[#allocation8 + $0x378] sm:$0xff]  ;;  %v9904_v53 = vpack.c.bf16 %v233_v44, %v225_v43  ;;  %v239_v54 = vld [vmem:[#allocation8 + $0x320] sm:$0xff] }
  0xa7   :  { %493 = vmatmul.mubr.f32.gmra.mrb[2].mxu1 %v14204_v59  ;;  %9857 = vmatpush1.bf16.msra.mxu0 %v9856_v60  ;;  %v14228_v49 = vld [vmem:[#allocation5 + $0x28] sm:$0xff]  ;;  %v247_v55 = vld [vmem:[#allocation8 + $0x360] sm:$0xff]  ;;  %v9874_v56 = vpack.c.bf16 %v248_v48, %v240_v47  ;;  %v241_v57 = vld [vmem:[#allocation8 + $0x330] sm:$0xff]  ;;  %v9906_v60 = vpack.c.bf16 %v250_v52, %v242_v51 }
  0xa8   :  { %9889 = vmatpush1.bf16.msra.mxu1 %v9888_v63  ;;  %385 = vmatprep.mubr.f32.mxu0 %v16732_v0  ;;  %v249_v58 = vld [vmem:[#allocation8 + $0x370] sm:$0xff]  ;;  %v256_v61 = vld [vmem:[#allocation8 + $0x3a8] sm:$0xff]  ;;  %v9876_v1 = vpack.c.bf16 %v247_v55, %v239_v54  ;;  %v258_v2 = vld [vmem:[#allocation8 + $0x3b8] sm:$0xff] }
  0xa9   :  { %498 = vmatprep.mubr.f32.mxu1 %v16732_v0  ;;  %9859 = vmatprep.subr.bf16.mxu0 %v9858_v3  ;;  %v264_v62 = vld [vmem:[#allocation8 + $0x3e8] sm:$0xff]  ;;  %v14234_v63 = vld [vmem:[#allocation5 + $0x30] sm:$0xff]  ;;  %v266_v3 = vld [vmem:[#allocation8 + $0x3f8] sm:$0xff]  ;;  %v9908_v4 = vpack.c.bf16 %v249_v58, %v241_v57 }
  0xaa   :  { %386 = vmatmul.mubr.f32.gmra.mrb[4].mxu0 %v14210_v9  ;;  %9891 = vmatprep.subr.bf16.mxu1 %v9890_v6  ;;  %v255_v5 = vld [vmem:[#allocation8 + $0x3a0] sm:$0xff]  ;;  %v9878_v7 = vpack.c.bf16 %v264_v62, %v256_v61  ;;  %v257_v8 = vld [vmem:[#allocation8 + $0x3b0] sm:$0xff]  ;;  %v9910_v11 = vpack.c.bf16 %v266_v3, %v258_v2  ;;  %v826_v12 = vld [vmem:[#allocation10 + $0x8] sm:$0xff] }
  0xab   :  { %499 = vmatmul.mubr.f32.gmra.mrb[4].mxu1 %v14210_v9  ;;  %9861 = vmatpush1.bf16.msra.mxu0 %v9860_v10  ;;  %v263_v6 = vld [vmem:[#allocation8 + $0x3e0] sm:$0xff]  ;;  %v265_v10 = vld [vmem:[#allocation8 + $0x3f0] sm:$0xff]  ;;  %v14240_v14 = vld [vmem:[#allocation5 + $0x38] sm:$0xff] }
  0xac   :  { %9893 = vmatpush1.bf16.msra.mxu1 %v9892_v13  ;;  %391 = vmatprep.mubr.f32.mxu0 %v16732_v0  ;;  %v834_v13 = vld [vmem:[#allocation10 + $0x48] sm:$0xff]  ;;  %v9880_v15 = vpack.c.bf16 %v263_v6, %v255_v5  ;;  %v836_v17 = vld [vmem:[#allocation10 + $0x58] sm:$0xff]  ;;  %v9912_v18 = vpack.c.bf16 %v265_v10, %v257_v8  ;;  %v833_v20 = vld [vmem:[#allocation10 + $0x40] sm:$0xff] }
  0xad   :  { %504 = vmatprep.mubr.f32.mxu1 %v16732_v0  ;;  %9863 = vmatprep.subr.bf16.mxu0 %v9862_v16  ;;  %v828_v16 = vld [vmem:[#allocation10 + $0x18] sm:$0xff]  ;;  %v14244_v21 = vpack.c.bf16 %v834_v13, %v826_v12  ;;  %v835_v24 = vld [vmem:[#allocation10 + $0x50] sm:$0xff]  ;;  %v850_v27 = vld [vmem:[#allocation10 + $0xc8] sm:$0xff] }
  0xae   :  { %392 = vmatmul.mubr.f32.gmra.mrb[6].mxu0 %v14216_v22  ;;  %9895 = vmatprep.subr.bf16.mxu1 %v9894_v19  ;;  %v825_v19 = vld [vmem:[#allocation10] sm:$0xff]  ;;  %v14247_v25 = vpack.c.bf16 %v836_v17, %v828_v16  ;;  %v852_v30 = vld [vmem:[#allocation10 + $0xd8] sm:$0xff]  ;;  %v851_v37 = vld [vmem:[#allocation10 + $0xd0] sm:$0xff] }
  0xaf   :  { %505 = vmatmul.mubr.f32.gmra.mrb[6].mxu1 %v14216_v22  ;;  %9865 = vmatpush1.bf16.msra.mxu0 %v9864_v23  ;;  %v827_v23 = vld [vmem:[#allocation10 + $0x10] sm:$0xff]  ;;  %v14250_v28 = vpack.c.bf16 %v833_v20, %v825_v19  ;;  %v849_v33 = vld [vmem:[#allocation10 + $0xc0] sm:$0xff]  ;;  %v866_v40 = vld [vmem:[#allocation10 + $0x148] sm:$0xff] }
  0xb0   :  { %9897 = vmatpush1.bf16.msra.mxu1 %v9896_v26  ;;  %397 = vmatprep.mubr.f32.mxu0 %v16732_v0  ;;  %v842_v26 = vld [vmem:[#allocation10 + $0x88] sm:$0xff]  ;;  %v14253_v31 = vpack.c.bf16 %v835_v24, %v827_v23  ;;  %v868_v43 = vld [vmem:[#allocation10 + $0x158] sm:$0xff]  ;;  %v865_v47 = vld [vmem:[#allocation10 + $0x140] sm:$0xff] }
  0xb1   :  { %510 = vmatprep.mubr.f32.mxu1 %v16732_v0  ;;  %9867 = vmatprep.subr.bf16.mxu0 %v9866_v29  ;;  %v844_v29 = vld [vmem:[#allocation10 + $0x98] sm:$0xff]  ;;  %v14257_v34 = vpack.c.bf16 %v850_v27, %v842_v26  ;;  %v874_v52 = vld [vmem:[#allocation10 + $0x188] sm:$0xff]  ;;  %v873_v58 = vld [vmem:[#allocation10 + $0x180] sm:$0xff] }
  0xb2   :  { %398 = vmatmul.mubr.f32.gmra.mrb[8].mxu0 %v14222_v35  ;;  %9899 = vmatprep.subr.bf16.mxu1 %v9898_v32  ;;  %v841_v32 = vld [vmem:[#allocation10 + $0x80] sm:$0xff]  ;;  %v14261_v38 = vpack.c.bf16 %v852_v30, %v844_v29  ;;  %v876_v55 = vld [vmem:[#allocation10 + $0x198] sm:$0xff]  ;;  %v883_v62 = vld [vmem:[#allocation10 + $0x1d0] sm:$0xff] }
  0xb3   :  { %511 = vmatmul.mubr.f32.gmra.mrb[8].mxu1 %v14222_v35  ;;  %9869 = vmatpush1.bf16.msra.mxu0 %v9868_v36  ;;  %v843_v36 = vld [vmem:[#allocation10 + $0x90] sm:$0xff]  ;;  %v14265_v41 = vpack.c.bf16 %v849_v33, %v841_v32  ;;  %v890_v2 = vld [vmem:[#allocation10 + $0x208] sm:$0xff]  ;;  %v892_v5 = vld [vmem:[#allocation10 + $0x218] sm:$0xff] }
  0xb4   :  { %9901 = vmatpush1.bf16.msra.mxu1 %v9900_v39  ;;  %403 = vmatprep.mubr.f32.mxu0 %v16732_v0  ;;  %v858_v39 = vld [vmem:[#allocation10 + $0x108] sm:$0xff]  ;;  %v14269_v44 = vpack.c.bf16 %v851_v37, %v843_v36  ;;  %v900_v6 = vld [vmem:[#allocation10 + $0x258] sm:$0xff]  ;;  %v889_v8 = vld [vmem:[#allocation10 + $0x200] sm:$0xff] }
  0xb5   :  { %516 = vmatprep.mubr.f32.mxu1 %v16732_v0  ;;  %9871 = vmatprep.subr.bf16.mxu0 %v9870_v42  ;;  %v860_v42 = vld [vmem:[#allocation10 + $0x118] sm:$0xff]  ;;  %v14273_v48 = vpack.c.bf16 %v866_v40, %v858_v39  ;;  %v898_v3 = vld [vmem:[#allocation10 + $0x248] sm:$0xff]  ;;  %v897_v10 = vld [vmem:[#allocation10 + $0x240] sm:$0xff]  ;;  %v14309_v13 = vpack.c.bf16 %v900_v6, %v892_v5 }
  0xb6   :  { %404 = vmatmul.mubr.f32.gmra.mrb[10].mxu0 %v14228_v49  ;;  %9903 = vmatprep.subr.bf16.mxu1 %v9902_v45  ;;  %v857_v45 = vld [vmem:[#allocation10 + $0x100] sm:$0xff]  ;;  %v14277_v51 = vpack.c.bf16 %v868_v43, %v860_v42  ;;  %v899_v12 = vld [vmem:[#allocation10 + $0x250] sm:$0xff]  ;;  %v914_v16 = vld [vmem:[#allocation10 + $0x2c8] sm:$0xff]  ;;  %v14313_v17 = vpack.c.bf16 %v897_v10, %v889_v8 }
  0xb7   :  { %517 = vmatmul.mubr.f32.gmra.mrb[10].mxu1 %v14228_v49  ;;  %9873 = vmatpush1.bf16.msra.mxu0 %v9872_v50  ;;  %16960 = vst [vmem:[#allocation23_spill] sm:$0xff] %v14273_v48  ;;  %v867_v50 = vld [vmem:[#allocation10 + $0x150] sm:$0xff]  ;;  %v14281_v54 = vpack.c.bf16 %v865_v47, %v857_v45  ;;  %16969 = vst [vmem:[#allocation32_spill] sm:$0xff] %v14309_v13  ;;  %v916_v19 = vld [vmem:[#allocation10 + $0x2d8] sm:$0xff] }
  0xb8   :  { %9905 = vmatpush1.bf16.msra.mxu1 %v9904_v53  ;;  %409 = vmatprep.mubr.f32.mxu0 %v16732_v0  ;;  %16961 = vst [vmem:[#allocation24_spill] sm:$0xff] %v14277_v51  ;;  %v882_v53 = vld [vmem:[#allocation10 + $0x1c8] sm:$0xff]  ;;  %16970 = vst [vmem:[#allocation33_spill] sm:$0xff] %v14313_v17  ;;  %v905_v23 = vld [vmem:[#allocation10 + $0x280] sm:$0xff] }
  0xb9   :  { %522 = vmatprep.mubr.f32.mxu1 %v16732_v0  ;;  %9875 = vmatprep.subr.bf16.mxu0 %v9874_v56  ;;  %16962 = vst [vmem:[#allocation25_spill] sm:$0xff] %v14281_v54  ;;  %v884_v56 = vld [vmem:[#allocation10 + $0x1d8] sm:$0xff]  ;;  %v14289_v61 = vpack.c.bf16 %v882_v53, %v874_v52  ;;  %v913_v24 = vld [vmem:[#allocation10 + $0x2c0] sm:$0xff]  ;;  %v915_v27 = vld [vmem:[#allocation10 + $0x2d0] sm:$0xff] }
  0xba   :  { %410 = vmatmul.mubr.f32.gmra.mrb[12].mxu0 %v14234_v63  ;;  %9907 = vmatprep.subr.bf16.mxu1 %v9906_v60  ;;  %v881_v60 = vld [vmem:[#allocation10 + $0x1c0] sm:$0xff]  ;;  %v922_v30 = vld [vmem:[#allocation10 + $0x308] sm:$0xff]  ;;  %v14329_v33 = vpack.c.bf16 %v913_v24, %v905_v23  ;;  %v924_v36 = vld [vmem:[#allocation10 + $0x318] sm:$0xff] }
  0xbb   :  { %523 = vmatmul.mubr.f32.gmra.mrb[12].mxu1 %v14234_v63  ;;  %9877 = vmatpush1.bf16.msra.mxu0 %v9876_v1  ;;  %16964 = vst [vmem:[#allocation27_spill] sm:$0xff] %v14289_v61  ;;  %v14293_v1 = vpack.c.bf16 %v884_v56, %v876_v55  ;;  %v930_v32 = vld [vmem:[#allocation10 + $0x348] sm:$0xff]  ;;  %v932_v37 = vld [vmem:[#allocation10 + $0x358] sm:$0xff]  ;;  %v921_v40 = vld [vmem:[#allocation10 + $0x300] sm:$0xff] }
  0xbc   :  { %9909 = vmatpush1.bf16.msra.mxu1 %v9908_v4  ;;  %415 = vmatprep.mubr.f32.mxu0 %v16732_v0  ;;  %v14297_v4 = vpack.c.bf16 %v881_v60, %v873_v58  ;;  %16974 = vst [vmem:[#allocation37_spill] sm:$0xff] %v14329_v33  ;;  %v929_v42 = vld [vmem:[#allocation10 + $0x340] sm:$0xff]  ;;  %v14337_v43 = vpack.c.bf16 %v930_v32, %v922_v30  ;;  %v931_v45 = vld [vmem:[#allocation10 + $0x350] sm:$0xff]  ;;  %v940_v53 = vld [vmem:[#allocation10 + $0x398] sm:$0xff] }
  0xbd   :  { %528 = vmatprep.mubr.f32.mxu1 %v16732_v0  ;;  %9879 = vmatprep.subr.bf16.mxu0 %v9878_v7  ;;  %16965 = vst [vmem:[#allocation28_spill] sm:$0xff] %v14293_v1  ;;  %v14341_v47 = vpack.c.bf16 %v932_v37, %v924_v36  ;;  %v14345_v52 = vpack.c.bf16 %v929_v42, %v921_v40  ;;  %v948_v55 = vld [vmem:[#allocation10 + $0x3d8] sm:$0xff]  ;;  %v937_v58 = vld [vmem:[#allocation10 + $0x380] sm:$0xff]  ;;  %v838_v5 = vld [vmem:[#allocation10 + $0x68] sm:$0xff] }
  0xbe   :  { %416 = vmatmul.mubr.f32.gmra.mrb[14].mxu0 %v14240_v14  ;;  %9911 = vmatprep.subr.bf16.mxu1 %v9910_v11  ;;  %16966 = vst [vmem:[#allocation29_spill] sm:$0xff] %v14297_v4  ;;  %v14305_v11 = vpack.c.bf16 %v898_v3, %v890_v2  ;;  %16976 = vst [vmem:[#allocation39_spill] sm:$0xff] %v14337_v43  ;;  %v945_v60 = vld [vmem:[#allocation10 + $0x3c0] sm:$0xff]  ;;  %v14357_v2 = vpack.c.bf16 %v948_v55, %v940_v53  ;;  %v830_v3 = vld [vmem:[#allocation10 + $0x28] sm:$0xff] }
  0xbf   :  { %529 = vmatmul.mubr.f32.gmra.mrb[14].mxu1 %v14240_v14  ;;  %9881 = vmatpush1.bf16.msra.mxu0 %v9880_v15  ;;  %v906_v15 = vld [vmem:[#allocation10 + $0x288] sm:$0xff]  ;;  %16977 = vst [vmem:[#allocation40_spill] sm:$0xff] %v14341_v47  ;;  %16978 = vst [vmem:[#allocation41_spill] sm:$0xff] %v14345_v52  ;;  %v14361_v6 = vpack.c.bf16 %v945_v60, %v937_v58  ;;  %v832_v8 = vld [vmem:[#allocation10 + $0x38] sm:$0xff] }
  0xc0   :  { %9913 = vmatpush1.bf16.msra.mxu1 %v9912_v18  ;;  %599 = vmatprep.mubr.f32.mxu0 %v16732_v0  ;;  %16968 = vst [vmem:[#allocation31_spill] sm:$0xff] %v14305_v11  ;;  %v908_v18 = vld [vmem:[#allocation10 + $0x298] sm:$0xff]  ;;  %v14321_v26 = vpack.c.bf16 %v914_v16, %v906_v15  ;;  %16981 = vst [vmem:[#allocation44_spill] sm:$0xff] %v14357_v2  ;;  %v837_v15 = vld [vmem:[#allocation10 + $0x60] sm:$0xff] }
  0xc1   :  { %712 = vmatprep.mubr.f32.mxu1 %v16732_v0  ;;  %9915 = vmatprep.subr.bf16.mxu0 %v14244_v21  ;;  %v14325_v29 = vpack.c.bf16 %v916_v19, %v908_v18  ;;  %16982 = vst [vmem:[#allocation45_spill] sm:$0xff] %v14361_v6  ;;  %v840_v10 = vld [vmem:[#allocation10 + $0x78] sm:$0xff]  ;;  %v831_v16 = vld [vmem:[#allocation10 + $0x30] sm:$0xff]  ;;  %v846_v19 = vld [vmem:[#allocation10 + $0xa8] sm:$0xff] }
  0xc2   :  { %600 = vmatmul.mubr.f32.vlgmr.msra.gmra.mrb[16].mxu0 %v14200_v46  ;;  %9947 = vmatprep.subr.bf16.mxu1 %v14247_v25  ;;  %16972 = vst [vmem:[#allocation35_spill] sm:$0xff] %v14321_v26  ;;  %v839_v18 = vld [vmem:[#allocation10 + $0x70] sm:$0xff]  ;;  %v854_v23 = vld [vmem:[#allocation10 + $0xe8] sm:$0xff]  ;;  %v14373_v24 = vpack.c.bf16 %v840_v10, %v832_v8  ;;  %v845_v37 = vld [vmem:[#allocation10 + $0xa0] sm:$0xff] }
  0xc3   :  { %713 = vmatmul.mubr.f32.vlgmr.msra.gmra.mrb[16].mxu1 %v14200_v46  ;;  %9917 = vmatpush1.bf16.msra.mxu0 %v14250_v28  ;;  %v859_v46 = vld [vmem:[#allocation10 + $0x110] sm:$0xff]  ;;  %16973 = vst [vmem:[#allocation36_spill] sm:$0xff] %v14325_v29  ;;  %v14381_v32 = vpack.c.bf16 %v839_v18, %v831_v16  ;;  %v14383_v36 = vpack.c.bf16 %v854_v23, %v846_v19  ;;  %v853_v40 = vld [vmem:[#allocation10 + $0xe0] sm:$0xff]  ;;  %v872_v53 = vld [vmem:[#allocation10 + $0x178] sm:$0xff] }
  0xc4   :  { %9949 = vmatpush1.bf16.msra.mxu1 %v14253_v31  ;;  %605 = vmatprep.mubr.f32.mxu0 %v16732_v0  ;;  %v14285_v57 = vpack.c.bf16 %v867_v50, %v859_v46  ;;  %v938_v46 = vld [vmem:[#allocation10 + $0x388] sm:$0xff]  ;;  %16985 = vst [vmem:[#allocation48_spill] sm:$0xff] %v14373_v24  ;;  %v847_v42 = vld [vmem:[#allocation10 + $0xb0] sm:$0xff]  ;;  %v14393_v55 = vpack.c.bf16 %v853_v40, %v845_v37  ;;  %v888_v16 = vld [vmem:[#allocation10 + $0x1f8] sm:$0xff] }
  0xc5   :  { %718 = vmatprep.mubr.f32.mxu1 %v16732_v0  ;;  %9919 = vmatprep.subr.bf16.mxu0 %v14257_v34  ;;  %v946_v50 = vld [vmem:[#allocation10 + $0x3c8] sm:$0xff]  ;;  %v871_v8 = vld [vmem:[#allocation10 + $0x170] sm:$0xff] }
  0xc6   :  { %606 = vmatmul.mubr.f32.gmra.mrb[18].mxu0 %v14204_v59  ;;  %9951 = vmatprep.subr.bf16.mxu1 %v14261_v38  ;;  %16963 = vst [vmem:[#allocation26_spill] sm:$0xff] %v14285_v57  ;;  %v878_v10 = vld [vmem:[#allocation10 + $0x1a8] sm:$0xff]  ;;  %v879_v37 = vld [vmem:[#allocation10 + $0x1b0] sm:$0xff] }
  0xc7   :  { %719 = vmatmul.mubr.f32.gmra.mrb[18].mxu1 %v14204_v59  ;;  %9921 = vmatpush1.bf16.msra.mxu0 %v14265_v41  ;;  %v875_v59 = vld [vmem:[#allocation10 + $0x190] sm:$0xff] }
  0xc8   :  { %9953 = vmatpush1.bf16.msra.mxu1 %v14269_v44  ;;  %611 = vmatprep.mubr.f32.mxu0 %v16732_v0  ;;  %v14301_v7 = vpack.c.bf16 %v883_v62, %v875_v59  ;;  %v14353_v59 = vpack.c.bf16 %v946_v50, %v938_v46  ;;  %v947_v62 = vld [vmem:[#allocation10 + $0x3d0] sm:$0xff]  ;;  %v870_v46 = vld [vmem:[#allocation10 + $0x168] sm:$0xff]  ;;  %v864_v50 = vld [vmem:[#allocation10 + $0x138] sm:$0xff] }
  0xc9   :  { %724 = vmatprep.mubr.f32.mxu1 %v16732_v0  ;;  %9923 = vmatprep.subr.bf16.mxu0 %v14273_v48 }
  0xca   :  { %612 = vmatmul.mubr.f32.gmra.mrb[20].mxu0 %v14210_v9  ;;  %9955 = vmatprep.subr.bf16.mxu1 %v14277_v51  ;;  %16967 = vst [vmem:[#allocation30_spill] sm:$0xff] %v14301_v7  ;;  %16980 = vst [vmem:[#allocation43_spill] sm:$0xff] %v14353_v59 }
  0xcb   :  { %725 = vmatmul.mubr.f32.gmra.mrb[20].mxu1 %v14210_v9  ;;  %9925 = vmatpush1.bf16.msra.mxu0 %v14281_v54  ;;  %v891_v9 = vld [vmem:[#allocation10 + $0x210] sm:$0xff] }
  0xcc   :  { %9957 = vmatpush1.bf16.msra.mxu1 %v14285_v57  ;;  %617 = vmatprep.mubr.f32.mxu0 %v16732_v0  ;;  %v14317_v20 = vpack.c.bf16 %v899_v12, %v891_v9  ;;  %v829_v12 = vld [vmem:[#allocation10 + $0x20] sm:$0xff] }
  0xcd   :  { %730 = vmatprep.mubr.f32.mxu1 %v16732_v0  ;;  %9927 = vmatprep.subr.bf16.mxu0 %v14289_v61  ;;  %v14377_v30 = vpack.c.bf16 %v837_v15, %v829_v12  ;;  %v886_v12 = vld [vmem:[#allocation10 + $0x1e8] sm:$0xff]  ;;  %v880_v15 = vld [vmem:[#allocation10 + $0x1b8] sm:$0xff] }
  0xce   :  { %618 = vmatmul.mubr.f32.gmra.mrb[22].mxu0 %v14216_v22  ;;  %9959 = vmatprep.subr.bf16.mxu1 %v14293_v1  ;;  %16971 = vst [vmem:[#allocation34_spill] sm:$0xff] %v14317_v20  ;;  %v14415_v23 = vpack.c.bf16 %v886_v12, %v878_v10  ;;  %v14418_v40 = vpack.c.bf16 %v888_v16, %v880_v15  ;;  %v895_v10 = vld [vmem:[#allocation10 + $0x230] sm:$0xff]  ;;  %v910_v16 = vld [vmem:[#allocation10 + $0x2a8] sm:$0xff] }
  0xcf   :  { %731 = vmatmul.mubr.f32.gmra.mrb[22].mxu1 %v14216_v22  ;;  %9929 = vmatpush1.bf16.msra.mxu0 %v14297_v4  ;;  %v907_v22 = vld [vmem:[#allocation10 + $0x290] sm:$0xff] }
  0xd0   :  { %9961 = vmatpush1.bf16.msra.mxu1 %v14301_v7  ;;  %623 = vmatprep.mubr.f32.mxu0 %v16732_v0  ;;  %v14333_v39 = vpack.c.bf16 %v915_v27, %v907_v22  ;;  %v848_v22 = vld [vmem:[#allocation10 + $0xb8] sm:$0xff]  ;;  %16987 = vst [vmem:[#allocation50_spill] sm:$0xff] %v14415_v23  ;;  %16988 = vst [vmem:[#allocation51_spill] sm:$0xff] %v14418_v40  ;;  %v903_v15 = vld [vmem:[#allocation10 + $0x270] sm:$0xff] }
  0xd1   :  { %736 = vmatprep.mubr.f32.mxu1 %v16732_v0  ;;  %9931 = vmatprep.subr.bf16.mxu0 %v14305_v11  ;;  %v856_v27 = vld [vmem:[#allocation10 + $0xf8] sm:$0xff] }
  0xd2   :  { %624 = vmatmul.mubr.f32.gmra.mrb[24].mxu0 %v14222_v35  ;;  %9963 = vmatprep.subr.bf16.mxu1 %v14309_v13  ;;  %16975 = vst [vmem:[#allocation38_spill] sm:$0xff] %v14333_v39 }
  0xd3   :  { %737 = vmatmul.mubr.f32.gmra.mrb[24].mxu1 %v14222_v35  ;;  %9933 = vmatpush1.bf16.msra.mxu0 %v14313_v17  ;;  %v923_v35 = vld [vmem:[#allocation10 + $0x310] sm:$0xff] }
  0xd4   :  { %9965 = vmatpush1.bf16.msra.mxu1 %v14317_v20  ;;  %629 = vmatprep.mubr.f32.mxu0 %v16732_v0  ;;  %v14349_v56 = vpack.c.bf16 %v931_v45, %v923_v35  ;;  %v855_v35 = vld [vmem:[#allocation10 + $0xf0] sm:$0xff]  ;;  %v862_v45 = vld [vmem:[#allocation10 + $0x128] sm:$0xff] }
  0xd5   :  { %742 = vmatprep.mubr.f32.mxu1 %v16732_v0  ;;  %9935 = vmatprep.subr.bf16.mxu0 %v14321_v26  ;;  %v14397_v58 = vpack.c.bf16 %v855_v35, %v847_v42  ;;  %v14399_v60 = vpack.c.bf16 %v870_v46, %v862_v45  ;;  %v887_v42 = vld [vmem:[#allocation10 + $0x1f0] sm:$0xff]  ;;  %v894_v35 = vld [vmem:[#allocation10 + $0x228] sm:$0xff]  ;;  %v896_v46 = vld [vmem:[#allocation10 + $0x238] sm:$0xff] }
  0xd6   :  { %630 = vmatmul.mubr.f32.gmra.mrb[26].mxu0 %v14228_v49  ;;  %9967 = vmatprep.subr.bf16.mxu1 %v14325_v29  ;;  %16979 = vst [vmem:[#allocation42_spill] sm:$0xff] %v14349_v56  ;;  %v902_v45 = vld [vmem:[#allocation10 + $0x268] sm:$0xff] }
  0xd7   :  { %743 = vmatmul.mubr.f32.gmra.mrb[26].mxu1 %v14228_v49  ;;  %9937 = vmatpush1.bf16.msra.mxu0 %v14329_v33  ;;  %v939_v49 = vld [vmem:[#allocation10 + $0x390] sm:$0xff] }
  0xd8   :  { %9969 = vmatpush1.bf16.msra.mxu1 %v14333_v39  ;;  %635 = vmatprep.mubr.f32.mxu0 %v16732_v0  ;;  %v14365_v9 = vpack.c.bf16 %v947_v62, %v939_v49  ;;  %v861_v49 = vld [vmem:[#allocation10 + $0x120] sm:$0xff] }
  0xd9   :  { %748 = vmatprep.mubr.f32.mxu1 %v16732_v0  ;;  %9939 = vmatprep.subr.bf16.mxu0 %v14337_v43  ;;  %v869_v62 = vld [vmem:[#allocation10 + $0x160] sm:$0xff] }
  0xda   :  { %636 = vmatmul.mubr.f32.gmra.mrb[28].mxu0 %v14234_v63  ;;  %9971 = vmatprep.subr.bf16.mxu1 %v14341_v47  ;;  %16983 = vst [vmem:[#allocation46_spill] sm:$0xff] %v14365_v9  ;;  %v14408_v18 = vpack.c.bf16 %v869_v62, %v861_v49  ;;  %v14427_v49 = vpack.c.bf16 %v887_v42, %v879_v37 }
  0xdb   :  { %749 = vmatmul.mubr.f32.gmra.mrb[28].mxu1 %v14234_v63  ;;  %9941 = vmatpush1.bf16.msra.mxu0 %v14345_v52  ;;  %v14369_v63 = vpack.c.bf16 %v838_v5, %v830_v3  ;;  %v863_v3 = vld [vmem:[#allocation10 + $0x130] sm:$0xff]  ;;  %v14402_v5 = vpack.c.bf16 %v872_v53, %v864_v50  ;;  %v904_v50 = vld [vmem:[#allocation10 + $0x278] sm:$0xff]  ;;  %v14429_v62 = vpack.c.bf16 %v902_v45, %v894_v35  ;;  %v909_v35 = vld [vmem:[#allocation10 + $0x2a0] sm:$0xff] }
  0xdc   :  { %9973 = vmatpush1.bf16.msra.mxu1 %v14349_v56  ;;  %641 = vmatprep.mubr.f32.mxu0 %v16732_v0  ;;  %v14413_v19 = vpack.c.bf16 %v871_v8, %v863_v3  ;;  %16990 = vst [vmem:[#allocation53_spill] sm:$0xff] %v14427_v49  ;;  %v893_v3 = vld [vmem:[#allocation10 + $0x220] sm:$0xff]  ;;  %v14432_v12 = vpack.c.bf16 %v904_v50, %v896_v46  ;;  %v911_v46 = vld [vmem:[#allocation10 + $0x2b0] sm:$0xff] }
  0xdd   :  { %754 = vmatprep.mubr.f32.mxu1 %v16732_v0  ;;  %9943 = vmatprep.subr.bf16.mxu0 %v14353_v59  ;;  %16984 = vst [vmem:[#allocation47_spill] sm:$0xff] %v14369_v63  ;;  %16991 = vst [vmem:[#allocation54_spill] sm:$0xff] %v14429_v62  ;;  %v901_v8 = vld [vmem:[#allocation10 + $0x260] sm:$0xff]  ;;  %v14439_v37 = vpack.c.bf16 %v903_v15, %v895_v10 }
  0xde   :  { %642 = vmatmul.mubr.f32.gmra.mrb[30].mxu0 %v14240_v14  ;;  %9975 = vmatprep.subr.bf16.mxu1 %v14357_v2  ;;  %16986 = vst [vmem:[#allocation49_spill] sm:$0xff] %v14413_v19  ;;  %16992 = vst [vmem:[#allocation55_spill] sm:$0xff] %v14432_v12  ;;  %v917_v45 = vld [vmem:[#allocation10 + $0x2e0] sm:$0xff] }
  0xdf   :  { %755 = vmatmul.mubr.f32.gmra.mrb[30].mxu1 %v14240_v14  ;;  %9945 = vmatpush1.bf16.msra.mxu0 %v14361_v6  ;;  %v14387_v14 = vpack.c.bf16 %v856_v27, %v848_v22  ;;  %v877_v22 = vld [vmem:[#allocation10 + $0x1a0] sm:$0xff]  ;;  %16994 = vst [vmem:[#allocation57_spill] sm:$0xff] %v14439_v37 }
  0xe0   :  { %9977 = vmatpush1.bf16.msra.mxu1 %v14365_v9  ;;  %1017 = vmatprep.mubr.f32.mxu0 %v16732_v0  ;;  %v885_v27 = vld [vmem:[#allocation10 + $0x1e0] sm:$0xff] }
  0xe1   :  { %1092 = vmatprep.mubr.f32.mxu1 %v16732_v0  ;;  %9979 = vmatprep.subr.bf16.mxu0 %v14369_v63  ;;  %v14423_v53 = vpack.c.bf16 %v885_v27, %v877_v22  ;;  %v912_v22 = vld [vmem:[#allocation10 + $0x2b8] sm:$0xff]  ;;  %v925_v15 = vld [vmem:[#allocation10 + $0x320] sm:$0xff] }
  0xe2   :  { %1018 = vmatmul.mubr.f32.vlgmr.msra.gmra.mrb[0].mxu0 %v16732_v0  ;;  %10011 = vmatprep.subr.bf16.mxu1 %v14373_v24  ;;  %v920_v27 = vld [vmem:[#allocation10 + $0x2f8] sm:$0xff] }
  0xe3   :  { %1093 = vmatmul.mubr.f32.vlgmr.msra.gmra.mrb[0].mxu1 %v16732_v0  ;;  %9981 = vmatpush1.bf16.msra.mxu0 %v14377_v30  ;;  %16989 = vst [vmem:[#allocation52_spill] sm:$0xff] %v14423_v53  ;;  %v14444_v50 = vpack.c.bf16 %v920_v27, %v912_v22  ;;  %v927_v22 = vld [vmem:[#allocation10 + $0x330] sm:$0xff] }
  0xe4   :  { %10013 = vmatpush1.bf16.msra.mxu1 %v14381_v32  ;;  %9983 = vmatprep.subr.bf16.mxu0 %v14383_v36 }
  0xe5   :  { %10015 = vmatprep.subr.bf16.mxu1 %v14387_v14  ;;  %1023 = vmatprep.mubr.f32.mxu0 %v16732_v0  ;;  %16995 = vst [vmem:[#allocation58_spill] sm:$0xff] %v14444_v50 }
  0xe6   :  { %1024 = vmatmul.mubr.f32.gmra.mrb[32].mxu0 %v16732_v0  ;;  %1098 = vmatprep.mubr.f32.mxu1 %v16732_v0 }
  0xe7   :  { %9985 = vmatpush1.bf16.msra.mxu0 %v14393_v55  ;;  %1099 = vmatmul.mubr.f32.gmra.mrb[32].mxu1 %v16732_v0 }
  0xe8   :  { %10017 = vmatpush1.bf16.msra.mxu1 %v14397_v58  ;;  %9987 = vmatprep.subr.bf16.mxu0 %v14399_v60 }
  0xe9   :  { %10019 = vmatprep.subr.bf16.mxu1 %v14402_v5  ;;  %1167 = vmatprep.mubr.f32.mxu0 %v16732_v0 }
  0xea   :  { %1242 = vmatprep.mubr.f32.mxu1 %v16732_v0  ;;  %v918_v0 = vld [vmem:[#allocation10 + $0x2e8] sm:$0xff] }
  0xeb   :  { %9989 = vmatpush1.bf16.msra.mxu0 %v14408_v18  ;;  %v14441_v42 = vpack.c.bf16 %v918_v0, %v910_v16  ;;  %v933_v16 = vld [vmem:[#allocation10 + $0x360] sm:$0xff] }
  0xec   :  { %10021 = vmatpush1.bf16.msra.mxu1 %v14413_v19  ;;  %9991 = vmatprep.subr.bf16.mxu0 %v14415_v23  ;;  %v14435_v19 = vpack.c.bf16 %v901_v8, %v893_v3  ;;  %v926_v23 = vld [vmem:[#allocation10 + $0x328] sm:$0xff]  ;;  %v928_v3 = vld [vmem:[#allocation10 + $0x338] sm:$0xff] }
  0xed   :  { %10023 = vmatprep.subr.bf16.mxu1 %v14418_v40  ;;  %v919_v40 = vld [vmem:[#allocation10 + $0x2f0] sm:$0xff]  ;;  %v936_v8 = vld [vmem:[#allocation10 + $0x378] sm:$0xff] }
  0xee   :  { %16993 = vst [vmem:[#allocation56_spill] sm:$0xff] %v14435_v19  ;;  %v14451_v0 = vpack.c.bf16 %v919_v40, %v911_v46  ;;  %v14456_v27 = vpack.c.bf16 %v936_v8, %v928_v3  ;;  %v949_v46 = vld [vmem:[#allocation10 + $0x3e0] sm:$0xff]  ;;  %v943_v8 = vld [vmem:[#allocation10 + $0x3b0] sm:$0xff] }
  0xef   :  { %9993 = vmatpush1.bf16.msra.mxu0 %v14423_v53  ;;  %v934_v53 = vld [vmem:[#allocation10 + $0x368] sm:$0xff] }
  0xf0   :  { %10025 = vmatpush1.bf16.msra.mxu1 %v14427_v49  ;;  %9995 = vmatprep.subr.bf16.mxu0 %v14429_v62  ;;  %v14447_v49 = vpack.c.bf16 %v917_v45, %v909_v35  ;;  %v14453_v10 = vpack.c.bf16 %v934_v53, %v926_v23  ;;  %v942_v62 = vld [vmem:[#allocation10 + $0x3a8] sm:$0xff]  ;;  %v944_v35 = vld [vmem:[#allocation10 + $0x3b8] sm:$0xff]  ;;  %v941_v53 = vld [vmem:[#allocation10 + $0x3a0] sm:$0xff] }
  0xf1   :  { %10027 = vmatprep.subr.bf16.mxu1 %v14432_v12  ;;  %v935_v12 = vld [vmem:[#allocation10 + $0x370] sm:$0xff]  ;;  %v952_v45 = vld [vmem:[#allocation10 + $0x3f8] sm:$0xff] }
  0xf2   :  { %v14463_v23 = vpack.c.bf16 %v935_v12, %v927_v22  ;;  %v14468_v3 = vpack.c.bf16 %v952_v45, %v944_v35  ;;  %v14530_v22 = vld [vmem:[%s16724_s3] sm:$0xff] }
  0xf3   :  { %9997 = vmatpush1.bf16.msra.mxu0 %v14435_v19  ;;  %v950_v19 = vld [vmem:[#allocation10 + $0x3e8] sm:$0xff] }
  0xf4   :  { %10029 = vmatpush1.bf16.msra.mxu1 %v14439_v37  ;;  %9999 = vmatprep.subr.bf16.mxu0 %v14441_v42  ;;  %v14459_v37 = vpack.c.bf16 %v933_v16, %v925_v15  ;;  %v14465_v40 = vpack.c.bf16 %v950_v19, %v942_v62  ;;  %v14471_v15 = vpack.c.bf16 %v949_v46, %v941_v53  ;;  %v16996_v19 = vmov 0.0  }
  0xf5   :  { %10031 = vmatprep.subr.bf16.mxu1 %v14444_v50  ;;  %v951_v50 = vld [vmem:[#allocation10 + $0x3f0] sm:$0xff]  ;;  %v269_v62 = vlaneseq }
  0xf6   :  { %v14475_v12 = vpack.c.bf16 %v951_v50, %v943_v8 }
  0xf7   :  { %10001 = vmatpush1.bf16.msra.mxu0 %v14447_v49  ;;  %v14522_v50 = vshrl.u32 %v269_v62, 7 }
  0xf8   :  { %10033 = vmatpush1.bf16.msra.mxu1 %v14451_v0  ;;  %10003 = vmatprep.subr.bf16.mxu0 %v14453_v10 }
  0xf9   :  { %10035 = vmatprep.subr.bf16.mxu1 %v14456_v27  ;;  %16997 = vst [vmem:[#allocation59_spill] sm:$0xff] %v14522_v50  ;;  %v14525_v16 = vsub.s32 0, %v14522_v50  ;;  %v14533_v35 = vsub.s32 1, %v14522_v50  ;;  %v14544_v8 = vsub.s32 3, %v14522_v50 }
  0xfb   :  { %10005 = vmatpush1.bf16.msra.mxu0 %v14459_v37  ;;  %16998 = vst [vmem:[#allocation60_spill] sm:$0xff] %v14525_v16  ;;  %16999 = vst [vmem:[#allocation61_spill] sm:$0xff] %v14533_v35  ;;  %v14537_v45 = vrot.slane %v14530_v22, %v14525_v16  ;;  %v14541_v53 = vrot.slane %v14530_v22, %v14533_v35  ;;  %v14550_v16 = vrot.slane %v14530_v22, %v14544_v8 }
  0xfc   :  { %10037 = vmatpush1.bf16.msra.mxu1 %v14463_v23  ;;  %10007 = vmatprep.subr.bf16.mxu0 %v14465_v40  ;;  %17002 = vst [vmem:[#allocation64_spill] sm:$0xff] %v14544_v8  ;;  %v14553_v35 = vsub.s32 2, %v14522_v50 }
  0xfd   :  { %10039 = vmatprep.subr.bf16.mxu1 %v14468_v3  ;;  %17000 = vst [vmem:[#allocation62_spill] sm:$0xff] %v14537_v45  ;;  %17001 = vst [vmem:[#allocation63_spill] sm:$0xff] %v14541_v53 }
  0xfe   :  { %17003 = vst [vmem:[#allocation65_spill] sm:$0xff] %v14550_v16  ;;  %17004 = vst [vmem:[#allocation66_spill] sm:$0xff] %v14553_v35 }
  0xff   :  { %10009 = vmatpush1.bf16.msra.mxu0 %v14471_v15 }
 0x100   :  { %10041 = vmatpush1.bf16.msra.mxu1 %v14475_v12  ;;  %10043 = vmatprep.subr.bf16.mxu0 %v14244_v21 }
 0x101   :  { %10075 = vmatprep.subr.bf16.mxu1 %v14247_v25 }
 0x102   :  { %1168 = vmatmul.mubr.f32.vlgmr.msra.gmra.mrb[34].mxu0 %v16996_v19 }
 0x103   :  { %1243 = vmatmul.mubr.f32.vlgmr.msra.gmra.mrb[34].mxu1 %v16996_v19  ;;  %1171 = vmatprep.mubr.f32.mxu0 %v16996_v19 }
 0x104   :  { %1246 = vmatprep.mubr.f32.mxu1 %v16996_v19  ;;  %10045 = vmatpush1.bf16.msra.mxu0 %v14250_v28 }
 0x105   :  { %10077 = vmatpush1.bf16.msra.mxu1 %v14253_v31  ;;  %10047 = vmatprep.subr.bf16.mxu0 %v14257_v34 }
 0x106   :  { %1172 = vmatmul.mubr.f32.gmra.mrb[30].mxu0 %v16996_v19  ;;  %10079 = vmatprep.subr.bf16.mxu1 %v14261_v38 }
 0x107   :  { %1247 = vmatmul.mubr.f32.gmra.mrb[30].mxu1 %v16996_v19  ;;  %1383 = vmatprep.mubr.f32.mxu0 %v16996_v19 }
 0x108   :  { %10049 = vmatpush1.bf16.msra.mxu0 %v14265_v41  ;;  %1458 = vmatprep.mubr.f32.mxu1 %v16996_v19 }
 0x109   :  { %10081 = vmatpush1.bf16.msra.mxu1 %v14269_v44  ;;  %10051 = vmatprep.subr.bf16.mxu0 %v14273_v48 }
 0x10a   :  { %10083 = vmatprep.subr.bf16.mxu1 %v14277_v51 }
 0x10c   :  { %10053 = vmatpush1.bf16.msra.mxu0 %v14281_v54 }
 0x10d   :  { %10085 = vmatpush1.bf16.msra.mxu1 %v14285_v57  ;;  %10055 = vmatprep.subr.bf16.mxu0 %v14289_v61 }
 0x10e   :  { %10087 = vmatprep.subr.bf16.mxu1 %v14293_v1 }
 0x110   :  { %10057 = vmatpush1.bf16.msra.mxu0 %v14297_v4 }
 0x111   :  { %10089 = vmatpush1.bf16.msra.mxu1 %v14301_v7  ;;  %10059 = vmatprep.subr.bf16.mxu0 %v14305_v11 }
 0x112   :  { %10091 = vmatprep.subr.bf16.mxu1 %v14309_v13 }
 0x114   :  { %10061 = vmatpush1.bf16.msra.mxu0 %v14313_v17 }
 0x115   :  { %10093 = vmatpush1.bf16.msra.mxu1 %v14317_v20  ;;  %10063 = vmatprep.subr.bf16.mxu0 %v14321_v26 }
 0x116   :  { %10095 = vmatprep.subr.bf16.mxu1 %v14325_v29 }
 0x118   :  { %10065 = vmatpush1.bf16.msra.mxu0 %v14329_v33 }
 0x119   :  { %10097 = vmatpush1.bf16.msra.mxu1 %v14333_v39  ;;  %10067 = vmatprep.subr.bf16.mxu0 %v14337_v43 }
 0x11a   :  { %10099 = vmatprep.subr.bf16.mxu1 %v14341_v47 }
 0x11c   :  { %10069 = vmatpush1.bf16.msra.mxu0 %v14345_v52 }
 0x11d   :  { %10101 = vmatpush1.bf16.msra.mxu1 %v14349_v56  ;;  %10071 = vmatprep.subr.bf16.mxu0 %v14353_v59 }
 0x11e   :  { %10103 = vmatprep.subr.bf16.mxu1 %v14357_v2 }
 0x120   :  { %10073 = vmatpush1.bf16.msra.mxu0 %v14361_v6 }
 0x121   :  { %10105 = vmatpush1.bf16.msra.mxu1 %v14365_v9  ;;  %10107 = vmatprep.subr.bf16.mxu0 %v14369_v63 }
 0x122   :  { %10139 = vmatprep.subr.bf16.mxu1 %v14373_v24 }
 0x1b5   :  { %v1019_v46 = vpop.f32.mrb[0].mxu0 }
 0x1b6   :  { %v12858_v62 = vadd.f32 %v1019_v46, %v14537_v45  ;;  %v1094_v24 = vpop.f32.mrb[0].mxu1  ;;  %v1021_v63 = vpop.f32.mrb[1].mxu0 }
 0x1b7   :  { %v12859_v9 = vadd.f32 %v1021_v63, %v14541_v53  ;;  %v1096_v6 = vpop.f32.mrb[1].mxu1  ;;  %v14558_v63 = vrot.slane %v14530_v22, %v14553_v35  ;;  %v16791_v35 = vsub.s32 4, %v14522_v50 }
 0x1b8   :  { %v9666_v2 = vmul.f32 -1.442695, %v12858_v62  ;;  %v12875_v45 = vadd.f32 %v1096_v6, %v14550_v16 }
 0x1b9   :  { %v9668_v59 = vmul.f32 -1.442695, %v12859_v9  ;;  %v1025_v56 = vpop.f32.mrb[32].mxu0  ;;  %17005 = vst [vmem:[#allocation67_spill] sm:$0xff] %v14558_v63  ;;  %v12874_v62 = vadd.f32 %v1094_v24, %v14558_v63 }
 0x1ba   :  { %13193 = vpow2.f32 %v9666_v2  ;;  %v1026_v52 = vpop.f32.mrb[33].mxu0  ;;  %v1100_v47 = vpop.f32.mrb[32].mxu1  ;;  %v9670_v9 = vmul.f32 -1.442695, %v12875_v45  ;;  %v16790_v45 = vsub.s32 5, %v14522_v50 }
 0x1bb   :  { %13195 = vpow2.f32 %v9668_v59  ;;  %v1101_v46 = vpop.f32.mrb[33].mxu1 }
 0x1bc   :  { %13197 = vpow2.f32 %v9670_v9 }
 0x1bd   :  { %13199 = vtanh.f32 %v12874_v62 }
 0x1c4   :  { %v13194_v8 = vpop.eup %13193 }
 0x1c5   :  { %v13196_v53 = vpop.eup %13195  ;;  %v1275_v56 = vadd.f32 1.0, %v13194_v8 }
 0x1c6   :  { %v1287_v2 = vadd.f32 1.0, %v13196_v53  ;;  %v13198_v47 = vpop.eup %13197  ;;  %v14568_v53 = vrot.slane %v14530_v22, %v16791_v35 }
 0x1c7   :  { %13201 = vrcp.f32 %v1275_v56  ;;  %v13200_v52 = vpop.eup %13199  ;;  %v1301_v16 = vadd.f32 1.0, %v13198_v47  ;;  %v14574_v56 = vrot.slane %v14530_v22, %v16790_v45 }
 0x1c8   :  { %13203 = vrcp.f32 %v1287_v2 }
 0x1c9   :  { %13205 = vrcp.f32 %v1301_v16 }
 0x1d1   :  { %v13202_v59 = vpop.eup %13201 }
 0x1d2   :  { %v13204_v46 = vpop.eup %13203  ;;  %v1309_v6 = vmul.f32 %v13202_v59, %v13200_v52 }
 0x1d3   :  { %v1307_v43 = vmul.f32 0.0, %v13204_v46 }
 0x1d5   :  { %v14563_v24 = vadd.f32 %v1309_v6, %v1307_v43  ;;  %v1169_v63 = vpop.f32.mrb[34].mxu0  ;;  %v16793_v43 = vsub.s32 7, %v14522_v50 }
 0x1d6   :  { %v1170_v8 = vpop.f32.mrb[35].mxu0  ;;  %v1244_v9 = vpop.f32.mrb[34].mxu1 }
 0x1d7   :  { %13207 = vtanh.f32 %v14563_v24  ;;  %v1245_v62 = vpop.f32.mrb[35].mxu1  ;;  %v14582_v8 = vrot.slane %v14530_v22, %v16793_v43  ;;  %v16792_v9 = vsub.s32 6, %v14522_v50  ;;  %v17017_v43 = vld [vmem:[#allocation57_spill] sm:$0xff] }
 0x1d8   :  { %v13206_v62 = vpop.eup %13205 }
 0x1d9   :  { %v1173_v2 = vpop.f32.mrb[30].mxu0  ;;  %17006 = vst [vmem:[#allocation68_spill] sm:$0xff] %v14582_v8 }
 0x1da   :  { %v12904_v16 = vadd.f32 %v1173_v2, %v14568_v53  ;;  %v1248_v63 = vpop.f32.mrb[30].mxu1  ;;  %v1175_v47 = vpop.f32.mrb[31].mxu0 }
 0x1db   :  { %v12905_v52 = vadd.f32 %v1175_v47, %v14574_v56  ;;  %v1250_v59 = vpop.f32.mrb[31].mxu1 }
 0x1dc   :  { %v9667_v46 = vmul.f32 -1.442695, %v12904_v16  ;;  %v12921_v2 = vadd.f32 %v1250_v59, %v14582_v8  ;;  %v14591_v16 = vrot.slane %v14530_v22, %v16792_v9 }
 0x1dd   :  { %v9669_v6 = vmul.f32 -1.442695, %v12905_v52 }
 0x1de   :  { %13209 = vpow2.f32 %v9667_v46  ;;  %17008 = vst [vmem:[#allocation70_spill] sm:$0xff] %v14591_v16  ;;  %v9671_v47 = vmul.f32 -1.442695, %v12921_v2  ;;  %v12920_v52 = vadd.f32 %v1248_v63, %v14591_v16  ;;  %v17009_v63 = vld [vmem:[#allocation49_spill] sm:$0xff]  ;;  %v17012_v2 = vld [vmem:[#allocation52_spill] sm:$0xff] }
 0x1df   :  { %13211 = vpow2.f32 %v9669_v6  ;;  %v17010_v6 = vld [vmem:[#allocation50_spill] sm:$0xff] }
 0x1e0   :  { %13213 = vpow2.f32 %v9671_v47  ;;  %v17013_v47 = vld [vmem:[#allocation53_spill] sm:$0xff] }
 0x1e1   :  { %v13208_v45 = vpop.eup %13207  ;;  %13215 = vtanh.f32 %v12920_v52  ;;  %v17014_v52 = vld [vmem:[#allocation54_spill] sm:$0xff] }
 0x1e2   :  { %v14586_v35 = vmul.f32 %v13208_v45, %v13206_v62  ;;  %v17011_v62 = vld [vmem:[#allocation51_spill] sm:$0xff] }
 0x1e4   :  { %17007 = vst [vmem:[#allocation69_spill] sm:$0xff] %v14586_v35  ;;  %1384 = vmatmul.mubr.f32.vlgmr.msra.gmra.mrb[2].mxu0 %v14586_v35  ;;  %1459 = vmatmul.mubr.f32.vlgmr.msra.gmra.mrb[2].mxu1 %v14586_v35 }
 0x1e5   :  { %10109 = vmatpush1.bf16.msra.mxu0 %v14377_v30  ;;  %10141 = vmatpush1.bf16.msra.mxu1 %v14381_v32 }
 0x1e6   :  { %10111 = vmatprep.subr.bf16.mxu0 %v14383_v36  ;;  %10143 = vmatprep.subr.bf16.mxu1 %v14387_v14 }
 0x1e7   :  { %1389 = vmatprep.mubr.f32.mxu0 %v16996_v19  ;;  %1464 = vmatprep.mubr.f32.mxu1 %v16996_v19 }
 0x1e8   :  { %v13210_v22 = vpop.eup %13209 }
 0x1e9   :  { %v13212_v45 = vpop.eup %13211  ;;  %v1276_v59 = vadd.f32 1.0, %v13210_v22  ;;  %10113 = vmatpush1.bf16.msra.mxu0 %v14393_v55  ;;  %10145 = vmatpush1.bf16.msra.mxu1 %v14397_v58  ;;  %v17015_v22 = vld [vmem:[#allocation55_spill] sm:$0xff] }
 0x1ea   :  { %v1288_v46 = vadd.f32 1.0, %v13212_v45  ;;  %10115 = vmatprep.subr.bf16.mxu0 %v14399_v60  ;;  %10147 = vmatprep.subr.bf16.mxu1 %v14402_v5  ;;  %v13214_v45 = vpop.eup %13213 }
 0x1eb   :  { %13217 = vrcp.f32 %v1276_v59  ;;  %v13216_v9 = vpop.eup %13215 }
 0x1ec   :  { %13219 = vrcp.f32 %v1288_v46  ;;  %v17016_v46 = vld [vmem:[#allocation56_spill] sm:$0xff] }
 0x1ed   :  { %10117 = vmatpush1.bf16.msra.mxu0 %v14408_v18  ;;  %10149 = vmatpush1.bf16.msra.mxu1 %v17009_v63 }
 0x1ee   :  { %10119 = vmatprep.subr.bf16.mxu0 %v17010_v6  ;;  %10151 = vmatprep.subr.bf16.mxu1 %v17011_v62  ;;  %v1302_v6 = vadd.f32 1.0, %v13214_v45  ;;  %v17018_v62 = vld [vmem:[#allocation58_spill] sm:$0xff]  ;;  %v17022_v45 = vld [vmem:[#allocation41_spill] sm:$0xff] }
 0x1f0   :  { %13221 = vrcp.f32 %v1302_v6  ;;  %v17020_v6 = vld [vmem:[#allocation39_spill] sm:$0xff] }
 0x1f1   :  { %10121 = vmatpush1.bf16.msra.mxu0 %v17012_v2  ;;  %10153 = vmatpush1.bf16.msra.mxu1 %v17013_v47 }
 0x1f2   :  { %10123 = vmatprep.subr.bf16.mxu0 %v17014_v52  ;;  %10155 = vmatprep.subr.bf16.mxu1 %v17015_v22 }
 0x1f5   :  { %v13218_v59 = vpop.eup %13217  ;;  %10125 = vmatpush1.bf16.msra.mxu0 %v17016_v46  ;;  %10157 = vmatpush1.bf16.msra.mxu1 %v17017_v43 }
 0x1f6   :  { %v13220_v50 = vpop.eup %13219  ;;  %v1310_v16 = vmul.f32 %v13218_v59, %v13216_v9  ;;  %10127 = vmatprep.subr.bf16.mxu0 %v14441_v42  ;;  %10159 = vmatprep.subr.bf16.mxu1 %v17018_v62  ;;  %v17023_v59 = vld [vmem:[#allocation42_spill] sm:$0xff] }
 0x1f7   :  { %v1308_v2 = vmul.f32 0.0, %v13220_v50 }
 0x1f9   :  { %v14618_v47 = vadd.f32 %v1310_v16, %v1308_v2  ;;  %10129 = vmatpush1.bf16.msra.mxu0 %v14447_v49  ;;  %10161 = vmatpush1.bf16.msra.mxu1 %v14451_v0  ;;  %v17021_v2 = vld [vmem:[#allocation40_spill] sm:$0xff] }
 0x1fa   :  { %10131 = vmatprep.subr.bf16.mxu0 %v14453_v10  ;;  %10163 = vmatprep.subr.bf16.mxu1 %v14456_v27  ;;  %v13222_v50 = vpop.eup %13221 }
 0x1fb   :  { %13223 = vtanh.f32 %v14618_v47 }
 0x1fd   :  { %10133 = vmatpush1.bf16.msra.mxu0 %v14459_v37  ;;  %10165 = vmatpush1.bf16.msra.mxu1 %v14463_v23 }
 0x1fe   :  { %10135 = vmatprep.subr.bf16.mxu0 %v14465_v40  ;;  %10167 = vmatprep.subr.bf16.mxu1 %v14468_v3 }
 0x201   :  { %10137 = vmatpush1.bf16.msra.mxu0 %v14471_v15  ;;  %10169 = vmatpush1.bf16.msra.mxu1 %v14475_v12 }
 0x202   :  { %10171 = vmatprep.subr.bf16.mxu0 %v14244_v21  ;;  %10203 = vmatprep.subr.bf16.mxu1 %v14247_v25 }
 0x205   :  { %v13224_v9 = vpop.eup %13223 }
 0x206   :  { %v14633_v16 = vmul.f32 %v13224_v9, %v13222_v50  ;;  %v17024_v50 = vld [vmem:[#allocation43_spill] sm:$0xff]  ;;  %v17025_v9 = vld [vmem:[#allocation44_spill] sm:$0xff] }
 0x208   :  { %17019 = vst [vmem:[#allocation49_spill] sm:$0xff] %v14633_v16  ;;  %1390 = vmatmul.mubr.f32.gmra.mrb[36].mxu0 %v14633_v16  ;;  %1465 = vmatmul.mubr.f32.gmra.mrb[36].mxu1 %v14633_v16 }
 0x209   :  { %1533 = vmatprep.mubr.f32.mxu0 %v16996_v19  ;;  %1608 = vmatprep.mubr.f32.mxu1 %v16996_v19 }
 0x20c   :  { %1534 = vmatmul.mubr.f32.vlgmr.msra.gmra.mrb[38].mxu0 %v14586_v35  ;;  %1609 = vmatmul.mubr.f32.vlgmr.msra.gmra.mrb[38].mxu1 %v14586_v35  ;;  %v17027_v35 = vld [vmem:[#allocation46_spill] sm:$0xff] }
 0x20d   :  { %1537 = vmatprep.mubr.f32.mxu0 %v16996_v19  ;;  %1612 = vmatprep.mubr.f32.mxu1 %v16996_v19 }
 0x20e   :  { %10173 = vmatpush1.bf16.msra.mxu0 %v14250_v28  ;;  %10205 = vmatpush1.bf16.msra.mxu1 %v14253_v31 }
 0x20f   :  { %10175 = vmatprep.subr.bf16.mxu0 %v14257_v34  ;;  %10207 = vmatprep.subr.bf16.mxu1 %v14261_v38 }
 0x210   :  { %1538 = vmatmul.mubr.f32.gmra.mrb[28].mxu0 %v14633_v16  ;;  %1613 = vmatmul.mubr.f32.gmra.mrb[28].mxu1 %v14633_v16  ;;  %v17026_v16 = vld [vmem:[#allocation45_spill] sm:$0xff] }
 0x211   :  { %1749 = vmatprep.mubr.f32.mxu0 %v16996_v19  ;;  %1824 = vmatprep.mubr.f32.mxu1 %v16996_v19 }
 0x212   :  { %10177 = vmatpush1.bf16.msra.mxu0 %v14265_v41  ;;  %10209 = vmatpush1.bf16.msra.mxu1 %v14269_v44 }
 0x213   :  { %10179 = vmatprep.subr.bf16.mxu0 %v14273_v48  ;;  %10211 = vmatprep.subr.bf16.mxu1 %v14277_v51 }
 0x216   :  { %10181 = vmatpush1.bf16.msra.mxu0 %v14281_v54  ;;  %10213 = vmatpush1.bf16.msra.mxu1 %v14285_v57 }
 0x217   :  { %10183 = vmatprep.subr.bf16.mxu0 %v14289_v61  ;;  %10215 = vmatprep.subr.bf16.mxu1 %v14293_v1 }
 0x21a   :  { %10185 = vmatpush1.bf16.msra.mxu0 %v14297_v4  ;;  %10217 = vmatpush1.bf16.msra.mxu1 %v14301_v7 }
 0x21b   :  { %10187 = vmatprep.subr.bf16.mxu0 %v14305_v11  ;;  %10219 = vmatprep.subr.bf16.mxu1 %v14309_v13 }
 0x21e   :  { %10189 = vmatpush1.bf16.msra.mxu0 %v14313_v17  ;;  %10221 = vmatpush1.bf16.msra.mxu1 %v14317_v20  ;;  %v17031_v17 = vld [vmem:[#allocation63_spill] sm:$0xff] }
 0x21f   :  { %10191 = vmatprep.subr.bf16.mxu0 %v14321_v26  ;;  %10223 = vmatprep.subr.bf16.mxu1 %v14325_v29  ;;  %v17028_v29 = vld [vmem:[#allocation47_spill] sm:$0xff]  ;;  %v17030_v26 = vld [vmem:[#allocation62_spill] sm:$0xff] }
 0x222   :  { %10193 = vmatpush1.bf16.msra.mxu0 %v14329_v33  ;;  %10225 = vmatpush1.bf16.msra.mxu1 %v14333_v39  ;;  %v17029_v33 = vld [vmem:[#allocation48_spill] sm:$0xff] }
 0x223   :  { %10195 = vmatprep.subr.bf16.mxu0 %v17020_v6  ;;  %10227 = vmatprep.subr.bf16.mxu1 %v17021_v2 }
 0x226   :  { %10197 = vmatpush1.bf16.msra.mxu0 %v17022_v45  ;;  %10229 = vmatpush1.bf16.msra.mxu1 %v17023_v59 }
 0x227   :  { %10199 = vmatprep.subr.bf16.mxu0 %v17024_v50  ;;  %10231 = vmatprep.subr.bf16.mxu1 %v17025_v9  ;;  %v17032_v9 = vld [vmem:[#allocation65_spill] sm:$0xff] }
 0x22a   :  { %10201 = vmatpush1.bf16.msra.mxu0 %v17026_v16  ;;  %10233 = vmatpush1.bf16.msra.mxu1 %v17027_v35  ;;  %v17033_v35 = vld [vmem:[#allocation67_spill] sm:$0xff] }
 0x22b   :  { %10235 = vmatprep.subr.bf16.mxu0 %v17028_v29  ;;  %10267 = vmatprep.subr.bf16.mxu1 %v17029_v33 }
 0x2b7   :  { %v1385_v39 = vpop.f32.mrb[2].mxu0  ;;  %v1460_v6 = vpop.f32.mrb[2].mxu1 }
 0x2b8   :  { %v12860_v2 = vadd.f32 %v1385_v39, %v17030_v26  ;;  %v1387_v20 = vpop.f32.mrb[3].mxu0  ;;  %v1462_v45 = vpop.f32.mrb[3].mxu1  ;;  %v12876_v7 = vadd.f32 %v1460_v6, %v17033_v35 }
 0x2b9   :  { %v12861_v59 = vadd.f32 %v1387_v20, %v17031_v17  ;;  %v12877_v16 = vadd.f32 %v1462_v45, %v17032_v9 }
 0x2ba   :  { %v9672_v13 = vmul.f32 -1.442695, %v12860_v2 }
 0x2bb   :  { %v9674_v50 = vmul.f32 -1.442695, %v12861_v59  ;;  %v9676_v11 = vmul.f32 -1.442695, %v12877_v16 }
 0x2bc   :  { %13225 = vpow2.f32 %v9672_v13 }
 0x2bd   :  { %13227 = vpow2.f32 %v9674_v50 }
 0x2be   :  { %13229 = vpow2.f32 %v9676_v11 }
 0x2bf   :  { %13231 = vtanh.f32 %v12876_v7 }
 0x2c6   :  { %v13226_v29 = vpop.eup %13225 }
 0x2c7   :  { %v13228_v4 = vpop.eup %13227  ;;  %v1641_v33 = vadd.f32 1.0, %v13226_v29 }
 0x2c8   :  { %v1653_v1 = vadd.f32 1.0, %v13228_v4  ;;  %v13230_v39 = vpop.eup %13229 }
 0x2c9   :  { %13233 = vrcp.f32 %v1641_v33  ;;  %v13232_v26 = vpop.eup %13231  ;;  %v1667_v13 = vadd.f32 1.0, %v13230_v39 }
 0x2ca   :  { %13235 = vrcp.f32 %v1653_v1 }
 0x2cb   :  { %13237 = vrcp.f32 %v1667_v13 }
 0x2d3   :  { %v13234_v20 = vpop.eup %13233 }
 0x2d4   :  { %v13236_v2 = vpop.eup %13235  ;;  %v1675_v59 = vmul.f32 %v13234_v20, %v13232_v26 }
 0x2d5   :  { %v1673_v50 = vmul.f32 %v13236_v2, %v14563_v24  ;;  %v13238_v35 = vpop.eup %13237 }
 0x2d7   :  { %v14684_v45 = vadd.f32 %v1675_v59, %v1673_v50 }
 0x2d9   :  { %13239 = vtanh.f32 %v14684_v45 }
 0x2db   :  { %v1391_v16 = vpop.f32.mrb[36].mxu0  ;;  %v1466_v29 = vpop.f32.mrb[36].mxu1 }
 0x2dc   :  { %v1392_v11 = vpop.f32.mrb[37].mxu0  ;;  %v1467_v7 = vpop.f32.mrb[37].mxu1  ;;  %v17036_v29 = vld [vmem:[#allocation50_spill] sm:$0xff] }
 0x2dd   :  { %v17037_v11 = vld [vmem:[#allocation51_spill] sm:$0xff] }
 0x2df   :  { %v1535_v4 = vpop.f32.mrb[38].mxu0  ;;  %v1610_v33 = vpop.f32.mrb[38].mxu1 }
 0x2e0   :  { %v1536_v1 = vpop.f32.mrb[39].mxu0  ;;  %v1611_v6 = vpop.f32.mrb[39].mxu1 }
 0x2e1   :  { %v17038_v1 = vld [vmem:[#allocation52_spill] sm:$0xff]  ;;  %v17039_v6 = vld [vmem:[#allocation53_spill] sm:$0xff] }
 0x2e3   :  { %v13240_v9 = vpop.eup %13239  ;;  %v1539_v17 = vpop.f32.mrb[28].mxu0 }
 0x2e4   :  { %v1614_v26 = vpop.f32.mrb[28].mxu1  ;;  %v14687_v39 = vmul.f32 %v13240_v9, %v13238_v35  ;;  %v12902_v24 = vadd.f32 %v1539_v17, %v14568_v53  ;;  %v1541_v20 = vpop.f32.mrb[29].mxu0  ;;  %v17035_v9 = vld [vmem:[#allocation70_spill] sm:$0xff] }
 0x2e5   :  { %v1616_v2 = vpop.f32.mrb[29].mxu1  ;;  %v12903_v59 = vadd.f32 %v1541_v20, %v14574_v56  ;;  %v12918_v16 = vadd.f32 %v1614_v26, %v17035_v9 }
 0x2e6   :  { %17034 = vst [vmem:[#allocation54_spill] sm:$0xff] %v14687_v39  ;;  %v9673_v13 = vmul.f32 -1.442695, %v12902_v24  ;;  %1750 = vmatmul.mubr.f32.vlgmr.msra.gmra.mrb[4].mxu0 %v14687_v39  ;;  %1825 = vmatmul.mubr.f32.vlgmr.msra.gmra.mrb[4].mxu1 %v14687_v39  ;;  %v12919_v17 = vadd.f32 %v1616_v2, %v14582_v8 }
 0x2e7   :  { %v9675_v50 = vmul.f32 -1.442695, %v12903_v59  ;;  %10237 = vmatpush1.bf16.msra.mxu0 %v14377_v30  ;;  %10269 = vmatpush1.bf16.msra.mxu1 %v14381_v32 }
 0x2e8   :  { %13241 = vpow2.f32 %v9673_v13  ;;  %10239 = vmatprep.subr.bf16.mxu0 %v14383_v36  ;;  %10271 = vmatprep.subr.bf16.mxu1 %v14387_v14  ;;  %v9677_v35 = vmul.f32 -1.442695, %v12919_v17 }
 0x2e9   :  { %13243 = vpow2.f32 %v9675_v50  ;;  %1755 = vmatprep.mubr.f32.mxu0 %v16996_v19  ;;  %1830 = vmatprep.mubr.f32.mxu1 %v16996_v19 }
 0x2ea   :  { %13245 = vpow2.f32 %v9677_v35 }
 0x2eb   :  { %10241 = vmatpush1.bf16.msra.mxu0 %v14393_v55  ;;  %10273 = vmatpush1.bf16.msra.mxu1 %v14397_v58  ;;  %13247 = vtanh.f32 %v12918_v16 }
 0x2ec   :  { %10243 = vmatprep.subr.bf16.mxu0 %v14399_v60  ;;  %10275 = vmatprep.subr.bf16.mxu1 %v14402_v5 }
 0x2ef   :  { %10245 = vmatpush1.bf16.msra.mxu0 %v14408_v18  ;;  %10277 = vmatpush1.bf16.msra.mxu1 %v17009_v63 }
 0x2f0   :  { %10247 = vmatprep.subr.bf16.mxu0 %v17036_v29  ;;  %10279 = vmatprep.subr.bf16.mxu1 %v17037_v11 }
 0x2f2   :  { %v13242_v7 = vpop.eup %13241 }
 0x2f3   :  { %v13244_v4 = vpop.eup %13243  ;;  %v1642_v33 = vadd.f32 1.0, %v13242_v7  ;;  %10249 = vmatpush1.bf16.msra.mxu0 %v17038_v1  ;;  %10281 = vmatpush1.bf16.msra.mxu1 %v17039_v6 }
 0x2f4   :  { %v1654_v24 = vadd.f32 1.0, %v13244_v4  ;;  %10251 = vmatprep.subr.bf16.mxu0 %v17014_v52  ;;  %10283 = vmatprep.subr.bf16.mxu1 %v17015_v22  ;;  %v13246_v26 = vpop.eup %13245 }
 0x2f5   :  { %13249 = vrcp.f32 %v1642_v33  ;;  %v13248_v20 = vpop.eup %13247  ;;  %v1668_v50 = vadd.f32 1.0, %v13246_v26  ;;  %v17042_v33 = vld [vmem:[#allocation29_spill] sm:$0xff]  ;;  %v17044_v26 = vld [vmem:[#allocation31_spill] sm:$0xff] }
 0x2f6   :  { %13251 = vrcp.f32 %v1654_v24  ;;  %v17043_v24 = vld [vmem:[#allocation30_spill] sm:$0xff] }
 0x2f7   :  { %10253 = vmatpush1.bf16.msra.mxu0 %v17016_v46  ;;  %10285 = vmatpush1.bf16.msra.mxu1 %v17017_v43  ;;  %13253 = vrcp.f32 %v1668_v50  ;;  %v17049_v50 = vld [vmem:[#allocation36_spill] sm:$0xff] }
 0x2f8   :  { %10255 = vmatprep.subr.bf16.mxu0 %v14441_v42  ;;  %10287 = vmatprep.subr.bf16.mxu1 %v17018_v62 }
 0x2fb   :  { %10257 = vmatpush1.bf16.msra.mxu0 %v14447_v49  ;;  %10289 = vmatpush1.bf16.msra.mxu1 %v14451_v0 }
 0x2fc   :  { %10259 = vmatprep.subr.bf16.mxu0 %v14453_v10  ;;  %10291 = vmatprep.subr.bf16.mxu1 %v14456_v27 }
 0x2ff   :  { %v13250_v2 = vpop.eup %13249  ;;  %10261 = vmatpush1.bf16.msra.mxu0 %v14459_v37  ;;  %10293 = vmatpush1.bf16.msra.mxu1 %v14463_v23 }
 0x300   :  { %v13252_v59 = vpop.eup %13251  ;;  %v1676_v13 = vmul.f32 %v13250_v2, %v13248_v20  ;;  %10263 = vmatprep.subr.bf16.mxu0 %v14465_v40  ;;  %10295 = vmatprep.subr.bf16.mxu1 %v14468_v3  ;;  %v17045_v20 = vld [vmem:[#allocation32_spill] sm:$0xff]  ;;  %v17046_v2 = vld [vmem:[#allocation33_spill] sm:$0xff] }
 0x301   :  { %v1674_v17 = vmul.f32 %v13252_v59, %v14618_v47  ;;  %v13254_v16 = vpop.eup %13253  ;;  %v17041_v47 = vld [vmem:[#allocation28_spill] sm:$0xff]  ;;  %v17047_v59 = vld [vmem:[#allocation34_spill] sm:$0xff] }
 0x303   :  { %v14726_v35 = vadd.f32 %v1676_v13, %v1674_v17  ;;  %10265 = vmatpush1.bf16.msra.mxu0 %v14471_v15  ;;  %10297 = vmatpush1.bf16.msra.mxu1 %v14475_v12  ;;  %v17048_v13 = vld [vmem:[#allocation35_spill] sm:$0xff]  ;;  %v17050_v17 = vld [vmem:[#allocation37_spill] sm:$0xff] }
 0x304   :  { %10299 = vmatprep.subr.bf16.mxu0 %v14244_v21  ;;  %10331 = vmatprep.subr.bf16.mxu1 %v14247_v25 }
 0x305   :  { %13255 = vtanh.f32 %v14726_v35 }
 0x30f   :  { %v13256_v7 = vpop.eup %13255 }
 0x310   :  { %v14733_v4 = vmul.f32 %v13256_v7, %v13254_v16  ;;  %v17051_v16 = vld [vmem:[#allocation38_spill] sm:$0xff]  ;;  %v17052_v7 = vld [vmem:[#allocation39_spill] sm:$0xff] }
 0x312   :  { %17040 = vst [vmem:[#allocation55_spill] sm:$0xff] %v14733_v4  ;;  %1756 = vmatmul.mubr.f32.gmra.mrb[40].mxu0 %v14733_v4  ;;  %1831 = vmatmul.mubr.f32.gmra.mrb[40].mxu1 %v14733_v4 }
 0x313   :  { %1899 = vmatprep.mubr.f32.mxu0 %v16996_v19  ;;  %1974 = vmatprep.mubr.f32.mxu1 %v16996_v19 }
 0x316   :  { %1900 = vmatmul.mubr.f32.vlgmr.msra.gmra.mrb[42].mxu0 %v14687_v39  ;;  %1975 = vmatmul.mubr.f32.vlgmr.msra.gmra.mrb[42].mxu1 %v14687_v39  ;;  %v17054_v39 = vld [vmem:[#allocation41_spill] sm:$0xff] }
 0x317   :  { %1903 = vmatprep.mubr.f32.mxu0 %v16996_v19  ;;  %1978 = vmatprep.mubr.f32.mxu1 %v16996_v19 }
 0x318   :  { %10301 = vmatpush1.bf16.msra.mxu0 %v14250_v28  ;;  %10333 = vmatpush1.bf16.msra.mxu1 %v14253_v31 }
 0x319   :  { %10303 = vmatprep.subr.bf16.mxu0 %v14257_v34  ;;  %10335 = vmatprep.subr.bf16.mxu1 %v14261_v38 }
 0x31a   :  { %1904 = vmatmul.mubr.f32.gmra.mrb[26].mxu0 %v14733_v4  ;;  %1979 = vmatmul.mubr.f32.gmra.mrb[26].mxu1 %v14733_v4  ;;  %v17053_v4 = vld [vmem:[#allocation40_spill] sm:$0xff] }
 0x31b   :  { %2115 = vmatprep.mubr.f32.mxu0 %v16996_v19  ;;  %2190 = vmatprep.mubr.f32.mxu1 %v16996_v19 }
 0x31c   :  { %10305 = vmatpush1.bf16.msra.mxu0 %v14265_v41  ;;  %10337 = vmatpush1.bf16.msra.mxu1 %v14269_v44 }
 0x31d   :  { %10307 = vmatprep.subr.bf16.mxu0 %v14273_v48  ;;  %10339 = vmatprep.subr.bf16.mxu1 %v14277_v51 }
 0x320   :  { %10309 = vmatpush1.bf16.msra.mxu0 %v14281_v54  ;;  %10341 = vmatpush1.bf16.msra.mxu1 %v14285_v57 }
 0x321   :  { %10311 = vmatprep.subr.bf16.mxu0 %v14289_v61  ;;  %10343 = vmatprep.subr.bf16.mxu1 %v17041_v47  ;;  %v17063_v47 = vld [vmem:[#allocation63_spill] sm:$0xff] }
 0x324   :  { %10313 = vmatpush1.bf16.msra.mxu0 %v17042_v33  ;;  %10345 = vmatpush1.bf16.msra.mxu1 %v17043_v24  ;;  %v17062_v24 = vld [vmem:[#allocation62_spill] sm:$0xff] }
 0x325   :  { %10315 = vmatprep.subr.bf16.mxu0 %v17044_v26  ;;  %10347 = vmatprep.subr.bf16.mxu1 %v17045_v20  ;;  %v17055_v26 = vld [vmem:[#allocation42_spill] sm:$0xff]  ;;  %v17056_v20 = vld [vmem:[#allocation43_spill] sm:$0xff] }
 0x328   :  { %10317 = vmatpush1.bf16.msra.mxu0 %v17046_v2  ;;  %10349 = vmatpush1.bf16.msra.mxu1 %v17047_v59  ;;  %v17057_v2 = vld [vmem:[#allocation44_spill] sm:$0xff]  ;;  %v17058_v59 = vld [vmem:[#allocation45_spill] sm:$0xff] }
 0x329   :  { %10319 = vmatprep.subr.bf16.mxu0 %v17048_v13  ;;  %10351 = vmatprep.subr.bf16.mxu1 %v17049_v50  ;;  %v17059_v13 = vld [vmem:[#allocation46_spill] sm:$0xff]  ;;  %v17060_v50 = vld [vmem:[#allocation47_spill] sm:$0xff] }
 0x32c   :  { %10321 = vmatpush1.bf16.msra.mxu0 %v17050_v17  ;;  %10353 = vmatpush1.bf16.msra.mxu1 %v17051_v16  ;;  %v17061_v17 = vld [vmem:[#allocation48_spill] sm:$0xff] }
 0x32d   :  { %10323 = vmatprep.subr.bf16.mxu0 %v17052_v7  ;;  %10355 = vmatprep.subr.bf16.mxu1 %v17053_v4 }
 0x330   :  { %10325 = vmatpush1.bf16.msra.mxu0 %v17054_v39  ;;  %10357 = vmatpush1.bf16.msra.mxu1 %v17055_v26 }
 0x331   :  { %10327 = vmatprep.subr.bf16.mxu0 %v17056_v20  ;;  %10359 = vmatprep.subr.bf16.mxu1 %v17057_v2  ;;  %v17064_v2 = vld [vmem:[#allocation65_spill] sm:$0xff] }
 0x334   :  { %10329 = vmatpush1.bf16.msra.mxu0 %v17058_v59  ;;  %10361 = vmatpush1.bf16.msra.mxu1 %v17059_v13  ;;  %v17065_v13 = vld [vmem:[#allocation67_spill] sm:$0xff] }
 0x335   :  { %10363 = vmatprep.subr.bf16.mxu0 %v17060_v50  ;;  %10395 = vmatprep.subr.bf16.mxu1 %v17061_v17 }
 0x3b9   :  { %v1751_v16 = vpop.f32.mrb[4].mxu0  ;;  %v1826_v7 = vpop.f32.mrb[4].mxu1 }
 0x3ba   :  { %v12862_v4 = vadd.f32 %v1751_v16, %v17062_v24  ;;  %v1753_v33 = vpop.f32.mrb[5].mxu0  ;;  %v1828_v39 = vpop.f32.mrb[5].mxu1  ;;  %v12878_v54 = vadd.f32 %v1826_v7, %v17065_v13 }
 0x3bb   :  { %v12863_v26 = vadd.f32 %v1753_v33, %v17063_v47  ;;  %v12879_v59 = vadd.f32 %v1828_v39, %v17064_v2 }
 0x3bc   :  { %v9678_v61 = vmul.f32 -1.442695, %v12862_v4 }
 0x3bd   :  { %v9680_v20 = vmul.f32 -1.442695, %v12863_v26  ;;  %v9682_v57 = vmul.f32 -1.442695, %v12879_v59 }
 0x3be   :  { %13257 = vpow2.f32 %v9678_v61 }
 0x3bf   :  { %13259 = vpow2.f32 %v9680_v20 }
 0x3c0   :  { %13261 = vpow2.f32 %v9682_v57 }
 0x3c1   :  { %13263 = vtanh.f32 %v12878_v54 }
 0x3c8   :  { %v13258_v50 = vpop.eup %13257 }
 0x3c9   :  { %v13260_v51 = vpop.eup %13259  ;;  %v2007_v17 = vadd.f32 1.0, %v13258_v50 }
 0x3ca   :  { %v2019_v48 = vadd.f32 1.0, %v13260_v51  ;;  %v13262_v16 = vpop.eup %13261 }
 0x3cb   :  { %13265 = vrcp.f32 %v2007_v17  ;;  %v13264_v24 = vpop.eup %13263  ;;  %v2033_v61 = vadd.f32 1.0, %v13262_v16 }
 0x3cc   :  { %13267 = vrcp.f32 %v2019_v48 }
 0x3cd   :  { %13269 = vrcp.f32 %v2033_v61 }
 0x3d5   :  { %v13266_v33 = vpop.eup %13265 }
 0x3d6   :  { %v13268_v4 = vpop.eup %13267  ;;  %v2041_v26 = vmul.f32 %v13266_v33, %v13264_v24 }
 0x3d7   :  { %v2039_v20 = vmul.f32 %v13268_v4, %v14684_v45  ;;  %v13270_v59 = vpop.eup %13269 }
 0x3d9   :  { %v14784_v39 = vadd.f32 %v2041_v26, %v2039_v20 }
 0x3db   :  { %13271 = vtanh.f32 %v14784_v39 }
 0x3e5   :  { %v13272_v50 = vpop.eup %13271  ;;  %v1757_v57 = vpop.f32.mrb[40].mxu0 }
 0x3e6   :  { %v1832_v54 = vpop.f32.mrb[40].mxu1  ;;  %v14787_v51 = vmul.f32 %v13272_v50, %v13270_v59  ;;  %v1758_v48 = vpop.f32.mrb[41].mxu0 }
 0x3e7   :  { %v1833_v17 = vpop.f32.mrb[41].mxu1 }
 0x3e8   :  { %17066 = vst [vmem:[#allocation56_spill] sm:$0xff] %v14787_v51  ;;  %2116 = vmatmul.mubr.f32.vlgmr.msra.gmra.mrb[6].mxu0 %v14787_v51  ;;  %2191 = vmatmul.mubr.f32.vlgmr.msra.gmra.mrb[6].mxu1 %v14787_v51 }
 0x3e9   :  { %v1901_v24 = vpop.f32.mrb[42].mxu0  ;;  %v1976_v7 = vpop.f32.mrb[42].mxu1  ;;  %10365 = vmatpush1.bf16.msra.mxu0 %v14377_v30  ;;  %10397 = vmatpush1.bf16.msra.mxu1 %v14381_v32 }
 0x3ea   :  { %v1902_v45 = vpop.f32.mrb[43].mxu0  ;;  %v1977_v16 = vpop.f32.mrb[43].mxu1  ;;  %10367 = vmatprep.subr.bf16.mxu0 %v14383_v36  ;;  %10399 = vmatprep.subr.bf16.mxu1 %v14387_v14 }
 0x3eb   :  { %2121 = vmatprep.mubr.f32.mxu0 %v16996_v19  ;;  %2196 = vmatprep.mubr.f32.mxu1 %v16996_v19 }
 0x3ed   :  { %v1905_v33 = vpop.f32.mrb[26].mxu0  ;;  %v1980_v4 = vpop.f32.mrb[26].mxu1  ;;  %10369 = vmatpush1.bf16.msra.mxu0 %v14393_v55  ;;  %10401 = vmatpush1.bf16.msra.mxu1 %v14397_v58 }
 0x3ee   :  { %v12900_v26 = vadd.f32 %v1905_v33, %v14568_v53  ;;  %v1907_v61 = vpop.f32.mrb[27].mxu0  ;;  %v1982_v20 = vpop.f32.mrb[27].mxu1  ;;  %10371 = vmatprep.subr.bf16.mxu0 %v14399_v60  ;;  %10403 = vmatprep.subr.bf16.mxu1 %v14402_v5  ;;  %v12916_v17 = vadd.f32 %v1980_v4, %v17035_v9 }
 0x3ef   :  { %v12901_v59 = vadd.f32 %v1907_v61, %v14574_v56  ;;  %v12917_v54 = vadd.f32 %v1982_v20, %v14582_v8 }
 0x3f0   :  { %v9679_v50 = vmul.f32 -1.442695, %v12900_v26 }
 0x3f1   :  { %v9681_v57 = vmul.f32 -1.442695, %v12901_v59  ;;  %10373 = vmatpush1.bf16.msra.mxu0 %v14408_v18  ;;  %10405 = vmatpush1.bf16.msra.mxu1 %v17009_v63  ;;  %v9683_v48 = vmul.f32 -1.442695, %v12917_v54 }
 0x3f2   :  { %13273 = vpow2.f32 %v9679_v50  ;;  %10375 = vmatprep.subr.bf16.mxu0 %v17036_v29  ;;  %10407 = vmatprep.subr.bf16.mxu1 %v17037_v11 }
 0x3f3   :  { %13275 = vpow2.f32 %v9681_v57 }
 0x3f4   :  { %13277 = vpow2.f32 %v9683_v48 }
 0x3f5   :  { %10377 = vmatpush1.bf16.msra.mxu0 %v17038_v1  ;;  %10409 = vmatpush1.bf16.msra.mxu1 %v17039_v6  ;;  %13279 = vtanh.f32 %v12916_v17 }
 0x3f6   :  { %10379 = vmatprep.subr.bf16.mxu0 %v17014_v52  ;;  %10411 = vmatprep.subr.bf16.mxu1 %v17015_v22 }
 0x3f9   :  { %10381 = vmatpush1.bf16.msra.mxu0 %v17016_v46  ;;  %10413 = vmatpush1.bf16.msra.mxu1 %v17017_v43 }
 0x3fa   :  { %10383 = vmatprep.subr.bf16.mxu0 %v14441_v42  ;;  %10415 = vmatprep.subr.bf16.mxu1 %v17018_v62 }
 0x3fc   :  { %v13274_v24 = vpop.eup %13273 }
 0x3fd   :  { %v13276_v7 = vpop.eup %13275  ;;  %v2008_v45 = vadd.f32 1.0, %v13274_v24  ;;  %10385 = vmatpush1.bf16.msra.mxu0 %v14447_v49  ;;  %10417 = vmatpush1.bf16.msra.mxu1 %v14451_v0  ;;  %v17069_v24 = vld [vmem:[#allocation24_spill] sm:$0xff] }
 0x3fe   :  { %v2020_v16 = vadd.f32 1.0, %v13276_v7  ;;  %10387 = vmatprep.subr.bf16.mxu0 %v14453_v10  ;;  %10419 = vmatprep.subr.bf16.mxu1 %v14456_v27  ;;  %v13278_v33 = vpop.eup %13277  ;;  %v17070_v7 = vld [vmem:[#allocation25_spill] sm:$0xff] }
 0x3ff   :  { %13281 = vrcp.f32 %v2008_v45  ;;  %v13280_v4 = vpop.eup %13279  ;;  %v2034_v59 = vadd.f32 1.0, %v13278_v33  ;;  %v17071_v45 = vld [vmem:[#allocation26_spill] sm:$0xff]  ;;  %v17073_v33 = vld [vmem:[#allocation28_spill] sm:$0xff] }
 0x400   :  { %13283 = vrcp.f32 %v2020_v16  ;;  %v17072_v16 = vld [vmem:[#allocation27_spill] sm:$0xff] }
 0x401   :  { %10389 = vmatpush1.bf16.msra.mxu0 %v14459_v37  ;;  %10421 = vmatpush1.bf16.msra.mxu1 %v14463_v23  ;;  %13285 = vrcp.f32 %v2034_v59  ;;  %v17078_v59 = vld [vmem:[#allocation33_spill] sm:$0xff] }
 0x402   :  { %10391 = vmatprep.subr.bf16.mxu0 %v14465_v40  ;;  %10423 = vmatprep.subr.bf16.mxu1 %v14468_v3 }
 0x405   :  { %10393 = vmatpush1.bf16.msra.mxu0 %v14471_v15  ;;  %10425 = vmatpush1.bf16.msra.mxu1 %v14475_v12 }
 0x406   :  { %10427 = vmatprep.subr.bf16.mxu0 %v14244_v21  ;;  %10459 = vmatprep.subr.bf16.mxu1 %v14247_v25 }
 0x409   :  { %v13282_v26 = vpop.eup %13281 }
 0x40a   :  { %v13284_v61 = vpop.eup %13283  ;;  %v2042_v20 = vmul.f32 %v13282_v26, %v13280_v4  ;;  %v17074_v4 = vld [vmem:[#allocation29_spill] sm:$0xff]  ;;  %v17075_v26 = vld [vmem:[#allocation30_spill] sm:$0xff] }
 0x40b   :  { %v2040_v50 = vmul.f32 %v13284_v61, %v14726_v35  ;;  %v13286_v54 = vpop.eup %13285  ;;  %v17068_v35 = vld [vmem:[#allocation23_spill] sm:$0xff] }
 0x40c   :  { %v17076_v61 = vld [vmem:[#allocation31_spill] sm:$0xff] }
 0x40d   :  { %v14830_v57 = vadd.f32 %v2042_v20, %v2040_v50  ;;  %v17077_v20 = vld [vmem:[#allocation32_spill] sm:$0xff]  ;;  %v17079_v50 = vld [vmem:[#allocation34_spill] sm:$0xff] }
 0x40f   :  { %13287 = vtanh.f32 %v14830_v57 }
 0x419   :  { %v13288_v48 = vpop.eup %13287 }
 0x41a   :  { %v14833_v17 = vmul.f32 %v13288_v48, %v13286_v54  ;;  %v17080_v54 = vld [vmem:[#allocation35_spill] sm:$0xff]  ;;  %v17081_v48 = vld [vmem:[#allocation36_spill] sm:$0xff] }
 0x41c   :  { %17067 = vst [vmem:[#allocation57_spill] sm:$0xff] %v14833_v17  ;;  %2122 = vmatmul.mubr.f32.gmra.mrb[44].mxu0 %v14833_v17  ;;  %2197 = vmatmul.mubr.f32.gmra.mrb[44].mxu1 %v14833_v17 }
 0x41d   :  { %2265 = vmatprep.mubr.f32.mxu0 %v16996_v19  ;;  %2340 = vmatprep.mubr.f32.mxu1 %v16996_v19 }
 0x420   :  { %2266 = vmatmul.mubr.f32.vlgmr.msra.gmra.mrb[46].mxu0 %v14787_v51  ;;  %2341 = vmatmul.mubr.f32.vlgmr.msra.gmra.mrb[46].mxu1 %v14787_v51  ;;  %v17083_v51 = vld [vmem:[#allocation38_spill] sm:$0xff] }
 0x421   :  { %2269 = vmatprep.mubr.f32.mxu0 %v16996_v19  ;;  %2344 = vmatprep.mubr.f32.mxu1 %v16996_v19 }
 0x422   :  { %10429 = vmatpush1.bf16.msra.mxu0 %v14250_v28  ;;  %10461 = vmatpush1.bf16.msra.mxu1 %v14253_v31 }
 0x423   :  { %10431 = vmatprep.subr.bf16.mxu0 %v14257_v34  ;;  %10463 = vmatprep.subr.bf16.mxu1 %v14261_v38 }
 0x424   :  { %2270 = vmatmul.mubr.f32.gmra.mrb[24].mxu0 %v14833_v17  ;;  %2345 = vmatmul.mubr.f32.gmra.mrb[24].mxu1 %v14833_v17  ;;  %v17082_v17 = vld [vmem:[#allocation37_spill] sm:$0xff] }
 0x425   :  { %2481 = vmatprep.mubr.f32.mxu0 %v16996_v19  ;;  %2556 = vmatprep.mubr.f32.mxu1 %v16996_v19 }
 0x426   :  { %10433 = vmatpush1.bf16.msra.mxu0 %v14265_v41  ;;  %10465 = vmatpush1.bf16.msra.mxu1 %v14269_v44 }
 0x427   :  { %10435 = vmatprep.subr.bf16.mxu0 %v17068_v35  ;;  %10467 = vmatprep.subr.bf16.mxu1 %v17069_v24 }
 0x42a   :  { %10437 = vmatpush1.bf16.msra.mxu0 %v17070_v7  ;;  %10469 = vmatpush1.bf16.msra.mxu1 %v17071_v45 }
 0x42b   :  { %10439 = vmatprep.subr.bf16.mxu0 %v17072_v16  ;;  %10471 = vmatprep.subr.bf16.mxu1 %v17073_v33  ;;  %v17084_v33 = vld [vmem:[#allocation39_spill] sm:$0xff]  ;;  %v17094_v16 = vld [vmem:[#allocation62_spill] sm:$0xff] }
 0x42e   :  { %10441 = vmatpush1.bf16.msra.mxu0 %v17074_v4  ;;  %10473 = vmatpush1.bf16.msra.mxu1 %v17075_v26  ;;  %v17085_v4 = vld [vmem:[#allocation40_spill] sm:$0xff]  ;;  %v17086_v26 = vld [vmem:[#allocation41_spill] sm:$0xff] }
 0x42f   :  { %10443 = vmatprep.subr.bf16.mxu0 %v17076_v61  ;;  %10475 = vmatprep.subr.bf16.mxu1 %v17077_v20  ;;  %v17087_v61 = vld [vmem:[#allocation42_spill] sm:$0xff]  ;;  %v17088_v20 = vld [vmem:[#allocation43_spill] sm:$0xff] }
 0x432   :  { %10445 = vmatpush1.bf16.msra.mxu0 %v17078_v59  ;;  %10477 = vmatpush1.bf16.msra.mxu1 %v17079_v50  ;;  %v17089_v59 = vld [vmem:[#allocation44_spill] sm:$0xff]  ;;  %v17090_v50 = vld [vmem:[#allocation45_spill] sm:$0xff] }
 0x433   :  { %10447 = vmatprep.subr.bf16.mxu0 %v17080_v54  ;;  %10479 = vmatprep.subr.bf16.mxu1 %v17081_v48  ;;  %v17091_v54 = vld [vmem:[#allocation46_spill] sm:$0xff]  ;;  %v17092_v48 = vld [vmem:[#allocation47_spill] sm:$0xff] }
 0x436   :  { %10449 = vmatpush1.bf16.msra.mxu0 %v17082_v17  ;;  %10481 = vmatpush1.bf16.msra.mxu1 %v17083_v51  ;;  %v17093_v17 = vld [vmem:[#allocation48_spill] sm:$0xff] }
 0x437   :  { %10451 = vmatprep.subr.bf16.mxu0 %v17084_v33  ;;  %10483 = vmatprep.subr.bf16.mxu1 %v17085_v4 }
 0x43a   :  { %10453 = vmatpush1.bf16.msra.mxu0 %v17086_v26  ;;  %10485 = vmatpush1.bf16.msra.mxu1 %v17087_v61 }
 0x43b   :  { %10455 = vmatprep.subr.bf16.mxu0 %v17088_v20  ;;  %10487 = vmatprep.subr.bf16.mxu1 %v17089_v59 }
 0x43e   :  { %10457 = vmatpush1.bf16.msra.mxu0 %v17090_v50  ;;  %10489 = vmatpush1.bf16.msra.mxu1 %v17091_v54 }
 0x43f   :  { %10491 = vmatprep.subr.bf16.mxu0 %v17092_v48  ;;  %10523 = vmatprep.subr.bf16.mxu1 %v17093_v17 }
 0x4bb   :  { %v2117_v51 = vpop.f32.mrb[6].mxu0  ;;  %v2192_v33 = vpop.f32.mrb[6].mxu1 }
 0x4bc   :  { %v12864_v4 = vadd.f32 %v2117_v51, %v17094_v16  ;;  %v2119_v45 = vpop.f32.mrb[7].mxu0  ;;  %v2194_v26 = vpop.f32.mrb[7].mxu1  ;;  %v12880_v54 = vadd.f32 %v2192_v33, %v17065_v13 }
 0x4bd   :  { %v12865_v61 = vadd.f32 %v2119_v45, %v17063_v47  ;;  %v12881_v50 = vadd.f32 %v2194_v26, %v17064_v2 }
 0x4be   :  { %v9684_v7 = vmul.f32 -1.442695, %v12864_v4 }
 0x4bf   :  { %v9686_v20 = vmul.f32 -1.442695, %v12865_v61  ;;  %v9688_v59 = vmul.f32 -1.442695, %v12881_v50 }
 0x4c0   :  { %13289 = vpow2.f32 %v9684_v7 }
 0x4c1   :  { %13291 = vpow2.f32 %v9686_v20 }
 0x4c2   :  { %13293 = vpow2.f32 %v9688_v59 }
 0x4c3   :  { %13295 = vtanh.f32 %v12880_v54 }
 0x4ca   :  { %v13290_v48 = vpop.eup %13289 }
 0x4cb   :  { %v13292_v24 = vpop.eup %13291  ;;  %v2373_v17 = vadd.f32 1.0, %v13290_v48 }
 0x4cc   :  { %v2385_v35 = vadd.f32 1.0, %v13292_v24  ;;  %v13294_v51 = vpop.eup %13293 }
 0x4cd   :  { %13297 = vrcp.f32 %v2373_v17  ;;  %v13296_v16 = vpop.eup %13295  ;;  %v2399_v7 = vadd.f32 1.0, %v13294_v51 }
 0x4ce   :  { %13299 = vrcp.f32 %v2385_v35 }
 0x4cf   :  { %13301 = vrcp.f32 %v2399_v7 }
 0x4d7   :  { %v13298_v45 = vpop.eup %13297 }
 0x4d8   :  { %v13300_v4 = vpop.eup %13299  ;;  %v2407_v61 = vmul.f32 %v13298_v45, %v13296_v16 }
 0x4d9   :  { %v2405_v20 = vmul.f32 %v13300_v4, %v14784_v39  ;;  %v13302_v33 = vpop.eup %13301 }
 0x4db   :  { %v14884_v26 = vadd.f32 %v2407_v61, %v2405_v20 }
 0x4dd   :  { %13303 = vtanh.f32 %v14884_v26 }
 0x4e7   :  { %v13304_v50 = vpop.eup %13303 }
 0x4e8   :  { %v14887_v59 = vmul.f32 %v13304_v50, %v13302_v33 }
 0x4ea   :  { %17095 = vst [vmem:[#allocation58_spill] sm:$0xff] %v14887_v59  ;;  %2482 = vmatmul.mubr.f32.vlgmr.msra.gmra.mrb[8].mxu0 %v14887_v59  ;;  %2557 = vmatmul.mubr.f32.vlgmr.msra.gmra.mrb[8].mxu1 %v14887_v59 }
 0x4eb   :  { %10493 = vmatpush1.bf16.msra.mxu0 %v14377_v30  ;;  %10525 = vmatpush1.bf16.msra.mxu1 %v14381_v32 }
 0x4ec   :  { %10495 = vmatprep.subr.bf16.mxu0 %v14383_v36  ;;  %10527 = vmatprep.subr.bf16.mxu1 %v14387_v14 }
 0x4ed   :  { %2487 = vmatprep.mubr.f32.mxu0 %v16996_v19  ;;  %2562 = vmatprep.mubr.f32.mxu1 %v16996_v19 }
 0x4ef   :  { %v2123_v39 = vpop.f32.mrb[44].mxu0  ;;  %v2198_v17 = vpop.f32.mrb[44].mxu1  ;;  %10497 = vmatpush1.bf16.msra.mxu0 %v14393_v55  ;;  %10529 = vmatpush1.bf16.msra.mxu1 %v14397_v58 }
 0x4f0   :  { %v2124_v35 = vpop.f32.mrb[45].mxu0  ;;  %v2199_v24 = vpop.f32.mrb[45].mxu1  ;;  %10499 = vmatprep.subr.bf16.mxu0 %v14399_v60  ;;  %10531 = vmatprep.subr.bf16.mxu1 %v14402_v5 }
 0x4f3   :  { %v2267_v16 = vpop.f32.mrb[46].mxu0  ;;  %v2342_v54 = vpop.f32.mrb[46].mxu1  ;;  %10501 = vmatpush1.bf16.msra.mxu0 %v14408_v18  ;;  %10533 = vmatpush1.bf16.msra.mxu1 %v17009_v63 }
 0x4f4   :  { %v2268_v48 = vpop.f32.mrb[47].mxu0  ;;  %v2343_v51 = vpop.f32.mrb[47].mxu1  ;;  %10503 = vmatprep.subr.bf16.mxu0 %v17036_v29  ;;  %10535 = vmatprep.subr.bf16.mxu1 %v17037_v11 }
 0x4f7   :  { %v2271_v45 = vpop.f32.mrb[24].mxu0  ;;  %v2346_v4 = vpop.f32.mrb[24].mxu1  ;;  %10505 = vmatpush1.bf16.msra.mxu0 %v17038_v1  ;;  %10537 = vmatpush1.bf16.msra.mxu1 %v17039_v6 }
 0x4f8   :  { %v12898_v61 = vadd.f32 %v2271_v45, %v14568_v53  ;;  %v2273_v7 = vpop.f32.mrb[25].mxu0  ;;  %v2348_v20 = vpop.f32.mrb[25].mxu1  ;;  %10507 = vmatprep.subr.bf16.mxu0 %v17014_v52  ;;  %10539 = vmatprep.subr.bf16.mxu1 %v17015_v22  ;;  %v12914_v24 = vadd.f32 %v2346_v4, %v17035_v9 }
 0x4f9   :  { %v12899_v33 = vadd.f32 %v2273_v7, %v14574_v56  ;;  %v12915_v17 = vadd.f32 %v2348_v20, %v14582_v8 }
 0x4fa   :  { %v9685_v50 = vmul.f32 -1.442695, %v12898_v61 }
 0x4fb   :  { %v9687_v39 = vmul.f32 -1.442695, %v12899_v33  ;;  %10509 = vmatpush1.bf16.msra.mxu0 %v17016_v46  ;;  %10541 = vmatpush1.bf16.msra.mxu1 %v17017_v43  ;;  %v9689_v35 = vmul.f32 -1.442695, %v12915_v17 }
 0x4fc   :  { %13305 = vpow2.f32 %v9685_v50  ;;  %10511 = vmatprep.subr.bf16.mxu0 %v14441_v42  ;;  %10543 = vmatprep.subr.bf16.mxu1 %v17018_v62 }
 0x4fd   :  { %13307 = vpow2.f32 %v9687_v39 }
 0x4fe   :  { %13309 = vpow2.f32 %v9689_v35 }
 0x4ff   :  { %10513 = vmatpush1.bf16.msra.mxu0 %v14447_v49  ;;  %10545 = vmatpush1.bf16.msra.mxu1 %v14451_v0  ;;  %13311 = vtanh.f32 %v12914_v24 }
 0x500   :  { %10515 = vmatprep.subr.bf16.mxu0 %v14453_v10  ;;  %10547 = vmatprep.subr.bf16.mxu1 %v14456_v27 }
 0x503   :  { %10517 = vmatpush1.bf16.msra.mxu0 %v14459_v37  ;;  %10549 = vmatpush1.bf16.msra.mxu1 %v14463_v23 }
 0x504   :  { %10519 = vmatprep.subr.bf16.mxu0 %v14465_v40  ;;  %10551 = vmatprep.subr.bf16.mxu1 %v14468_v3 }
 0x506   :  { %v13306_v16 = vpop.eup %13305 }
 0x507   :  { %v13308_v54 = vpop.eup %13307  ;;  %v2374_v48 = vadd.f32 1.0, %v13306_v16  ;;  %10521 = vmatpush1.bf16.msra.mxu0 %v14471_v15  ;;  %10553 = vmatpush1.bf16.msra.mxu1 %v14475_v12  ;;  %v17098_v16 = vld [vmem:[#allocation24_spill] sm:$0xff] }
 0x508   :  { %v2386_v51 = vadd.f32 1.0, %v13308_v54  ;;  %10555 = vmatprep.subr.bf16.mxu0 %v14244_v21  ;;  %10587 = vmatprep.subr.bf16.mxu1 %v14247_v25  ;;  %v13310_v45 = vpop.eup %13309  ;;  %v17099_v54 = vld [vmem:[#allocation25_spill] sm:$0xff] }
 0x509   :  { %13313 = vrcp.f32 %v2374_v48  ;;  %v13312_v4 = vpop.eup %13311  ;;  %v2400_v33 = vadd.f32 1.0, %v13310_v45  ;;  %v17100_v48 = vld [vmem:[#allocation26_spill] sm:$0xff]  ;;  %v17102_v45 = vld [vmem:[#allocation28_spill] sm:$0xff] }
 0x50a   :  { %13315 = vrcp.f32 %v2386_v51  ;;  %v17101_v51 = vld [vmem:[#allocation27_spill] sm:$0xff] }
 0x50b   :  { %13317 = vrcp.f32 %v2400_v33  ;;  %v17107_v33 = vld [vmem:[#allocation33_spill] sm:$0xff] }
 0x513   :  { %v13314_v61 = vpop.eup %13313 }
 0x514   :  { %v13316_v7 = vpop.eup %13315  ;;  %v2408_v20 = vmul.f32 %v13314_v61, %v13312_v4  ;;  %v17103_v4 = vld [vmem:[#allocation29_spill] sm:$0xff]  ;;  %v17104_v61 = vld [vmem:[#allocation30_spill] sm:$0xff] }
 0x515   :  { %v2406_v50 = vmul.f32 %v13316_v7, %v14830_v57  ;;  %v13318_v17 = vpop.eup %13317  ;;  %v17097_v57 = vld [vmem:[#allocation23_spill] sm:$0xff] }
 0x516   :  { %v17105_v7 = vld [vmem:[#allocation31_spill] sm:$0xff] }
 0x517   :  { %v14930_v39 = vadd.f32 %v2408_v20, %v2406_v50  ;;  %v17106_v20 = vld [vmem:[#allocation32_spill] sm:$0xff]  ;;  %v17108_v50 = vld [vmem:[#allocation34_spill] sm:$0xff] }
 0x519   :  { %13319 = vtanh.f32 %v14930_v39 }
 0x523   :  { %v13320_v35 = vpop.eup %13319 }
 0x524   :  { %v14933_v24 = vmul.f32 %v13320_v35, %v13318_v17  ;;  %v17109_v17 = vld [vmem:[#allocation35_spill] sm:$0xff]  ;;  %v17110_v35 = vld [vmem:[#allocation36_spill] sm:$0xff] }
 0x526   :  { %17096 = vst [vmem:[#allocation70_spill] sm:$0xff] %v14933_v24  ;;  %2488 = vmatmul.mubr.f32.gmra.mrb[48].mxu0 %v14933_v24  ;;  %2563 = vmatmul.mubr.f32.gmra.mrb[48].mxu1 %v14933_v24 }
 0x527   :  { %2631 = vmatprep.mubr.f32.mxu0 %v16996_v19  ;;  %2706 = vmatprep.mubr.f32.mxu1 %v16996_v19 }
 0x52a   :  { %2632 = vmatmul.mubr.f32.vlgmr.msra.gmra.mrb[50].mxu0 %v14887_v59  ;;  %2707 = vmatmul.mubr.f32.vlgmr.msra.gmra.mrb[50].mxu1 %v14887_v59  ;;  %v17112_v59 = vld [vmem:[#allocation38_spill] sm:$0xff] }
 0x52b   :  { %2635 = vmatprep.mubr.f32.mxu0 %v16996_v19  ;;  %2710 = vmatprep.mubr.f32.mxu1 %v16996_v19 }
 0x52c   :  { %10557 = vmatpush1.bf16.msra.mxu0 %v14250_v28  ;;  %10589 = vmatpush1.bf16.msra.mxu1 %v14253_v31 }
 0x52d   :  { %10559 = vmatprep.subr.bf16.mxu0 %v14257_v34  ;;  %10591 = vmatprep.subr.bf16.mxu1 %v14261_v38 }
 0x52e   :  { %2636 = vmatmul.mubr.f32.gmra.mrb[22].mxu0 %v14933_v24  ;;  %2711 = vmatmul.mubr.f32.gmra.mrb[22].mxu1 %v14933_v24  ;;  %v17111_v24 = vld [vmem:[#allocation37_spill] sm:$0xff] }
 0x52f   :  { %2847 = vmatprep.mubr.f32.mxu0 %v16996_v19  ;;  %2922 = vmatprep.mubr.f32.mxu1 %v16996_v19 }
 0x530   :  { %10561 = vmatpush1.bf16.msra.mxu0 %v14265_v41  ;;  %10593 = vmatpush1.bf16.msra.mxu1 %v14269_v44 }
 0x531   :  { %10563 = vmatprep.subr.bf16.mxu0 %v17097_v57  ;;  %10595 = vmatprep.subr.bf16.mxu1 %v17098_v16 }
 0x534   :  { %10565 = vmatpush1.bf16.msra.mxu0 %v17099_v54  ;;  %10597 = vmatpush1.bf16.msra.mxu1 %v17100_v48 }
 0x535   :  { %10567 = vmatprep.subr.bf16.mxu0 %v17101_v51  ;;  %10599 = vmatprep.subr.bf16.mxu1 %v17102_v45  ;;  %v17113_v45 = vld [vmem:[#allocation39_spill] sm:$0xff]  ;;  %v17123_v51 = vld [vmem:[#allocation62_spill] sm:$0xff] }
 0x538   :  { %10569 = vmatpush1.bf16.msra.mxu0 %v17103_v4  ;;  %10601 = vmatpush1.bf16.msra.mxu1 %v17104_v61  ;;  %v17114_v4 = vld [vmem:[#allocation40_spill] sm:$0xff]  ;;  %v17115_v61 = vld [vmem:[#allocation41_spill] sm:$0xff] }
 0x539   :  { %10571 = vmatprep.subr.bf16.mxu0 %v17105_v7  ;;  %10603 = vmatprep.subr.bf16.mxu1 %v17106_v20  ;;  %v17116_v7 = vld [vmem:[#allocation42_spill] sm:$0xff]  ;;  %v17117_v20 = vld [vmem:[#allocation43_spill] sm:$0xff] }
 0x53c   :  { %10573 = vmatpush1.bf16.msra.mxu0 %v17107_v33  ;;  %10605 = vmatpush1.bf16.msra.mxu1 %v17108_v50  ;;  %v17118_v33 = vld [vmem:[#allocation44_spill] sm:$0xff]  ;;  %v17119_v50 = vld [vmem:[#allocation45_spill] sm:$0xff] }
 0x53d   :  { %10575 = vmatprep.subr.bf16.mxu0 %v17109_v17  ;;  %10607 = vmatprep.subr.bf16.mxu1 %v17110_v35  ;;  %v17120_v17 = vld [vmem:[#allocation46_spill] sm:$0xff]  ;;  %v17121_v35 = vld [vmem:[#allocation47_spill] sm:$0xff] }
 0x540   :  { %10577 = vmatpush1.bf16.msra.mxu0 %v17111_v24  ;;  %10609 = vmatpush1.bf16.msra.mxu1 %v17112_v59  ;;  %v17122_v24 = vld [vmem:[#allocation48_spill] sm:$0xff] }
 0x541   :  { %10579 = vmatprep.subr.bf16.mxu0 %v17113_v45  ;;  %10611 = vmatprep.subr.bf16.mxu1 %v17114_v4 }
 0x544   :  { %10581 = vmatpush1.bf16.msra.mxu0 %v17115_v61  ;;  %10613 = vmatpush1.bf16.msra.mxu1 %v17116_v7 }
 0x545   :  { %10583 = vmatprep.subr.bf16.mxu0 %v17117_v20  ;;  %10615 = vmatprep.subr.bf16.mxu1 %v17118_v33 }
 0x548   :  { %10585 = vmatpush1.bf16.msra.mxu0 %v17119_v50  ;;  %10617 = vmatpush1.bf16.msra.mxu1 %v17120_v17 }
 0x549   :  { %10619 = vmatprep.subr.bf16.mxu0 %v17121_v35  ;;  %10651 = vmatprep.subr.bf16.mxu1 %v17122_v24 }
 0x5bd   :  { %v2483_v59 = vpop.f32.mrb[8].mxu0  ;;  %v2558_v45 = vpop.f32.mrb[8].mxu1 }
 0x5be   :  { %v12866_v4 = vadd.f32 %v2483_v59, %v17123_v51  ;;  %v2485_v48 = vpop.f32.mrb[9].mxu0  ;;  %v2560_v61 = vpop.f32.mrb[9].mxu1  ;;  %v12882_v17 = vadd.f32 %v2558_v45, %v17065_v13 }
 0x5bf   :  { %v12867_v7 = vadd.f32 %v2485_v48, %v17063_v47  ;;  %v12883_v50 = vadd.f32 %v2560_v61, %v17064_v2 }
 0x5c0   :  { %v9690_v54 = vmul.f32 -1.442695, %v12866_v4 }
 0x5c1   :  { %v9692_v20 = vmul.f32 -1.442695, %v12867_v7  ;;  %v9694_v33 = vmul.f32 -1.442695, %v12883_v50 }
 0x5c2   :  { %13321 = vpow2.f32 %v9690_v54 }
 0x5c3   :  { %13323 = vpow2.f32 %v9692_v20 }
 0x5c4   :  { %13325 = vpow2.f32 %v9694_v33 }
 0x5c5   :  { %13327 = vtanh.f32 %v12882_v17 }
 0x5cc   :  { %v13322_v35 = vpop.eup %13321 }
 0x5cd   :  { %v13324_v16 = vpop.eup %13323  ;;  %v2739_v24 = vadd.f32 1.0, %v13322_v35 }
 0x5ce   :  { %v2751_v57 = vadd.f32 1.0, %v13324_v16  ;;  %v13326_v59 = vpop.eup %13325 }
 0x5cf   :  { %13329 = vrcp.f32 %v2739_v24  ;;  %v13328_v51 = vpop.eup %13327  ;;  %v2765_v54 = vadd.f32 1.0, %v13326_v59 }
 0x5d0   :  { %13331 = vrcp.f32 %v2751_v57 }
 0x5d1   :  { %13333 = vrcp.f32 %v2765_v54 }
 0x5d9   :  { %v13330_v48 = vpop.eup %13329 }
 0x5da   :  { %v13332_v4 = vpop.eup %13331  ;;  %v2773_v7 = vmul.f32 %v13330_v48, %v13328_v51 }
 0x5db   :  { %v2771_v20 = vmul.f32 %v13332_v4, %v14884_v26  ;;  %v13334_v45 = vpop.eup %13333 }
 0x5dd   :  { %v14984_v61 = vadd.f32 %v2773_v7, %v2771_v20 }
 0x5df   :  { %13335 = vtanh.f32 %v14984_v61 }
 0x5e9   :  { %v13336_v50 = vpop.eup %13335 }
 0x5ea   :  { %v14987_v33 = vmul.f32 %v13336_v50, %v13334_v45 }
 0x5ec   :  { %17124 = vst [vmem:[#allocation50_spill] sm:$0xff] %v14987_v33  ;;  %2848 = vmatmul.mubr.f32.vlgmr.msra.gmra.mrb[10].mxu0 %v14987_v33  ;;  %2923 = vmatmul.mubr.f32.vlgmr.msra.gmra.mrb[10].mxu1 %v14987_v33 }
 0x5ed   :  { %10621 = vmatpush1.bf16.msra.mxu0 %v14377_v30  ;;  %10653 = vmatpush1.bf16.msra.mxu1 %v14381_v32 }
 0x5ee   :  { %10623 = vmatprep.subr.bf16.mxu0 %v14383_v36  ;;  %10655 = vmatprep.subr.bf16.mxu1 %v14387_v14 }
 0x5ef   :  { %2853 = vmatprep.mubr.f32.mxu0 %v16996_v19  ;;  %2928 = vmatprep.mubr.f32.mxu1 %v16996_v19 }
 0x5f1   :  { %10625 = vmatpush1.bf16.msra.mxu0 %v14393_v55  ;;  %10657 = vmatpush1.bf16.msra.mxu1 %v14397_v58 }
 0x5f2   :  { %10627 = vmatprep.subr.bf16.mxu0 %v14399_v60  ;;  %10659 = vmatprep.subr.bf16.mxu1 %v14402_v5 }
 0x5f5   :  { %10629 = vmatpush1.bf16.msra.mxu0 %v14408_v18  ;;  %10661 = vmatpush1.bf16.msra.mxu1 %v17009_v63 }
 0x5f6   :  { %10631 = vmatprep.subr.bf16.mxu0 %v17036_v29  ;;  %10663 = vmatprep.subr.bf16.mxu1 %v17037_v11 }
 0x5f9   :  { %v2489_v26 = vpop.f32.mrb[48].mxu0  ;;  %v2564_v24 = vpop.f32.mrb[48].mxu1  ;;  %10633 = vmatpush1.bf16.msra.mxu0 %v17038_v1  ;;  %10665 = vmatpush1.bf16.msra.mxu1 %v17039_v6 }
 0x5fa   :  { %v2490_v57 = vpop.f32.mrb[49].mxu0  ;;  %v2565_v16 = vpop.f32.mrb[49].mxu1  ;;  %10635 = vmatprep.subr.bf16.mxu0 %v17014_v52  ;;  %10667 = vmatprep.subr.bf16.mxu1 %v17015_v22 }
 0x5fd   :  { %v2633_v51 = vpop.f32.mrb[50].mxu0  ;;  %v2708_v17 = vpop.f32.mrb[50].mxu1  ;;  %10637 = vmatpush1.bf16.msra.mxu0 %v17016_v46  ;;  %10669 = vmatpush1.bf16.msra.mxu1 %v17017_v43 }
 0x5fe   :  { %v2634_v35 = vpop.f32.mrb[51].mxu0  ;;  %v2709_v59 = vpop.f32.mrb[51].mxu1  ;;  %10639 = vmatprep.subr.bf16.mxu0 %v14441_v42  ;;  %10671 = vmatprep.subr.bf16.mxu1 %v17018_v62 }
 0x601   :  { %v2637_v48 = vpop.f32.mrb[22].mxu0  ;;  %v2712_v4 = vpop.f32.mrb[22].mxu1  ;;  %10641 = vmatpush1.bf16.msra.mxu0 %v14447_v49  ;;  %10673 = vmatpush1.bf16.msra.mxu1 %v14451_v0 }
 0x602   :  { %v12896_v7 = vadd.f32 %v2637_v48, %v14568_v53  ;;  %v2639_v54 = vpop.f32.mrb[23].mxu0  ;;  %v2714_v20 = vpop.f32.mrb[23].mxu1  ;;  %10643 = vmatprep.subr.bf16.mxu0 %v14453_v10  ;;  %10675 = vmatprep.subr.bf16.mxu1 %v14456_v27  ;;  %v12912_v16 = vadd.f32 %v2712_v4, %v17035_v9 }
 0x603   :  { %v12897_v45 = vadd.f32 %v2639_v54, %v14574_v56  ;;  %v12913_v24 = vadd.f32 %v2714_v20, %v14582_v8 }
 0x604   :  { %v9691_v50 = vmul.f32 -1.442695, %v12896_v7 }
 0x605   :  { %v9693_v26 = vmul.f32 -1.442695, %v12897_v45  ;;  %10645 = vmatpush1.bf16.msra.mxu0 %v14459_v37  ;;  %10677 = vmatpush1.bf16.msra.mxu1 %v14463_v23  ;;  %v9695_v57 = vmul.f32 -1.442695, %v12913_v24 }
 0x606   :  { %13337 = vpow2.f32 %v9691_v50  ;;  %10647 = vmatprep.subr.bf16.mxu0 %v14465_v40  ;;  %10679 = vmatprep.subr.bf16.mxu1 %v14468_v3 }
 0x607   :  { %13339 = vpow2.f32 %v9693_v26 }
 0x608   :  { %13341 = vpow2.f32 %v9695_v57 }
 0x609   :  { %10649 = vmatpush1.bf16.msra.mxu0 %v14471_v15  ;;  %10681 = vmatpush1.bf16.msra.mxu1 %v14475_v12  ;;  %13343 = vtanh.f32 %v12912_v16  ;;  %v17127_v16 = vld [vmem:[#allocation24_spill] sm:$0xff] }
 0x60a   :  { %10683 = vmatprep.subr.bf16.mxu0 %v14244_v21  ;;  %10715 = vmatprep.subr.bf16.mxu1 %v14247_v25 }
 0x610   :  { %v13338_v51 = vpop.eup %13337 }
 0x611   :  { %v13340_v17 = vpop.eup %13339  ;;  %v2740_v35 = vadd.f32 1.0, %v13338_v51  ;;  %v17128_v51 = vld [vmem:[#allocation25_spill] sm:$0xff] }
 0x612   :  { %v2752_v59 = vadd.f32 1.0, %v13340_v17  ;;  %v13342_v48 = vpop.eup %13341  ;;  %v17129_v17 = vld [vmem:[#allocation26_spill] sm:$0xff] }
 0x613   :  { %13345 = vrcp.f32 %v2740_v35  ;;  %v13344_v7 = vpop.eup %13343  ;;  %v2766_v50 = vadd.f32 1.0, %v13342_v48  ;;  %v17130_v35 = vld [vmem:[#allocation27_spill] sm:$0xff]  ;;  %v17132_v48 = vld [vmem:[#allocation29_spill] sm:$0xff] }
 0x614   :  { %13347 = vrcp.f32 %v2752_v59  ;;  %v17131_v59 = vld [vmem:[#allocation28_spill] sm:$0xff] }
 0x615   :  { %13349 = vrcp.f32 %v2766_v50  ;;  %v17137_v50 = vld [vmem:[#allocation34_spill] sm:$0xff] }
 0x61d   :  { %v13346_v54 = vpop.eup %13345 }
 0x61e   :  { %v13348_v20 = vpop.eup %13347  ;;  %v2774_v45 = vmul.f32 %v13346_v54, %v13344_v7  ;;  %v17133_v7 = vld [vmem:[#allocation30_spill] sm:$0xff]  ;;  %v17134_v54 = vld [vmem:[#allocation31_spill] sm:$0xff] }
 0x61f   :  { %v2772_v26 = vmul.f32 %v13348_v20, %v14930_v39  ;;  %v13350_v4 = vpop.eup %13349  ;;  %v17126_v39 = vld [vmem:[#allocation23_spill] sm:$0xff]  ;;  %v17135_v20 = vld [vmem:[#allocation32_spill] sm:$0xff] }
 0x621   :  { %v15030_v8 = vadd.f32 %v2774_v45, %v2772_v26  ;;  %v17136_v45 = vld [vmem:[#allocation33_spill] sm:$0xff]  ;;  %v17138_v26 = vld [vmem:[#allocation35_spill] sm:$0xff] }
 0x623   :  { %13351 = vtanh.f32 %v15030_v8 }
 0x62d   :  { %v13352_v24 = vpop.eup %13351 }
 0x62e   :  { %v15033_v57 = vmul.f32 %v13352_v24, %v13350_v4  ;;  %v17139_v4 = vld [vmem:[#allocation36_spill] sm:$0xff]  ;;  %v17140_v24 = vld [vmem:[#allocation37_spill] sm:$0xff] }
 0x630   :  { %17125 = vst [vmem:[#allocation51_spill] sm:$0xff] %v15033_v57  ;;  %2854 = vmatmul.mubr.f32.gmra.mrb[52].mxu0 %v15033_v57  ;;  %2929 = vmatmul.mubr.f32.gmra.mrb[52].mxu1 %v15033_v57 }
 0x631   :  { %2997 = vmatprep.mubr.f32.mxu0 %v16996_v19  ;;  %3072 = vmatprep.mubr.f32.mxu1 %v16996_v19 }
 0x634   :  { %2998 = vmatmul.mubr.f32.vlgmr.msra.gmra.mrb[54].mxu0 %v14987_v33  ;;  %3073 = vmatmul.mubr.f32.vlgmr.msra.gmra.mrb[54].mxu1 %v14987_v33  ;;  %v17141_v33 = vld [vmem:[#allocation38_spill] sm:$0xff] }
 0x635   :  { %3001 = vmatprep.mubr.f32.mxu0 %v16996_v19  ;;  %3076 = vmatprep.mubr.f32.mxu1 %v16996_v19 }
 0x636   :  { %10685 = vmatpush1.bf16.msra.mxu0 %v14250_v28  ;;  %10717 = vmatpush1.bf16.msra.mxu1 %v14253_v31 }
 0x637   :  { %10687 = vmatprep.subr.bf16.mxu0 %v14257_v34  ;;  %10719 = vmatprep.subr.bf16.mxu1 %v14261_v38 }
 0x638   :  { %3002 = vmatmul.mubr.f32.gmra.mrb[20].mxu0 %v15033_v57  ;;  %3077 = vmatmul.mubr.f32.gmra.mrb[20].mxu1 %v15033_v57  ;;  %v17142_v57 = vld [vmem:[#allocation39_spill] sm:$0xff] }
 0x639   :  { %3213 = vmatprep.mubr.f32.mxu0 %v16996_v19  ;;  %3288 = vmatprep.mubr.f32.mxu1 %v16996_v19 }
 0x63a   :  { %10689 = vmatpush1.bf16.msra.mxu0 %v14265_v41  ;;  %10721 = vmatpush1.bf16.msra.mxu1 %v14269_v44 }
 0x63b   :  { %10691 = vmatprep.subr.bf16.mxu0 %v17126_v39  ;;  %10723 = vmatprep.subr.bf16.mxu1 %v17127_v16 }
 0x63e   :  { %10693 = vmatpush1.bf16.msra.mxu0 %v17128_v51  ;;  %10725 = vmatpush1.bf16.msra.mxu1 %v17129_v17 }
 0x63f   :  { %10695 = vmatprep.subr.bf16.mxu0 %v17130_v35  ;;  %10727 = vmatprep.subr.bf16.mxu1 %v17131_v59  ;;  %v17152_v59 = vld [vmem:[#allocation62_spill] sm:$0xff] }
 0x642   :  { %10697 = vmatpush1.bf16.msra.mxu0 %v17132_v48  ;;  %10729 = vmatpush1.bf16.msra.mxu1 %v17133_v7  ;;  %v17143_v48 = vld [vmem:[#allocation40_spill] sm:$0xff]  ;;  %v17144_v7 = vld [vmem:[#allocation41_spill] sm:$0xff] }
 0x643   :  { %10699 = vmatprep.subr.bf16.mxu0 %v17134_v54  ;;  %10731 = vmatprep.subr.bf16.mxu1 %v17135_v20  ;;  %v17145_v54 = vld [vmem:[#allocation42_spill] sm:$0xff]  ;;  %v17146_v20 = vld [vmem:[#allocation43_spill] sm:$0xff] }
 0x646   :  { %10701 = vmatpush1.bf16.msra.mxu0 %v17136_v45  ;;  %10733 = vmatpush1.bf16.msra.mxu1 %v17137_v50  ;;  %v17147_v45 = vld [vmem:[#allocation44_spill] sm:$0xff]  ;;  %v17148_v50 = vld [vmem:[#allocation45_spill] sm:$0xff] }
 0x647   :  { %10703 = vmatprep.subr.bf16.mxu0 %v17138_v26  ;;  %10735 = vmatprep.subr.bf16.mxu1 %v17139_v4  ;;  %v17149_v26 = vld [vmem:[#allocation46_spill] sm:$0xff]  ;;  %v17150_v4 = vld [vmem:[#allocation47_spill] sm:$0xff] }
 0x64a   :  { %10705 = vmatpush1.bf16.msra.mxu0 %v17140_v24  ;;  %10737 = vmatpush1.bf16.msra.mxu1 %v17141_v33  ;;  %v17151_v24 = vld [vmem:[#allocation48_spill] sm:$0xff] }
 0x64b   :  { %10707 = vmatprep.subr.bf16.mxu0 %v17142_v57  ;;  %10739 = vmatprep.subr.bf16.mxu1 %v17143_v48 }
 0x64e   :  { %10709 = vmatpush1.bf16.msra.mxu0 %v17144_v7  ;;  %10741 = vmatpush1.bf16.msra.mxu1 %v17145_v54 }
 0x64f   :  { %10711 = vmatprep.subr.bf16.mxu0 %v17146_v20  ;;  %10743 = vmatprep.subr.bf16.mxu1 %v17147_v45 }
 0x652   :  { %10713 = vmatpush1.bf16.msra.mxu0 %v17148_v50  ;;  %10745 = vmatpush1.bf16.msra.mxu1 %v17149_v26 }
 0x653   :  { %10747 = vmatprep.subr.bf16.mxu0 %v17150_v4  ;;  %10779 = vmatprep.subr.bf16.mxu1 %v17151_v24 }
 0x6bf   :  { %v2849_v33 = vpop.f32.mrb[10].mxu0  ;;  %v2924_v57 = vpop.f32.mrb[10].mxu1 }
 0x6c0   :  { %v12868_v48 = vadd.f32 %v2849_v33, %v17152_v59  ;;  %v2851_v35 = vpop.f32.mrb[11].mxu0  ;;  %v2926_v7 = vpop.f32.mrb[11].mxu1  ;;  %v12884_v26 = vadd.f32 %v2924_v57, %v17065_v13 }
 0x6c1   :  { %v12869_v54 = vadd.f32 %v2851_v35, %v17063_v47  ;;  %v12885_v50 = vadd.f32 %v2926_v7, %v17064_v2 }
 0x6c2   :  { %v9696_v17 = vmul.f32 -1.442695, %v12868_v48 }
 0x6c3   :  { %v9698_v20 = vmul.f32 -1.442695, %v12869_v54  ;;  %v9700_v45 = vmul.f32 -1.442695, %v12885_v50 }
 0x6c4   :  { %13353 = vpow2.f32 %v9696_v17 }
 0x6c5   :  { %13355 = vpow2.f32 %v9698_v20 }
 0x6c6   :  { %13357 = vpow2.f32 %v9700_v45 }
 0x6c7   :  { %13359 = vtanh.f32 %v12884_v26 }
 0x6ce   :  { %v13354_v4 = vpop.eup %13353 }
 0x6cf   :  { %v13356_v51 = vpop.eup %13355  ;;  %v3105_v24 = vadd.f32 1.0, %v13354_v4 }
 0x6d0   :  { %v3117_v16 = vadd.f32 1.0, %v13356_v51  ;;  %v13358_v33 = vpop.eup %13357 }
 0x6d1   :  { %13361 = vrcp.f32 %v3105_v24  ;;  %v13360_v59 = vpop.eup %13359  ;;  %v3131_v17 = vadd.f32 1.0, %v13358_v33 }
 0x6d2   :  { %13363 = vrcp.f32 %v3117_v16 }
 0x6d3   :  { %13365 = vrcp.f32 %v3131_v17 }
 0x6db   :  { %v13362_v35 = vpop.eup %13361 }
 0x6dc   :  { %v13364_v48 = vpop.eup %13363  ;;  %v3139_v54 = vmul.f32 %v13362_v35, %v13360_v59 }
 0x6dd   :  { %v3137_v20 = vmul.f32 %v13364_v48, %v14984_v61  ;;  %v13366_v57 = vpop.eup %13365 }
 0x6df   :  { %v15084_v7 = vadd.f32 %v3139_v54, %v3137_v20 }
 0x6e1   :  { %13367 = vtanh.f32 %v15084_v7 }
 0x6eb   :  { %v13368_v50 = vpop.eup %13367 }
 0x6ec   :  { %v15087_v45 = vmul.f32 %v13368_v50, %v13366_v57 }
 0x6ee   :  { %3214 = vmatmul.mubr.f32.vlgmr.msra.gmra.mrb[12].mxu0 %v15087_v45  ;;  %3289 = vmatmul.mubr.f32.vlgmr.msra.gmra.mrb[12].mxu1 %v15087_v45 }
 0x6ef   :  { %10749 = vmatpush1.bf16.msra.mxu0 %v14377_v30  ;;  %10781 = vmatpush1.bf16.msra.mxu1 %v14381_v32 }
 0x6f0   :  { %10751 = vmatprep.subr.bf16.mxu0 %v14383_v36  ;;  %10783 = vmatprep.subr.bf16.mxu1 %v14387_v14 }
 0x6f1   :  { %3219 = vmatprep.mubr.f32.mxu0 %v16996_v19  ;;  %3294 = vmatprep.mubr.f32.mxu1 %v16996_v19 }
 0x6f3   :  { %10753 = vmatpush1.bf16.msra.mxu0 %v14393_v55  ;;  %10785 = vmatpush1.bf16.msra.mxu1 %v14397_v58 }
 0x6f4   :  { %10755 = vmatprep.subr.bf16.mxu0 %v14399_v60  ;;  %10787 = vmatprep.subr.bf16.mxu1 %v14402_v5 }
 0x6f7   :  { %10757 = vmatpush1.bf16.msra.mxu0 %v14408_v18  ;;  %10789 = vmatpush1.bf16.msra.mxu1 %v17009_v63 }
 0x6f8   :  { %10759 = vmatprep.subr.bf16.mxu0 %v17036_v29  ;;  %10791 = vmatprep.subr.bf16.mxu1 %v17037_v11 }
 0x6fb   :  { %10761 = vmatpush1.bf16.msra.mxu0 %v17038_v1  ;;  %10793 = vmatpush1.bf16.msra.mxu1 %v17039_v6 }
 0x6fc   :  { %10763 = vmatprep.subr.bf16.mxu0 %v17014_v52  ;;  %10795 = vmatprep.subr.bf16.mxu1 %v17015_v22 }
 0x6ff   :  { %10765 = vmatpush1.bf16.msra.mxu0 %v17016_v46  ;;  %10797 = vmatpush1.bf16.msra.mxu1 %v17017_v43 }
 0x700   :  { %10767 = vmatprep.subr.bf16.mxu0 %v14441_v42  ;;  %10799 = vmatprep.subr.bf16.mxu1 %v17018_v62 }
 0x703   :  { %v2855_v61 = vpop.f32.mrb[52].mxu0  ;;  %v2930_v16 = vpop.f32.mrb[52].mxu1  ;;  %10769 = vmatpush1.bf16.msra.mxu0 %v14447_v49  ;;  %10801 = vmatpush1.bf16.msra.mxu1 %v14451_v0 }
 0x704   :  { %v2856_v51 = vpop.f32.mrb[53].mxu0  ;;  %v2931_v59 = vpop.f32.mrb[53].mxu1  ;;  %10771 = vmatprep.subr.bf16.mxu0 %v14453_v10  ;;  %10803 = vmatprep.subr.bf16.mxu1 %v14456_v27  ;;  %v17153_v16 = vld [vmem:[#allocation68_spill] sm:$0xff] }
 0x707   :  { %v2999_v26 = vpop.f32.mrb[54].mxu0  ;;  %v3074_v4 = vpop.f32.mrb[54].mxu1  ;;  %10773 = vmatpush1.bf16.msra.mxu0 %v14459_v37  ;;  %10805 = vmatpush1.bf16.msra.mxu1 %v14463_v23 }
 0x708   :  { %v3000_v24 = vpop.f32.mrb[55].mxu0  ;;  %v3075_v33 = vpop.f32.mrb[55].mxu1  ;;  %10775 = vmatprep.subr.bf16.mxu0 %v14465_v40  ;;  %10807 = vmatprep.subr.bf16.mxu1 %v14468_v3 }
 0x70b   :  { %v3003_v35 = vpop.f32.mrb[20].mxu0  ;;  %v3078_v48 = vpop.f32.mrb[20].mxu1  ;;  %10777 = vmatpush1.bf16.msra.mxu0 %v14471_v15  ;;  %10809 = vmatpush1.bf16.msra.mxu1 %v14475_v12 }
 0x70c   :  { %v12894_v54 = vadd.f32 %v3003_v35, %v14568_v53  ;;  %v3005_v17 = vpop.f32.mrb[21].mxu0  ;;  %v3080_v20 = vpop.f32.mrb[21].mxu1  ;;  %10811 = vmatprep.subr.bf16.mxu0 %v14244_v21  ;;  %10843 = vmatprep.subr.bf16.mxu1 %v14247_v25  ;;  %v12910_v26 = vadd.f32 %v3078_v48, %v17035_v9 }
 0x70d   :  { %v12895_v57 = vadd.f32 %v3005_v17, %v14574_v56  ;;  %v12911_v51 = vadd.f32 %v3080_v20, %v17153_v16 }
 0x70e   :  { %v9697_v50 = vmul.f32 -1.442695, %v12894_v54 }
 0x70f   :  { %v9699_v61 = vmul.f32 -1.442695, %v12895_v57  ;;  %v9701_v59 = vmul.f32 -1.442695, %v12911_v51 }
 0x710   :  { %13369 = vpow2.f32 %v9697_v50 }
 0x711   :  { %13371 = vpow2.f32 %v9699_v61 }
 0x712   :  { %13373 = vpow2.f32 %v9701_v59 }
 0x713   :  { %13375 = vtanh.f32 %v12910_v26  ;;  %v17159_v26 = vld [vmem:[#allocation29_spill] sm:$0xff] }
 0x71a   :  { %v13370_v4 = vpop.eup %13369 }
 0x71b   :  { %v13372_v24 = vpop.eup %13371  ;;  %v3106_v33 = vadd.f32 1.0, %v13370_v4  ;;  %v17160_v4 = vld [vmem:[#allocation30_spill] sm:$0xff] }
 0x71c   :  { %v3118_v35 = vadd.f32 1.0, %v13372_v24  ;;  %v13374_v21 = vpop.eup %13373  ;;  %v17161_v24 = vld [vmem:[#allocation31_spill] sm:$0xff] }
 0x71d   :  { %13377 = vrcp.f32 %v3106_v33  ;;  %v13376_v25 = vpop.eup %13375  ;;  %v3132_v50 = vadd.f32 1.0, %v13374_v21  ;;  %v17165_v33 = vld [vmem:[#allocation35_spill] sm:$0xff]  ;;  %v17167_v21 = vld [vmem:[#allocation37_spill] sm:$0xff] }
 0x71e   :  { %13379 = vrcp.f32 %v3118_v35  ;;  %v17166_v35 = vld [vmem:[#allocation36_spill] sm:$0xff] }
 0x71f   :  { %13381 = vrcp.f32 %v3132_v50  ;;  %v17172_v50 = vld [vmem:[#allocation42_spill] sm:$0xff] }
 0x727   :  { %v13378_v17 = vpop.eup %13377 }
 0x728   :  { %v13380_v54 = vpop.eup %13379  ;;  %v3140_v57 = vmul.f32 %v13378_v17, %v13376_v25  ;;  %v17168_v25 = vld [vmem:[#allocation38_spill] sm:$0xff]  ;;  %v17169_v17 = vld [vmem:[#allocation39_spill] sm:$0xff] }
 0x729   :  { %v3138_v61 = vmul.f32 %v13380_v54, %v15030_v8  ;;  %v13382_v48 = vpop.eup %13381  ;;  %v17158_v8 = vld [vmem:[#allocation28_spill] sm:$0xff] }
 0x72a   :  { %v17170_v54 = vld [vmem:[#allocation40_spill] sm:$0xff] }
 0x72b   :  { %v15130_v20 = vadd.f32 %v3140_v57, %v3138_v61  ;;  %v17171_v57 = vld [vmem:[#allocation41_spill] sm:$0xff]  ;;  %v17173_v61 = vld [vmem:[#allocation43_spill] sm:$0xff] }
 0x72d   :  { %13383 = vtanh.f32 %v15130_v20 }
 0x737   :  { %v13384_v51 = vpop.eup %13383 }
 0x738   :  { %v15133_v59 = vmul.f32 %v13384_v51, %v13382_v48  ;;  %v17174_v48 = vld [vmem:[#allocation44_spill] sm:$0xff]  ;;  %v17175_v51 = vld [vmem:[#allocation45_spill] sm:$0xff] }
 0x73a   :  { %3220 = vmatmul.mubr.f32.gmra.mrb[56].mxu0 %v15133_v59  ;;  %3295 = vmatmul.mubr.f32.gmra.mrb[56].mxu1 %v15133_v59 }
 0x73b   :  { %3363 = vmatprep.mubr.f32.mxu0 %v16996_v19  ;;  %3438 = vmatprep.mubr.f32.mxu1 %v16996_v19 }
 0x73e   :  { %3364 = vmatmul.mubr.f32.vlgmr.msra.gmra.mrb[58].mxu0 %v15087_v45  ;;  %3439 = vmatmul.mubr.f32.vlgmr.msra.gmra.mrb[58].mxu1 %v15087_v45 }
 0x73f   :  { %3367 = vmatprep.mubr.f32.mxu0 %v16996_v19  ;;  %3442 = vmatprep.mubr.f32.mxu1 %v16996_v19 }
 0x740   :  { %10813 = vmatpush1.bf16.msra.mxu0 %v14250_v28  ;;  %10845 = vmatpush1.bf16.msra.mxu1 %v14253_v31  ;;  %v17154_v28 = vld [vmem:[#allocation24_spill] sm:$0xff]  ;;  %v17155_v31 = vld [vmem:[#allocation25_spill] sm:$0xff] }
 0x741   :  { %10815 = vmatprep.subr.bf16.mxu0 %v14257_v34  ;;  %10847 = vmatprep.subr.bf16.mxu1 %v14261_v38  ;;  %v17156_v34 = vld [vmem:[#allocation26_spill] sm:$0xff]  ;;  %v17157_v38 = vld [vmem:[#allocation27_spill] sm:$0xff] }
 0x742   :  { %3368 = vmatmul.mubr.f32.gmra.mrb[18].mxu0 %v15133_v59  ;;  %3443 = vmatmul.mubr.f32.gmra.mrb[18].mxu1 %v15133_v59 }
 0x743   :  { %3579 = vmatprep.mubr.f32.mxu0 %v16996_v19  ;;  %3654 = vmatprep.mubr.f32.mxu1 %v16996_v19 }
 0x744   :  { %10817 = vmatpush1.bf16.msra.mxu0 %v14265_v41  ;;  %10849 = vmatpush1.bf16.msra.mxu1 %v14269_v44  ;;  %v17162_v41 = vld [vmem:[#allocation32_spill] sm:$0xff]  ;;  %v17163_v44 = vld [vmem:[#allocation33_spill] sm:$0xff] }
 0x745   :  { %10819 = vmatprep.subr.bf16.mxu0 %v17126_v39  ;;  %10851 = vmatprep.subr.bf16.mxu1 %v17154_v28  ;;  %v17164_v39 = vld [vmem:[#allocation34_spill] sm:$0xff] }
 0x746   :  { %v17176_v28 = vld [vmem:[#allocation46_spill] sm:$0xff] }
 0x748   :  { %10821 = vmatpush1.bf16.msra.mxu0 %v17155_v31  ;;  %10853 = vmatpush1.bf16.msra.mxu1 %v17156_v34  ;;  %v17177_v31 = vld [vmem:[#allocation47_spill] sm:$0xff]  ;;  %v17178_v34 = vld [vmem:[#allocation48_spill] sm:$0xff] }
 0x749   :  { %10823 = vmatprep.subr.bf16.mxu0 %v17157_v38  ;;  %10855 = vmatprep.subr.bf16.mxu1 %v17158_v8 }
 0x74c   :  { %10825 = vmatpush1.bf16.msra.mxu0 %v17159_v26  ;;  %10857 = vmatpush1.bf16.msra.mxu1 %v17160_v4  ;;  %v17179_v26 = vld [vmem:[#allocation62_spill] sm:$0xff] }
 0x74d   :  { %10827 = vmatprep.subr.bf16.mxu0 %v17161_v24  ;;  %10859 = vmatprep.subr.bf16.mxu1 %v17162_v41 }
 0x750   :  { %10829 = vmatpush1.bf16.msra.mxu0 %v17163_v44  ;;  %10861 = vmatpush1.bf16.msra.mxu1 %v17164_v39 }
 0x751   :  { %10831 = vmatprep.subr.bf16.mxu0 %v17165_v33  ;;  %10863 = vmatprep.subr.bf16.mxu1 %v17166_v35 }
 0x754   :  { %10833 = vmatpush1.bf16.msra.mxu0 %v17167_v21  ;;  %10865 = vmatpush1.bf16.msra.mxu1 %v17168_v25 }
 0x755   :  { %10835 = vmatprep.subr.bf16.mxu0 %v17169_v17  ;;  %10867 = vmatprep.subr.bf16.mxu1 %v17170_v54 }
 0x758   :  { %10837 = vmatpush1.bf16.msra.mxu0 %v17171_v57  ;;  %10869 = vmatpush1.bf16.msra.mxu1 %v17172_v50 }
 0x759   :  { %10839 = vmatprep.subr.bf16.mxu0 %v17173_v61  ;;  %10871 = vmatprep.subr.bf16.mxu1 %v17174_v48 }
 0x75c   :  { %10841 = vmatpush1.bf16.msra.mxu0 %v17175_v51  ;;  %10873 = vmatpush1.bf16.msra.mxu1 %v17176_v28 }
 0x75d   :  { %10875 = vmatprep.subr.bf16.mxu0 %v17177_v31  ;;  %10907 = vmatprep.subr.bf16.mxu1 %v17178_v34 }
 0x7c1   :  { %v3215_v38 = vpop.f32.mrb[12].mxu0  ;;  %v3290_v8 = vpop.f32.mrb[12].mxu1 }
 0x7c2   :  { %v12870_v4 = vadd.f32 %v3215_v38, %v17179_v26  ;;  %v3217_v24 = vpop.f32.mrb[13].mxu0  ;;  %v3292_v41 = vpop.f32.mrb[13].mxu1  ;;  %v12886_v25 = vadd.f32 %v3290_v8, %v17065_v13 }
 0x7c3   :  { %v12871_v44 = vadd.f32 %v3217_v24, %v17063_v47  ;;  %v12887_v35 = vadd.f32 %v3292_v41, %v17064_v2 }
 0x7c4   :  { %v9702_v39 = vmul.f32 -1.442695, %v12870_v4 }
 0x7c5   :  { %v9704_v33 = vmul.f32 -1.442695, %v12871_v44  ;;  %v9706_v21 = vmul.f32 -1.442695, %v12887_v35  ;;  %v3906_v35 = vld [vmem:[#allocation11 + $0x48] sm:$0xff] }
 0x7c6   :  { %13385 = vpow2.f32 %v9702_v39 }
 0x7c7   :  { %13387 = vpow2.f32 %v9704_v33 }
 0x7c8   :  { %13389 = vpow2.f32 %v9706_v21  ;;  %v3900_v21 = vld [vmem:[#allocation11 + $0x18] sm:$0xff] }
 0x7c9   :  { %13391 = vtanh.f32 %v12886_v25 }
 0x7d0   :  { %v13386_v17 = vpop.eup %13385 }
 0x7d1   :  { %v13388_v54 = vpop.eup %13387  ;;  %v3471_v57 = vadd.f32 1.0, %v13386_v17  ;;  %v3908_v17 = vld [vmem:[#allocation11 + $0x58] sm:$0xff] }
 0x7d2   :  { %v3483_v50 = vadd.f32 1.0, %v13388_v54  ;;  %v13390_v61 = vpop.eup %13389  ;;  %v3897_v54 = vld [vmem:[#allocation11] sm:$0xff] }
 0x7d3   :  { %13393 = vrcp.f32 %v3471_v57  ;;  %v13392_v48 = vpop.eup %13391  ;;  %v3497_v34 = vadd.f32 1.0, %v13390_v61  ;;  %v3905_v57 = vld [vmem:[#allocation11 + $0x40] sm:$0xff] }
 0x7d4   :  { %13395 = vrcp.f32 %v3483_v50  ;;  %v11002_v50 = vpack.c.bf16 %v3908_v17, %v3900_v21  ;;  %v10940_v61 = vpack.c.bf16 %v3905_v57, %v3897_v54  ;;  %v3961_v17 = vld [vmem:[#allocation11 + $0x200] sm:$0xff] }
 0x7d5   :  { %13397 = vrcp.f32 %v3497_v34  ;;  %v3922_v34 = vld [vmem:[#allocation11 + $0xc8] sm:$0xff]  ;;  %v3969_v54 = vld [vmem:[#allocation11 + $0x240] sm:$0xff] }
 0x7dd   :  { %v13394_v51 = vpop.eup %13393 }
 0x7de   :  { %v13396_v28 = vpop.eup %13395  ;;  %v3505_v31 = vmul.f32 %v13394_v51, %v13392_v48  ;;  %v3899_v48 = vld [vmem:[#allocation11 + $0x10] sm:$0xff] }
 0x7df   :  { %v3503_v38 = vmul.f32 %v13396_v28, %v15084_v7  ;;  %v13398_v8 = vpop.eup %13397  ;;  %v3907_v51 = vld [vmem:[#allocation11 + $0x50] sm:$0xff]  ;;  %v3914_v28 = vld [vmem:[#allocation11 + $0x88] sm:$0xff] }
 0x7e1   :  { %v15184_v4 = vadd.f32 %v3505_v31, %v3503_v38  ;;  %v11004_v31 = vpack.c.bf16 %v3907_v51, %v3899_v48  ;;  %v3916_v38 = vld [vmem:[#allocation11 + $0x98] sm:$0xff]  ;;  %v3971_v48 = vld [vmem:[#allocation11 + $0x250] sm:$0xff] }
 0x7e3   :  { %13399 = vtanh.f32 %v15184_v4 }
 0x7ed   :  { %v13400_v24 = vpop.eup %13399 }
 0x7ee   :  { %v15187_v41 = vmul.f32 %v13400_v24, %v13398_v8  ;;  %v3924_v8 = vld [vmem:[#allocation11 + $0xd8] sm:$0xff]  ;;  %v10942_v24 = vpack.c.bf16 %v3922_v34, %v3914_v28  ;;  %v3978_v28 = vld [vmem:[#allocation11 + $0x288] sm:$0xff] }
 0x7ef   :  { %v3980_v34 = vld [vmem:[#allocation11 + $0x298] sm:$0xff] }
 0x7f0   :  { %3580 = vmatmul.mubr.f32.vlgmr.msra.gmra.mrb[14].mxu0 %v15187_v41  ;;  %3655 = vmatmul.mubr.f32.vlgmr.msra.gmra.mrb[14].mxu1 %v15187_v41 }
 0x7f1   :  { %10877 = vmatpush1.bf16.msra.mxu0 %v14377_v30  ;;  %10909 = vmatpush1.bf16.msra.mxu1 %v14381_v32 }
 0x7f2   :  { %10879 = vmatprep.subr.bf16.mxu0 %v14383_v36  ;;  %10911 = vmatprep.subr.bf16.mxu1 %v14387_v14 }
 0x7f3   :  { %3585 = vmatprep.mubr.f32.mxu0 %v16996_v19  ;;  %3660 = vmatprep.mubr.f32.mxu1 %v16996_v19 }
 0x7f5   :  { %10881 = vmatpush1.bf16.msra.mxu0 %v14393_v55  ;;  %10913 = vmatpush1.bf16.msra.mxu1 %v14397_v58 }
 0x7f6   :  { %10883 = vmatprep.subr.bf16.mxu0 %v14399_v60  ;;  %10915 = vmatprep.subr.bf16.mxu1 %v14402_v5 }
 0x7f9   :  { %10885 = vmatpush1.bf16.msra.mxu0 %v14408_v18  ;;  %10917 = vmatpush1.bf16.msra.mxu1 %v17009_v63 }
 0x7fa   :  { %10887 = vmatprep.subr.bf16.mxu0 %v17036_v29  ;;  %10919 = vmatprep.subr.bf16.mxu1 %v17037_v11 }
 0x7fd   :  { %10889 = vmatpush1.bf16.msra.mxu0 %v17038_v1  ;;  %10921 = vmatpush1.bf16.msra.mxu1 %v17039_v6 }
 0x7fe   :  { %10891 = vmatprep.subr.bf16.mxu0 %v17014_v52  ;;  %10923 = vmatprep.subr.bf16.mxu1 %v17015_v22 }
 0x801   :  { %10893 = vmatpush1.bf16.msra.mxu0 %v17016_v46  ;;  %10925 = vmatpush1.bf16.msra.mxu1 %v17017_v43 }
 0x802   :  { %10895 = vmatprep.subr.bf16.mxu0 %v14441_v42  ;;  %10927 = vmatprep.subr.bf16.mxu1 %v17018_v62 }
 0x805   :  { %10897 = vmatpush1.bf16.msra.mxu0 %v14447_v49  ;;  %10929 = vmatpush1.bf16.msra.mxu1 %v14451_v0 }
 0x806   :  { %10899 = vmatprep.subr.bf16.mxu0 %v14453_v10  ;;  %10931 = vmatprep.subr.bf16.mxu1 %v14456_v27 }
 0x809   :  { %10901 = vmatpush1.bf16.msra.mxu0 %v14459_v37  ;;  %10933 = vmatpush1.bf16.msra.mxu1 %v14463_v23 }
 0x80a   :  { %10903 = vmatprep.subr.bf16.mxu0 %v14465_v40  ;;  %10935 = vmatprep.subr.bf16.mxu1 %v14468_v3 }
 0x80d   :  { %v3221_v30 = vpop.f32.mrb[56].mxu0  ;;  %v3296_v32 = vpop.f32.mrb[56].mxu1  ;;  %10905 = vmatpush1.bf16.msra.mxu0 %v14471_v15  ;;  %10937 = vmatpush1.bf16.msra.mxu1 %v14475_v12 }
 0x80e   :  { %v3222_v36 = vpop.f32.mrb[57].mxu0  ;;  %v3297_v14 = vpop.f32.mrb[57].mxu1  ;;  %11003 = vmatprep.subr.bf16.mxu1 %v11002_v50  ;;  %v11006_v30 = vpack.c.bf16 %v3924_v8, %v3916_v38  ;;  %v3913_v32 = vld [vmem:[#allocation11 + $0x80] sm:$0xff]  ;;  %v10956_v50 = vpack.c.bf16 %v3969_v54, %v3961_v17  ;;  %v3988_v8 = vld [vmem:[#allocation11 + $0x2d8] sm:$0xff] }
 0x80f   :  { %v3921_v36 = vld [vmem:[#allocation11 + $0xc0] sm:$0xff]  ;;  %v3915_v14 = vld [vmem:[#allocation11 + $0x90] sm:$0xff] }
 0x810   :  { %v4033_v17 = vld [vmem:[#allocation11 + $0x440] sm:$0xff] }
 0x811   :  { %v3365_v55 = vpop.f32.mrb[58].mxu0  ;;  %v3440_v58 = vpop.f32.mrb[58].mxu1 }
 0x812   :  { %v3366_v60 = vpop.f32.mrb[59].mxu0  ;;  %v3441_v5 = vpop.f32.mrb[59].mxu1  ;;  %v10944_v55 = vpack.c.bf16 %v3921_v36, %v3913_v32  ;;  %v3923_v58 = vld [vmem:[#allocation11 + $0xd0] sm:$0xff]  ;;  %v11022_v32 = vpack.c.bf16 %v3988_v8, %v3980_v34  ;;  %v4041_v8 = vld [vmem:[#allocation11 + $0x480] sm:$0xff] }
 0x813   :  { %v3930_v60 = vld [vmem:[#allocation11 + $0x108] sm:$0xff] }
 0x814   :  { %v3938_v5 = vld [vmem:[#allocation11 + $0x148] sm:$0xff] }
 0x815   :  { %v3369_v18 = vpop.f32.mrb[18].mxu0  ;;  %v3444_v49 = vpop.f32.mrb[18].mxu1 }
 0x816   :  { %v12892_v37 = vadd.f32 %v3369_v18, %v14568_v53  ;;  %v3371_v42 = vpop.f32.mrb[19].mxu0  ;;  %v3446_v0 = vpop.f32.mrb[19].mxu1  ;;  %v12908_v15 = vadd.f32 %v3444_v49, %v17035_v9  ;;  %v11008_v18 = vpack.c.bf16 %v3923_v58, %v3915_v14  ;;  %v10946_v49 = vpack.c.bf16 %v3938_v5, %v3930_v60  ;;  %v3979_v14 = vld [vmem:[#allocation11 + $0x290] sm:$0xff]  ;;  %v3994_v60 = vld [vmem:[#allocation11 + $0x308] sm:$0xff] }
 0x817   :  { %v12893_v10 = vadd.f32 %v3371_v42, %v14574_v56  ;;  %v12909_v40 = vadd.f32 %v3446_v0, %v17153_v16  ;;  %v3940_v42 = vld [vmem:[#allocation11 + $0x158] sm:$0xff]  ;;  %v4002_v5 = vld [vmem:[#allocation11 + $0x348] sm:$0xff] }
 0x818   :  { %v9703_v27 = vmul.f32 -1.442695, %v12892_v37  ;;  %v3932_v37 = vld [vmem:[#allocation11 + $0x118] sm:$0xff] }
 0x819   :  { %v9705_v23 = vmul.f32 -1.442695, %v12893_v10  ;;  %v9707_v3 = vmul.f32 -1.442695, %v12909_v40  ;;  %v11010_v0 = vpack.c.bf16 %v3940_v42, %v3932_v37  ;;  %v3929_v10 = vld [vmem:[#allocation11 + $0x100] sm:$0xff]  ;;  %v4004_v37 = vld [vmem:[#allocation11 + $0x358] sm:$0xff] }
 0x81a   :  { %13401 = vpow2.f32 %v9703_v27  ;;  %v3937_v27 = vld [vmem:[#allocation11 + $0x140] sm:$0xff] }
 0x81b   :  { %13403 = vpow2.f32 %v9705_v23  ;;  %v3931_v23 = vld [vmem:[#allocation11 + $0x110] sm:$0xff]  ;;  %v10948_v40 = vpack.c.bf16 %v3937_v27, %v3929_v10  ;;  %v3993_v42 = vld [vmem:[#allocation11 + $0x300] sm:$0xff] }
 0x81c   :  { %13405 = vpow2.f32 %v9707_v3  ;;  %v3939_v3 = vld [vmem:[#allocation11 + $0x150] sm:$0xff] }
 0x81d   :  { %13407 = vtanh.f32 %v12908_v15  ;;  %v11012_v15 = vpack.c.bf16 %v3939_v3, %v3931_v23  ;;  %v3995_v23 = vld [vmem:[#allocation11 + $0x310] sm:$0xff] }
 0x824   :  { %v13402_v12 = vpop.eup %13401 }
 0x825   :  { %v13404_v43 = vpop.eup %13403  ;;  %v3472_v63 = vadd.f32 1.0, %v13402_v12  ;;  %v3946_v12 = vld [vmem:[#allocation11 + $0x188] sm:$0xff] }
 0x826   :  { %v3484_v62 = vadd.f32 1.0, %v13404_v43  ;;  %v13406_v52 = vpop.eup %13405  ;;  %v3954_v43 = vld [vmem:[#allocation11 + $0x1c8] sm:$0xff] }
 0x827   :  { %13409 = vrcp.f32 %v3472_v63  ;;  %v13408_v22 = vpop.eup %13407  ;;  %v3498_v1 = vadd.f32 1.0, %v13406_v52  ;;  %v3948_v63 = vld [vmem:[#allocation11 + $0x198] sm:$0xff] }
 0x828   :  { %13411 = vrcp.f32 %v3484_v62  ;;  %v10950_v62 = vpack.c.bf16 %v3954_v43, %v3946_v12  ;;  %v3956_v52 = vld [vmem:[#allocation11 + $0x1d8] sm:$0xff]  ;;  %v4018_v12 = vld [vmem:[#allocation11 + $0x3c8] sm:$0xff] }
 0x829   :  { %13413 = vrcp.f32 %v3498_v1  ;;  %v3947_v1 = vld [vmem:[#allocation11 + $0x190] sm:$0xff]  ;;  %v4012_v43 = vld [vmem:[#allocation11 + $0x398] sm:$0xff] }
 0x831   :  { %v13410_v46 = vpop.eup %13409 }
 0x832   :  { %v13412_v29 = vpop.eup %13411  ;;  %v3506_v11 = vmul.f32 %v13410_v46, %v13408_v22  ;;  %v3945_v22 = vld [vmem:[#allocation11 + $0x180] sm:$0xff] }
 0x833   :  { %v3504_v6 = vmul.f32 %v13412_v29, %v15130_v20  ;;  %v13414_v44 = vpop.eup %13413  ;;  %v3898_v20 = vld [vmem:[#allocation11 + $0x8] sm:$0xff]  ;;  %v3953_v46 = vld [vmem:[#allocation11 + $0x1c0] sm:$0xff]  ;;  %v11014_v29 = vpack.c.bf16 %v3956_v52, %v3948_v63 }
 0x834   :  { %v10938_v25 = vpack.c.bf16 %v3906_v35, %v3898_v20  ;;  %v3970_v20 = vld [vmem:[#allocation11 + $0x248] sm:$0xff]  ;;  %v3964_v35 = vld [vmem:[#allocation11 + $0x218] sm:$0xff]  ;;  %v4009_v52 = vld [vmem:[#allocation11 + $0x380] sm:$0xff] }
 0x835   :  { %v15228_v7 = vadd.f32 %v3506_v11, %v3504_v6  ;;  %v10952_v11 = vpack.c.bf16 %v3953_v46, %v3945_v22  ;;  %v3955_v6 = vld [vmem:[#allocation11 + $0x1d0] sm:$0xff]  ;;  %v4017_v22 = vld [vmem:[#allocation11 + $0x3c0] sm:$0xff] }
 0x836   :  { %10939 = vmatprep.subr.bf16.mxu0 %v10938_v25  ;;  %v3972_v25 = vld [vmem:[#allocation11 + $0x258] sm:$0xff] }
 0x837   :  { %13415 = vtanh.f32 %v15228_v7  ;;  %v11018_v57 = vpack.c.bf16 %v3972_v25, %v3964_v35  ;;  %v4025_v25 = vld [vmem:[#allocation11 + $0x400] sm:$0xff] }
 0x841   :  { %v13416_v39 = vpop.eup %13415 }
 0x842   :  { %v15231_v33 = vmul.f32 %v13416_v39, %v13414_v44  ;;  %v11016_v44 = vpack.c.bf16 %v3955_v6, %v3947_v1  ;;  %v3962_v39 = vld [vmem:[#allocation11 + $0x208] sm:$0xff]  ;;  %v4019_v1 = vld [vmem:[#allocation11 + $0x3d0] sm:$0xff] }
 0x843   :  { %v10954_v21 = vpack.c.bf16 %v3970_v20, %v3962_v39  ;;  %v4034_v39 = vld [vmem:[#allocation11 + $0x448] sm:$0xff]  ;;  %v4028_v20 = vld [vmem:[#allocation11 + $0x418] sm:$0xff] }
 0x844   :  { %3586 = vmatmul.mubr.f32.gmra.mrb[60].mxu0 %v15231_v33  ;;  %3661 = vmatmul.mubr.f32.gmra.mrb[60].mxu1 %v15231_v33 }
 0x845   :  { %3729 = vmatprep.mubr.f32.mxu0 %v16996_v19  ;;  %3804 = vmatprep.mubr.f32.mxu1 %v16996_v19 }
 0x848   :  { %3730 = vmatmul.mubr.f32.vlgmr.msra.gmra.mrb[62].mxu0 %v15187_v41  ;;  %3805 = vmatmul.mubr.f32.vlgmr.msra.gmra.mrb[62].mxu1 %v15187_v41 }
 0x849   :  { %3733 = vmatprep.mubr.f32.mxu0 %v16996_v19  ;;  %3808 = vmatprep.mubr.f32.mxu1 %v16996_v19 }
 0x84a   :  { %10941 = vmatpush1.bf16.msra.mxu0 %v10940_v61  ;;  %11005 = vmatpush1.bf16.msra.mxu1 %v11004_v31  ;;  %v3963_v61 = vld [vmem:[#allocation11 + $0x210] sm:$0xff]  ;;  %v3986_v31 = vld [vmem:[#allocation11 + $0x2c8] sm:$0xff] }
 0x84b   :  { %10943 = vmatprep.subr.bf16.mxu0 %v10942_v24  ;;  %11007 = vmatprep.subr.bf16.mxu1 %v11006_v30  ;;  %v11020_v51 = vpack.c.bf16 %v3971_v48, %v3963_v61  ;;  %v10958_v38 = vpack.c.bf16 %v3986_v31, %v3978_v28  ;;  %v3977_v24 = vld [vmem:[#allocation11 + $0x280] sm:$0xff]  ;;  %v4035_v61 = vld [vmem:[#allocation11 + $0x450] sm:$0xff]  ;;  %v4050_v28 = vld [vmem:[#allocation11 + $0x4c8] sm:$0xff] }
 0x84c   :  { %3734 = vmatmul.mubr.f32.gmra.mrb[16].mxu0 %v15231_v33  ;;  %3809 = vmatmul.mubr.f32.gmra.mrb[16].mxu1 %v15231_v33  ;;  %v3985_v30 = vld [vmem:[#allocation11 + $0x2c0] sm:$0xff]  ;;  %v4044_v31 = vld [vmem:[#allocation11 + $0x498] sm:$0xff] }
 0x84d   :  { %v10960_v36 = vpack.c.bf16 %v3985_v30, %v3977_v24  ;;  %v4049_v24 = vld [vmem:[#allocation11 + $0x4c0] sm:$0xff] }
 0x84e   :  { %10945 = vmatpush1.bf16.msra.mxu0 %v10944_v55  ;;  %11009 = vmatpush1.bf16.msra.mxu1 %v11008_v18  ;;  %v3987_v55 = vld [vmem:[#allocation11 + $0x2d0] sm:$0xff]  ;;  %v3996_v18 = vld [vmem:[#allocation11 + $0x318] sm:$0xff] }
 0x84f   :  { %10947 = vmatprep.subr.bf16.mxu0 %v10946_v49  ;;  %11011 = vmatprep.subr.bf16.mxu1 %v11010_v0  ;;  %v11024_v58 = vpack.c.bf16 %v3987_v55, %v3979_v14  ;;  %v10962_v49 = vpack.c.bf16 %v4002_v5, %v3994_v60  ;;  %v4001_v0 = vld [vmem:[#allocation11 + $0x340] sm:$0xff]  ;;  %v11026_v10 = vpack.c.bf16 %v4004_v37, %v3996_v18  ;;  %v4051_v14 = vld [vmem:[#allocation11 + $0x4d0] sm:$0xff]  ;;  %v4066_v60 = vld [vmem:[#allocation11 + $0x548] sm:$0xff] }
 0x850   :  { %v10964_v27 = vpack.c.bf16 %v4001_v0, %v3993_v42  ;;  %v4060_v5 = vld [vmem:[#allocation11 + $0x518] sm:$0xff]  ;;  %v4057_v37 = vld [vmem:[#allocation11 + $0x500] sm:$0xff] }
 0x851   :  { %v4065_v42 = vld [vmem:[#allocation11 + $0x540] sm:$0xff] }
 0x852   :  { %10949 = vmatpush1.bf16.msra.mxu0 %v10948_v40  ;;  %11013 = vmatpush1.bf16.msra.mxu1 %v11012_v15  ;;  %v4003_v40 = vld [vmem:[#allocation11 + $0x350] sm:$0xff]  ;;  %v4010_v15 = vld [vmem:[#allocation11 + $0x388] sm:$0xff] }
 0x853   :  { %10951 = vmatprep.subr.bf16.mxu0 %v10950_v62  ;;  %11015 = vmatprep.subr.bf16.mxu1 %v11014_v29  ;;  %v11028_v3 = vpack.c.bf16 %v4003_v40, %v3995_v23  ;;  %v10966_v63 = vpack.c.bf16 %v4018_v12, %v4010_v15  ;;  %v4020_v62 = vld [vmem:[#allocation11 + $0x3d8] sm:$0xff]  ;;  %v10968_v29 = vpack.c.bf16 %v4017_v22, %v4009_v52  ;;  %v4067_v23 = vld [vmem:[#allocation11 + $0x550] sm:$0xff]  ;;  %v4082_v15 = vld [vmem:[#allocation11 + $0x5c8] sm:$0xff] }
 0x854   :  { %v11030_v46 = vpack.c.bf16 %v4020_v62, %v4012_v43  ;;  %v4076_v12 = vld [vmem:[#allocation11 + $0x598] sm:$0xff]  ;;  %v4073_v62 = vld [vmem:[#allocation11 + $0x580] sm:$0xff] }
 0x855   :  { %v4081_v52 = vld [vmem:[#allocation11 + $0x5c0] sm:$0xff] }
 0x856   :  { %10953 = vmatpush1.bf16.msra.mxu0 %v10952_v11  ;;  %11017 = vmatpush1.bf16.msra.mxu1 %v11016_v44  ;;  %v4011_v11 = vld [vmem:[#allocation11 + $0x390] sm:$0xff]  ;;  %v4026_v44 = vld [vmem:[#allocation11 + $0x408] sm:$0xff] }
 0x857   :  { %10955 = vmatprep.subr.bf16.mxu0 %v10954_v21  ;;  %11019 = vmatprep.subr.bf16.mxu1 %v11018_v57  ;;  %v11032_v6 = vpack.c.bf16 %v4019_v1, %v4011_v11  ;;  %v10970_v35 = vpack.c.bf16 %v4034_v39, %v4026_v44  ;;  %v4036_v21 = vld [vmem:[#allocation11 + $0x458] sm:$0xff]  ;;  %v10972_v57 = vpack.c.bf16 %v4033_v17, %v4025_v25  ;;  %v4083_v11 = vld [vmem:[#allocation11 + $0x5d0] sm:$0xff]  ;;  %v4098_v44 = vld [vmem:[#allocation11 + $0x648] sm:$0xff] }
 0x858   :  { %v11034_v54 = vpack.c.bf16 %v4036_v21, %v4028_v20  ;;  %v4092_v39 = vld [vmem:[#allocation11 + $0x618] sm:$0xff]  ;;  %v4089_v21 = vld [vmem:[#allocation11 + $0x600] sm:$0xff] }
 0x859   :  { %v4097_v25 = vld [vmem:[#allocation11 + $0x640] sm:$0xff] }
 0x85a   :  { %10957 = vmatpush1.bf16.msra.mxu0 %v10956_v50  ;;  %11021 = vmatpush1.bf16.msra.mxu1 %v11020_v51  ;;  %v4027_v50 = vld [vmem:[#allocation11 + $0x410] sm:$0xff]  ;;  %v4042_v51 = vld [vmem:[#allocation11 + $0x488] sm:$0xff] }
 0x85b   :  { %10959 = vmatprep.subr.bf16.mxu0 %v10958_v38  ;;  %11023 = vmatprep.subr.bf16.mxu1 %v11022_v32  ;;  %v11036_v48 = vpack.c.bf16 %v4035_v61, %v4027_v50  ;;  %v10974_v34 = vpack.c.bf16 %v4050_v28, %v4042_v51  ;;  %v4052_v38 = vld [vmem:[#allocation11 + $0x4d8] sm:$0xff]  ;;  %v10976_v32 = vpack.c.bf16 %v4049_v24, %v4041_v8  ;;  %v4099_v50 = vld [vmem:[#allocation11 + $0x650] sm:$0xff]  ;;  %v4114_v51 = vld [vmem:[#allocation11 + $0x6c8] sm:$0xff] }
 0x85c   :  { %v11038_v30 = vpack.c.bf16 %v4052_v38, %v4044_v31  ;;  %v4108_v28 = vld [vmem:[#allocation11 + $0x698] sm:$0xff]  ;;  %v4105_v38 = vld [vmem:[#allocation11 + $0x680] sm:$0xff] }
 0x85d   :  { %v4113_v8 = vld [vmem:[#allocation11 + $0x6c0] sm:$0xff] }
 0x85e   :  { %10961 = vmatpush1.bf16.msra.mxu0 %v10960_v36  ;;  %11025 = vmatpush1.bf16.msra.mxu1 %v11024_v58  ;;  %v4043_v36 = vld [vmem:[#allocation11 + $0x490] sm:$0xff]  ;;  %v4058_v58 = vld [vmem:[#allocation11 + $0x508] sm:$0xff] }
 0x85f   :  { %10963 = vmatprep.subr.bf16.mxu0 %v10962_v49  ;;  %11027 = vmatprep.subr.bf16.mxu1 %v11026_v10  ;;  %v11040_v55 = vpack.c.bf16 %v4051_v14, %v4043_v36  ;;  %v10978_v18 = vpack.c.bf16 %v4066_v60, %v4058_v58  ;;  %v4068_v49 = vld [vmem:[#allocation11 + $0x558] sm:$0xff]  ;;  %v10980_v10 = vpack.c.bf16 %v4065_v42, %v4057_v37  ;;  %v4115_v36 = vld [vmem:[#allocation11 + $0x6d0] sm:$0xff]  ;;  %v4122_v14 = vld [vmem:[#allocation11 + $0x708] sm:$0xff] }
 0x860   :  { %v11042_v0 = vpack.c.bf16 %v4068_v49, %v4060_v5  ;;  %v4130_v5 = vld [vmem:[#allocation11 + $0x748] sm:$0xff]  ;;  %v4132_v49 = vld [vmem:[#allocation11 + $0x758] sm:$0xff] }
 0x862   :  { %10965 = vmatpush1.bf16.msra.mxu0 %v10964_v27  ;;  %11029 = vmatpush1.bf16.msra.mxu1 %v11028_v3  ;;  %v4059_v27 = vld [vmem:[#allocation11 + $0x510] sm:$0xff]  ;;  %v4074_v3 = vld [vmem:[#allocation11 + $0x588] sm:$0xff] }
 0x863   :  { %10967 = vmatprep.subr.bf16.mxu0 %v10966_v63  ;;  %11031 = vmatprep.subr.bf16.mxu1 %v11030_v46  ;;  %v11044_v40 = vpack.c.bf16 %v4067_v23, %v4059_v27  ;;  %v10982_v43 = vpack.c.bf16 %v4082_v15, %v4074_v3  ;;  %v4084_v63 = vld [vmem:[#allocation11 + $0x5d8] sm:$0xff]  ;;  %v10984_v46 = vpack.c.bf16 %v4081_v52, %v4073_v62  ;;  %v4121_v27 = vld [vmem:[#allocation11 + $0x700] sm:$0xff]  ;;  %v4146_v62 = vld [vmem:[#allocation11 + $0x7c8] sm:$0xff] }
 0x864   :  { %v11046_v22 = vpack.c.bf16 %v4084_v63, %v4076_v12  ;;  %v4129_v23 = vld [vmem:[#allocation11 + $0x740] sm:$0xff]  ;;  %v4138_v63 = vld [vmem:[#allocation11 + $0x788] sm:$0xff] }
 0x865   :  { %v10996_v12 = vpack.c.bf16 %v4129_v23, %v4121_v27 }
 0x866   :  { %10969 = vmatpush1.bf16.msra.mxu0 %v10968_v29  ;;  %11033 = vmatpush1.bf16.msra.mxu1 %v11032_v6  ;;  %v4075_v29 = vld [vmem:[#allocation11 + $0x590] sm:$0xff]  ;;  %v4090_v6 = vld [vmem:[#allocation11 + $0x608] sm:$0xff] }
 0x867   :  { %10971 = vmatprep.subr.bf16.mxu0 %v10970_v35  ;;  %11035 = vmatprep.subr.bf16.mxu1 %v11034_v54  ;;  %v11048_v1 = vpack.c.bf16 %v4083_v11, %v4075_v29  ;;  %v10986_v20 = vpack.c.bf16 %v4098_v44, %v4090_v6  ;;  %v4100_v35 = vld [vmem:[#allocation11 + $0x658] sm:$0xff]  ;;  %v10988_v54 = vpack.c.bf16 %v4097_v25, %v4089_v21  ;;  %v4137_v11 = vld [vmem:[#allocation11 + $0x780] sm:$0xff]  ;;  %v3902_v25 = vld [vmem:[#allocation11 + $0x28] sm:$0xff] }
 0x868   :  { %v11050_v17 = vpack.c.bf16 %v4100_v35, %v4092_v39  ;;  %v4148_v29 = vld [vmem:[#allocation11 + $0x7d8] sm:$0xff]  ;;  %v4145_v44 = vld [vmem:[#allocation11 + $0x7c0] sm:$0xff]  ;;  %v4139_v39 = vld [vmem:[#allocation11 + $0x790] sm:$0xff] }
 0x86a   :  { %10973 = vmatpush1.bf16.msra.mxu0 %v10972_v57  ;;  %11037 = vmatpush1.bf16.msra.mxu1 %v11036_v48  ;;  %v4091_v57 = vld [vmem:[#allocation11 + $0x610] sm:$0xff]  ;;  %v4106_v48 = vld [vmem:[#allocation11 + $0x688] sm:$0xff] }
 0x86b   :  { %10975 = vmatprep.subr.bf16.mxu0 %v10974_v34  ;;  %11039 = vmatprep.subr.bf16.mxu1 %v11038_v30  ;;  %v11052_v61 = vpack.c.bf16 %v4099_v50, %v4091_v57  ;;  %v10990_v31 = vpack.c.bf16 %v4114_v51, %v4106_v48  ;;  %v4116_v34 = vld [vmem:[#allocation11 + $0x6d8] sm:$0xff]  ;;  %v10992_v30 = vpack.c.bf16 %v4113_v8, %v4105_v38 }
 0x86c   :  { %v11054_v24 = vpack.c.bf16 %v4116_v34, %v4108_v28  ;;  %v3912_v50 = vld [vmem:[#allocation11 + $0x78] sm:$0xff] }
 0x86e   :  { %10977 = vmatpush1.bf16.msra.mxu0 %v10976_v32  ;;  %11041 = vmatpush1.bf16.msra.mxu1 %v11040_v55  ;;  %v4107_v32 = vld [vmem:[#allocation11 + $0x690] sm:$0xff] }
 0x86f   :  { %10979 = vmatprep.subr.bf16.mxu0 %v10978_v18  ;;  %11043 = vmatprep.subr.bf16.mxu1 %v11042_v0  ;;  %v11056_v60 = vpack.c.bf16 %v4115_v36, %v4107_v32  ;;  %v4124_v18 = vld [vmem:[#allocation11 + $0x718] sm:$0xff] }
 0x870   :  { %v11058_v15 = vpack.c.bf16 %v4132_v49, %v4124_v18 }
 0x872   :  { %10981 = vmatpush1.bf16.msra.mxu0 %v10980_v10  ;;  %11045 = vmatpush1.bf16.msra.mxu1 %v11044_v40  ;;  %v10994_v10 = vpack.c.bf16 %v4130_v5, %v4122_v14  ;;  %v4123_v40 = vld [vmem:[#allocation11 + $0x710] sm:$0xff] }
 0x873   :  { %10983 = vmatprep.subr.bf16.mxu0 %v10982_v43  ;;  %11047 = vmatprep.subr.bf16.mxu1 %v11046_v22  ;;  %v4131_v43 = vld [vmem:[#allocation11 + $0x750] sm:$0xff] }
 0x874   :  { %v11060_v22 = vpack.c.bf16 %v4131_v43, %v4123_v40 }
 0x876   :  { %10985 = vmatpush1.bf16.msra.mxu0 %v10984_v46  ;;  %11049 = vmatpush1.bf16.msra.mxu1 %v11048_v1  ;;  %v4140_v46 = vld [vmem:[#allocation11 + $0x798] sm:$0xff] }
 0x877   :  { %10987 = vmatprep.subr.bf16.mxu0 %v10986_v20  ;;  %11051 = vmatprep.subr.bf16.mxu1 %v11050_v17  ;;  %v11062_v6 = vpack.c.bf16 %v4148_v29, %v4140_v46  ;;  %v4147_v20 = vld [vmem:[#allocation11 + $0x7d0] sm:$0xff]  ;;  %v3910_v17 = vld [vmem:[#allocation11 + $0x68] sm:$0xff] }
 0x878   :  { %v11064_v35 = vpack.c.bf16 %v4147_v20, %v4139_v39  ;;  %v11066_v57 = vpack.c.bf16 %v3910_v17, %v3902_v25  ;;  %v3909_v20 = vld [vmem:[#allocation11 + $0x60] sm:$0xff]  ;;  %v3918_v17 = vld [vmem:[#allocation11 + $0xa8] sm:$0xff] }
 0x87a   :  { %10989 = vmatpush1.bf16.msra.mxu0 %v10988_v54  ;;  %11053 = vmatpush1.bf16.msra.mxu1 %v11052_v61  ;;  %v3904_v54 = vld [vmem:[#allocation11 + $0x38] sm:$0xff] }
 0x87b   :  { %10991 = vmatprep.subr.bf16.mxu0 %v10990_v31  ;;  %11055 = vmatprep.subr.bf16.mxu1 %v11054_v24  ;;  %v11130_v61 = vpack.c.bf16 %v3912_v50, %v3904_v54  ;;  %v3920_v50 = vld [vmem:[#allocation11 + $0xb8] sm:$0xff] }
 0x87e   :  { %10993 = vmatpush1.bf16.msra.mxu0 %v10992_v30  ;;  %11057 = vmatpush1.bf16.msra.mxu1 %v11056_v60 }
 0x87f   :  { %10995 = vmatprep.subr.bf16.mxu0 %v10994_v10  ;;  %11059 = vmatprep.subr.bf16.mxu1 %v11058_v15 }
 0x882   :  { %10997 = vmatpush1.bf16.msra.mxu0 %v10996_v12  ;;  %11061 = vmatpush1.bf16.msra.mxu1 %v11060_v22 }
 0x883   :  { %11063 = vmatprep.subr.bf16.mxu1 %v11062_v6 }
 0x886   :  { %11065 = vmatpush1.bf16.msra.mxu1 %v11064_v35  ;;  %v3903_v35 = vld [vmem:[#allocation11 + $0x30] sm:$0xff] }
 0x887   :  { %11131 = vmatprep.subr.bf16.mxu1 %v11130_v61  ;;  %v3928_v61 = vld [vmem:[#allocation11 + $0xf8] sm:$0xff] }
 0x8c3   :  { %v3581_v55 = vpop.f32.mrb[14].mxu0  ;;  %v3656_v58 = vpop.f32.mrb[14].mxu1 }
 0x8c4   :  { %v12872_v37 = vadd.f32 %v3581_v55, %v17179_v26  ;;  %v3583_v42 = vpop.f32.mrb[15].mxu0  ;;  %v3658_v0 = vpop.f32.mrb[15].mxu1  ;;  %v10998_v26 = vpack.c.bf16 %v4146_v62, %v4138_v63  ;;  %v12888_v51 = vadd.f32 %v3656_v58, %v17065_v13 }
 0x8c5   :  { %v12873_v3 = vadd.f32 %v3583_v42, %v17063_v47  ;;  %v11000_v47 = vpack.c.bf16 %v4145_v44, %v4137_v11  ;;  %v12889_v21 = vadd.f32 %v3658_v0, %v17064_v2 }
 0x8c6   :  { %v9708_v52 = vmul.f32 -1.442695, %v12872_v37  ;;  %10999 = vmatprep.subr.bf16.mxu0 %v10998_v26 }
 0x8c7   :  { %v9710_v1 = vmul.f32 -1.442695, %v12873_v3  ;;  %11001 = vmatpush1.bf16.msra.mxu0 %v11000_v47  ;;  %v9712_v48 = vmul.f32 -1.442695, %v12889_v21  ;;  %v3911_v21 = vld [vmem:[#allocation11 + $0x70] sm:$0xff] }
 0x8c8   :  { %13417 = vpow2.f32 %v9708_v52  ;;  %11067 = vmatprep.subr.bf16.mxu0 %v11066_v57  ;;  %v3926_v57 = vld [vmem:[#allocation11 + $0xe8] sm:$0xff] }
 0x8c9   :  { %13419 = vpow2.f32 %v9710_v1 }
 0x8ca   :  { %13421 = vpow2.f32 %v9712_v48 }
 0x8cb   :  { %13423 = vtanh.f32 %v12888_v51 }
 0x8d2   :  { %v13418_v28 = vpop.eup %13417 }
 0x8d3   :  { %v13420_v31 = vpop.eup %13419  ;;  %v3837_v34 = vadd.f32 1.0, %v13418_v28  ;;  %v11132_v28 = vpack.c.bf16 %v3911_v21, %v3903_v35  ;;  %v17184_v35 = vld [vmem:[#allocation58_spill] sm:$0xff]  ;;  %v3990_v21 = vld [vmem:[#allocation11 + $0x2e8] sm:$0xff] }
 0x8d4   :  { %v3849_v38 = vadd.f32 1.0, %v13420_v31  ;;  %v13422_v2 = vpop.eup %13421  ;;  %v3917_v31 = vld [vmem:[#allocation11 + $0xa0] sm:$0xff] }
 0x8d5   :  { %13425 = vrcp.f32 %v3837_v34  ;;  %v13424_v8 = vpop.eup %13423  ;;  %v3863_v36 = vadd.f32 1.0, %v13422_v2  ;;  %v3925_v34 = vld [vmem:[#allocation11 + $0xe0] sm:$0xff]  ;;  %v11070_v2 = vpack.c.bf16 %v3926_v57, %v3918_v17  ;;  %v3992_v17 = vld [vmem:[#allocation11 + $0x2f8] sm:$0xff] }
 0x8d6   :  { %13427 = vrcp.f32 %v3849_v38  ;;  %v3927_v38 = vld [vmem:[#allocation11 + $0xf0] sm:$0xff] }
 0x8d7   :  { %13429 = vrcp.f32 %v3863_v36  ;;  %v3936_v36 = vld [vmem:[#allocation11 + $0x138] sm:$0xff] }
 0x8df   :  { %v13426_v24 = vpop.eup %13425 }
 0x8e0   :  { %v13428_v30 = vpop.eup %13427  ;;  %v3871_v32 = vmul.f32 %v13426_v24, %v13424_v8  ;;  %v11134_v8 = vpack.c.bf16 %v3928_v61, %v3920_v50  ;;  %v3934_v24 = vld [vmem:[#allocation11 + $0x128] sm:$0xff]  ;;  %v3981_v50 = vld [vmem:[#allocation11 + $0x2a0] sm:$0xff] }
 0x8e1   :  { %v3869_v14 = vmul.f32 %v13428_v30, %v15184_v4  ;;  %v13430_v13 = vpop.eup %13429  ;;  %v17180_v30 = vld [vmem:[#allocation69_spill] sm:$0xff]  ;;  %v17185_v61 = vld [vmem:[#allocation70_spill] sm:$0xff] }
 0x8e3   :  { %v3873_v55 = vadd.f32 %v3871_v32, %v3869_v14  ;;  %v3942_v32 = vld [vmem:[#allocation11 + $0x168] sm:$0xff]  ;;  %v3944_v14 = vld [vmem:[#allocation11 + $0x178] sm:$0xff] }
 0x8e5   :  { %13431 = vtanh.f32 %v3873_v55  ;;  %v11072_v55 = vpack.c.bf16 %v3925_v34, %v3917_v31  ;;  %v3991_v31 = vld [vmem:[#allocation11 + $0x2f0] sm:$0xff] }
 0x8ef   :  { %v13432_v58 = vpop.eup %13431 }
 0x8f0   :  { %v15248_v60 = vmul.f32 %v13432_v58, %v13430_v13  ;;  %v3933_v58 = vld [vmem:[#allocation11 + $0x120] sm:$0xff] }
 0x917   :  { %v3587_v5 = vpop.f32.mrb[60].mxu0  ;;  %v3662_v18 = vpop.f32.mrb[60].mxu1 }
 0x918   :  { %v3588_v49 = vpop.f32.mrb[61].mxu0  ;;  %v3663_v37 = vpop.f32.mrb[61].mxu1  ;;  %v3941_v5 = vld [vmem:[#allocation11 + $0x160] sm:$0xff]  ;;  %v3935_v18 = vld [vmem:[#allocation11 + $0x130] sm:$0xff] }
 0x919   :  { %v3943_v49 = vld [vmem:[#allocation11 + $0x170] sm:$0xff]  ;;  %v11074_v37 = vpack.c.bf16 %v3942_v32, %v3934_v24  ;;  %v4000_v24 = vld [vmem:[#allocation11 + $0x338] sm:$0xff] }
 0x91a   :  { %v4008_v32 = vld [vmem:[#allocation11 + $0x378] sm:$0xff] }
 0x91b   :  { %v3731_v42 = vpop.f32.mrb[62].mxu0  ;;  %v3806_v0 = vpop.f32.mrb[62].mxu1 }
 0x91c   :  { %v3732_v10 = vpop.f32.mrb[63].mxu0  ;;  %v3807_v27 = vpop.f32.mrb[63].mxu1  ;;  %v11138_v42 = vpack.c.bf16 %v3944_v14, %v3936_v36  ;;  %v3950_v0 = vld [vmem:[#allocation11 + $0x1a8] sm:$0xff] }
 0x91d   :  { %v17181_v10 = vld [vmem:[#allocation54_spill] sm:$0xff]  ;;  %v3958_v27 = vld [vmem:[#allocation11 + $0x1e8] sm:$0xff] }
 0x91f   :  { %v3735_v23 = vpop.f32.mrb[16].mxu0  ;;  %v3810_v40 = vpop.f32.mrb[16].mxu1 }
 0x920   :  { %v12890_v3 = vadd.f32 %v3735_v23, %v14568_v53  ;;  %v3737_v4 = vpop.f32.mrb[17].mxu0  ;;  %v3812_v15 = vpop.f32.mrb[17].mxu1  ;;  %v12906_v22 = vadd.f32 %v3810_v40, %v17035_v9  ;;  %v3901_v9 = vld [vmem:[#allocation11 + $0x20] sm:$0xff]  ;;  %v3952_v23 = vld [vmem:[#allocation11 + $0x1b8] sm:$0xff] }
 0x921   :  { %v12891_v12 = vadd.f32 %v3737_v4, %v14574_v56  ;;  %v12907_v62 = vadd.f32 %v3812_v15, %v17153_v16  ;;  %v11068_v51 = vpack.c.bf16 %v3909_v20, %v3901_v9  ;;  %v3960_v40 = vld [vmem:[#allocation11 + $0x1f8] sm:$0xff]  ;;  %v11140_v4 = vpack.c.bf16 %v3943_v49, %v3935_v18  ;;  %v3949_v15 = vld [vmem:[#allocation11 + $0x1a0] sm:$0xff]  ;;  %v3982_v20 = vld [vmem:[#allocation11 + $0x2a8] sm:$0xff] }
 0x922   :  { %v9709_v43 = vmul.f32 -1.442695, %v12890_v3  ;;  %v11076_v3 = vpack.c.bf16 %v3941_v5, %v3933_v58  ;;  %v11086_v34 = vpack.c.bf16 %v3990_v21, %v3982_v20  ;;  %v4005_v58 = vld [vmem:[#allocation11 + $0x360] sm:$0xff]  ;;  %v3999_v5 = vld [vmem:[#allocation11 + $0x330] sm:$0xff] }
 0x923   :  { %v9711_v63 = vmul.f32 -1.442695, %v12891_v12  ;;  %v9713_v52 = vmul.f32 -1.442695, %v12907_v62  ;;  %v3957_v12 = vld [vmem:[#allocation11 + $0x1e0] sm:$0xff]  ;;  %v11078_v62 = vpack.c.bf16 %v3958_v27, %v3950_v0  ;;  %v4007_v18 = vld [vmem:[#allocation11 + $0x370] sm:$0xff] }
 0x924   :  { %13433 = vpow2.f32 %v9709_v43  ;;  %v3951_v43 = vld [vmem:[#allocation11 + $0x1b0] sm:$0xff]  ;;  %v4022_v0 = vld [vmem:[#allocation11 + $0x3e8] sm:$0xff]  ;;  %v4016_v27 = vld [vmem:[#allocation11 + $0x3b8] sm:$0xff] }
 0x925   :  { %13435 = vpow2.f32 %v9711_v63  ;;  %v3959_v63 = vld [vmem:[#allocation11 + $0x1f0] sm:$0xff] }
 0x926   :  { %13437 = vpow2.f32 %v9713_v52  ;;  %v11142_v52 = vpack.c.bf16 %v3960_v40, %v3952_v23  ;;  %v4024_v23 = vld [vmem:[#allocation11 + $0x3f8] sm:$0xff] }
 0x927   :  { %13439 = vtanh.f32 %v12906_v22  ;;  %v3966_v22 = vld [vmem:[#allocation11 + $0x228] sm:$0xff] }
 0x92e   :  { %v13434_v26 = vpop.eup %13433 }
 0x92f   :  { %v13436_v46 = vpop.eup %13435  ;;  %v3838_v29 = vadd.f32 1.0, %v13434_v26  ;;  %v17182_v26 = vld [vmem:[#allocation56_spill] sm:$0xff] }
 0x930   :  { %v3850_v11 = vadd.f32 1.0, %v13436_v46  ;;  %v13438_v53 = vpop.eup %13437  ;;  %v3974_v46 = vld [vmem:[#allocation11 + $0x268] sm:$0xff] }
 0x931   :  { %13441 = vrcp.f32 %v3838_v29  ;;  %v13440_v1 = vpop.eup %13439  ;;  %v3864_v39 = vadd.f32 1.0, %v13438_v53  ;;  %v3968_v29 = vld [vmem:[#allocation11 + $0x238] sm:$0xff]  ;;  %v11080_v53 = vpack.c.bf16 %v3957_v12, %v3949_v15  ;;  %v17188_v15 = vld [vmem:[#allocation55_spill] sm:$0xff]  ;;  %v4021_v12 = vld [vmem:[#allocation11 + $0x3e0] sm:$0xff] }
 0x932   :  { %13443 = vrcp.f32 %v3850_v11  ;;  %v3976_v11 = vld [vmem:[#allocation11 + $0x278] sm:$0xff] }
 0x933   :  { %13445 = vrcp.f32 %v3864_v39  ;;  %v3967_v39 = vld [vmem:[#allocation11 + $0x230] sm:$0xff]  ;;  %v11146_v9 = vpack.c.bf16 %v3976_v11, %v3968_v29  ;;  %v4032_v29 = vld [vmem:[#allocation11 + $0x438] sm:$0xff] }
 0x934   :  { %v4040_v11 = vld [vmem:[#allocation11 + $0x478] sm:$0xff] }
 0x935   :  { %v11162_v21 = vpack.c.bf16 %v4040_v11, %v4032_v29  ;;  %v4096_v29 = vld [vmem:[#allocation11 + $0x638] sm:$0xff] }
 0x936   :  { %v4104_v11 = vld [vmem:[#allocation11 + $0x678] sm:$0xff] }
 0x93b   :  { %v13442_v56 = vpop.eup %13441 }
 0x93c   :  { %v13444_v6 = vpop.eup %13443  ;;  %v3872_v44 = vmul.f32 %v13442_v56, %v13440_v1  ;;  %v11144_v1 = vpack.c.bf16 %v3959_v63, %v3951_v43  ;;  %v3965_v56 = vld [vmem:[#allocation11 + $0x220] sm:$0xff]  ;;  %v4015_v43 = vld [vmem:[#allocation11 + $0x3b0] sm:$0xff] }
 0x93d   :  { %v3870_v47 = vmul.f32 %v13444_v6, %v15228_v7  ;;  %v13446_v25 = vpop.eup %13445  ;;  %v3919_v7 = vld [vmem:[#allocation11 + $0xb0] sm:$0xff]  ;;  %v17183_v6 = vld [vmem:[#allocation51_spill] sm:$0xff] }
 0x93e   :  { %v11136_v13 = vpack.c.bf16 %v3927_v38, %v3919_v7  ;;  %v3998_v38 = vld [vmem:[#allocation11 + $0x328] sm:$0xff]  ;;  %v4023_v63 = vld [vmem:[#allocation11 + $0x3f0] sm:$0xff] }
 0x93f   :  { %v3874_v16 = vadd.f32 %v3872_v44, %v3870_v47  ;;  %v3973_v44 = vld [vmem:[#allocation11 + $0x260] sm:$0xff]  ;;  %v3975_v47 = vld [vmem:[#allocation11 + $0x270] sm:$0xff] }
 0x940   :  { %v11148_v57 = vpack.c.bf16 %v3975_v47, %v3967_v39  ;;  %v17189_v39 = vld [vmem:[#allocation49_spill] sm:$0xff]  ;;  %v4031_v47 = vld [vmem:[#allocation11 + $0x430] sm:$0xff] }
 0x941   :  { %13447 = vtanh.f32 %v3874_v16  ;;  %v11082_v16 = vpack.c.bf16 %v3974_v46, %v3966_v22  ;;  %v4030_v22 = vld [vmem:[#allocation11 + $0x428] sm:$0xff] }
 0x942   :  { %v4038_v46 = vld [vmem:[#allocation11 + $0x468] sm:$0xff] }
 0x943   :  { %v11098_v20 = vpack.c.bf16 %v4038_v46, %v4030_v22  ;;  %v4094_v22 = vld [vmem:[#allocation11 + $0x628] sm:$0xff] }
 0x944   :  { %v4102_v46 = vld [vmem:[#allocation11 + $0x668] sm:$0xff] }
 0x94b   :  { %v13448_v54 = vpop.eup %13447 }
 0x94c   :  { %v15255_v48 = vmul.f32 %v13448_v54, %v13446_v25  ;;  %v3984_v25 = vld [vmem:[#allocation11 + $0x2b8] sm:$0xff]  ;;  %v11084_v54 = vpack.c.bf16 %v3973_v44, %v3965_v56  ;;  %v4029_v56 = vld [vmem:[#allocation11 + $0x420] sm:$0xff] }
 0x94d   :  { %v11150_v7 = vpack.c.bf16 %v3992_v17, %v3984_v25  ;;  %v4037_v44 = vld [vmem:[#allocation11 + $0x460] sm:$0xff]  ;;  %v4054_v25 = vld [vmem:[#allocation11 + $0x4e8] sm:$0xff]  ;;  %v4048_v17 = vld [vmem:[#allocation11 + $0x4b8] sm:$0xff] }
 0x94e   :  { %4259 = vmatprep.mubr.f32.mxu0 %v15255_v48  ;;  %4372 = vmatprep.mubr.f32.mxu1 %v15255_v48 }
 0x94f   :  { %4260 = vmatmul.mubr.f32.vlgmr.msra.gmra.mrb[64].mxu0 %v17180_v30  ;;  %4373 = vmatmul.mubr.f32.vlgmr.msra.gmra.mrb[64].mxu1 %v17180_v30 }
 0x950   :  { %11069 = vmatpush1.bf16.msra.mxu0 %v11068_v51  ;;  %11133 = vmatpush1.bf16.msra.mxu1 %v11132_v28  ;;  %v3989_v51 = vld [vmem:[#allocation11 + $0x2e0] sm:$0xff]  ;;  %v3983_v28 = vld [vmem:[#allocation11 + $0x2b0] sm:$0xff] }
 0x951   :  { %4265 = vmatprep.mubr.f32.mxu0 %v15231_v33  ;;  %4378 = vmatprep.mubr.f32.mxu1 %v15231_v33  ;;  %v11088_v36 = vpack.c.bf16 %v3989_v51, %v3981_v50  ;;  %v11152_v14 = vpack.c.bf16 %v3991_v31, %v3983_v28  ;;  %v4045_v51 = vld [vmem:[#allocation11 + $0x4a0] sm:$0xff] }
 0x952   :  { %11071 = vmatprep.subr.bf16.mxu0 %v11070_v2  ;;  %11135 = vmatprep.subr.bf16.mxu1 %v11134_v8  ;;  %v17186_v2 = vld [vmem:[#allocation50_spill] sm:$0xff]  ;;  %v4006_v8 = vld [vmem:[#allocation11 + $0x368] sm:$0xff] }
 0x953   :  { %4266 = vmatmul.mubr.f32.gmra.mrb[66].mxu0 %v17181_v10  ;;  %4379 = vmatmul.mubr.f32.gmra.mrb[66].mxu1 %v17181_v10  ;;  %v11090_v49 = vpack.c.bf16 %v4006_v8, %v3998_v38  ;;  %v4053_v28 = vld [vmem:[#allocation11 + $0x4e0] sm:$0xff]  ;;  %v4055_v38 = vld [vmem:[#allocation11 + $0x4f0] sm:$0xff]  ;;  %v4062_v8 = vld [vmem:[#allocation11 + $0x528] sm:$0xff] }
 0x954   :  { %11073 = vmatpush1.bf16.msra.mxu0 %v11072_v55  ;;  %11137 = vmatpush1.bf16.msra.mxu1 %v11136_v13  ;;  %v3997_v55 = vld [vmem:[#allocation11 + $0x320] sm:$0xff]  ;;  %v17187_v13 = vld [vmem:[#allocation57_spill] sm:$0xff] }
 0x955   :  { %4271 = vmatprep.mubr.f32.mxu0 %v15133_v59  ;;  %4384 = vmatprep.mubr.f32.mxu1 %v15133_v59  ;;  %v11092_v40 = vpack.c.bf16 %v4005_v58, %v3997_v55  ;;  %v4061_v58 = vld [vmem:[#allocation11 + $0x520] sm:$0xff] }
 0x956   :  { %11075 = vmatprep.subr.bf16.mxu0 %v11074_v37  ;;  %11139 = vmatprep.subr.bf16.mxu1 %v11138_v42  ;;  %v11154_v37 = vpack.c.bf16 %v4008_v32, %v4000_v24  ;;  %v4014_v42 = vld [vmem:[#allocation11 + $0x3a8] sm:$0xff]  ;;  %v4064_v32 = vld [vmem:[#allocation11 + $0x538] sm:$0xff] }
 0x957   :  { %4272 = vmatmul.mubr.f32.gmra.mrb[68].mxu0 %v17182_v26  ;;  %4385 = vmatmul.mubr.f32.gmra.mrb[68].mxu1 %v17182_v26  ;;  %v4070_v24 = vld [vmem:[#allocation11 + $0x568] sm:$0xff] }
 0x958   :  { %11077 = vmatpush1.bf16.msra.mxu0 %v11076_v3  ;;  %11141 = vmatpush1.bf16.msra.mxu1 %v11140_v4  ;;  %v11156_v3 = vpack.c.bf16 %v4007_v18, %v3999_v5  ;;  %v4013_v4 = vld [vmem:[#allocation11 + $0x3a0] sm:$0xff]  ;;  %v11106_v18 = vpack.c.bf16 %v4070_v24, %v4062_v8  ;;  %v4126_v8 = vld [vmem:[#allocation11 + $0x728] sm:$0xff] }
 0x959   :  { %4277 = vmatprep.mubr.f32.mxu0 %v17183_v6  ;;  %4390 = vmatprep.mubr.f32.mxu1 %v17183_v6  ;;  %v4069_v5 = vld [vmem:[#allocation11 + $0x560] sm:$0xff]  ;;  %v4134_v24 = vld [vmem:[#allocation11 + $0x768] sm:$0xff] }
 0x95a   :  { %11079 = vmatprep.subr.bf16.mxu0 %v11078_v62  ;;  %11143 = vmatprep.subr.bf16.mxu1 %v11142_v52  ;;  %v11094_v62 = vpack.c.bf16 %v4022_v0, %v4014_v42  ;;  %v11158_v52 = vpack.c.bf16 %v4024_v23, %v4016_v27  ;;  %v4078_v42 = vld [vmem:[#allocation11 + $0x5a8] sm:$0xff]  ;;  %v4080_v27 = vld [vmem:[#allocation11 + $0x5b8] sm:$0xff] }
 0x95b   :  { %4278 = vmatmul.mubr.f32.gmra.mrb[70].mxu0 %v17184_v35  ;;  %4391 = vmatmul.mubr.f32.gmra.mrb[70].mxu1 %v17184_v35  ;;  %v4086_v0 = vld [vmem:[#allocation11 + $0x5e8] sm:$0xff]  ;;  %v4088_v23 = vld [vmem:[#allocation11 + $0x5f8] sm:$0xff] }
 0x95c   :  { %11081 = vmatpush1.bf16.msra.mxu0 %v11080_v53  ;;  %11145 = vmatpush1.bf16.msra.mxu1 %v11144_v1  ;;  %v11096_v53 = vpack.c.bf16 %v4021_v12, %v4013_v4  ;;  %v11160_v1 = vpack.c.bf16 %v4023_v63, %v4015_v43  ;;  %v4077_v4 = vld [vmem:[#allocation11 + $0x5a0] sm:$0xff]  ;;  %v11110_v43 = vpack.c.bf16 %v4086_v0, %v4078_v42  ;;  %v4142_v42 = vld [vmem:[#allocation11 + $0x7a8] sm:$0xff] }
 0x95d   :  { %4283 = vmatprep.mubr.f32.mxu0 %v17185_v61  ;;  %4396 = vmatprep.mubr.f32.mxu1 %v17185_v61  ;;  %v4085_v12 = vld [vmem:[#allocation11 + $0x5e0] sm:$0xff]  ;;  %v11174_v63 = vpack.c.bf16 %v4088_v23, %v4080_v27  ;;  %v4150_v0 = vld [vmem:[#allocation11 + $0x7e8] sm:$0xff]  ;;  %v4144_v27 = vld [vmem:[#allocation11 + $0x7b8] sm:$0xff] }
 0x95e   :  { %11083 = vmatprep.subr.bf16.mxu0 %v11082_v16  ;;  %11147 = vmatprep.subr.bf16.mxu1 %v11146_v9  ;;  %v4039_v16 = vld [vmem:[#allocation11 + $0x470] sm:$0xff]  ;;  %v4046_v9 = vld [vmem:[#allocation11 + $0x4a8] sm:$0xff]  ;;  %v4152_v23 = vld [vmem:[#allocation11 + $0x7f8] sm:$0xff] }
 0x95f   :  { %4284 = vmatmul.mubr.f32.gmra.mrb[72].mxu0 %v17186_v2  ;;  %4397 = vmatmul.mubr.f32.gmra.mrb[72].mxu1 %v17186_v2  ;;  %v11164_v50 = vpack.c.bf16 %v4039_v16, %v4031_v47  ;;  %v11102_v31 = vpack.c.bf16 %v4054_v25, %v4046_v9  ;;  %v11114_v47 = vpack.c.bf16 %v4102_v46, %v4094_v22  ;;  %v4095_v9 = vld [vmem:[#allocation11 + $0x630] sm:$0xff]  ;;  %v4118_v25 = vld [vmem:[#allocation11 + $0x6e8] sm:$0xff] }
 0x960   :  { %11085 = vmatpush1.bf16.msra.mxu0 %v11084_v54  ;;  %11149 = vmatpush1.bf16.msra.mxu1 %v11148_v57  ;;  %v4056_v54 = vld [vmem:[#allocation11 + $0x4f8] sm:$0xff]  ;;  %v11100_v57 = vpack.c.bf16 %v4037_v44, %v4029_v56  ;;  %v4093_v56 = vld [vmem:[#allocation11 + $0x620] sm:$0xff]  ;;  %v11178_v16 = vpack.c.bf16 %v4104_v11, %v4096_v29  ;;  %v4712_v22 = vld [vmem:[#allocation13 + $0x8] sm:$0xff] }
 0x961   :  { %4289 = vmatprep.mubr.f32.mxu0 %v17187_v13  ;;  %4402 = vmatprep.mubr.f32.mxu1 %v17187_v13  ;;  %v4101_v44 = vld [vmem:[#allocation11 + $0x660] sm:$0xff]  ;;  %v4720_v46 = vld [vmem:[#allocation13 + $0x48] sm:$0xff]  ;;  %v4714_v29 = vld [vmem:[#allocation13 + $0x18] sm:$0xff] }
 0x962   :  { %11087 = vmatprep.subr.bf16.mxu0 %v11086_v34  ;;  %11151 = vmatprep.subr.bf16.mxu1 %v11150_v7  ;;  %v11166_v34 = vpack.c.bf16 %v4056_v54, %v4048_v17  ;;  %v4047_v7 = vld [vmem:[#allocation11 + $0x4b0] sm:$0xff]  ;;  %v4112_v17 = vld [vmem:[#allocation11 + $0x6b8] sm:$0xff] }
 0x963   :  { %4290 = vmatmul.mubr.f32.gmra.mrb[74].mxu0 %v15087_v45  ;;  %4403 = vmatmul.mubr.f32.gmra.mrb[74].mxu1 %v15087_v45  ;;  %v11168_v55 = vpack.c.bf16 %v4055_v38, %v4047_v7  ;;  %v4120_v54 = vld [vmem:[#allocation11 + $0x6f8] sm:$0xff]  ;;  %v4111_v7 = vld [vmem:[#allocation11 + $0x6b0] sm:$0xff] }
 0x964   :  { %11089 = vmatpush1.bf16.msra.mxu0 %v11088_v36  ;;  %11153 = vmatpush1.bf16.msra.mxu1 %v11152_v14  ;;  %v4072_v36 = vld [vmem:[#allocation11 + $0x578] sm:$0xff]  ;;  %v11104_v14 = vpack.c.bf16 %v4053_v28, %v4045_v51  ;;  %v4109_v51 = vld [vmem:[#allocation11 + $0x6a0] sm:$0xff]  ;;  %v4119_v38 = vld [vmem:[#allocation11 + $0x6f0] sm:$0xff] }
 0x965   :  { %4295 = vmatprep.mubr.f32.mxu0 %v17188_v15  ;;  %4408 = vmatprep.mubr.f32.mxu1 %v17188_v15  ;;  %v4117_v28 = vld [vmem:[#allocation11 + $0x6e0] sm:$0xff]  ;;  %v4722_v11 = vld [vmem:[#allocation13 + $0x58] sm:$0xff] }
 0x966   :  { %11091 = vmatprep.subr.bf16.mxu0 %v11090_v49  ;;  %11155 = vmatprep.subr.bf16.mxu1 %v11154_v37  ;;  %v4063_v49 = vld [vmem:[#allocation11 + $0x530] sm:$0xff] }
 0x967   :  { %4296 = vmatmul.mubr.f32.gmra.mrb[76].mxu0 %v15187_v41  ;;  %4409 = vmatmul.mubr.f32.gmra.mrb[76].mxu1 %v15187_v41  ;;  %v4071_v37 = vld [vmem:[#allocation11 + $0x570] sm:$0xff] }
 0x968   :  { %11093 = vmatpush1.bf16.msra.mxu0 %v11092_v40  ;;  %11157 = vmatpush1.bf16.msra.mxu1 %v11156_v3  ;;  %v11108_v40 = vpack.c.bf16 %v4069_v5, %v4061_v58  ;;  %v11172_v3 = vpack.c.bf16 %v4071_v37, %v4063_v49  ;;  %v4125_v58 = vld [vmem:[#allocation11 + $0x720] sm:$0xff]  ;;  %v4127_v49 = vld [vmem:[#allocation11 + $0x730] sm:$0xff] }
 0x969   :  { %4301 = vmatprep.mubr.f32.mxu0 %v17189_v39  ;;  %4414 = vmatprep.mubr.f32.mxu1 %v17189_v39  ;;  %v4133_v5 = vld [vmem:[#allocation11 + $0x760] sm:$0xff]  ;;  %v4135_v37 = vld [vmem:[#allocation11 + $0x770] sm:$0xff] }
 0x96a   :  { %11095 = vmatprep.subr.bf16.mxu0 %v11094_v62  ;;  %11159 = vmatprep.subr.bf16.mxu1 %v11158_v52  ;;  %v4079_v62 = vld [vmem:[#allocation11 + $0x5b0] sm:$0xff] }
 0x96b   :  { %4302 = vmatmul.mubr.f32.gmra.mrb[78].mxu0 %v15248_v60  ;;  %4415 = vmatmul.mubr.f32.gmra.mrb[78].mxu1 %v15248_v60  ;;  %v4087_v52 = vld [vmem:[#allocation11 + $0x5f0] sm:$0xff] }
 0x96c   :  { %11097 = vmatpush1.bf16.msra.mxu0 %v11096_v53  ;;  %11161 = vmatpush1.bf16.msra.mxu1 %v11160_v1  ;;  %v11112_v53 = vpack.c.bf16 %v4085_v12, %v4077_v4  ;;  %v11176_v1 = vpack.c.bf16 %v4087_v52, %v4079_v62  ;;  %v4141_v4 = vld [vmem:[#allocation11 + $0x7a0] sm:$0xff]  ;;  %v4143_v62 = vld [vmem:[#allocation11 + $0x7b0] sm:$0xff] }
 0x96d   :  { %4485 = vmatprep.mubr.f32.mxu0 %v15255_v48  ;;  %4598 = vmatprep.mubr.f32.mxu1 %v15255_v48  ;;  %v11170_v48 = vpack.c.bf16 %v4072_v36, %v4064_v32  ;;  %v4128_v32 = vld [vmem:[#allocation11 + $0x738] sm:$0xff]  ;;  %v4149_v12 = vld [vmem:[#allocation11 + $0x7e0] sm:$0xff]  ;;  %v4151_v52 = vld [vmem:[#allocation11 + $0x7f0] sm:$0xff] }
 0x96e   :  { %11099 = vmatprep.subr.bf16.mxu0 %v11098_v20  ;;  %11163 = vmatprep.subr.bf16.mxu1 %v11162_v21  ;;  %v4103_v20 = vld [vmem:[#allocation11 + $0x670] sm:$0xff]  ;;  %v4110_v21 = vld [vmem:[#allocation11 + $0x6a8] sm:$0xff]  ;;  %v4136_v36 = vld [vmem:[#allocation11 + $0x778] sm:$0xff] }
 0x970   :  { %11101 = vmatpush1.bf16.msra.mxu0 %v11100_v57  ;;  %11165 = vmatpush1.bf16.msra.mxu1 %v11164_v50  ;;  %v11116_v57 = vpack.c.bf16 %v4101_v44, %v4093_v56  ;;  %v11180_v50 = vpack.c.bf16 %v4103_v20, %v4095_v9  ;;  %v15291_v56 = vpack.c.bf16 %v4720_v46, %v4712_v22  ;;  %v4713_v9 = vld [vmem:[#allocation13 + $0x10] sm:$0xff] }
 0x971   :  { %11103 = vmatprep.subr.bf16.mxu0 %v11102_v31  ;;  %11167 = vmatprep.subr.bf16.mxu1 %v11166_v34  ;;  %v11118_v31 = vpack.c.bf16 %v4118_v25, %v4110_v21  ;;  %v11182_v34 = vpack.c.bf16 %v4120_v54, %v4112_v17  ;;  %v15293_v44 = vpack.c.bf16 %v4722_v11, %v4714_v29  ;;  %v4721_v20 = vld [vmem:[#allocation13 + $0x50] sm:$0xff]  ;;  %v4728_v21 = vld [vmem:[#allocation13 + $0x88] sm:$0xff]  ;;  %v4730_v17 = vld [vmem:[#allocation13 + $0x98] sm:$0xff] }
 0x972   :  { %v4736_v25 = vld [vmem:[#allocation13 + $0xc8] sm:$0xff]  ;;  %v4738_v54 = vld [vmem:[#allocation13 + $0xd8] sm:$0xff]  ;;  %v4775_v29 = vld [vmem:[#allocation13 + $0x200] sm:$0xff] }
 0x973   :  { %v4783_v11 = vld [vmem:[#allocation13 + $0x240] sm:$0xff] }
 0x974   :  { %11105 = vmatpush1.bf16.msra.mxu0 %v11104_v14  ;;  %11169 = vmatpush1.bf16.msra.mxu1 %v11168_v55  ;;  %v11120_v14 = vpack.c.bf16 %v4117_v28, %v4109_v51  ;;  %v11184_v55 = vpack.c.bf16 %v4119_v38, %v4111_v7  ;;  %v4727_v51 = vld [vmem:[#allocation13 + $0x80] sm:$0xff]  ;;  %v4729_v7 = vld [vmem:[#allocation13 + $0x90] sm:$0xff] }
 0x975   :  { %11107 = vmatprep.subr.bf16.mxu0 %v11106_v18  ;;  %11171 = vmatprep.subr.bf16.mxu1 %v11170_v48  ;;  %v11122_v18 = vpack.c.bf16 %v4134_v24, %v4126_v8  ;;  %v11186_v48 = vpack.c.bf16 %v4136_v36, %v4128_v32  ;;  %v4735_v28 = vld [vmem:[#allocation13 + $0xc0] sm:$0xff]  ;;  %v4737_v38 = vld [vmem:[#allocation13 + $0xd0] sm:$0xff]  ;;  %v4744_v8 = vld [vmem:[#allocation13 + $0x108] sm:$0xff] }
 0x976   :  { %v4752_v24 = vld [vmem:[#allocation13 + $0x148] sm:$0xff]  ;;  %v4746_v32 = vld [vmem:[#allocation13 + $0x118] sm:$0xff] }
 0x977   :  { %v4754_v36 = vld [vmem:[#allocation13 + $0x158] sm:$0xff] }
 0x978   :  { %11109 = vmatpush1.bf16.msra.mxu0 %v11108_v40  ;;  %11173 = vmatpush1.bf16.msra.mxu1 %v11172_v3  ;;  %v11124_v40 = vpack.c.bf16 %v4133_v5, %v4125_v58  ;;  %v11188_v3 = vpack.c.bf16 %v4135_v37, %v4127_v49  ;;  %v4743_v58 = vld [vmem:[#allocation13 + $0x100] sm:$0xff]  ;;  %v4760_v49 = vld [vmem:[#allocation13 + $0x188] sm:$0xff] }
 0x979   :  { %11111 = vmatprep.subr.bf16.mxu0 %v11110_v43  ;;  %11175 = vmatprep.subr.bf16.mxu1 %v11174_v63  ;;  %v11126_v43 = vpack.c.bf16 %v4150_v0, %v4142_v42  ;;  %v11190_v63 = vpack.c.bf16 %v4152_v23, %v4144_v27  ;;  %v4751_v5 = vld [vmem:[#allocation13 + $0x140] sm:$0xff]  ;;  %v4768_v37 = vld [vmem:[#allocation13 + $0x1c8] sm:$0xff]  ;;  %v4762_v42 = vld [vmem:[#allocation13 + $0x198] sm:$0xff] }
 0x97a   :  { %v4770_v0 = vld [vmem:[#allocation13 + $0x1d8] sm:$0xff]  ;;  %v15327_v27 = vpack.c.bf16 %v4751_v5, %v4743_v58  ;;  %v4807_v58 = vld [vmem:[#allocation13 + $0x300] sm:$0xff] }
 0x97b   :  { %v4815_v5 = vld [vmem:[#allocation13 + $0x340] sm:$0xff] }
 0x97c   :  { %11113 = vmatpush1.bf16.msra.mxu0 %v11112_v53  ;;  %11177 = vmatpush1.bf16.msra.mxu1 %v11176_v1  ;;  %v11128_v53 = vpack.c.bf16 %v4149_v12, %v4141_v4  ;;  %v11192_v1 = vpack.c.bf16 %v4151_v52, %v4143_v62  ;;  %17192 = vst [vmem:[#allocation63_spill] sm:$0xff] %v15327_v27  ;;  %v4761_v12 = vld [vmem:[#allocation13 + $0x190] sm:$0xff]  ;;  %v4778_v62 = vld [vmem:[#allocation13 + $0x218] sm:$0xff] }
 0x97d   :  { %11115 = vmatprep.subr.bf16.mxu0 %v11114_v47  ;;  %11179 = vmatprep.subr.bf16.mxu1 %v11178_v16  ;;  %v4711_v47 = vld [vmem:[#allocation13] sm:$0xff]  ;;  %v15335_v4 = vpack.c.bf16 %v4770_v0, %v4762_v42  ;;  %v4786_v52 = vld [vmem:[#allocation13 + $0x258] sm:$0xff] }
 0x97e   :  { %v4719_v16 = vld [vmem:[#allocation13 + $0x40] sm:$0xff]  ;;  %v4826_v42 = vld [vmem:[#allocation13 + $0x398] sm:$0xff] }
 0x97f   :  { %17195 = vst [vmem:[#allocation23_spill] sm:$0xff] %v15335_v4  ;;  %v4834_v0 = vld [vmem:[#allocation13 + $0x3d8] sm:$0xff] }
 0x980   :  { %11117 = vmatpush1.bf16.msra.mxu0 %v11116_v57  ;;  %11181 = vmatpush1.bf16.msra.mxu1 %v11180_v50  ;;  %v15297_v57 = vpack.c.bf16 %v4719_v16, %v4711_v47  ;;  %v15299_v50 = vpack.c.bf16 %v4721_v20, %v4713_v9  ;;  %v4792_v47 = vld [vmem:[#allocation13 + $0x288] sm:$0xff]  ;;  %v4794_v9 = vld [vmem:[#allocation13 + $0x298] sm:$0xff] }
 0x981   :  { %11119 = vmatprep.subr.bf16.mxu0 %v11118_v31  ;;  %11183 = vmatprep.subr.bf16.mxu1 %v11182_v34  ;;  %v15301_v31 = vpack.c.bf16 %v4736_v25, %v4728_v21  ;;  %v15303_v34 = vpack.c.bf16 %v4738_v54, %v4730_v17  ;;  %v4800_v16 = vld [vmem:[#allocation13 + $0x2c8] sm:$0xff]  ;;  %v4802_v20 = vld [vmem:[#allocation13 + $0x2d8] sm:$0xff]  ;;  %v15359_v21 = vpack.c.bf16 %v4783_v11, %v4775_v29  ;;  %v4791_v17 = vld [vmem:[#allocation13 + $0x280] sm:$0xff] }
 0x982   :  { %v4799_v54 = vld [vmem:[#allocation13 + $0x2c0] sm:$0xff]  ;;  %v4718_v29 = vld [vmem:[#allocation13 + $0x38] sm:$0xff] }
 0x983   :  { %17200 = vst [vmem:[#allocation27_spill] sm:$0xff] %v15359_v21  ;;  %v4726_v11 = vld [vmem:[#allocation13 + $0x78] sm:$0xff] }
 0x984   :  { %11121 = vmatpush1.bf16.msra.mxu0 %v11120_v14  ;;  %11185 = vmatpush1.bf16.msra.mxu1 %v11184_v55  ;;  %v15311_v14 = vpack.c.bf16 %v4735_v28, %v4727_v51  ;;  %v15313_v55 = vpack.c.bf16 %v4737_v38, %v4729_v7  ;;  %v15367_v51 = vpack.c.bf16 %v4802_v20, %v4794_v9  ;;  %v4793_v28 = vld [vmem:[#allocation13 + $0x290] sm:$0xff]  ;;  %v4808_v7 = vld [vmem:[#allocation13 + $0x308] sm:$0xff] }
 0x985   :  { %11123 = vmatprep.subr.bf16.mxu0 %v11122_v18  ;;  %11187 = vmatprep.subr.bf16.mxu1 %v11186_v48  ;;  %v15319_v18 = vpack.c.bf16 %v4754_v36, %v4746_v32  ;;  %v4745_v48 = vld [vmem:[#allocation13 + $0x110] sm:$0xff]  ;;  %v4816_v38 = vld [vmem:[#allocation13 + $0x348] sm:$0xff]  ;;  %v15375_v32 = vpack.c.bf16 %v4799_v54, %v4791_v17  ;;  %v15415_v9 = vpack.c.bf16 %v4726_v11, %v4718_v29 }
 0x986   :  { %17203 = vst [vmem:[#allocation30_spill] sm:$0xff] %v15367_v51  ;;  %v4717_v20 = vld [vmem:[#allocation13 + $0x30] sm:$0xff]  ;;  %v4732_v17 = vld [vmem:[#allocation13 + $0xa8] sm:$0xff] }
 0x987   :  { %17191 = vst [vmem:[#allocation53_spill] sm:$0xff] %v15319_v18  ;;  %17204 = vst [vmem:[#allocation31_spill] sm:$0xff] %v15375_v32  ;;  %v4740_v54 = vld [vmem:[#allocation13 + $0xe8] sm:$0xff]  ;;  %v4757_v29 = vld [vmem:[#allocation13 + $0x170] sm:$0xff] }
 0x988   :  { %11125 = vmatpush1.bf16.msra.mxu0 %v11124_v40  ;;  %11189 = vmatpush1.bf16.msra.mxu1 %v11188_v3  ;;  %v4759_v40 = vld [vmem:[#allocation13 + $0x180] sm:$0xff]  ;;  %17215 = vst [vmem:[#allocation42_spill] sm:$0xff] %v15415_v9  ;;  %v4764_v11 = vld [vmem:[#allocation13 + $0x1a8] sm:$0xff] }
 0x989   :  { %11127 = vmatprep.subr.bf16.mxu0 %v11126_v43  ;;  %11191 = vmatprep.subr.bf16.mxu1 %v11190_v63  ;;  %v4767_v3 = vld [vmem:[#allocation13 + $0x1c0] sm:$0xff]  ;;  %v4776_v43 = vld [vmem:[#allocation13 + $0x208] sm:$0xff] }
 0x98a   :  { %v4784_v63 = vld [vmem:[#allocation13 + $0x248] sm:$0xff]  ;;  %v15343_v22 = vpack.c.bf16 %v4767_v3, %v4759_v40  ;;  %v15391_v40 = vpack.c.bf16 %v4815_v5, %v4807_v58  ;;  %v4733_v5 = vld [vmem:[#allocation13 + $0xb0] sm:$0xff] }
 0x98c   :  { %11129 = vmatpush1.bf16.msra.mxu0 %v11128_v53  ;;  %11193 = vmatpush1.bf16.msra.mxu1 %v11192_v1  ;;  %17196 = vst [vmem:[#allocation68_spill] sm:$0xff] %v15343_v22  ;;  %v15351_v53 = vpack.c.bf16 %v4786_v52, %v4778_v62  ;;  %v4777_v1 = vld [vmem:[#allocation13 + $0x210] sm:$0xff]  ;;  %17208 = vst [vmem:[#allocation35_spill] sm:$0xff] %v15391_v40  ;;  %v4716_v62 = vld [vmem:[#allocation13 + $0x28] sm:$0xff] }
 0x98d   :  { %11195 = vmatprep.subr.bf16.mxu0 %v15291_v56  ;;  %11227 = vmatprep.subr.bf16.mxu1 %v15293_v44  ;;  %v4724_v52 = vld [vmem:[#allocation13 + $0x68] sm:$0xff] }
 0x98e   :  { %17199 = vst [vmem:[#allocation26_spill] sm:$0xff] %v15351_v53 }
 0x98f   :  { %4486 = vmatmul.mubr.f32.vlgmr.msra.gmra.mrb[80].mxu0 %v17180_v30  ;;  %4599 = vmatmul.mubr.f32.vlgmr.msra.gmra.mrb[80].mxu1 %v17180_v30  ;;  %v15317_v30 = vpack.c.bf16 %v4752_v24, %v4744_v8  ;;  %v4810_v8 = vld [vmem:[#allocation13 + $0x318] sm:$0xff] }
 0x990   :  { %4491 = vmatprep.mubr.f32.mxu0 %v15231_v33  ;;  %4604 = vmatprep.mubr.f32.mxu1 %v15231_v33  ;;  %v4753_v33 = vld [vmem:[#allocation13 + $0x150] sm:$0xff]  ;;  %v4818_v24 = vld [vmem:[#allocation13 + $0x358] sm:$0xff] }
 0x991   :  { %11197 = vmatpush1.bf16.msra.mxu0 %v15297_v57  ;;  %11229 = vmatpush1.bf16.msra.mxu1 %v15299_v50  ;;  %17190 = vst [vmem:[#allocation52_spill] sm:$0xff] %v15317_v30  ;;  %v15329_v23 = vpack.c.bf16 %v4753_v33, %v4745_v48  ;;  %v15383_v48 = vpack.c.bf16 %v4818_v24, %v4810_v8  ;;  %v4809_v33 = vld [vmem:[#allocation13 + $0x310] sm:$0xff]  ;;  %v4731_v8 = vld [vmem:[#allocation13 + $0xa0] sm:$0xff] }
 0x992   :  { %11199 = vmatprep.subr.bf16.mxu0 %v15301_v31  ;;  %11231 = vmatprep.subr.bf16.mxu1 %v15303_v34  ;;  %v4739_v24 = vld [vmem:[#allocation13 + $0xe0] sm:$0xff] }
 0x993   :  { %4492 = vmatmul.mubr.f32.gmra.mrb[82].mxu0 %v17181_v10  ;;  %4605 = vmatmul.mubr.f32.gmra.mrb[82].mxu1 %v17181_v10  ;;  %17193 = vst [vmem:[#allocation65_spill] sm:$0xff] %v15329_v23  ;;  %v15333_v10 = vpack.c.bf16 %v4768_v37, %v4760_v49  ;;  %17207 = vst [vmem:[#allocation34_spill] sm:$0xff] %v15383_v48  ;;  %v4824_v49 = vld [vmem:[#allocation13 + $0x388] sm:$0xff] }
 0x994   :  { %4497 = vmatprep.mubr.f32.mxu0 %v15133_v59  ;;  %4610 = vmatprep.mubr.f32.mxu1 %v15133_v59  ;;  %v4769_v59 = vld [vmem:[#allocation13 + $0x1d0] sm:$0xff]  ;;  %v4832_v37 = vld [vmem:[#allocation13 + $0x3c8] sm:$0xff] }
 0x995   :  { %11201 = vmatpush1.bf16.msra.mxu0 %v15311_v14  ;;  %11233 = vmatpush1.bf16.msra.mxu1 %v15313_v55  ;;  %17194 = vst [vmem:[#allocation67_spill] sm:$0xff] %v15333_v10  ;;  %v15345_v46 = vpack.c.bf16 %v4769_v59, %v4761_v12  ;;  %v4823_v12 = vld [vmem:[#allocation13 + $0x380] sm:$0xff] }
 0x996   :  { %11203 = vmatprep.subr.bf16.mxu0 %v15317_v30  ;;  %11235 = vmatprep.subr.bf16.mxu1 %v15319_v18  ;;  %v4831_v59 = vld [vmem:[#allocation13 + $0x3c0] sm:$0xff] }
 0x997   :  { %4498 = vmatmul.mubr.f32.gmra.mrb[84].mxu0 %v17182_v26  ;;  %4611 = vmatmul.mubr.f32.gmra.mrb[84].mxu1 %v17182_v26  ;;  %17197 = vst [vmem:[#allocation24_spill] sm:$0xff] %v15345_v46  ;;  %v15349_v26 = vpack.c.bf16 %v4784_v63, %v4776_v43  ;;  %v15399_v43 = vpack.c.bf16 %v4834_v0, %v4826_v42  ;;  %v4825_v63 = vld [vmem:[#allocation13 + $0x390] sm:$0xff]  ;;  %v4758_v42 = vld [vmem:[#allocation13 + $0x178] sm:$0xff] }
 0x998   :  { %4503 = vmatprep.mubr.f32.mxu0 %v17183_v6  ;;  %4616 = vmatprep.mubr.f32.mxu1 %v17183_v6  ;;  %v4785_v6 = vld [vmem:[#allocation13 + $0x250] sm:$0xff]  ;;  %v15437_v0 = vpack.c.bf16 %v4739_v24, %v4731_v8 }
 0x999   :  { %11205 = vmatpush1.bf16.msra.mxu0 %v15327_v27  ;;  %11237 = vmatpush1.bf16.msra.mxu1 %v15329_v23  ;;  %17198 = vst [vmem:[#allocation25_spill] sm:$0xff] %v15349_v26  ;;  %v15361_v25 = vpack.c.bf16 %v4785_v6, %v4777_v1  ;;  %17211 = vst [vmem:[#allocation38_spill] sm:$0xff] %v15399_v43  ;;  %v15407_v1 = vpack.c.bf16 %v4831_v59, %v4823_v12  ;;  %v4747_v59 = vld [vmem:[#allocation13 + $0x120] sm:$0xff]  ;;  %v4765_v24 = vld [vmem:[#allocation13 + $0x1b0] sm:$0xff] }
 0x99a   :  { %11207 = vmatprep.subr.bf16.mxu0 %v15333_v10  ;;  %11239 = vmatprep.subr.bf16.mxu1 %v15335_v4 }
 0x99b   :  { %4504 = vmatmul.mubr.f32.gmra.mrb[86].mxu0 %v17184_v35  ;;  %4617 = vmatmul.mubr.f32.gmra.mrb[86].mxu1 %v17184_v35  ;;  %17201 = vst [vmem:[#allocation28_spill] sm:$0xff] %v15361_v25  ;;  %v15365_v35 = vpack.c.bf16 %v4800_v16, %v4792_v47  ;;  %17212 = vst [vmem:[#allocation39_spill] sm:$0xff] %v15407_v1  ;;  %v4715_v47 = vld [vmem:[#allocation13 + $0x20] sm:$0xff] }
 0x99c   :  { %4509 = vmatprep.mubr.f32.mxu0 %v17185_v61  ;;  %4622 = vmatprep.mubr.f32.mxu1 %v17185_v61  ;;  %v4801_v61 = vld [vmem:[#allocation13 + $0x2d0] sm:$0xff]  ;;  %v4723_v16 = vld [vmem:[#allocation13 + $0x60] sm:$0xff] }
 0x99d   :  { %11209 = vmatpush1.bf16.msra.mxu0 %v15343_v22  ;;  %11241 = vmatpush1.bf16.msra.mxu1 %v15345_v46  ;;  %17202 = vst [vmem:[#allocation29_spill] sm:$0xff] %v15365_v35  ;;  %v15377_v36 = vpack.c.bf16 %v4801_v61, %v4793_v28  ;;  %v4734_v28 = vld [vmem:[#allocation13 + $0xb8] sm:$0xff] }
 0x99e   :  { %11211 = vmatprep.subr.bf16.mxu0 %v15349_v26  ;;  %11243 = vmatprep.subr.bf16.mxu1 %v15351_v53  ;;  %v4742_v61 = vld [vmem:[#allocation13 + $0xf8] sm:$0xff] }
 0x99f   :  { %4510 = vmatmul.mubr.f32.gmra.mrb[88].mxu0 %v17186_v2  ;;  %4623 = vmatmul.mubr.f32.gmra.mrb[88].mxu1 %v17186_v2  ;;  %17205 = vst [vmem:[#allocation32_spill] sm:$0xff] %v15377_v36  ;;  %v15381_v2 = vpack.c.bf16 %v4816_v38, %v4808_v7  ;;  %v15423_v7 = vpack.c.bf16 %v4723_v16, %v4715_v47  ;;  %v4772_v47 = vld [vmem:[#allocation13 + $0x1e8] sm:$0xff]  ;;  %v4766_v16 = vld [vmem:[#allocation13 + $0x1b8] sm:$0xff] }
 0x9a0   :  { %4515 = vmatprep.mubr.f32.mxu0 %v17187_v13  ;;  %4628 = vmatprep.mubr.f32.mxu1 %v17187_v13  ;;  %v4817_v13 = vld [vmem:[#allocation13 + $0x350] sm:$0xff]  ;;  %v15431_v58 = vpack.c.bf16 %v4742_v61, %v4734_v28  ;;  %v4771_v28 = vld [vmem:[#allocation13 + $0x1e0] sm:$0xff]  ;;  %v15459_v61 = vpack.c.bf16 %v4772_v47, %v4764_v11 }
 0x9a1   :  { %11213 = vmatpush1.bf16.msra.mxu0 %v15359_v21  ;;  %11245 = vmatpush1.bf16.msra.mxu1 %v15361_v25  ;;  %17206 = vst [vmem:[#allocation33_spill] sm:$0xff] %v15381_v2  ;;  %v15393_v3 = vpack.c.bf16 %v4817_v13, %v4809_v33  ;;  %v4741_v33 = vld [vmem:[#allocation13 + $0xf0] sm:$0xff]  ;;  %v4748_v13 = vld [vmem:[#allocation13 + $0x128] sm:$0xff] }
 0x9a2   :  { %11215 = vmatprep.subr.bf16.mxu0 %v15365_v35  ;;  %11247 = vmatprep.subr.bf16.mxu1 %v15367_v51  ;;  %v15439_v12 = vpack.c.bf16 %v4741_v33, %v4733_v5  ;;  %17219 = vst [vmem:[#allocation46_spill] sm:$0xff] %v15459_v61  ;;  %v4773_v5 = vld [vmem:[#allocation13 + $0x1f0] sm:$0xff]  ;;  %v4780_v33 = vld [vmem:[#allocation13 + $0x228] sm:$0xff] }
 0x9a3   :  { %4516 = vmatmul.mubr.f32.gmra.mrb[90].mxu0 %v15087_v45  ;;  %4629 = vmatmul.mubr.f32.gmra.mrb[90].mxu1 %v15087_v45  ;;  %17209 = vst [vmem:[#allocation36_spill] sm:$0xff] %v15393_v3  ;;  %v15397_v45 = vpack.c.bf16 %v4832_v37, %v4824_v49  ;;  %v4756_v49 = vld [vmem:[#allocation13 + $0x168] sm:$0xff]  ;;  %v4750_v37 = vld [vmem:[#allocation13 + $0x138] sm:$0xff]  ;;  %v4781_v47 = vld [vmem:[#allocation13 + $0x230] sm:$0xff] }
 0x9a4   :  { %4521 = vmatprep.mubr.f32.mxu0 %v17188_v15  ;;  %4634 = vmatprep.mubr.f32.mxu1 %v17188_v15  ;;  %v4833_v15 = vld [vmem:[#allocation13 + $0x3d0] sm:$0xff] }
 0x9a5   :  { %11217 = vmatpush1.bf16.msra.mxu0 %v15375_v32  ;;  %11249 = vmatpush1.bf16.msra.mxu1 %v15377_v36  ;;  %17210 = vst [vmem:[#allocation37_spill] sm:$0xff] %v15397_v45  ;;  %v15409_v6 = vpack.c.bf16 %v4833_v15, %v4825_v63  ;;  %v4755_v63 = vld [vmem:[#allocation13 + $0x160] sm:$0xff]  ;;  %v15443_v15 = vpack.c.bf16 %v4756_v49, %v4748_v13  ;;  %v4788_v13 = vld [vmem:[#allocation13 + $0x268] sm:$0xff]  ;;  %v4782_v49 = vld [vmem:[#allocation13 + $0x238] sm:$0xff] }
 0x9a6   :  { %11219 = vmatprep.subr.bf16.mxu0 %v15381_v2  ;;  %11251 = vmatprep.subr.bf16.mxu1 %v15383_v48 }
 0x9a7   :  { %4522 = vmatmul.mubr.f32.gmra.mrb[92].mxu0 %v15187_v41  ;;  %4635 = vmatmul.mubr.f32.gmra.mrb[92].mxu1 %v15187_v41  ;;  %17213 = vst [vmem:[#allocation40_spill] sm:$0xff] %v15409_v6  ;;  %v15413_v41 = vpack.c.bf16 %v4724_v52, %v4716_v62  ;;  %v15445_v62 = vpack.c.bf16 %v4758_v42, %v4750_v37  ;;  %v4749_v52 = vld [vmem:[#allocation13 + $0x130] sm:$0xff]  ;;  %v4790_v37 = vld [vmem:[#allocation13 + $0x278] sm:$0xff] }
 0x9a8   :  { %4527 = vmatprep.mubr.f32.mxu0 %v17189_v39  ;;  %4640 = vmatprep.mubr.f32.mxu1 %v17189_v39  ;;  %v4725_v39 = vld [vmem:[#allocation13 + $0x70] sm:$0xff]  ;;  %v15475_v11 = vpack.c.bf16 %v4790_v37, %v4782_v49 }
 0x9a9   :  { %11221 = vmatpush1.bf16.msra.mxu0 %v15391_v40  ;;  %11253 = vmatpush1.bf16.msra.mxu1 %v15393_v3  ;;  %17214 = vst [vmem:[#allocation41_spill] sm:$0xff] %v15413_v41  ;;  %v15425_v38 = vpack.c.bf16 %v4725_v39, %v4717_v20  ;;  %17216 = vst [vmem:[#allocation43_spill] sm:$0xff] %v15445_v62  ;;  %v4774_v20 = vld [vmem:[#allocation13 + $0x1f8] sm:$0xff]  ;;  %v15453_v39 = vpack.c.bf16 %v4755_v63, %v4747_v59  ;;  %v4779_v63 = vld [vmem:[#allocation13 + $0x220] sm:$0xff] }
 0x9aa   :  { %11223 = vmatprep.subr.bf16.mxu0 %v15397_v45  ;;  %11255 = vmatprep.subr.bf16.mxu1 %v15399_v43  ;;  %v15461_v8 = vpack.c.bf16 %v4774_v20, %v4766_v16  ;;  %v15469_v59 = vpack.c.bf16 %v4773_v5, %v4765_v24  ;;  %17224 = vst [vmem:[#allocation54_spill] sm:$0xff] %v15475_v11  ;;  %v4789_v16 = vld [vmem:[#allocation13 + $0x270] sm:$0xff]  ;;  %v4796_v20 = vld [vmem:[#allocation13 + $0x2a8] sm:$0xff]  ;;  %v4795_v24 = vld [vmem:[#allocation13 + $0x2a0] sm:$0xff] }
 0x9ab   :  { %4528 = vmatmul.mubr.f32.gmra.mrb[94].mxu0 %v15248_v60  ;;  %4641 = vmatmul.mubr.f32.gmra.mrb[94].mxu1 %v15248_v60  ;;  %v15429_v60 = vpack.c.bf16 %v4740_v54, %v4732_v17  ;;  %17217 = vst [vmem:[#allocation44_spill] sm:$0xff] %v15453_v39  ;;  %v15455_v17 = vpack.c.bf16 %v4757_v29, %v4749_v52  ;;  %v4763_v54 = vld [vmem:[#allocation13 + $0x1a0] sm:$0xff]  ;;  %v4797_v49 = vld [vmem:[#allocation13 + $0x2b0] sm:$0xff] }
 0x9ac   :  { %4903 = vmatprep.mubr.f32.mxu0 %v16996_v19  ;;  %4978 = vmatprep.mubr.f32.mxu1 %v16996_v19  ;;  %17220 = vst [vmem:[#allocation47_spill] sm:$0xff] %v15461_v8  ;;  %v15467_v42 = vpack.c.bf16 %v4771_v28, %v4763_v54  ;;  %17222 = vst [vmem:[#allocation62_spill] sm:$0xff] %v15469_v59  ;;  %v4787_v52 = vld [vmem:[#allocation13 + $0x260] sm:$0xff]  ;;  %v15473_v29 = vpack.c.bf16 %v4788_v13, %v4780_v33  ;;  %v4805_v37 = vld [vmem:[#allocation13 + $0x2f0] sm:$0xff] }
 0x9ad   :  { %11225 = vmatpush1.bf16.msra.mxu0 %v15407_v1  ;;  %11257 = vmatpush1.bf16.msra.mxu1 %v15409_v6  ;;  %17218 = vst [vmem:[#allocation45_spill] sm:$0xff] %v15455_v17  ;;  %v15479_v54 = vpack.c.bf16 %v4787_v52, %v4779_v63  ;;  %v15481_v28 = vpack.c.bf16 %v4789_v16, %v4781_v47  ;;  %v4803_v5 = vld [vmem:[#allocation13 + $0x2e0] sm:$0xff] }
 0x9ae   :  { %11259 = vmatprep.subr.bf16.mxu0 %v15413_v41  ;;  %11291 = vmatprep.subr.bf16.mxu1 %v15415_v9  ;;  %17221 = vst [vmem:[#allocation48_spill] sm:$0xff] %v15467_v42  ;;  %17223 = vst [vmem:[#allocation69_spill] sm:$0xff] %v15473_v29  ;;  %v15491_v63 = vpack.c.bf16 %v4803_v5, %v4795_v24  ;;  %v15493_v52 = vpack.c.bf16 %v4805_v37, %v4797_v49  ;;  %v4811_v47 = vld [vmem:[#allocation13 + $0x320] sm:$0xff]  ;;  %v4837_v37 = vld [vmem:[#allocation13 + $0x3f0] sm:$0xff] }
 0x9af   :  { %17225 = vst [vmem:[#allocation56_spill] sm:$0xff] %v15479_v54  ;;  %17226 = vst [vmem:[#allocation51_spill] sm:$0xff] %v15481_v28  ;;  %v4819_v16 = vld [vmem:[#allocation13 + $0x360] sm:$0xff] }
 0x9b0   :  { %4904 = vmatmul.mubr.f32.vlgmr.msra.gmra.mrb[64].mxu0 %v16996_v19  ;;  %4979 = vmatmul.mubr.f32.vlgmr.msra.gmra.mrb[64].mxu1 %v16996_v19  ;;  %v15503_v24 = vpack.c.bf16 %v4819_v16, %v4811_v47  ;;  %v4827_v49 = vld [vmem:[#allocation13 + $0x3a0] sm:$0xff] }
 0x9b1   :  { %11261 = vmatpush1.bf16.msra.mxu0 %v15423_v7  ;;  %11293 = vmatpush1.bf16.msra.mxu1 %v15425_v38 }
 0x9b2   :  { %11263 = vmatprep.subr.bf16.mxu0 %v15429_v60  ;;  %11295 = vmatprep.subr.bf16.mxu1 %v15431_v58 }
 0x9b3   :  { %4909 = vmatprep.mubr.f32.mxu0 %v16996_v19  ;;  %4984 = vmatprep.mubr.f32.mxu1 %v16996_v19 }
 0x9b4   :  { %4910 = vmatmul.mubr.f32.gmra.mrb[96].mxu0 %v16996_v19  ;;  %4985 = vmatmul.mubr.f32.gmra.mrb[96].mxu1 %v16996_v19 }
 0x9b5   :  { %11265 = vmatpush1.bf16.msra.mxu0 %v15437_v0  ;;  %11297 = vmatpush1.bf16.msra.mxu1 %v15439_v12 }
 0x9b6   :  { %11267 = vmatprep.subr.bf16.mxu0 %v15443_v15  ;;  %11299 = vmatprep.subr.bf16.mxu1 %v15445_v62  ;;  %v4798_v62 = vld [vmem:[#allocation13 + $0x2b8] sm:$0xff] }
 0x9b7   :  { %5053 = vmatprep.mubr.f32.mxu0 %v16996_v19  ;;  %5128 = vmatprep.mubr.f32.mxu1 %v16996_v19 }
 0x9b9   :  { %11269 = vmatpush1.bf16.msra.mxu0 %v15453_v39  ;;  %11301 = vmatpush1.bf16.msra.mxu1 %v15455_v17  ;;  %v4804_v39 = vld [vmem:[#allocation13 + $0x2e8] sm:$0xff]  ;;  %v4806_v17 = vld [vmem:[#allocation13 + $0x2f8] sm:$0xff] }
 0x9ba   :  { %11271 = vmatprep.subr.bf16.mxu0 %v15459_v61  ;;  %11303 = vmatprep.subr.bf16.mxu1 %v15461_v8  ;;  %v15485_v33 = vpack.c.bf16 %v4804_v39, %v4796_v20  ;;  %v15487_v13 = vpack.c.bf16 %v4806_v17, %v4798_v62  ;;  %v4812_v8 = vld [vmem:[#allocation13 + $0x328] sm:$0xff]  ;;  %v4814_v61 = vld [vmem:[#allocation13 + $0x338] sm:$0xff]  ;;  %v4813_v17 = vld [vmem:[#allocation13 + $0x330] sm:$0xff] }
 0x9bb   :  { %v4821_v20 = vld [vmem:[#allocation13 + $0x370] sm:$0xff] }
 0x9bc   :  { %v15505_v5 = vpack.c.bf16 %v4821_v20, %v4813_v17 }
 0x9bd   :  { %11273 = vmatpush1.bf16.msra.mxu0 %v15467_v42  ;;  %11305 = vmatpush1.bf16.msra.mxu1 %v15469_v59  ;;  %v4820_v42 = vld [vmem:[#allocation13 + $0x368] sm:$0xff]  ;;  %v4822_v59 = vld [vmem:[#allocation13 + $0x378] sm:$0xff] }
 0x9be   :  { %11275 = vmatprep.subr.bf16.mxu0 %v15473_v29  ;;  %11307 = vmatprep.subr.bf16.mxu1 %v15475_v11  ;;  %v15497_v62 = vpack.c.bf16 %v4820_v42, %v4812_v8  ;;  %v15499_v39 = vpack.c.bf16 %v4822_v59, %v4814_v61  ;;  %v4828_v11 = vld [vmem:[#allocation13 + $0x3a8] sm:$0xff]  ;;  %v4830_v29 = vld [vmem:[#allocation13 + $0x3b8] sm:$0xff]  ;;  %v4835_v42 = vld [vmem:[#allocation13 + $0x3e0] sm:$0xff] }
 0x9bf   :  { %v4829_v59 = vld [vmem:[#allocation13 + $0x3b0] sm:$0xff]  ;;  %v15515_v47 = vpack.c.bf16 %v4835_v42, %v4827_v49 }
 0x9c0   :  { %v15517_v16 = vpack.c.bf16 %v4837_v37, %v4829_v59 }
 0x9c1   :  { %11277 = vmatpush1.bf16.msra.mxu0 %v15479_v54  ;;  %11309 = vmatpush1.bf16.msra.mxu1 %v15481_v28  ;;  %v4836_v54 = vld [vmem:[#allocation13 + $0x3e8] sm:$0xff]  ;;  %v4838_v28 = vld [vmem:[#allocation13 + $0x3f8] sm:$0xff] }
 0x9c2   :  { %11279 = vmatprep.subr.bf16.mxu0 %v15485_v33  ;;  %11311 = vmatprep.subr.bf16.mxu1 %v15487_v13  ;;  %v15509_v61 = vpack.c.bf16 %v4836_v54, %v4828_v11  ;;  %v15511_v8 = vpack.c.bf16 %v4838_v28, %v4830_v29  ;;  %v4153_v29 = vld [vmem:[%s16727_s6] sm:$0xff]  ;;  %v17227_v11 = vld [vmem:[#allocation60_spill] sm:$0xff]  ;;  %v17229_v28 = vld [vmem:[#allocation61_spill] sm:$0xff] }
 0x9c3   :  { %v15569_v54 = vrot.slane %v4153_v29, %v17227_v11  ;;  %v15572_v17 = vrot.slane %v4153_v29, %v17229_v28 }
 0x9c5   :  { %11281 = vmatpush1.bf16.msra.mxu0 %v15491_v63  ;;  %11313 = vmatpush1.bf16.msra.mxu1 %v15493_v52  ;;  %17228 = vst [vmem:[#allocation58_spill] sm:$0xff] %v15569_v54  ;;  %17230 = vst [vmem:[#allocation70_spill] sm:$0xff] %v15572_v17 }
 0x9c6   :  { %11283 = vmatprep.subr.bf16.mxu0 %v15497_v62  ;;  %11315 = vmatprep.subr.bf16.mxu1 %v15499_v39 }
 0x9c9   :  { %11285 = vmatpush1.bf16.msra.mxu0 %v15503_v24  ;;  %11317 = vmatpush1.bf16.msra.mxu1 %v15505_v5 }
 0x9ca   :  { %11287 = vmatprep.subr.bf16.mxu0 %v15509_v61  ;;  %11319 = vmatprep.subr.bf16.mxu1 %v15511_v8 }
 0x9cd   :  { %11289 = vmatpush1.bf16.msra.mxu0 %v15515_v47  ;;  %11321 = vmatpush1.bf16.msra.mxu1 %v15517_v16 }
 0x9ce   :  { %11323 = vmatprep.subr.bf16.mxu0 %v15291_v56  ;;  %11355 = vmatprep.subr.bf16.mxu1 %v15293_v44 }
 0x9d0   :  { %5054 = vmatmul.mubr.f32.vlgmr.msra.gmra.mrb[98].mxu0 %v16996_v19  ;;  %5129 = vmatmul.mubr.f32.vlgmr.msra.gmra.mrb[98].mxu1 %v16996_v19 }
 0x9d1   :  { %5057 = vmatprep.mubr.f32.mxu0 %v16996_v19  ;;  %5132 = vmatprep.mubr.f32.mxu1 %v16996_v19 }
 0x9d2   :  { %11325 = vmatpush1.bf16.msra.mxu0 %v15297_v57  ;;  %11357 = vmatpush1.bf16.msra.mxu1 %v15299_v50 }
 0x9d3   :  { %11327 = vmatprep.subr.bf16.mxu0 %v15301_v31  ;;  %11359 = vmatprep.subr.bf16.mxu1 %v15303_v34 }
 0x9d4   :  { %5058 = vmatmul.mubr.f32.gmra.mrb[94].mxu0 %v16996_v19  ;;  %5133 = vmatmul.mubr.f32.gmra.mrb[94].mxu1 %v16996_v19 }
 0x9d5   :  { %5269 = vmatprep.mubr.f32.mxu0 %v16996_v19  ;;  %5344 = vmatprep.mubr.f32.mxu1 %v16996_v19 }
 0x9d6   :  { %11329 = vmatpush1.bf16.msra.mxu0 %v15311_v14  ;;  %11361 = vmatpush1.bf16.msra.mxu1 %v15313_v55 }
 0x9d7   :  { %11331 = vmatprep.subr.bf16.mxu0 %v15317_v30  ;;  %11363 = vmatprep.subr.bf16.mxu1 %v15319_v18 }
 0x9da   :  { %11333 = vmatpush1.bf16.msra.mxu0 %v15327_v27  ;;  %11365 = vmatpush1.bf16.msra.mxu1 %v15329_v23 }
 0x9db   :  { %11335 = vmatprep.subr.bf16.mxu0 %v15333_v10  ;;  %11367 = vmatprep.subr.bf16.mxu1 %v15335_v4 }
 0x9de   :  { %11337 = vmatpush1.bf16.msra.mxu0 %v15343_v22  ;;  %11369 = vmatpush1.bf16.msra.mxu1 %v15345_v46 }
 0x9df   :  { %11339 = vmatprep.subr.bf16.mxu0 %v15349_v26  ;;  %11371 = vmatprep.subr.bf16.mxu1 %v15351_v53 }
 0x9e2   :  { %11341 = vmatpush1.bf16.msra.mxu0 %v15359_v21  ;;  %11373 = vmatpush1.bf16.msra.mxu1 %v15361_v25 }
 0x9e3   :  { %11343 = vmatprep.subr.bf16.mxu0 %v15365_v35  ;;  %11375 = vmatprep.subr.bf16.mxu1 %v15367_v51 }
 0x9e6   :  { %11345 = vmatpush1.bf16.msra.mxu0 %v15375_v32  ;;  %11377 = vmatpush1.bf16.msra.mxu1 %v15377_v36 }
 0x9e7   :  { %11347 = vmatprep.subr.bf16.mxu0 %v15381_v2  ;;  %11379 = vmatprep.subr.bf16.mxu1 %v15383_v48  ;;  %v17233_v48 = vld [vmem:[#allocation66_spill] sm:$0xff] }
 0x9e8   :  { %v15581_v2 = vrot.slane %v4153_v29, %v17233_v48 }
 0x9ea   :  { %11349 = vmatpush1.bf16.msra.mxu0 %v15391_v40  ;;  %11381 = vmatpush1.bf16.msra.mxu1 %v15393_v3  ;;  %17234 = vst [vmem:[#allocation57_spill] sm:$0xff] %v15581_v2 }
 0x9eb   :  { %11351 = vmatprep.subr.bf16.mxu0 %v15397_v45  ;;  %11383 = vmatprep.subr.bf16.mxu1 %v15399_v43 }
 0x9ee   :  { %11353 = vmatpush1.bf16.msra.mxu0 %v15407_v1  ;;  %11385 = vmatpush1.bf16.msra.mxu1 %v15409_v6  ;;  %v17231_v1 = vld [vmem:[#allocation64_spill] sm:$0xff] }
 0x9ef   :  { %11387 = vmatprep.subr.bf16.mxu0 %v15413_v41  ;;  %11419 = vmatprep.subr.bf16.mxu1 %v15415_v9  ;;  %v15577_v43 = vrot.slane %v4153_v29, %v17231_v1 }
 0x9f1   :  { %17232 = vst [vmem:[#allocation50_spill] sm:$0xff] %v15577_v43 }
 0xa83   :  { %v4905_v20 = vpop.f32.mrb[64].mxu0  ;;  %v4980_v49 = vpop.f32.mrb[64].mxu1 }
 0xa84   :  { %v12922_v42 = vadd.f32 %v4905_v20, %v15569_v54  ;;  %v4907_v59 = vpop.f32.mrb[65].mxu0  ;;  %v4982_v37 = vpop.f32.mrb[65].mxu1  ;;  %v12938_v54 = vadd.f32 %v4980_v49, %v15581_v2 }
 0xa85   :  { %v12923_v41 = vadd.f32 %v4907_v59, %v15572_v17  ;;  %v12939_v28 = vadd.f32 %v4982_v37, %v15577_v43 }
 0xa86   :  { %v9714_v6 = vmul.f32 -1.442695, %v12922_v42 }
 0xa87   :  { %v9716_v9 = vmul.f32 -1.442695, %v12923_v41  ;;  %v4911_v45 = vpop.f32.mrb[96].mxu0  ;;  %v4986_v3 = vpop.f32.mrb[96].mxu1  ;;  %v9718_v20 = vmul.f32 -1.442695, %v12939_v28 }
 0xa88   :  { %13449 = vpow2.f32 %v9714_v6  ;;  %v4912_v11 = vpop.f32.mrb[97].mxu0  ;;  %v4987_v40 = vpop.f32.mrb[97].mxu1 }
 0xa89   :  { %13451 = vpow2.f32 %v9716_v9 }
 0xa8a   :  { %13453 = vpow2.f32 %v9718_v20 }
 0xa8b   :  { %13455 = vtanh.f32 %v12938_v54 }
 0xa92   :  { %v13450_v59 = vpop.eup %13449 }
 0xa93   :  { %v13452_v42 = vpop.eup %13451  ;;  %v5161_v41 = vadd.f32 1.0, %v13450_v59  ;;  %v17235_v59 = vld [vmem:[#allocation59_spill] sm:$0xff] }
 0xa94   :  { %v5173_v1 = vadd.f32 1.0, %v13452_v42  ;;  %v13454_v3 = vpop.eup %13453  ;;  %v17236_v20 = vsub.s32 4, %v17235_v59 }
 0xa95   :  { %13457 = vrcp.f32 %v5161_v41  ;;  %v13456_v45 = vpop.eup %13455  ;;  %v5187_v11 = vadd.f32 1.0, %v13454_v3 }
 0xa96   :  { %13459 = vrcp.f32 %v5173_v1  ;;  %v15588_v54 = vrot.slane %v4153_v29, %v17236_v20  ;;  %v17238_v1 = vsub.s32 5, %v17235_v59 }
 0xa97   :  { %13461 = vrcp.f32 %v5187_v11  ;;  %v17239_v11 = vsub.s32 7, %v17235_v59 }
 0xa98   :  { %17237 = vst [vmem:[#allocation55_spill] sm:$0xff] %v15588_v54  ;;  %v15593_v42 = vrot.slane %v4153_v29, %v17238_v1 }
 0xa9f   :  { %v13458_v40 = vpop.eup %13457 }
 0xaa0   :  { %v13460_v6 = vpop.eup %13459  ;;  %v5195_v9 = vmul.f32 %v13458_v40, %v13456_v45 }
 0xaa1   :  { %v5193_v37 = vmul.f32 0.0, %v13460_v6 }
 0xaa3   :  { %v15584_v48 = vadd.f32 %v5195_v9, %v5193_v37  ;;  %v5055_v28 = vpop.f32.mrb[98].mxu0  ;;  %v5130_v43 = vpop.f32.mrb[98].mxu1  ;;  %v15599_v37 = vrot.slane %v4153_v29, %v17239_v11  ;;  %v17247_v11 = vld [vmem:[#allocation46_spill] sm:$0xff] }
 0xaa4   :  { %v5056_v49 = vpop.f32.mrb[99].mxu0  ;;  %v5131_v2 = vpop.f32.mrb[99].mxu1 }
 0xaa5   :  { %13463 = vtanh.f32 %v15584_v48  ;;  %17240 = vst [vmem:[#allocation49_spill] sm:$0xff] %v15599_v37  ;;  %v13462_v28 = vpop.eup %13461 }
 0xaa7   :  { %v5059_v41 = vpop.f32.mrb[94].mxu0  ;;  %v5134_v3 = vpop.f32.mrb[94].mxu1 }
 0xaa8   :  { %v12968_v45 = vadd.f32 %v5059_v41, %v15588_v54  ;;  %v5061_v40 = vpop.f32.mrb[95].mxu0  ;;  %v5136_v6 = vpop.f32.mrb[95].mxu1  ;;  %v17242_v41 = vsub.s32 6, %v17235_v59 }
 0xaa9   :  { %v12969_v43 = vadd.f32 %v5061_v40, %v15593_v42  ;;  %v12985_v20 = vadd.f32 %v5136_v6, %v15599_v37 }
 0xaaa   :  { %v9715_v9 = vmul.f32 -1.442695, %v12968_v45  ;;  %v15606_v54 = vrot.slane %v4153_v29, %v17242_v41  ;;  %v17251_v41 = vld [vmem:[#allocation69_spill] sm:$0xff] }
 0xaab   :  { %v9717_v2 = vmul.f32 -1.442695, %v12969_v43  ;;  %v9719_v45 = vmul.f32 -1.442695, %v12985_v20  ;;  %v17250_v20 = vld [vmem:[#allocation62_spill] sm:$0xff] }
 0xaac   :  { %13465 = vpow2.f32 %v9715_v9  ;;  %17243 = vst [vmem:[#allocation71_spill] sm:$0xff] %v15606_v54  ;;  %v12984_v40 = vadd.f32 %v5134_v3, %v15606_v54  ;;  %v17244_v3 = vld [vmem:[#allocation43_spill] sm:$0xff]  ;;  %v17245_v9 = vld [vmem:[#allocation44_spill] sm:$0xff] }
 0xaad   :  { %13467 = vpow2.f32 %v9717_v2  ;;  %v17246_v2 = vld [vmem:[#allocation45_spill] sm:$0xff] }
 0xaae   :  { %13469 = vpow2.f32 %v9719_v45  ;;  %v17252_v45 = vld [vmem:[#allocation54_spill] sm:$0xff] }
 0xaaf   :  { %v13464_v49 = vpop.eup %13463  ;;  %13471 = vtanh.f32 %v12984_v40 }
 0xab0   :  { %v15602_v1 = vmul.f32 %v13464_v49, %v13462_v28  ;;  %v17248_v28 = vld [vmem:[#allocation47_spill] sm:$0xff]  ;;  %v17249_v49 = vld [vmem:[#allocation48_spill] sm:$0xff] }
 0xab2   :  { %17241 = vst [vmem:[#allocation59_spill] sm:$0xff] %v15602_v1  ;;  %5270 = vmatmul.mubr.f32.vlgmr.msra.gmra.mrb[66].mxu0 %v15602_v1  ;;  %5345 = vmatmul.mubr.f32.vlgmr.msra.gmra.mrb[66].mxu1 %v15602_v1 }
 0xab3   :  { %11389 = vmatpush1.bf16.msra.mxu0 %v15423_v7  ;;  %11421 = vmatpush1.bf16.msra.mxu1 %v15425_v38 }
 0xab4   :  { %11391 = vmatprep.subr.bf16.mxu0 %v15429_v60  ;;  %11423 = vmatprep.subr.bf16.mxu1 %v15431_v58 }
 0xab5   :  { %5275 = vmatprep.mubr.f32.mxu0 %v16996_v19  ;;  %5350 = vmatprep.mubr.f32.mxu1 %v16996_v19 }
 0xab6   :  { %v13466_v29 = vpop.eup %13465 }
 0xab7   :  { %v13468_v59 = vpop.eup %13467  ;;  %v5162_v6 = vadd.f32 1.0, %v13466_v29  ;;  %11393 = vmatpush1.bf16.msra.mxu0 %v15437_v0  ;;  %11425 = vmatpush1.bf16.msra.mxu1 %v15439_v12 }
 0xab8   :  { %v5174_v43 = vadd.f32 1.0, %v13468_v59  ;;  %11395 = vmatprep.subr.bf16.mxu0 %v15443_v15  ;;  %11427 = vmatprep.subr.bf16.mxu1 %v17244_v3  ;;  %v13470_v40 = vpop.eup %13469 }
 0xab9   :  { %13473 = vrcp.f32 %v5162_v6  ;;  %v13472_v29 = vpop.eup %13471  ;;  %v17253_v6 = vld [vmem:[#allocation56_spill] sm:$0xff] }
 0xaba   :  { %13475 = vrcp.f32 %v5174_v43  ;;  %v17254_v43 = vld [vmem:[#allocation51_spill] sm:$0xff] }
 0xabb   :  { %11397 = vmatpush1.bf16.msra.mxu0 %v17245_v9  ;;  %11429 = vmatpush1.bf16.msra.mxu1 %v17246_v2 }
 0xabc   :  { %11399 = vmatprep.subr.bf16.mxu0 %v17247_v11  ;;  %11431 = vmatprep.subr.bf16.mxu1 %v17248_v28  ;;  %v5188_v11 = vadd.f32 1.0, %v13470_v40  ;;  %v17257_v40 = vld [vmem:[#allocation34_spill] sm:$0xff] }
 0xabe   :  { %13477 = vrcp.f32 %v5188_v11 }
 0xabf   :  { %11401 = vmatpush1.bf16.msra.mxu0 %v17249_v49  ;;  %11433 = vmatpush1.bf16.msra.mxu1 %v17250_v20 }
 0xac0   :  { %11403 = vmatprep.subr.bf16.mxu0 %v17251_v41  ;;  %11435 = vmatprep.subr.bf16.mxu1 %v17252_v45 }
 0xac3   :  { %v13474_v59 = vpop.eup %13473  ;;  %11405 = vmatpush1.bf16.msra.mxu0 %v17253_v6  ;;  %11437 = vmatpush1.bf16.msra.mxu1 %v17254_v43 }
 0xac4   :  { %v13476_v54 = vpop.eup %13475  ;;  %v5196_v2 = vmul.f32 %v13474_v59, %v13472_v29  ;;  %11407 = vmatprep.subr.bf16.mxu0 %v15485_v33  ;;  %11439 = vmatprep.subr.bf16.mxu1 %v15487_v13  ;;  %v17258_v29 = vld [vmem:[#allocation35_spill] sm:$0xff]  ;;  %v17259_v59 = vld [vmem:[#allocation36_spill] sm:$0xff] }
 0xac5   :  { %v5194_v49 = vmul.f32 0.0, %v13476_v54 }
 0xac7   :  { %v15633_v20 = vadd.f32 %v5196_v2, %v5194_v49  ;;  %11409 = vmatpush1.bf16.msra.mxu0 %v15491_v63  ;;  %11441 = vmatpush1.bf16.msra.mxu1 %v15493_v52  ;;  %v17256_v49 = vld [vmem:[#allocation33_spill] sm:$0xff] }
 0xac8   :  { %11411 = vmatprep.subr.bf16.mxu0 %v15497_v62  ;;  %11443 = vmatprep.subr.bf16.mxu1 %v15499_v39  ;;  %v13478_v54 = vpop.eup %13477 }
 0xac9   :  { %13479 = vtanh.f32 %v15633_v20 }
 0xacb   :  { %11413 = vmatpush1.bf16.msra.mxu0 %v15503_v24  ;;  %11445 = vmatpush1.bf16.msra.mxu1 %v15505_v5 }
 0xacc   :  { %11415 = vmatprep.subr.bf16.mxu0 %v15509_v61  ;;  %11447 = vmatprep.subr.bf16.mxu1 %v15511_v8 }
 0xacf   :  { %11417 = vmatpush1.bf16.msra.mxu0 %v15515_v47  ;;  %11449 = vmatpush1.bf16.msra.mxu1 %v15517_v16 }
 0xad0   :  { %11451 = vmatprep.subr.bf16.mxu0 %v15291_v56  ;;  %11483 = vmatprep.subr.bf16.mxu1 %v15293_v44 }
 0xad3   :  { %v13480_v2 = vpop.eup %13479 }
 0xad4   :  { %v15648_v11 = vmul.f32 %v13480_v2, %v13478_v54  ;;  %v17260_v54 = vld [vmem:[#allocation37_spill] sm:$0xff]  ;;  %v17261_v2 = vld [vmem:[#allocation38_spill] sm:$0xff] }
 0xad6   :  { %17255 = vst [vmem:[#allocation43_spill] sm:$0xff] %v15648_v11  ;;  %5276 = vmatmul.mubr.f32.gmra.mrb[100].mxu0 %v15648_v11  ;;  %5351 = vmatmul.mubr.f32.gmra.mrb[100].mxu1 %v15648_v11 }
 0xad7   :  { %5419 = vmatprep.mubr.f32.mxu0 %v16996_v19  ;;  %5494 = vmatprep.mubr.f32.mxu1 %v16996_v19 }
 0xada   :  { %5420 = vmatmul.mubr.f32.vlgmr.msra.gmra.mrb[102].mxu0 %v15602_v1  ;;  %5495 = vmatmul.mubr.f32.vlgmr.msra.gmra.mrb[102].mxu1 %v15602_v1  ;;  %v17263_v1 = vld [vmem:[#allocation40_spill] sm:$0xff] }
 0xadb   :  { %5423 = vmatprep.mubr.f32.mxu0 %v16996_v19  ;;  %5498 = vmatprep.mubr.f32.mxu1 %v16996_v19 }
 0xadc   :  { %11453 = vmatpush1.bf16.msra.mxu0 %v15297_v57  ;;  %11485 = vmatpush1.bf16.msra.mxu1 %v15299_v50 }
 0xadd   :  { %11455 = vmatprep.subr.bf16.mxu0 %v15301_v31  ;;  %11487 = vmatprep.subr.bf16.mxu1 %v15303_v34 }
 0xade   :  { %5424 = vmatmul.mubr.f32.gmra.mrb[92].mxu0 %v15648_v11  ;;  %5499 = vmatmul.mubr.f32.gmra.mrb[92].mxu1 %v15648_v11  ;;  %v17262_v11 = vld [vmem:[#allocation39_spill] sm:$0xff] }
 0xadf   :  { %5635 = vmatprep.mubr.f32.mxu0 %v16996_v19  ;;  %5710 = vmatprep.mubr.f32.mxu1 %v16996_v19 }
 0xae0   :  { %11457 = vmatpush1.bf16.msra.mxu0 %v15311_v14  ;;  %11489 = vmatpush1.bf16.msra.mxu1 %v15313_v55 }
 0xae1   :  { %11459 = vmatprep.subr.bf16.mxu0 %v15317_v30  ;;  %11491 = vmatprep.subr.bf16.mxu1 %v15319_v18 }
 0xae4   :  { %11461 = vmatpush1.bf16.msra.mxu0 %v15327_v27  ;;  %11493 = vmatpush1.bf16.msra.mxu1 %v15329_v23 }
 0xae5   :  { %11463 = vmatprep.subr.bf16.mxu0 %v15333_v10  ;;  %11495 = vmatprep.subr.bf16.mxu1 %v15335_v4 }
 0xae8   :  { %11465 = vmatpush1.bf16.msra.mxu0 %v15343_v22  ;;  %11497 = vmatpush1.bf16.msra.mxu1 %v15345_v46 }
 0xae9   :  { %11467 = vmatprep.subr.bf16.mxu0 %v15349_v26  ;;  %11499 = vmatprep.subr.bf16.mxu1 %v15351_v53 }
 0xaec   :  { %11469 = vmatpush1.bf16.msra.mxu0 %v15359_v21  ;;  %11501 = vmatpush1.bf16.msra.mxu1 %v15361_v25 }
 0xaed   :  { %11471 = vmatprep.subr.bf16.mxu0 %v15365_v35  ;;  %11503 = vmatprep.subr.bf16.mxu1 %v15367_v51  ;;  %v17264_v51 = vld [vmem:[#allocation41_spill] sm:$0xff]  ;;  %v17266_v35 = vld [vmem:[#allocation58_spill] sm:$0xff] }
 0xaf0   :  { %11473 = vmatpush1.bf16.msra.mxu0 %v15375_v32  ;;  %11505 = vmatpush1.bf16.msra.mxu1 %v15377_v36  ;;  %v17265_v32 = vld [vmem:[#allocation42_spill] sm:$0xff] }
 0xaf1   :  { %11475 = vmatprep.subr.bf16.mxu0 %v17256_v49  ;;  %11507 = vmatprep.subr.bf16.mxu1 %v17257_v40 }
 0xaf4   :  { %11477 = vmatpush1.bf16.msra.mxu0 %v17258_v29  ;;  %11509 = vmatpush1.bf16.msra.mxu1 %v17259_v59 }
 0xaf5   :  { %11479 = vmatprep.subr.bf16.mxu0 %v17260_v54  ;;  %11511 = vmatprep.subr.bf16.mxu1 %v17261_v2  ;;  %v17267_v2 = vld [vmem:[#allocation50_spill] sm:$0xff] }
 0xaf8   :  { %11481 = vmatpush1.bf16.msra.mxu0 %v17262_v11  ;;  %11513 = vmatpush1.bf16.msra.mxu1 %v17263_v1  ;;  %v17268_v1 = vld [vmem:[#allocation57_spill] sm:$0xff] }
 0xaf9   :  { %11515 = vmatprep.subr.bf16.mxu0 %v17264_v51  ;;  %11547 = vmatprep.subr.bf16.mxu1 %v17265_v32 }
 0xb85   :  { %v5271_v36 = vpop.f32.mrb[66].mxu0  ;;  %v5346_v49 = vpop.f32.mrb[66].mxu1 }
 0xb86   :  { %v12924_v40 = vadd.f32 %v5271_v36, %v17266_v35  ;;  %v5273_v25 = vpop.f32.mrb[67].mxu0  ;;  %v5348_v29 = vpop.f32.mrb[67].mxu1  ;;  %v12940_v26 = vadd.f32 %v5346_v49, %v17268_v1 }
 0xb87   :  { %v12925_v59 = vadd.f32 %v5273_v25, %v15572_v17  ;;  %v12941_v11 = vadd.f32 %v5348_v29, %v17267_v2 }
 0xb88   :  { %v9720_v21 = vmul.f32 -1.442695, %v12924_v40 }
 0xb89   :  { %v9722_v54 = vmul.f32 -1.442695, %v12925_v59  ;;  %v9724_v53 = vmul.f32 -1.442695, %v12941_v11 }
 0xb8a   :  { %13481 = vpow2.f32 %v9720_v21 }
 0xb8b   :  { %13483 = vpow2.f32 %v9722_v54 }
 0xb8c   :  { %13485 = vpow2.f32 %v9724_v53 }
 0xb8d   :  { %13487 = vtanh.f32 %v12940_v26 }
 0xb94   :  { %v13482_v51 = vpop.eup %13481 }
 0xb95   :  { %v13484_v46 = vpop.eup %13483  ;;  %v5527_v32 = vadd.f32 1.0, %v13482_v51 }
 0xb96   :  { %v5539_v22 = vadd.f32 1.0, %v13484_v46  ;;  %v13486_v36 = vpop.eup %13485 }
 0xb97   :  { %13489 = vrcp.f32 %v5527_v32  ;;  %v13488_v35 = vpop.eup %13487  ;;  %v5553_v21 = vadd.f32 1.0, %v13486_v36 }
 0xb98   :  { %13491 = vrcp.f32 %v5539_v22 }
 0xb99   :  { %13493 = vrcp.f32 %v5553_v21 }
 0xba1   :  { %v13490_v25 = vpop.eup %13489 }
 0xba2   :  { %v13492_v40 = vpop.eup %13491  ;;  %v5561_v59 = vmul.f32 %v13490_v25, %v13488_v35 }
 0xba3   :  { %v5559_v54 = vmul.f32 %v13492_v40, %v15584_v48  ;;  %v13494_v1 = vpop.eup %13493  ;;  %v17270_v48 = vld [vmem:[#allocation55_spill] sm:$0xff] }
 0xba5   :  { %v15699_v29 = vadd.f32 %v5561_v59, %v5559_v54 }
 0xba7   :  { %13495 = vtanh.f32 %v15699_v29 }
 0xba9   :  { %v5277_v11 = vpop.f32.mrb[100].mxu0  ;;  %v5352_v51 = vpop.f32.mrb[100].mxu1 }
 0xbaa   :  { %v5278_v53 = vpop.f32.mrb[101].mxu0  ;;  %v5353_v26 = vpop.f32.mrb[101].mxu1  ;;  %v17272_v51 = vld [vmem:[#allocation71_spill] sm:$0xff] }
 0xbab   :  { %v17273_v26 = vld [vmem:[#allocation46_spill] sm:$0xff] }
 0xbad   :  { %v5421_v46 = vpop.f32.mrb[102].mxu0  ;;  %v5496_v32 = vpop.f32.mrb[102].mxu1 }
 0xbae   :  { %v5422_v22 = vpop.f32.mrb[103].mxu0  ;;  %v5497_v49 = vpop.f32.mrb[103].mxu1 }
 0xbaf   :  { %v17274_v49 = vld [vmem:[#allocation48_spill] sm:$0xff] }
 0xbb1   :  { %v13496_v2 = vpop.eup %13495  ;;  %v5425_v17 = vpop.f32.mrb[92].mxu0 }
 0xbb2   :  { %v5500_v35 = vpop.f32.mrb[92].mxu1  ;;  %v15702_v36 = vmul.f32 %v13496_v2, %v13494_v1  ;;  %v12966_v25 = vadd.f32 %v5425_v17, %v17270_v48  ;;  %v5427_v40 = vpop.f32.mrb[93].mxu0  ;;  %v17271_v2 = vld [vmem:[#allocation45_spill] sm:$0xff] }
 0xbb3   :  { %v5502_v59 = vpop.f32.mrb[93].mxu1  ;;  %v12967_v21 = vadd.f32 %v5427_v40, %v15593_v42  ;;  %v12982_v53 = vadd.f32 %v5500_v35, %v17272_v51 }
 0xbb4   :  { %17269 = vst [vmem:[#allocation44_spill] sm:$0xff] %v15702_v36  ;;  %v9721_v54 = vmul.f32 -1.442695, %v12966_v25  ;;  %5636 = vmatmul.mubr.f32.vlgmr.msra.gmra.mrb[68].mxu0 %v15702_v36  ;;  %5711 = vmatmul.mubr.f32.vlgmr.msra.gmra.mrb[68].mxu1 %v15702_v36  ;;  %v12983_v17 = vadd.f32 %v5502_v59, %v15599_v37  ;;  %v17275_v25 = vld [vmem:[#allocation62_spill] sm:$0xff] }
 0xbb5   :  { %v9723_v11 = vmul.f32 -1.442695, %v12967_v21  ;;  %11517 = vmatpush1.bf16.msra.mxu0 %v15423_v7  ;;  %11549 = vmatpush1.bf16.msra.mxu1 %v15425_v38 }
 0xbb6   :  { %13497 = vpow2.f32 %v9721_v54  ;;  %11519 = vmatprep.subr.bf16.mxu0 %v15429_v60  ;;  %11551 = vmatprep.subr.bf16.mxu1 %v15431_v58  ;;  %v9725_v1 = vmul.f32 -1.442695, %v12983_v17 }
 0xbb7   :  { %13499 = vpow2.f32 %v9723_v11  ;;  %5641 = vmatprep.mubr.f32.mxu0 %v16996_v19  ;;  %5716 = vmatprep.mubr.f32.mxu1 %v16996_v19 }
 0xbb8   :  { %13501 = vpow2.f32 %v9725_v1 }
 0xbb9   :  { %11521 = vmatpush1.bf16.msra.mxu0 %v15437_v0  ;;  %11553 = vmatpush1.bf16.msra.mxu1 %v15439_v12  ;;  %13503 = vtanh.f32 %v12982_v53 }
 0xbba   :  { %11523 = vmatprep.subr.bf16.mxu0 %v15443_v15  ;;  %11555 = vmatprep.subr.bf16.mxu1 %v17244_v3 }
 0xbbd   :  { %11525 = vmatpush1.bf16.msra.mxu0 %v17245_v9  ;;  %11557 = vmatpush1.bf16.msra.mxu1 %v17271_v2 }
 0xbbe   :  { %11527 = vmatprep.subr.bf16.mxu0 %v17273_v26  ;;  %11559 = vmatprep.subr.bf16.mxu1 %v17248_v28 }
 0xbc0   :  { %v13498_v46 = vpop.eup %13497 }
 0xbc1   :  { %v13500_v32 = vpop.eup %13499  ;;  %v5528_v22 = vadd.f32 1.0, %v13498_v46  ;;  %11529 = vmatpush1.bf16.msra.mxu0 %v17274_v49  ;;  %11561 = vmatpush1.bf16.msra.mxu1 %v17275_v25 }
 0xbc2   :  { %v5540_v40 = vadd.f32 1.0, %v13500_v32  ;;  %11531 = vmatprep.subr.bf16.mxu0 %v17251_v41  ;;  %11563 = vmatprep.subr.bf16.mxu1 %v17252_v45  ;;  %v13502_v35 = vpop.eup %13501 }
 0xbc3   :  { %13505 = vrcp.f32 %v5528_v22  ;;  %v13504_v59 = vpop.eup %13503  ;;  %v5554_v17 = vadd.f32 1.0, %v13502_v35  ;;  %v17279_v35 = vld [vmem:[#allocation25_spill] sm:$0xff] }
 0xbc4   :  { %13507 = vrcp.f32 %v5540_v40  ;;  %v17278_v40 = vld [vmem:[#allocation24_spill] sm:$0xff] }
 0xbc5   :  { %11533 = vmatpush1.bf16.msra.mxu0 %v17253_v6  ;;  %11565 = vmatpush1.bf16.msra.mxu1 %v17254_v43  ;;  %13509 = vrcp.f32 %v5554_v17  ;;  %v17284_v17 = vld [vmem:[#allocation30_spill] sm:$0xff] }
 0xbc6   :  { %11535 = vmatprep.subr.bf16.mxu0 %v15485_v33  ;;  %11567 = vmatprep.subr.bf16.mxu1 %v15487_v13 }
 0xbc9   :  { %11537 = vmatpush1.bf16.msra.mxu0 %v15491_v63  ;;  %11569 = vmatpush1.bf16.msra.mxu1 %v15493_v52 }
 0xbca   :  { %11539 = vmatprep.subr.bf16.mxu0 %v15497_v62  ;;  %11571 = vmatprep.subr.bf16.mxu1 %v15499_v39 }
 0xbcd   :  { %v13506_v21 = vpop.eup %13505  ;;  %11541 = vmatpush1.bf16.msra.mxu0 %v15503_v24  ;;  %11573 = vmatpush1.bf16.msra.mxu1 %v15505_v5 }
 0xbce   :  { %v13508_v54 = vpop.eup %13507  ;;  %v5562_v11 = vmul.f32 %v13506_v21, %v13504_v59  ;;  %11543 = vmatprep.subr.bf16.mxu0 %v15509_v61  ;;  %11575 = vmatprep.subr.bf16.mxu1 %v15511_v8  ;;  %v17280_v59 = vld [vmem:[#allocation26_spill] sm:$0xff]  ;;  %v17281_v21 = vld [vmem:[#allocation27_spill] sm:$0xff] }
 0xbcf   :  { %v5560_v1 = vmul.f32 %v13508_v54, %v15633_v20  ;;  %v13510_v46 = vpop.eup %13509  ;;  %v17277_v20 = vld [vmem:[#allocation68_spill] sm:$0xff] }
 0xbd0   :  { %v17282_v54 = vld [vmem:[#allocation28_spill] sm:$0xff] }
 0xbd1   :  { %v15741_v53 = vadd.f32 %v5562_v11, %v5560_v1  ;;  %11545 = vmatpush1.bf16.msra.mxu0 %v15515_v47  ;;  %11577 = vmatpush1.bf16.msra.mxu1 %v15517_v16  ;;  %v17283_v11 = vld [vmem:[#allocation29_spill] sm:$0xff]  ;;  %v17285_v1 = vld [vmem:[#allocation31_spill] sm:$0xff] }
 0xbd2   :  { %11579 = vmatprep.subr.bf16.mxu0 %v15291_v56  ;;  %11611 = vmatprep.subr.bf16.mxu1 %v15293_v44 }
 0xbd3   :  { %13511 = vtanh.f32 %v15741_v53 }
 0xbdd   :  { %v13512_v32 = vpop.eup %13511 }
 0xbde   :  { %v15748_v22 = vmul.f32 %v13512_v32, %v13510_v46  ;;  %v17286_v46 = vld [vmem:[#allocation32_spill] sm:$0xff]  ;;  %v17287_v32 = vld [vmem:[#allocation33_spill] sm:$0xff] }
 0xbe0   :  { %17276 = vst [vmem:[#allocation47_spill] sm:$0xff] %v15748_v22  ;;  %5642 = vmatmul.mubr.f32.gmra.mrb[104].mxu0 %v15748_v22  ;;  %5717 = vmatmul.mubr.f32.gmra.mrb[104].mxu1 %v15748_v22 }
 0xbe1   :  { %5785 = vmatprep.mubr.f32.mxu0 %v16996_v19  ;;  %5860 = vmatprep.mubr.f32.mxu1 %v16996_v19 }
 0xbe4   :  { %5786 = vmatmul.mubr.f32.vlgmr.msra.gmra.mrb[106].mxu0 %v15702_v36  ;;  %5861 = vmatmul.mubr.f32.vlgmr.msra.gmra.mrb[106].mxu1 %v15702_v36  ;;  %v17289_v36 = vld [vmem:[#allocation35_spill] sm:$0xff] }
 0xbe5   :  { %5789 = vmatprep.mubr.f32.mxu0 %v16996_v19  ;;  %5864 = vmatprep.mubr.f32.mxu1 %v16996_v19 }
 0xbe6   :  { %11581 = vmatpush1.bf16.msra.mxu0 %v15297_v57  ;;  %11613 = vmatpush1.bf16.msra.mxu1 %v15299_v50 }
 0xbe7   :  { %11583 = vmatprep.subr.bf16.mxu0 %v15301_v31  ;;  %11615 = vmatprep.subr.bf16.mxu1 %v15303_v34 }
 0xbe8   :  { %5790 = vmatmul.mubr.f32.gmra.mrb[90].mxu0 %v15748_v22  ;;  %5865 = vmatmul.mubr.f32.gmra.mrb[90].mxu1 %v15748_v22  ;;  %v17288_v22 = vld [vmem:[#allocation34_spill] sm:$0xff] }
 0xbe9   :  { %6001 = vmatprep.mubr.f32.mxu0 %v16996_v19  ;;  %6076 = vmatprep.mubr.f32.mxu1 %v16996_v19 }
 0xbea   :  { %11585 = vmatpush1.bf16.msra.mxu0 %v15311_v14  ;;  %11617 = vmatpush1.bf16.msra.mxu1 %v15313_v55 }
 0xbeb   :  { %11587 = vmatprep.subr.bf16.mxu0 %v15317_v30  ;;  %11619 = vmatprep.subr.bf16.mxu1 %v15319_v18 }
 0xbee   :  { %11589 = vmatpush1.bf16.msra.mxu0 %v15327_v27  ;;  %11621 = vmatpush1.bf16.msra.mxu1 %v15329_v23 }
 0xbef   :  { %11591 = vmatprep.subr.bf16.mxu0 %v15333_v10  ;;  %11623 = vmatprep.subr.bf16.mxu1 %v15335_v4  ;;  %v17298_v4 = vld [vmem:[#allocation70_spill] sm:$0xff] }
 0xbf2   :  { %11593 = vmatpush1.bf16.msra.mxu0 %v17277_v20  ;;  %11625 = vmatpush1.bf16.msra.mxu1 %v17278_v40  ;;  %v17297_v40 = vld [vmem:[#allocation58_spill] sm:$0xff] }
 0xbf3   :  { %11595 = vmatprep.subr.bf16.mxu0 %v17279_v35  ;;  %11627 = vmatprep.subr.bf16.mxu1 %v17280_v59  ;;  %v17290_v35 = vld [vmem:[#allocation36_spill] sm:$0xff]  ;;  %v17291_v59 = vld [vmem:[#allocation37_spill] sm:$0xff] }
 0xbf6   :  { %11597 = vmatpush1.bf16.msra.mxu0 %v17281_v21  ;;  %11629 = vmatpush1.bf16.msra.mxu1 %v17282_v54  ;;  %v17292_v21 = vld [vmem:[#allocation38_spill] sm:$0xff]  ;;  %v17293_v54 = vld [vmem:[#allocation39_spill] sm:$0xff] }
 0xbf7   :  { %11599 = vmatprep.subr.bf16.mxu0 %v17283_v11  ;;  %11631 = vmatprep.subr.bf16.mxu1 %v17284_v17  ;;  %v17294_v11 = vld [vmem:[#allocation40_spill] sm:$0xff]  ;;  %v17295_v17 = vld [vmem:[#allocation41_spill] sm:$0xff] }
 0xbfa   :  { %11601 = vmatpush1.bf16.msra.mxu0 %v17285_v1  ;;  %11633 = vmatpush1.bf16.msra.mxu1 %v17286_v46  ;;  %v17296_v1 = vld [vmem:[#allocation42_spill] sm:$0xff] }
 0xbfb   :  { %11603 = vmatprep.subr.bf16.mxu0 %v17287_v32  ;;  %11635 = vmatprep.subr.bf16.mxu1 %v17288_v22 }
 0xbfe   :  { %11605 = vmatpush1.bf16.msra.mxu0 %v17289_v36  ;;  %11637 = vmatpush1.bf16.msra.mxu1 %v17290_v35 }
 0xbff   :  { %11607 = vmatprep.subr.bf16.mxu0 %v17291_v59  ;;  %11639 = vmatprep.subr.bf16.mxu1 %v17292_v21  ;;  %v17299_v21 = vld [vmem:[#allocation50_spill] sm:$0xff] }
 0xc02   :  { %11609 = vmatpush1.bf16.msra.mxu0 %v17293_v54  ;;  %11641 = vmatpush1.bf16.msra.mxu1 %v17294_v11  ;;  %v17300_v11 = vld [vmem:[#allocation57_spill] sm:$0xff] }
 0xc03   :  { %11643 = vmatprep.subr.bf16.mxu0 %v17295_v17  ;;  %11675 = vmatprep.subr.bf16.mxu1 %v17296_v1 }
 0xc87   :  { %v5637_v46 = vpop.f32.mrb[68].mxu0  ;;  %v5712_v32 = vpop.f32.mrb[68].mxu1 }
 0xc88   :  { %v12926_v22 = vadd.f32 %v5637_v46, %v17297_v40  ;;  %v5639_v20 = vpop.f32.mrb[69].mxu0  ;;  %v5714_v36 = vpop.f32.mrb[69].mxu1  ;;  %v12942_v27 = vadd.f32 %v5712_v32, %v17300_v11 }
 0xc89   :  { %v12927_v35 = vadd.f32 %v5639_v20, %v17298_v4  ;;  %v12943_v54 = vadd.f32 %v5714_v36, %v17299_v21 }
 0xc8a   :  { %v9726_v10 = vmul.f32 -1.442695, %v12926_v22 }
 0xc8b   :  { %v9728_v59 = vmul.f32 -1.442695, %v12927_v35  ;;  %v9730_v23 = vmul.f32 -1.442695, %v12943_v54 }
 0xc8c   :  { %13513 = vpow2.f32 %v9726_v10 }
 0xc8d   :  { %13515 = vpow2.f32 %v9728_v59 }
 0xc8e   :  { %13517 = vpow2.f32 %v9730_v23 }
 0xc8f   :  { %13519 = vtanh.f32 %v12942_v27 }
 0xc96   :  { %v13514_v17 = vpop.eup %13513 }
 0xc97   :  { %v13516_v18 = vpop.eup %13515  ;;  %v5893_v1 = vadd.f32 1.0, %v13514_v17 }
 0xc98   :  { %v5905_v30 = vadd.f32 1.0, %v13516_v18  ;;  %v13518_v46 = vpop.eup %13517 }
 0xc99   :  { %13521 = vrcp.f32 %v5893_v1  ;;  %v13520_v40 = vpop.eup %13519  ;;  %v5919_v10 = vadd.f32 1.0, %v13518_v46 }
 0xc9a   :  { %13523 = vrcp.f32 %v5905_v30 }
 0xc9b   :  { %13525 = vrcp.f32 %v5919_v10 }
 0xca3   :  { %v13522_v20 = vpop.eup %13521 }
 0xca4   :  { %v13524_v22 = vpop.eup %13523  ;;  %v5927_v35 = vmul.f32 %v13522_v20, %v13520_v40 }
 0xca5   :  { %v5925_v59 = vmul.f32 %v13524_v22, %v15699_v29  ;;  %v13526_v54 = vpop.eup %13525 }
 0xca7   :  { %v15799_v36 = vadd.f32 %v5927_v35, %v5925_v59 }
 0xca9   :  { %13527 = vtanh.f32 %v15799_v36 }
 0xcb3   :  { %v13528_v17 = vpop.eup %13527  ;;  %v5643_v23 = vpop.f32.mrb[104].mxu0 }
 0xcb4   :  { %v5718_v27 = vpop.f32.mrb[104].mxu1  ;;  %v15802_v18 = vmul.f32 %v13528_v17, %v13526_v54  ;;  %v5644_v30 = vpop.f32.mrb[105].mxu0 }
 0xcb5   :  { %v5719_v1 = vpop.f32.mrb[105].mxu1 }
 0xcb6   :  { %17301 = vst [vmem:[#allocation69_spill] sm:$0xff] %v15802_v18  ;;  %6002 = vmatmul.mubr.f32.vlgmr.msra.gmra.mrb[70].mxu0 %v15802_v18  ;;  %6077 = vmatmul.mubr.f32.vlgmr.msra.gmra.mrb[70].mxu1 %v15802_v18 }
 0xcb7   :  { %v5787_v40 = vpop.f32.mrb[106].mxu0  ;;  %v5862_v32 = vpop.f32.mrb[106].mxu1  ;;  %11645 = vmatpush1.bf16.msra.mxu0 %v15423_v7  ;;  %11677 = vmatpush1.bf16.msra.mxu1 %v15425_v38 }
 0xcb8   :  { %v5788_v29 = vpop.f32.mrb[107].mxu0  ;;  %v5863_v46 = vpop.f32.mrb[107].mxu1  ;;  %11647 = vmatprep.subr.bf16.mxu0 %v15429_v60  ;;  %11679 = vmatprep.subr.bf16.mxu1 %v15431_v58 }
 0xcb9   :  { %6007 = vmatprep.mubr.f32.mxu0 %v16996_v19  ;;  %6082 = vmatprep.mubr.f32.mxu1 %v16996_v19 }
 0xcbb   :  { %v5791_v20 = vpop.f32.mrb[90].mxu0  ;;  %v5866_v22 = vpop.f32.mrb[90].mxu1  ;;  %11649 = vmatpush1.bf16.msra.mxu0 %v15437_v0  ;;  %11681 = vmatpush1.bf16.msra.mxu1 %v15439_v12 }
 0xcbc   :  { %v12964_v35 = vadd.f32 %v5791_v20, %v17270_v48  ;;  %v5793_v10 = vpop.f32.mrb[91].mxu0  ;;  %v5868_v59 = vpop.f32.mrb[91].mxu1  ;;  %11651 = vmatprep.subr.bf16.mxu0 %v15443_v15  ;;  %11683 = vmatprep.subr.bf16.mxu1 %v17244_v3  ;;  %v12980_v1 = vadd.f32 %v5866_v22, %v17272_v51 }
 0xcbd   :  { %v12965_v54 = vadd.f32 %v5793_v10, %v15593_v42  ;;  %v12981_v27 = vadd.f32 %v5868_v59, %v15599_v37 }
 0xcbe   :  { %v9727_v17 = vmul.f32 -1.442695, %v12964_v35 }
 0xcbf   :  { %v9729_v23 = vmul.f32 -1.442695, %v12965_v54  ;;  %11653 = vmatpush1.bf16.msra.mxu0 %v17245_v9  ;;  %11685 = vmatpush1.bf16.msra.mxu1 %v17271_v2  ;;  %v9731_v30 = vmul.f32 -1.442695, %v12981_v27 }
 0xcc0   :  { %13529 = vpow2.f32 %v9727_v17  ;;  %11655 = vmatprep.subr.bf16.mxu0 %v17273_v26  ;;  %11687 = vmatprep.subr.bf16.mxu1 %v17248_v28 }
 0xcc1   :  { %13531 = vpow2.f32 %v9729_v23 }
 0xcc2   :  { %13533 = vpow2.f32 %v9731_v30 }
 0xcc3   :  { %11657 = vmatpush1.bf16.msra.mxu0 %v17274_v49  ;;  %11689 = vmatpush1.bf16.msra.mxu1 %v17275_v25  ;;  %13535 = vtanh.f32 %v12980_v1 }
 0xcc4   :  { %11659 = vmatprep.subr.bf16.mxu0 %v17251_v41  ;;  %11691 = vmatprep.subr.bf16.mxu1 %v17252_v45 }
 0xcc7   :  { %11661 = vmatpush1.bf16.msra.mxu0 %v17253_v6  ;;  %11693 = vmatpush1.bf16.msra.mxu1 %v17254_v43 }
 0xcc8   :  { %11663 = vmatprep.subr.bf16.mxu0 %v15485_v33  ;;  %11695 = vmatprep.subr.bf16.mxu1 %v15487_v13 }
 0xcca   :  { %v13530_v40 = vpop.eup %13529 }
 0xccb   :  { %v13532_v32 = vpop.eup %13531  ;;  %v5894_v29 = vadd.f32 1.0, %v13530_v40  ;;  %11665 = vmatpush1.bf16.msra.mxu0 %v15491_v63  ;;  %11697 = vmatpush1.bf16.msra.mxu1 %v15493_v52  ;;  %v17304_v40 = vld [vmem:[#allocation53_spill] sm:$0xff] }
 0xccc   :  { %v5906_v46 = vadd.f32 1.0, %v13532_v32  ;;  %11667 = vmatprep.subr.bf16.mxu0 %v15497_v62  ;;  %11699 = vmatprep.subr.bf16.mxu1 %v15499_v39  ;;  %v13534_v20 = vpop.eup %13533  ;;  %v17305_v32 = vld [vmem:[#allocation63_spill] sm:$0xff] }
 0xccd   :  { %13537 = vrcp.f32 %v5894_v29  ;;  %v13536_v22 = vpop.eup %13535  ;;  %v5920_v54 = vadd.f32 1.0, %v13534_v20  ;;  %v17306_v29 = vld [vmem:[#allocation65_spill] sm:$0xff]  ;;  %v17308_v20 = vld [vmem:[#allocation23_spill] sm:$0xff] }
 0xcce   :  { %13539 = vrcp.f32 %v5906_v46  ;;  %v17307_v46 = vld [vmem:[#allocation67_spill] sm:$0xff] }
 0xccf   :  { %11669 = vmatpush1.bf16.msra.mxu0 %v15503_v24  ;;  %11701 = vmatpush1.bf16.msra.mxu1 %v15505_v5  ;;  %13541 = vrcp.f32 %v5920_v54  ;;  %v17313_v54 = vld [vmem:[#allocation27_spill] sm:$0xff] }
 0xcd0   :  { %11671 = vmatprep.subr.bf16.mxu0 %v15509_v61  ;;  %11703 = vmatprep.subr.bf16.mxu1 %v15511_v8 }
 0xcd3   :  { %11673 = vmatpush1.bf16.msra.mxu0 %v15515_v47  ;;  %11705 = vmatpush1.bf16.msra.mxu1 %v15517_v16 }
 0xcd4   :  { %11707 = vmatprep.subr.bf16.mxu0 %v15291_v56  ;;  %11739 = vmatprep.subr.bf16.mxu1 %v15293_v44 }
 0xcd7   :  { %v13538_v35 = vpop.eup %13537 }
 0xcd8   :  { %v13540_v10 = vpop.eup %13539  ;;  %v5928_v59 = vmul.f32 %v13538_v35, %v13536_v22  ;;  %v17309_v22 = vld [vmem:[#allocation68_spill] sm:$0xff] }
 0xcd9   :  { %v5926_v17 = vmul.f32 %v13540_v10, %v15741_v53  ;;  %v13542_v27 = vpop.eup %13541  ;;  %v17303_v53 = vld [vmem:[#allocation52_spill] sm:$0xff]  ;;  %v17311_v10 = vld [vmem:[#allocation25_spill] sm:$0xff] }
 0xcda   :  { %v17310_v35 = vld [vmem:[#allocation24_spill] sm:$0xff] }
 0xcdb   :  { %v15845_v23 = vadd.f32 %v5928_v59, %v5926_v17  ;;  %v17312_v59 = vld [vmem:[#allocation26_spill] sm:$0xff]  ;;  %v17314_v17 = vld [vmem:[#allocation28_spill] sm:$0xff] }
 0xcdd   :  { %13543 = vtanh.f32 %v15845_v23 }
 0xce7   :  { %v13544_v30 = vpop.eup %13543 }
 0xce8   :  { %v15848_v1 = vmul.f32 %v13544_v30, %v13542_v27  ;;  %v17315_v27 = vld [vmem:[#allocation29_spill] sm:$0xff]  ;;  %v17316_v30 = vld [vmem:[#allocation30_spill] sm:$0xff] }
 0xcea   :  { %17302 = vst [vmem:[#allocation54_spill] sm:$0xff] %v15848_v1  ;;  %6008 = vmatmul.mubr.f32.gmra.mrb[108].mxu0 %v15848_v1  ;;  %6083 = vmatmul.mubr.f32.gmra.mrb[108].mxu1 %v15848_v1 }
 0xceb   :  { %6151 = vmatprep.mubr.f32.mxu0 %v16996_v19  ;;  %6226 = vmatprep.mubr.f32.mxu1 %v16996_v19 }
 0xcee   :  { %6152 = vmatmul.mubr.f32.vlgmr.msra.gmra.mrb[110].mxu0 %v15802_v18  ;;  %6227 = vmatmul.mubr.f32.vlgmr.msra.gmra.mrb[110].mxu1 %v15802_v18  ;;  %v17318_v18 = vld [vmem:[#allocation32_spill] sm:$0xff] }
 0xcef   :  { %6155 = vmatprep.mubr.f32.mxu0 %v16996_v19  ;;  %6230 = vmatprep.mubr.f32.mxu1 %v16996_v19 }
 0xcf0   :  { %11709 = vmatpush1.bf16.msra.mxu0 %v15297_v57  ;;  %11741 = vmatpush1.bf16.msra.mxu1 %v15299_v50 }
 0xcf1   :  { %11711 = vmatprep.subr.bf16.mxu0 %v15301_v31  ;;  %11743 = vmatprep.subr.bf16.mxu1 %v15303_v34 }
 0xcf2   :  { %6156 = vmatmul.mubr.f32.gmra.mrb[88].mxu0 %v15848_v1  ;;  %6231 = vmatmul.mubr.f32.gmra.mrb[88].mxu1 %v15848_v1  ;;  %v17317_v1 = vld [vmem:[#allocation31_spill] sm:$0xff] }
 0xcf3   :  { %6367 = vmatprep.mubr.f32.mxu0 %v16996_v19  ;;  %6442 = vmatprep.mubr.f32.mxu1 %v16996_v19 }
 0xcf4   :  { %11713 = vmatpush1.bf16.msra.mxu0 %v15311_v14  ;;  %11745 = vmatpush1.bf16.msra.mxu1 %v15313_v55 }
 0xcf5   :  { %11715 = vmatprep.subr.bf16.mxu0 %v17303_v53  ;;  %11747 = vmatprep.subr.bf16.mxu1 %v17304_v40 }
 0xcf8   :  { %11717 = vmatpush1.bf16.msra.mxu0 %v17305_v32  ;;  %11749 = vmatpush1.bf16.msra.mxu1 %v17306_v29 }
 0xcf9   :  { %11719 = vmatprep.subr.bf16.mxu0 %v17307_v46  ;;  %11751 = vmatprep.subr.bf16.mxu1 %v17308_v20  ;;  %v17319_v20 = vld [vmem:[#allocation33_spill] sm:$0xff]  ;;  %v17329_v46 = vld [vmem:[#allocation58_spill] sm:$0xff] }
 0xcfc   :  { %11721 = vmatpush1.bf16.msra.mxu0 %v17309_v22  ;;  %11753 = vmatpush1.bf16.msra.mxu1 %v17310_v35  ;;  %v17320_v22 = vld [vmem:[#allocation34_spill] sm:$0xff]  ;;  %v17321_v35 = vld [vmem:[#allocation35_spill] sm:$0xff] }
 0xcfd   :  { %11723 = vmatprep.subr.bf16.mxu0 %v17311_v10  ;;  %11755 = vmatprep.subr.bf16.mxu1 %v17312_v59  ;;  %v17322_v10 = vld [vmem:[#allocation36_spill] sm:$0xff]  ;;  %v17323_v59 = vld [vmem:[#allocation37_spill] sm:$0xff] }
 0xd00   :  { %11725 = vmatpush1.bf16.msra.mxu0 %v17313_v54  ;;  %11757 = vmatpush1.bf16.msra.mxu1 %v17314_v17  ;;  %v17324_v54 = vld [vmem:[#allocation38_spill] sm:$0xff]  ;;  %v17325_v17 = vld [vmem:[#allocation39_spill] sm:$0xff] }
 0xd01   :  { %11727 = vmatprep.subr.bf16.mxu0 %v17315_v27  ;;  %11759 = vmatprep.subr.bf16.mxu1 %v17316_v30  ;;  %v17326_v27 = vld [vmem:[#allocation40_spill] sm:$0xff]  ;;  %v17327_v30 = vld [vmem:[#allocation41_spill] sm:$0xff] }
 0xd04   :  { %11729 = vmatpush1.bf16.msra.mxu0 %v17317_v1  ;;  %11761 = vmatpush1.bf16.msra.mxu1 %v17318_v18  ;;  %v17328_v1 = vld [vmem:[#allocation42_spill] sm:$0xff] }
 0xd05   :  { %11731 = vmatprep.subr.bf16.mxu0 %v17319_v20  ;;  %11763 = vmatprep.subr.bf16.mxu1 %v17320_v22 }
 0xd08   :  { %11733 = vmatpush1.bf16.msra.mxu0 %v17321_v35  ;;  %11765 = vmatpush1.bf16.msra.mxu1 %v17322_v10 }
 0xd09   :  { %11735 = vmatprep.subr.bf16.mxu0 %v17323_v59  ;;  %11767 = vmatprep.subr.bf16.mxu1 %v17324_v54 }
 0xd0c   :  { %11737 = vmatpush1.bf16.msra.mxu0 %v17325_v17  ;;  %11769 = vmatpush1.bf16.msra.mxu1 %v17326_v27 }
 0xd0d   :  { %11771 = vmatprep.subr.bf16.mxu0 %v17327_v30  ;;  %11803 = vmatprep.subr.bf16.mxu1 %v17328_v1 }
 0xd89   :  { %v6003_v18 = vpop.f32.mrb[70].mxu0  ;;  %v6078_v20 = vpop.f32.mrb[70].mxu1 }
 0xd8a   :  { %v12928_v22 = vadd.f32 %v6003_v18, %v17329_v46  ;;  %v6005_v29 = vpop.f32.mrb[71].mxu0  ;;  %v6080_v35 = vpop.f32.mrb[71].mxu1  ;;  %v12944_v27 = vadd.f32 %v6078_v20, %v17300_v11 }
 0xd8b   :  { %v12929_v10 = vadd.f32 %v6005_v29, %v17298_v4  ;;  %v12945_v17 = vadd.f32 %v6080_v35, %v17299_v21 }
 0xd8c   :  { %v9732_v32 = vmul.f32 -1.442695, %v12928_v22 }
 0xd8d   :  { %v9734_v59 = vmul.f32 -1.442695, %v12929_v10  ;;  %v9736_v54 = vmul.f32 -1.442695, %v12945_v17 }
 0xd8e   :  { %13545 = vpow2.f32 %v9732_v32 }
 0xd8f   :  { %13547 = vpow2.f32 %v9734_v59 }
 0xd90   :  { %13549 = vpow2.f32 %v9736_v54 }
 0xd91   :  { %13551 = vtanh.f32 %v12944_v27 }
 0xd98   :  { %v13546_v30 = vpop.eup %13545 }
 0xd99   :  { %v13548_v40 = vpop.eup %13547  ;;  %v6259_v1 = vadd.f32 1.0, %v13546_v30 }
 0xd9a   :  { %v6271_v53 = vadd.f32 1.0, %v13548_v40  ;;  %v13550_v18 = vpop.eup %13549 }
 0xd9b   :  { %13553 = vrcp.f32 %v6259_v1  ;;  %v13552_v46 = vpop.eup %13551  ;;  %v6285_v32 = vadd.f32 1.0, %v13550_v18 }
 0xd9c   :  { %13555 = vrcp.f32 %v6271_v53 }
 0xd9d   :  { %13557 = vrcp.f32 %v6285_v32 }
 0xda5   :  { %v13554_v29 = vpop.eup %13553 }
 0xda6   :  { %v13556_v22 = vpop.eup %13555  ;;  %v6293_v10 = vmul.f32 %v13554_v29, %v13552_v46 }
 0xda7   :  { %v6291_v59 = vmul.f32 %v13556_v22, %v15799_v36  ;;  %v13558_v20 = vpop.eup %13557 }
 0xda9   :  { %v15899_v35 = vadd.f32 %v6293_v10, %v6291_v59 }
 0xdab   :  { %13559 = vtanh.f32 %v15899_v35 }
 0xdb5   :  { %v13560_v17 = vpop.eup %13559 }
 0xdb6   :  { %v15902_v54 = vmul.f32 %v13560_v17, %v13558_v20 }
 0xdb8   :  { %17330 = vst [vmem:[#allocation56_spill] sm:$0xff] %v15902_v54  ;;  %6368 = vmatmul.mubr.f32.vlgmr.msra.gmra.mrb[72].mxu0 %v15902_v54  ;;  %6443 = vmatmul.mubr.f32.vlgmr.msra.gmra.mrb[72].mxu1 %v15902_v54 }
 0xdb9   :  { %11773 = vmatpush1.bf16.msra.mxu0 %v15423_v7  ;;  %11805 = vmatpush1.bf16.msra.mxu1 %v15425_v38 }
 0xdba   :  { %11775 = vmatprep.subr.bf16.mxu0 %v15429_v60  ;;  %11807 = vmatprep.subr.bf16.mxu1 %v15431_v58 }
 0xdbb   :  { %6373 = vmatprep.mubr.f32.mxu0 %v16996_v19  ;;  %6448 = vmatprep.mubr.f32.mxu1 %v16996_v19 }
 0xdbd   :  { %v6009_v36 = vpop.f32.mrb[108].mxu0  ;;  %v6084_v1 = vpop.f32.mrb[108].mxu1  ;;  %11777 = vmatpush1.bf16.msra.mxu0 %v15437_v0  ;;  %11809 = vmatpush1.bf16.msra.mxu1 %v15439_v12 }
 0xdbe   :  { %v6010_v53 = vpop.f32.mrb[109].mxu0  ;;  %v6085_v40 = vpop.f32.mrb[109].mxu1  ;;  %11779 = vmatprep.subr.bf16.mxu0 %v15443_v15  ;;  %11811 = vmatprep.subr.bf16.mxu1 %v17244_v3 }
 0xdc1   :  { %v6153_v46 = vpop.f32.mrb[110].mxu0  ;;  %v6228_v27 = vpop.f32.mrb[110].mxu1  ;;  %11781 = vmatpush1.bf16.msra.mxu0 %v17245_v9  ;;  %11813 = vmatpush1.bf16.msra.mxu1 %v17271_v2 }
 0xdc2   :  { %v6154_v30 = vpop.f32.mrb[111].mxu0  ;;  %v6229_v18 = vpop.f32.mrb[111].mxu1  ;;  %11783 = vmatprep.subr.bf16.mxu0 %v17273_v26  ;;  %11815 = vmatprep.subr.bf16.mxu1 %v17248_v28 }
 0xdc5   :  { %v6157_v29 = vpop.f32.mrb[88].mxu0  ;;  %v6232_v22 = vpop.f32.mrb[88].mxu1  ;;  %11785 = vmatpush1.bf16.msra.mxu0 %v17274_v49  ;;  %11817 = vmatpush1.bf16.msra.mxu1 %v17275_v25 }
 0xdc6   :  { %v12962_v10 = vadd.f32 %v6157_v29, %v17270_v48  ;;  %v6159_v32 = vpop.f32.mrb[89].mxu0  ;;  %v6234_v59 = vpop.f32.mrb[89].mxu1  ;;  %11787 = vmatprep.subr.bf16.mxu0 %v17251_v41  ;;  %11819 = vmatprep.subr.bf16.mxu1 %v17252_v45  ;;  %v12978_v40 = vadd.f32 %v6232_v22, %v17272_v51 }
 0xdc7   :  { %v12963_v20 = vadd.f32 %v6159_v32, %v15593_v42  ;;  %v12979_v1 = vadd.f32 %v6234_v59, %v15599_v37 }
 0xdc8   :  { %v9733_v17 = vmul.f32 -1.442695, %v12962_v10 }
 0xdc9   :  { %v9735_v36 = vmul.f32 -1.442695, %v12963_v20  ;;  %11789 = vmatpush1.bf16.msra.mxu0 %v17253_v6  ;;  %11821 = vmatpush1.bf16.msra.mxu1 %v17254_v43  ;;  %v9737_v53 = vmul.f32 -1.442695, %v12979_v1 }
 0xdca   :  { %13561 = vpow2.f32 %v9733_v17  ;;  %11791 = vmatprep.subr.bf16.mxu0 %v15485_v33  ;;  %11823 = vmatprep.subr.bf16.mxu1 %v15487_v13 }
 0xdcb   :  { %13563 = vpow2.f32 %v9735_v36 }
 0xdcc   :  { %13565 = vpow2.f32 %v9737_v53 }
 0xdcd   :  { %11793 = vmatpush1.bf16.msra.mxu0 %v15491_v63  ;;  %11825 = vmatpush1.bf16.msra.mxu1 %v15493_v52  ;;  %13567 = vtanh.f32 %v12978_v40 }
 0xdce   :  { %11795 = vmatprep.subr.bf16.mxu0 %v15497_v62  ;;  %11827 = vmatprep.subr.bf16.mxu1 %v15499_v39 }
 0xdd1   :  { %11797 = vmatpush1.bf16.msra.mxu0 %v15503_v24  ;;  %11829 = vmatpush1.bf16.msra.mxu1 %v15505_v5 }
 0xdd2   :  { %11799 = vmatprep.subr.bf16.mxu0 %v15509_v61  ;;  %11831 = vmatprep.subr.bf16.mxu1 %v15511_v8 }
 0xdd4   :  { %v13562_v46 = vpop.eup %13561 }
 0xdd5   :  { %v13564_v27 = vpop.eup %13563  ;;  %v6260_v30 = vadd.f32 1.0, %v13562_v46  ;;  %11801 = vmatpush1.bf16.msra.mxu0 %v15515_v47  ;;  %11833 = vmatpush1.bf16.msra.mxu1 %v15517_v16  ;;  %v17333_v46 = vld [vmem:[#allocation53_spill] sm:$0xff] }
 0xdd6   :  { %v6272_v18 = vadd.f32 1.0, %v13564_v27  ;;  %11835 = vmatprep.subr.bf16.mxu0 %v15291_v56  ;;  %11867 = vmatprep.subr.bf16.mxu1 %v15293_v44  ;;  %v13566_v29 = vpop.eup %13565  ;;  %v17334_v27 = vld [vmem:[#allocation63_spill] sm:$0xff] }
 0xdd7   :  { %13569 = vrcp.f32 %v6260_v30  ;;  %v13568_v22 = vpop.eup %13567  ;;  %v6286_v20 = vadd.f32 1.0, %v13566_v29  ;;  %v17335_v30 = vld [vmem:[#allocation65_spill] sm:$0xff]  ;;  %v17337_v29 = vld [vmem:[#allocation23_spill] sm:$0xff] }
 0xdd8   :  { %13571 = vrcp.f32 %v6272_v18  ;;  %v17336_v18 = vld [vmem:[#allocation67_spill] sm:$0xff] }
 0xdd9   :  { %13573 = vrcp.f32 %v6286_v20  ;;  %v17342_v20 = vld [vmem:[#allocation27_spill] sm:$0xff] }
 0xde1   :  { %v13570_v10 = vpop.eup %13569 }
 0xde2   :  { %v13572_v32 = vpop.eup %13571  ;;  %v6294_v59 = vmul.f32 %v13570_v10, %v13568_v22  ;;  %v17338_v22 = vld [vmem:[#allocation68_spill] sm:$0xff] }
 0xde3   :  { %v6292_v17 = vmul.f32 %v13572_v32, %v15845_v23  ;;  %v13574_v1 = vpop.eup %13573  ;;  %v17332_v23 = vld [vmem:[#allocation52_spill] sm:$0xff]  ;;  %v17340_v32 = vld [vmem:[#allocation25_spill] sm:$0xff] }
 0xde4   :  { %v17339_v10 = vld [vmem:[#allocation24_spill] sm:$0xff] }
 0xde5   :  { %v15945_v36 = vadd.f32 %v6294_v59, %v6292_v17  ;;  %v17341_v59 = vld [vmem:[#allocation26_spill] sm:$0xff]  ;;  %v17343_v17 = vld [vmem:[#allocation28_spill] sm:$0xff] }
 0xde7   :  { %13575 = vtanh.f32 %v15945_v36 }
 0xdf1   :  { %v13576_v53 = vpop.eup %13575 }
 0xdf2   :  { %v15948_v40 = vmul.f32 %v13576_v53, %v13574_v1  ;;  %v17344_v1 = vld [vmem:[#allocation29_spill] sm:$0xff]  ;;  %v17345_v53 = vld [vmem:[#allocation30_spill] sm:$0xff] }
 0xdf4   :  { %17331 = vst [vmem:[#allocation51_spill] sm:$0xff] %v15948_v40  ;;  %6374 = vmatmul.mubr.f32.gmra.mrb[112].mxu0 %v15948_v40  ;;  %6449 = vmatmul.mubr.f32.gmra.mrb[112].mxu1 %v15948_v40 }
 0xdf5   :  { %6517 = vmatprep.mubr.f32.mxu0 %v16996_v19  ;;  %6592 = vmatprep.mubr.f32.mxu1 %v16996_v19 }
 0xdf8   :  { %6518 = vmatmul.mubr.f32.vlgmr.msra.gmra.mrb[114].mxu0 %v15902_v54  ;;  %6593 = vmatmul.mubr.f32.vlgmr.msra.gmra.mrb[114].mxu1 %v15902_v54  ;;  %v17347_v54 = vld [vmem:[#allocation32_spill] sm:$0xff] }
 0xdf9   :  { %6521 = vmatprep.mubr.f32.mxu0 %v16996_v19  ;;  %6596 = vmatprep.mubr.f32.mxu1 %v16996_v19 }
 0xdfa   :  { %11837 = vmatpush1.bf16.msra.mxu0 %v15297_v57  ;;  %11869 = vmatpush1.bf16.msra.mxu1 %v15299_v50 }
 0xdfb   :  { %11839 = vmatprep.subr.bf16.mxu0 %v15301_v31  ;;  %11871 = vmatprep.subr.bf16.mxu1 %v15303_v34 }
 0xdfc   :  { %6522 = vmatmul.mubr.f32.gmra.mrb[86].mxu0 %v15948_v40  ;;  %6597 = vmatmul.mubr.f32.gmra.mrb[86].mxu1 %v15948_v40  ;;  %v17346_v40 = vld [vmem:[#allocation31_spill] sm:$0xff] }
 0xdfd   :  { %6733 = vmatprep.mubr.f32.mxu0 %v16996_v19  ;;  %6808 = vmatprep.mubr.f32.mxu1 %v16996_v19 }
 0xdfe   :  { %11841 = vmatpush1.bf16.msra.mxu0 %v15311_v14  ;;  %11873 = vmatpush1.bf16.msra.mxu1 %v15313_v55 }
 0xdff   :  { %11843 = vmatprep.subr.bf16.mxu0 %v17332_v23  ;;  %11875 = vmatprep.subr.bf16.mxu1 %v17333_v46 }
 0xe02   :  { %11845 = vmatpush1.bf16.msra.mxu0 %v17334_v27  ;;  %11877 = vmatpush1.bf16.msra.mxu1 %v17335_v30 }
 0xe03   :  { %11847 = vmatprep.subr.bf16.mxu0 %v17336_v18  ;;  %11879 = vmatprep.subr.bf16.mxu1 %v17337_v29  ;;  %v17348_v29 = vld [vmem:[#allocation33_spill] sm:$0xff]  ;;  %v17358_v18 = vld [vmem:[#allocation58_spill] sm:$0xff] }
 0xe06   :  { %11849 = vmatpush1.bf16.msra.mxu0 %v17338_v22  ;;  %11881 = vmatpush1.bf16.msra.mxu1 %v17339_v10  ;;  %v17349_v22 = vld [vmem:[#allocation34_spill] sm:$0xff]  ;;  %v17350_v10 = vld [vmem:[#allocation35_spill] sm:$0xff] }
 0xe07   :  { %11851 = vmatprep.subr.bf16.mxu0 %v17340_v32  ;;  %11883 = vmatprep.subr.bf16.mxu1 %v17341_v59  ;;  %v17351_v32 = vld [vmem:[#allocation36_spill] sm:$0xff]  ;;  %v17352_v59 = vld [vmem:[#allocation37_spill] sm:$0xff] }
 0xe0a   :  { %11853 = vmatpush1.bf16.msra.mxu0 %v17342_v20  ;;  %11885 = vmatpush1.bf16.msra.mxu1 %v17343_v17  ;;  %v17353_v20 = vld [vmem:[#allocation38_spill] sm:$0xff]  ;;  %v17354_v17 = vld [vmem:[#allocation39_spill] sm:$0xff] }
 0xe0b   :  { %11855 = vmatprep.subr.bf16.mxu0 %v17344_v1  ;;  %11887 = vmatprep.subr.bf16.mxu1 %v17345_v53  ;;  %v17355_v1 = vld [vmem:[#allocation40_spill] sm:$0xff]  ;;  %v17356_v53 = vld [vmem:[#allocation41_spill] sm:$0xff] }
 0xe0e   :  { %11857 = vmatpush1.bf16.msra.mxu0 %v17346_v40  ;;  %11889 = vmatpush1.bf16.msra.mxu1 %v17347_v54  ;;  %v17357_v40 = vld [vmem:[#allocation42_spill] sm:$0xff] }
 0xe0f   :  { %11859 = vmatprep.subr.bf16.mxu0 %v17348_v29  ;;  %11891 = vmatprep.subr.bf16.mxu1 %v17349_v22 }
 0xe12   :  { %11861 = vmatpush1.bf16.msra.mxu0 %v17350_v10  ;;  %11893 = vmatpush1.bf16.msra.mxu1 %v17351_v32 }
 0xe13   :  { %11863 = vmatprep.subr.bf16.mxu0 %v17352_v59  ;;  %11895 = vmatprep.subr.bf16.mxu1 %v17353_v20 }
 0xe16   :  { %11865 = vmatpush1.bf16.msra.mxu0 %v17354_v17  ;;  %11897 = vmatpush1.bf16.msra.mxu1 %v17355_v1 }
 0xe17   :  { %11899 = vmatprep.subr.bf16.mxu0 %v17356_v53  ;;  %11931 = vmatprep.subr.bf16.mxu1 %v17357_v40 }
 0xe8b   :  { %v6369_v54 = vpop.f32.mrb[72].mxu0  ;;  %v6444_v29 = vpop.f32.mrb[72].mxu1 }
 0xe8c   :  { %v12930_v22 = vadd.f32 %v6369_v54, %v17358_v18  ;;  %v6371_v30 = vpop.f32.mrb[73].mxu0  ;;  %v6446_v10 = vpop.f32.mrb[73].mxu1  ;;  %v12946_v1 = vadd.f32 %v6444_v29, %v17300_v11 }
 0xe8d   :  { %v12931_v32 = vadd.f32 %v6371_v30, %v17298_v4  ;;  %v12947_v17 = vadd.f32 %v6446_v10, %v17299_v21 }
 0xe8e   :  { %v9738_v27 = vmul.f32 -1.442695, %v12930_v22 }
 0xe8f   :  { %v9740_v59 = vmul.f32 -1.442695, %v12931_v32  ;;  %v9742_v20 = vmul.f32 -1.442695, %v12947_v17 }
 0xe90   :  { %13577 = vpow2.f32 %v9738_v27 }
 0xe91   :  { %13579 = vpow2.f32 %v9740_v59 }
 0xe92   :  { %13581 = vpow2.f32 %v9742_v20 }
 0xe93   :  { %13583 = vtanh.f32 %v12946_v1 }
 0xe9a   :  { %v13578_v53 = vpop.eup %13577 }
 0xe9b   :  { %v13580_v46 = vpop.eup %13579  ;;  %v6625_v40 = vadd.f32 1.0, %v13578_v53 }
 0xe9c   :  { %v6637_v23 = vadd.f32 1.0, %v13580_v46  ;;  %v13582_v54 = vpop.eup %13581 }
 0xe9d   :  { %13585 = vrcp.f32 %v6625_v40  ;;  %v13584_v18 = vpop.eup %13583  ;;  %v6651_v27 = vadd.f32 1.0, %v13582_v54 }
 0xe9e   :  { %13587 = vrcp.f32 %v6637_v23 }
 0xe9f   :  { %13589 = vrcp.f32 %v6651_v27 }
 0xea7   :  { %v13586_v30 = vpop.eup %13585 }
 0xea8   :  { %v13588_v22 = vpop.eup %13587  ;;  %v6659_v32 = vmul.f32 %v13586_v30, %v13584_v18 }
 0xea9   :  { %v6657_v59 = vmul.f32 %v13588_v22, %v15899_v35  ;;  %v13590_v29 = vpop.eup %13589 }
 0xeab   :  { %v15999_v10 = vadd.f32 %v6659_v32, %v6657_v59 }
 0xead   :  { %13591 = vtanh.f32 %v15999_v10 }
 0xeb7   :  { %v13592_v17 = vpop.eup %13591 }
 0xeb8   :  { %v16002_v20 = vmul.f32 %v13592_v17, %v13590_v29 }
 0xeba   :  { %17359 = vst [vmem:[#allocation55_spill] sm:$0xff] %v16002_v20  ;;  %6734 = vmatmul.mubr.f32.vlgmr.msra.gmra.mrb[74].mxu0 %v16002_v20  ;;  %6809 = vmatmul.mubr.f32.vlgmr.msra.gmra.mrb[74].mxu1 %v16002_v20 }
 0xebb   :  { %11901 = vmatpush1.bf16.msra.mxu0 %v15423_v7  ;;  %11933 = vmatpush1.bf16.msra.mxu1 %v15425_v38 }
 0xebc   :  { %11903 = vmatprep.subr.bf16.mxu0 %v15429_v60  ;;  %11935 = vmatprep.subr.bf16.mxu1 %v15431_v58 }
 0xebd   :  { %6739 = vmatprep.mubr.f32.mxu0 %v16996_v19  ;;  %6814 = vmatprep.mubr.f32.mxu1 %v16996_v19 }
 0xebf   :  { %11905 = vmatpush1.bf16.msra.mxu0 %v15437_v0  ;;  %11937 = vmatpush1.bf16.msra.mxu1 %v15439_v12 }
 0xec0   :  { %11907 = vmatprep.subr.bf16.mxu0 %v15443_v15  ;;  %11939 = vmatprep.subr.bf16.mxu1 %v17244_v3 }
 0xec3   :  { %11909 = vmatpush1.bf16.msra.mxu0 %v17245_v9  ;;  %11941 = vmatpush1.bf16.msra.mxu1 %v17271_v2 }
 0xec4   :  { %11911 = vmatprep.subr.bf16.mxu0 %v17273_v26  ;;  %11943 = vmatprep.subr.bf16.mxu1 %v17248_v28 }
 0xec7   :  { %v6375_v35 = vpop.f32.mrb[112].mxu0  ;;  %v6450_v40 = vpop.f32.mrb[112].mxu1  ;;  %11913 = vmatpush1.bf16.msra.mxu0 %v17274_v49  ;;  %11945 = vmatpush1.bf16.msra.mxu1 %v17275_v25 }
 0xec8   :  { %v6376_v23 = vpop.f32.mrb[113].mxu0  ;;  %v6451_v46 = vpop.f32.mrb[113].mxu1  ;;  %11915 = vmatprep.subr.bf16.mxu0 %v17251_v41  ;;  %11947 = vmatprep.subr.bf16.mxu1 %v17252_v45 }
 0xecb   :  { %v6519_v18 = vpop.f32.mrb[114].mxu0  ;;  %v6594_v1 = vpop.f32.mrb[114].mxu1  ;;  %11917 = vmatpush1.bf16.msra.mxu0 %v17253_v6  ;;  %11949 = vmatpush1.bf16.msra.mxu1 %v17254_v43 }
 0xecc   :  { %v6520_v53 = vpop.f32.mrb[115].mxu0  ;;  %v6595_v54 = vpop.f32.mrb[115].mxu1  ;;  %11919 = vmatprep.subr.bf16.mxu0 %v15485_v33  ;;  %11951 = vmatprep.subr.bf16.mxu1 %v15487_v13 }
 0xecf   :  { %v6523_v30 = vpop.f32.mrb[86].mxu0  ;;  %v6598_v22 = vpop.f32.mrb[86].mxu1  ;;  %11921 = vmatpush1.bf16.msra.mxu0 %v15491_v63  ;;  %11953 = vmatpush1.bf16.msra.mxu1 %v15493_v52 }
 0xed0   :  { %v12960_v32 = vadd.f32 %v6523_v30, %v17270_v48  ;;  %v6525_v27 = vpop.f32.mrb[87].mxu0  ;;  %v6600_v59 = vpop.f32.mrb[87].mxu1  ;;  %11923 = vmatprep.subr.bf16.mxu0 %v15497_v62  ;;  %11955 = vmatprep.subr.bf16.mxu1 %v15499_v39  ;;  %v12976_v46 = vadd.f32 %v6598_v22, %v17272_v51 }
 0xed1   :  { %v12961_v29 = vadd.f32 %v6525_v27, %v15593_v42  ;;  %v12977_v40 = vadd.f32 %v6600_v59, %v15599_v37 }
 0xed2   :  { %v9739_v17 = vmul.f32 -1.442695, %v12960_v32 }
 0xed3   :  { %v9741_v35 = vmul.f32 -1.442695, %v12961_v29  ;;  %11925 = vmatpush1.bf16.msra.mxu0 %v15503_v24  ;;  %11957 = vmatpush1.bf16.msra.mxu1 %v15505_v5  ;;  %v9743_v23 = vmul.f32 -1.442695, %v12977_v40 }
 0xed4   :  { %13593 = vpow2.f32 %v9739_v17  ;;  %11927 = vmatprep.subr.bf16.mxu0 %v15509_v61  ;;  %11959 = vmatprep.subr.bf16.mxu1 %v15511_v8 }
 0xed5   :  { %13595 = vpow2.f32 %v9741_v35 }
 0xed6   :  { %13597 = vpow2.f32 %v9743_v23 }
 0xed7   :  { %11929 = vmatpush1.bf16.msra.mxu0 %v15515_v47  ;;  %11961 = vmatpush1.bf16.msra.mxu1 %v15517_v16  ;;  %13599 = vtanh.f32 %v12976_v46  ;;  %v17362_v46 = vld [vmem:[#allocation53_spill] sm:$0xff] }
 0xed8   :  { %11963 = vmatprep.subr.bf16.mxu0 %v15291_v56  ;;  %11995 = vmatprep.subr.bf16.mxu1 %v15293_v44 }
 0xede   :  { %v13594_v18 = vpop.eup %13593 }
 0xedf   :  { %v13596_v1 = vpop.eup %13595  ;;  %v6626_v53 = vadd.f32 1.0, %v13594_v18  ;;  %v17363_v18 = vld [vmem:[#allocation63_spill] sm:$0xff] }
 0xee0   :  { %v6638_v54 = vadd.f32 1.0, %v13596_v1  ;;  %v13598_v30 = vpop.eup %13597  ;;  %v17364_v1 = vld [vmem:[#allocation65_spill] sm:$0xff] }
 0xee1   :  { %13601 = vrcp.f32 %v6626_v53  ;;  %v13600_v32 = vpop.eup %13599  ;;  %v6652_v17 = vadd.f32 1.0, %v13598_v30  ;;  %v17365_v53 = vld [vmem:[#allocation67_spill] sm:$0xff]  ;;  %v17367_v30 = vld [vmem:[#allocation68_spill] sm:$0xff] }
 0xee2   :  { %13603 = vrcp.f32 %v6638_v54  ;;  %v17366_v54 = vld [vmem:[#allocation23_spill] sm:$0xff] }
 0xee3   :  { %13605 = vrcp.f32 %v6652_v17  ;;  %v17372_v17 = vld [vmem:[#allocation28_spill] sm:$0xff] }
 0xeeb   :  { %v13602_v27 = vpop.eup %13601 }
 0xeec   :  { %v13604_v59 = vpop.eup %13603  ;;  %v6660_v29 = vmul.f32 %v13602_v27, %v13600_v32  ;;  %v17368_v32 = vld [vmem:[#allocation24_spill] sm:$0xff]  ;;  %v17369_v27 = vld [vmem:[#allocation25_spill] sm:$0xff] }
 0xeed   :  { %v6658_v35 = vmul.f32 %v13604_v59, %v15945_v36  ;;  %v13606_v22 = vpop.eup %13605  ;;  %v17361_v36 = vld [vmem:[#allocation52_spill] sm:$0xff]  ;;  %v17370_v59 = vld [vmem:[#allocation26_spill] sm:$0xff] }
 0xeef   :  { %v16045_v37 = vadd.f32 %v6660_v29, %v6658_v35  ;;  %v17371_v29 = vld [vmem:[#allocation27_spill] sm:$0xff]  ;;  %v17373_v35 = vld [vmem:[#allocation29_spill] sm:$0xff] }
 0xef1   :  { %13607 = vtanh.f32 %v16045_v37 }
 0xefb   :  { %v13608_v40 = vpop.eup %13607 }
 0xefc   :  { %v16048_v23 = vmul.f32 %v13608_v40, %v13606_v22  ;;  %v17374_v22 = vld [vmem:[#allocation30_spill] sm:$0xff]  ;;  %v17375_v40 = vld [vmem:[#allocation31_spill] sm:$0xff] }
 0xefe   :  { %17360 = vst [vmem:[#allocation45_spill] sm:$0xff] %v16048_v23  ;;  %6740 = vmatmul.mubr.f32.gmra.mrb[116].mxu0 %v16048_v23  ;;  %6815 = vmatmul.mubr.f32.gmra.mrb[116].mxu1 %v16048_v23 }
 0xeff   :  { %6883 = vmatprep.mubr.f32.mxu0 %v16996_v19  ;;  %6958 = vmatprep.mubr.f32.mxu1 %v16996_v19 }
 0xf02   :  { %6884 = vmatmul.mubr.f32.vlgmr.msra.gmra.mrb[118].mxu0 %v16002_v20  ;;  %6959 = vmatmul.mubr.f32.vlgmr.msra.gmra.mrb[118].mxu1 %v16002_v20  ;;  %v17376_v20 = vld [vmem:[#allocation32_spill] sm:$0xff] }
 0xf03   :  { %6887 = vmatprep.mubr.f32.mxu0 %v16996_v19  ;;  %6962 = vmatprep.mubr.f32.mxu1 %v16996_v19 }
 0xf04   :  { %11965 = vmatpush1.bf16.msra.mxu0 %v15297_v57  ;;  %11997 = vmatpush1.bf16.msra.mxu1 %v15299_v50 }
 0xf05   :  { %11967 = vmatprep.subr.bf16.mxu0 %v15301_v31  ;;  %11999 = vmatprep.subr.bf16.mxu1 %v15303_v34 }
 0xf06   :  { %6888 = vmatmul.mubr.f32.gmra.mrb[84].mxu0 %v16048_v23  ;;  %6963 = vmatmul.mubr.f32.gmra.mrb[84].mxu1 %v16048_v23  ;;  %v17377_v23 = vld [vmem:[#allocation33_spill] sm:$0xff] }
 0xf07   :  { %7099 = vmatprep.mubr.f32.mxu0 %v16996_v19  ;;  %7174 = vmatprep.mubr.f32.mxu1 %v16996_v19 }
 0xf08   :  { %11969 = vmatpush1.bf16.msra.mxu0 %v15311_v14  ;;  %12001 = vmatpush1.bf16.msra.mxu1 %v15313_v55 }
 0xf09   :  { %11971 = vmatprep.subr.bf16.mxu0 %v17361_v36  ;;  %12003 = vmatprep.subr.bf16.mxu1 %v17362_v46 }
 0xf0c   :  { %11973 = vmatpush1.bf16.msra.mxu0 %v17363_v18  ;;  %12005 = vmatpush1.bf16.msra.mxu1 %v17364_v1 }
 0xf0d   :  { %11975 = vmatprep.subr.bf16.mxu0 %v17365_v53  ;;  %12007 = vmatprep.subr.bf16.mxu1 %v17366_v54  ;;  %v17387_v54 = vld [vmem:[#allocation58_spill] sm:$0xff] }
 0xf10   :  { %11977 = vmatpush1.bf16.msra.mxu0 %v17367_v30  ;;  %12009 = vmatpush1.bf16.msra.mxu1 %v17368_v32  ;;  %v17378_v30 = vld [vmem:[#allocation34_spill] sm:$0xff]  ;;  %v17379_v32 = vld [vmem:[#allocation35_spill] sm:$0xff] }
 0xf11   :  { %11979 = vmatprep.subr.bf16.mxu0 %v17369_v27  ;;  %12011 = vmatprep.subr.bf16.mxu1 %v17370_v59  ;;  %v17380_v27 = vld [vmem:[#allocation36_spill] sm:$0xff]  ;;  %v17381_v59 = vld [vmem:[#allocation37_spill] sm:$0xff] }
 0xf14   :  { %11981 = vmatpush1.bf16.msra.mxu0 %v17371_v29  ;;  %12013 = vmatpush1.bf16.msra.mxu1 %v17372_v17  ;;  %v17382_v29 = vld [vmem:[#allocation38_spill] sm:$0xff]  ;;  %v17383_v17 = vld [vmem:[#allocation39_spill] sm:$0xff] }
 0xf15   :  { %11983 = vmatprep.subr.bf16.mxu0 %v17373_v35  ;;  %12015 = vmatprep.subr.bf16.mxu1 %v17374_v22  ;;  %v17384_v35 = vld [vmem:[#allocation40_spill] sm:$0xff]  ;;  %v17385_v22 = vld [vmem:[#allocation41_spill] sm:$0xff] }
 0xf18   :  { %11985 = vmatpush1.bf16.msra.mxu0 %v17375_v40  ;;  %12017 = vmatpush1.bf16.msra.mxu1 %v17376_v20  ;;  %v17386_v40 = vld [vmem:[#allocation42_spill] sm:$0xff] }
 0xf19   :  { %11987 = vmatprep.subr.bf16.mxu0 %v17377_v23  ;;  %12019 = vmatprep.subr.bf16.mxu1 %v17378_v30 }
 0xf1c   :  { %11989 = vmatpush1.bf16.msra.mxu0 %v17379_v32  ;;  %12021 = vmatpush1.bf16.msra.mxu1 %v17380_v27 }
 0xf1d   :  { %11991 = vmatprep.subr.bf16.mxu0 %v17381_v59  ;;  %12023 = vmatprep.subr.bf16.mxu1 %v17382_v29 }
 0xf20   :  { %11993 = vmatpush1.bf16.msra.mxu0 %v17383_v17  ;;  %12025 = vmatpush1.bf16.msra.mxu1 %v17384_v35 }
 0xf21   :  { %12027 = vmatprep.subr.bf16.mxu0 %v17385_v22  ;;  %12059 = vmatprep.subr.bf16.mxu1 %v17386_v40 }
 0xf8d   :  { %v6735_v20 = vpop.f32.mrb[74].mxu0  ;;  %v6810_v23 = vpop.f32.mrb[74].mxu1 }
 0xf8e   :  { %v12932_v30 = vadd.f32 %v6735_v20, %v17387_v54  ;;  %v6737_v53 = vpop.f32.mrb[75].mxu0  ;;  %v6812_v32 = vpop.f32.mrb[75].mxu1  ;;  %v12948_v35 = vadd.f32 %v6810_v23, %v17300_v11 }
 0xf8f   :  { %v12933_v27 = vadd.f32 %v6737_v53, %v17298_v4  ;;  %v12949_v17 = vadd.f32 %v6812_v32, %v17299_v21 }
 0xf90   :  { %v9744_v1 = vmul.f32 -1.442695, %v12932_v30 }
 0xf91   :  { %v9746_v59 = vmul.f32 -1.442695, %v12933_v27  ;;  %v9748_v29 = vmul.f32 -1.442695, %v12949_v17 }
 0xf92   :  { %13609 = vpow2.f32 %v9744_v1 }
 0xf93   :  { %13611 = vpow2.f32 %v9746_v59 }
 0xf94   :  { %13613 = vpow2.f32 %v9748_v29 }
 0xf95   :  { %13615 = vtanh.f32 %v12948_v35 }
 0xf9c   :  { %v13610_v22 = vpop.eup %13609 }
 0xf9d   :  { %v13612_v18 = vpop.eup %13611  ;;  %v6991_v40 = vadd.f32 1.0, %v13610_v22 }
 0xf9e   :  { %v7003_v46 = vadd.f32 1.0, %v13612_v18  ;;  %v13614_v20 = vpop.eup %13613 }
 0xf9f   :  { %13617 = vrcp.f32 %v6991_v40  ;;  %v13616_v54 = vpop.eup %13615  ;;  %v7017_v1 = vadd.f32 1.0, %v13614_v20 }
 0xfa0   :  { %13619 = vrcp.f32 %v7003_v46 }
 0xfa1   :  { %13621 = vrcp.f32 %v7017_v1 }
 0xfa9   :  { %v13618_v53 = vpop.eup %13617 }
 0xfaa   :  { %v13620_v30 = vpop.eup %13619  ;;  %v7025_v27 = vmul.f32 %v13618_v53, %v13616_v54 }
 0xfab   :  { %v7023_v59 = vmul.f32 %v13620_v30, %v15999_v10  ;;  %v13622_v23 = vpop.eup %13621 }
 0xfad   :  { %v16099_v32 = vadd.f32 %v7025_v27, %v7023_v59 }
 0xfaf   :  { %13623 = vtanh.f32 %v16099_v32 }
 0xfb9   :  { %v13624_v17 = vpop.eup %13623 }
 0xfba   :  { %v16102_v29 = vmul.f32 %v13624_v17, %v13622_v23 }
 0xfbc   :  { %7100 = vmatmul.mubr.f32.vlgmr.msra.gmra.mrb[76].mxu0 %v16102_v29  ;;  %7175 = vmatmul.mubr.f32.vlgmr.msra.gmra.mrb[76].mxu1 %v16102_v29 }
 0xfbd   :  { %12029 = vmatpush1.bf16.msra.mxu0 %v15423_v7  ;;  %12061 = vmatpush1.bf16.msra.mxu1 %v15425_v38 }
 0xfbe   :  { %12031 = vmatprep.subr.bf16.mxu0 %v15429_v60  ;;  %12063 = vmatprep.subr.bf16.mxu1 %v15431_v58 }
 0xfbf   :  { %7105 = vmatprep.mubr.f32.mxu0 %v16996_v19  ;;  %7180 = vmatprep.mubr.f32.mxu1 %v16996_v19 }
 0xfc1   :  { %12033 = vmatpush1.bf16.msra.mxu0 %v15437_v0  ;;  %12065 = vmatpush1.bf16.msra.mxu1 %v15439_v12 }
 0xfc2   :  { %12035 = vmatprep.subr.bf16.mxu0 %v15443_v15  ;;  %12067 = vmatprep.subr.bf16.mxu1 %v17244_v3 }
 0xfc5   :  { %12037 = vmatpush1.bf16.msra.mxu0 %v17245_v9  ;;  %12069 = vmatpush1.bf16.msra.mxu1 %v17271_v2 }
 0xfc6   :  { %12039 = vmatprep.subr.bf16.mxu0 %v17273_v26  ;;  %12071 = vmatprep.subr.bf16.mxu1 %v17248_v28 }
 0xfc9   :  { %12041 = vmatpush1.bf16.msra.mxu0 %v17274_v49  ;;  %12073 = vmatpush1.bf16.msra.mxu1 %v17275_v25 }
 0xfca   :  { %12043 = vmatprep.subr.bf16.mxu0 %v17251_v41  ;;  %12075 = vmatprep.subr.bf16.mxu1 %v17252_v45 }
 0xfcd   :  { %12045 = vmatpush1.bf16.msra.mxu0 %v17253_v6  ;;  %12077 = vmatpush1.bf16.msra.mxu1 %v17254_v43 }
 0xfce   :  { %12047 = vmatprep.subr.bf16.mxu0 %v15485_v33  ;;  %12079 = vmatprep.subr.bf16.mxu1 %v15487_v13 }
 0xfd1   :  { %v6741_v10 = vpop.f32.mrb[116].mxu0  ;;  %v6816_v46 = vpop.f32.mrb[116].mxu1  ;;  %12049 = vmatpush1.bf16.msra.mxu0 %v15491_v63  ;;  %12081 = vmatpush1.bf16.msra.mxu1 %v15493_v52 }
 0xfd2   :  { %v6742_v18 = vpop.f32.mrb[117].mxu0  ;;  %v6817_v54 = vpop.f32.mrb[117].mxu1  ;;  %12051 = vmatprep.subr.bf16.mxu0 %v15497_v62  ;;  %12083 = vmatprep.subr.bf16.mxu1 %v15499_v39  ;;  %v17388_v46 = vld [vmem:[#allocation49_spill] sm:$0xff] }
 0xfd5   :  { %v6885_v35 = vpop.f32.mrb[118].mxu0  ;;  %v6960_v22 = vpop.f32.mrb[118].mxu1  ;;  %12053 = vmatpush1.bf16.msra.mxu0 %v15503_v24  ;;  %12085 = vmatpush1.bf16.msra.mxu1 %v15505_v5 }
 0xfd6   :  { %v6886_v40 = vpop.f32.mrb[119].mxu0  ;;  %v6961_v20 = vpop.f32.mrb[119].mxu1  ;;  %12055 = vmatprep.subr.bf16.mxu0 %v15509_v61  ;;  %12087 = vmatprep.subr.bf16.mxu1 %v15511_v8 }
 0xfd9   :  { %v6889_v53 = vpop.f32.mrb[84].mxu0  ;;  %v6964_v30 = vpop.f32.mrb[84].mxu1  ;;  %12057 = vmatpush1.bf16.msra.mxu0 %v15515_v47  ;;  %12089 = vmatpush1.bf16.msra.mxu1 %v15517_v16 }
 0xfda   :  { %v12958_v27 = vadd.f32 %v6889_v53, %v17270_v48  ;;  %v6891_v1 = vpop.f32.mrb[85].mxu0  ;;  %v6966_v59 = vpop.f32.mrb[85].mxu1  ;;  %12091 = vmatprep.subr.bf16.mxu0 %v15291_v56  ;;  %12123 = vmatprep.subr.bf16.mxu1 %v15293_v44  ;;  %v12974_v35 = vadd.f32 %v6964_v30, %v17272_v51 }
 0xfdb   :  { %v12959_v23 = vadd.f32 %v6891_v1, %v15593_v42  ;;  %v12975_v18 = vadd.f32 %v6966_v59, %v17388_v46 }
 0xfdc   :  { %v9745_v17 = vmul.f32 -1.442695, %v12958_v27 }
 0xfdd   :  { %v9747_v10 = vmul.f32 -1.442695, %v12959_v23  ;;  %v9749_v54 = vmul.f32 -1.442695, %v12975_v18 }
 0xfde   :  { %13625 = vpow2.f32 %v9745_v17 }
 0xfdf   :  { %13627 = vpow2.f32 %v9747_v10 }
 0xfe0   :  { %13629 = vpow2.f32 %v9749_v54 }
 0xfe1   :  { %13631 = vtanh.f32 %v12974_v35  ;;  %v17394_v35 = vld [vmem:[#allocation68_spill] sm:$0xff] }
 0xfe8   :  { %v13626_v22 = vpop.eup %13625 }
 0xfe9   :  { %v13628_v40 = vpop.eup %13627  ;;  %v6992_v20 = vadd.f32 1.0, %v13626_v22  ;;  %v17395_v22 = vld [vmem:[#allocation24_spill] sm:$0xff] }
 0xfea   :  { %v7004_v53 = vadd.f32 1.0, %v13628_v40  ;;  %v13630_v56 = vpop.eup %13629  ;;  %v17396_v40 = vld [vmem:[#allocation25_spill] sm:$0xff] }
 0xfeb   :  { %13633 = vrcp.f32 %v6992_v20  ;;  %v13632_v44 = vpop.eup %13631  ;;  %v7018_v17 = vadd.f32 1.0, %v13630_v56  ;;  %v17400_v20 = vld [vmem:[#allocation29_spill] sm:$0xff]  ;;  %v17402_v56 = vld [vmem:[#allocation31_spill] sm:$0xff] }
 0xfec   :  { %13635 = vrcp.f32 %v7004_v53  ;;  %v17401_v53 = vld [vmem:[#allocation30_spill] sm:$0xff] }
 0xfed   :  { %13637 = vrcp.f32 %v7018_v17  ;;  %v17407_v17 = vld [vmem:[#allocation36_spill] sm:$0xff] }
 0xff5   :  { %v13634_v1 = vpop.eup %13633 }
 0xff6   :  { %v13636_v27 = vpop.eup %13635  ;;  %v7026_v23 = vmul.f32 %v13634_v1, %v13632_v44  ;;  %v17403_v44 = vld [vmem:[#allocation32_spill] sm:$0xff]  ;;  %v17404_v1 = vld [vmem:[#allocation33_spill] sm:$0xff] }
 0xff7   :  { %v7024_v10 = vmul.f32 %v13636_v27, %v16045_v37  ;;  %v13638_v30 = vpop.eup %13637  ;;  %v17393_v37 = vld [vmem:[#allocation23_spill] sm:$0xff]  ;;  %v17405_v27 = vld [vmem:[#allocation34_spill] sm:$0xff] }
 0xff9   :  { %v16145_v59 = vadd.f32 %v7026_v23, %v7024_v10  ;;  %v17406_v23 = vld [vmem:[#allocation35_spill] sm:$0xff]  ;;  %v17408_v10 = vld [vmem:[#allocation37_spill] sm:$0xff] }
 0xffb   :  { %13639 = vtanh.f32 %v16145_v59 }
0x1005   :  { %v13640_v18 = vpop.eup %13639 }
0x1006   :  { %v16148_v54 = vmul.f32 %v13640_v18, %v13638_v30  ;;  %v17409_v30 = vld [vmem:[#allocation38_spill] sm:$0xff]  ;;  %v17410_v18 = vld [vmem:[#allocation39_spill] sm:$0xff] }
0x1008   :  { %7106 = vmatmul.mubr.f32.gmra.mrb[120].mxu0 %v16148_v54  ;;  %7181 = vmatmul.mubr.f32.gmra.mrb[120].mxu1 %v16148_v54 }
0x1009   :  { %7249 = vmatprep.mubr.f32.mxu0 %v16996_v19  ;;  %7324 = vmatprep.mubr.f32.mxu1 %v16996_v19 }
0x100c   :  { %7250 = vmatmul.mubr.f32.vlgmr.msra.gmra.mrb[122].mxu0 %v16102_v29  ;;  %7325 = vmatmul.mubr.f32.vlgmr.msra.gmra.mrb[122].mxu1 %v16102_v29 }
0x100d   :  { %7253 = vmatprep.mubr.f32.mxu0 %v16996_v19  ;;  %7328 = vmatprep.mubr.f32.mxu1 %v16996_v19 }
0x100e   :  { %12093 = vmatpush1.bf16.msra.mxu0 %v15297_v57  ;;  %12125 = vmatpush1.bf16.msra.mxu1 %v15299_v50  ;;  %v17389_v57 = vld [vmem:[#allocation53_spill] sm:$0xff]  ;;  %v17390_v50 = vld [vmem:[#allocation63_spill] sm:$0xff] }
0x100f   :  { %12095 = vmatprep.subr.bf16.mxu0 %v15301_v31  ;;  %12127 = vmatprep.subr.bf16.mxu1 %v15303_v34  ;;  %v17391_v31 = vld [vmem:[#allocation65_spill] sm:$0xff]  ;;  %v17392_v34 = vld [vmem:[#allocation67_spill] sm:$0xff] }
0x1010   :  { %7254 = vmatmul.mubr.f32.gmra.mrb[82].mxu0 %v16148_v54  ;;  %7329 = vmatmul.mubr.f32.gmra.mrb[82].mxu1 %v16148_v54 }
0x1011   :  { %7465 = vmatprep.mubr.f32.mxu0 %v16996_v19  ;;  %7540 = vmatprep.mubr.f32.mxu1 %v16996_v19 }
0x1012   :  { %12097 = vmatpush1.bf16.msra.mxu0 %v15311_v14  ;;  %12129 = vmatpush1.bf16.msra.mxu1 %v15313_v55  ;;  %v17397_v14 = vld [vmem:[#allocation26_spill] sm:$0xff]  ;;  %v17398_v55 = vld [vmem:[#allocation27_spill] sm:$0xff] }
0x1013   :  { %12099 = vmatprep.subr.bf16.mxu0 %v17361_v36  ;;  %12131 = vmatprep.subr.bf16.mxu1 %v17389_v57  ;;  %v17399_v36 = vld [vmem:[#allocation28_spill] sm:$0xff] }
0x1014   :  { %v17411_v57 = vld [vmem:[#allocation40_spill] sm:$0xff] }
0x1016   :  { %12101 = vmatpush1.bf16.msra.mxu0 %v17390_v50  ;;  %12133 = vmatpush1.bf16.msra.mxu1 %v17391_v31  ;;  %v17412_v50 = vld [vmem:[#allocation41_spill] sm:$0xff]  ;;  %v17413_v31 = vld [vmem:[#allocation42_spill] sm:$0xff] }
0x1017   :  { %12103 = vmatprep.subr.bf16.mxu0 %v17392_v34  ;;  %12135 = vmatprep.subr.bf16.mxu1 %v17393_v37 }
0x101a   :  { %12105 = vmatpush1.bf16.msra.mxu0 %v17394_v35  ;;  %12137 = vmatpush1.bf16.msra.mxu1 %v17395_v22  ;;  %v17414_v35 = vld [vmem:[#allocation58_spill] sm:$0xff] }
0x101b   :  { %12107 = vmatprep.subr.bf16.mxu0 %v17396_v40  ;;  %12139 = vmatprep.subr.bf16.mxu1 %v17397_v14 }
0x101e   :  { %12109 = vmatpush1.bf16.msra.mxu0 %v17398_v55  ;;  %12141 = vmatpush1.bf16.msra.mxu1 %v17399_v36 }
0x101f   :  { %12111 = vmatprep.subr.bf16.mxu0 %v17400_v20  ;;  %12143 = vmatprep.subr.bf16.mxu1 %v17401_v53 }
0x1022   :  { %12113 = vmatpush1.bf16.msra.mxu0 %v17402_v56  ;;  %12145 = vmatpush1.bf16.msra.mxu1 %v17403_v44 }
0x1023   :  { %12115 = vmatprep.subr.bf16.mxu0 %v17404_v1  ;;  %12147 = vmatprep.subr.bf16.mxu1 %v17405_v27 }
0x1026   :  { %12117 = vmatpush1.bf16.msra.mxu0 %v17406_v23  ;;  %12149 = vmatpush1.bf16.msra.mxu1 %v17407_v17 }
0x1027   :  { %12119 = vmatprep.subr.bf16.mxu0 %v17408_v10  ;;  %12151 = vmatprep.subr.bf16.mxu1 %v17409_v30 }
0x102a   :  { %12121 = vmatpush1.bf16.msra.mxu0 %v17410_v18  ;;  %12153 = vmatpush1.bf16.msra.mxu1 %v17411_v57 }
0x102b   :  { %12155 = vmatprep.subr.bf16.mxu0 %v17412_v50  ;;  %12187 = vmatprep.subr.bf16.mxu1 %v17413_v31 }
0x108f   :  { %v7101_v34 = vpop.f32.mrb[76].mxu0  ;;  %v7176_v37 = vpop.f32.mrb[76].mxu1 }
0x1090   :  { %v12934_v22 = vadd.f32 %v7101_v34, %v17414_v35  ;;  %v7103_v40 = vpop.f32.mrb[77].mxu0  ;;  %v7178_v14 = vpop.f32.mrb[77].mxu1  ;;  %v12950_v44 = vadd.f32 %v7176_v37, %v17300_v11 }
0x1091   :  { %v12935_v55 = vadd.f32 %v7103_v40, %v17298_v4  ;;  %v12951_v53 = vadd.f32 %v7178_v14, %v17299_v21 }
0x1092   :  { %v9750_v36 = vmul.f32 -1.442695, %v12934_v22 }
0x1093   :  { %v9752_v20 = vmul.f32 -1.442695, %v12935_v55  ;;  %v9754_v56 = vmul.f32 -1.442695, %v12951_v53  ;;  %v7788_v53 = vld [vmem:[#allocation14 + $0x28] sm:$0xff] }
0x1094   :  { %13641 = vpow2.f32 %v9750_v36 }
0x1095   :  { %13643 = vpow2.f32 %v9752_v20 }
0x1096   :  { %13645 = vpow2.f32 %v9754_v56  ;;  %v7783_v56 = vld [vmem:[#allocation14] sm:$0xff] }
0x1097   :  { %13647 = vtanh.f32 %v12950_v44 }
0x109e   :  { %v13642_v1 = vpop.eup %13641 }
0x109f   :  { %v13644_v27 = vpop.eup %13643  ;;  %v7357_v23 = vadd.f32 1.0, %v13642_v1  ;;  %v7787_v1 = vld [vmem:[#allocation14 + $0x20] sm:$0xff] }
0x10a0   :  { %v7369_v17 = vadd.f32 1.0, %v13644_v27  ;;  %v13646_v10 = vpop.eup %13645  ;;  %v7786_v27 = vld [vmem:[#allocation14 + $0x18] sm:$0xff] }
0x10a1   :  { %13649 = vrcp.f32 %v7357_v23  ;;  %v13648_v30 = vpop.eup %13647  ;;  %v7383_v31 = vadd.f32 1.0, %v13646_v10  ;;  %v7790_v23 = vld [vmem:[#allocation14 + $0x38] sm:$0xff] }
0x10a2   :  { %13651 = vrcp.f32 %v7369_v17  ;;  %v12220_v17 = vpack.c.bf16 %v7787_v1, %v7783_v56  ;;  %v12282_v10 = vpack.c.bf16 %v7790_v23, %v7786_v27  ;;  %v7818_v56 = vld [vmem:[#allocation14 + $0x118] sm:$0xff]  ;;  %v7815_v1 = vld [vmem:[#allocation14 + $0x100] sm:$0xff] }
0x10a3   :  { %13653 = vrcp.f32 %v7383_v31  ;;  %v7796_v31 = vld [vmem:[#allocation14 + $0x68] sm:$0xff]  ;;  %v7819_v27 = vld [vmem:[#allocation14 + $0x120] sm:$0xff] }
0x10ab   :  { %v13650_v18 = vpop.eup %13649 }
0x10ac   :  { %v13652_v57 = vpop.eup %13651  ;;  %v7391_v50 = vmul.f32 %v13650_v18, %v13648_v30  ;;  %v7785_v30 = vld [vmem:[#allocation14 + $0x10] sm:$0xff] }
0x10ad   :  { %v7389_v34 = vmul.f32 %v13652_v57, %v16099_v32  ;;  %v13654_v37 = vpop.eup %13653  ;;  %v7789_v18 = vld [vmem:[#allocation14 + $0x30] sm:$0xff]  ;;  %v7792_v57 = vld [vmem:[#allocation14 + $0x48] sm:$0xff] }
0x10af   :  { %v16199_v22 = vadd.f32 %v7391_v50, %v7389_v34  ;;  %v12284_v50 = vpack.c.bf16 %v7789_v18, %v7785_v30  ;;  %v7791_v34 = vld [vmem:[#allocation14 + $0x40] sm:$0xff]  ;;  %v7821_v30 = vld [vmem:[#allocation14 + $0x130] sm:$0xff] }
0x10b1   :  { %13655 = vtanh.f32 %v16199_v22 }
0x10bb   :  { %v13656_v40 = vpop.eup %13655 }
0x10bc   :  { %v16202_v14 = vmul.f32 %v13656_v40, %v13654_v37  ;;  %v7795_v37 = vld [vmem:[#allocation14 + $0x60] sm:$0xff]  ;;  %v12222_v40 = vpack.c.bf16 %v7796_v31, %v7792_v57  ;;  %v7824_v57 = vld [vmem:[#allocation14 + $0x148] sm:$0xff]  ;;  %v7826_v31 = vld [vmem:[#allocation14 + $0x158] sm:$0xff] }
0x10be   :  { %7466 = vmatmul.mubr.f32.vlgmr.msra.gmra.mrb[78].mxu0 %v16202_v14  ;;  %7541 = vmatmul.mubr.f32.vlgmr.msra.gmra.mrb[78].mxu1 %v16202_v14 }
0x10bf   :  { %12157 = vmatpush1.bf16.msra.mxu0 %v15423_v7  ;;  %12189 = vmatpush1.bf16.msra.mxu1 %v15425_v38 }
0x10c0   :  { %12159 = vmatprep.subr.bf16.mxu0 %v15429_v60  ;;  %12191 = vmatprep.subr.bf16.mxu1 %v15431_v58 }
0x10c1   :  { %7471 = vmatprep.mubr.f32.mxu0 %v16996_v19  ;;  %7546 = vmatprep.mubr.f32.mxu1 %v16996_v19 }
0x10c3   :  { %12161 = vmatpush1.bf16.msra.mxu0 %v15437_v0  ;;  %12193 = vmatpush1.bf16.msra.mxu1 %v15439_v12 }
0x10c4   :  { %12163 = vmatprep.subr.bf16.mxu0 %v15443_v15  ;;  %12195 = vmatprep.subr.bf16.mxu1 %v17244_v3 }
0x10c7   :  { %12165 = vmatpush1.bf16.msra.mxu0 %v17245_v9  ;;  %12197 = vmatpush1.bf16.msra.mxu1 %v17271_v2 }
0x10c8   :  { %12167 = vmatprep.subr.bf16.mxu0 %v17273_v26  ;;  %12199 = vmatprep.subr.bf16.mxu1 %v17248_v28 }
0x10cb   :  { %12169 = vmatpush1.bf16.msra.mxu0 %v17274_v49  ;;  %12201 = vmatpush1.bf16.msra.mxu1 %v17275_v25 }
0x10cc   :  { %12171 = vmatprep.subr.bf16.mxu0 %v17251_v41  ;;  %12203 = vmatprep.subr.bf16.mxu1 %v17252_v45 }
0x10cf   :  { %12173 = vmatpush1.bf16.msra.mxu0 %v17253_v6  ;;  %12205 = vmatpush1.bf16.msra.mxu1 %v17254_v43 }
0x10d0   :  { %12175 = vmatprep.subr.bf16.mxu0 %v15485_v33  ;;  %12207 = vmatprep.subr.bf16.mxu1 %v15487_v13 }
0x10d3   :  { %12177 = vmatpush1.bf16.msra.mxu0 %v15491_v63  ;;  %12209 = vmatpush1.bf16.msra.mxu1 %v15493_v52 }
0x10d4   :  { %12179 = vmatprep.subr.bf16.mxu0 %v15497_v62  ;;  %12211 = vmatprep.subr.bf16.mxu1 %v15499_v39 }
0x10d7   :  { %12181 = vmatpush1.bf16.msra.mxu0 %v15503_v24  ;;  %12213 = vmatpush1.bf16.msra.mxu1 %v15505_v5 }
0x10d8   :  { %12183 = vmatprep.subr.bf16.mxu0 %v15509_v61  ;;  %12215 = vmatprep.subr.bf16.mxu1 %v15511_v8 }
0x10db   :  { %v7107_v7 = vpop.f32.mrb[120].mxu0  ;;  %v7182_v38 = vpop.f32.mrb[120].mxu1  ;;  %12185 = vmatpush1.bf16.msra.mxu0 %v15515_v47  ;;  %12217 = vmatpush1.bf16.msra.mxu1 %v15517_v16 }
0x10dc   :  { %v7108_v60 = vpop.f32.mrb[121].mxu0  ;;  %v7183_v58 = vpop.f32.mrb[121].mxu1  ;;  %12283 = vmatprep.subr.bf16.mxu1 %v12282_v10  ;;  %v12224_v7 = vpack.c.bf16 %v7795_v37, %v7791_v34  ;;  %v7794_v38 = vld [vmem:[#allocation14 + $0x58] sm:$0xff]  ;;  %v12236_v10 = vpack.c.bf16 %v7819_v27, %v7815_v1  ;;  %v7823_v37 = vld [vmem:[#allocation14 + $0x140] sm:$0xff] }
0x10dd   :  { %v7798_v60 = vld [vmem:[#allocation14 + $0x78] sm:$0xff]  ;;  %v7793_v58 = vld [vmem:[#allocation14 + $0x50] sm:$0xff] }
0x10de   :  { %v7854_v1 = vld [vmem:[#allocation14 + $0x238] sm:$0xff] }
0x10df   :  { %v7251_v0 = vpop.f32.mrb[122].mxu0  ;;  %v7326_v12 = vpop.f32.mrb[122].mxu1 }
0x10e0   :  { %v7252_v15 = vpop.f32.mrb[123].mxu0  ;;  %v7327_v33 = vpop.f32.mrb[123].mxu1  ;;  %v12286_v0 = vpack.c.bf16 %v7798_v60, %v7794_v38  ;;  %v7797_v12 = vld [vmem:[#allocation14 + $0x70] sm:$0xff] }
0x10e1   :  { %v7800_v15 = vld [vmem:[#allocation14 + $0x88] sm:$0xff] }
0x10e2   :  { %v7804_v33 = vld [vmem:[#allocation14 + $0xa8] sm:$0xff] }
0x10e3   :  { %v7255_v13 = vpop.f32.mrb[82].mxu0  ;;  %v7330_v63 = vpop.f32.mrb[82].mxu1 }
0x10e4   :  { %v12956_v52 = vadd.f32 %v7255_v13, %v17270_v48  ;;  %v7257_v62 = vpop.f32.mrb[83].mxu0  ;;  %v7332_v39 = vpop.f32.mrb[83].mxu1  ;;  %v12972_v16 = vadd.f32 %v7330_v63, %v17272_v51  ;;  %v12288_v13 = vpack.c.bf16 %v7797_v12, %v7793_v58  ;;  %v12226_v63 = vpack.c.bf16 %v7804_v33, %v7800_v15  ;;  %v7825_v58 = vld [vmem:[#allocation14 + $0x150] sm:$0xff]  ;;  %v7832_v15 = vld [vmem:[#allocation14 + $0x188] sm:$0xff] }
0x10e5   :  { %v12957_v24 = vadd.f32 %v7257_v62, %v15593_v42  ;;  %v12973_v8 = vadd.f32 %v7332_v39, %v17388_v46  ;;  %v7806_v62 = vld [vmem:[#allocation14 + $0xb8] sm:$0xff]  ;;  %v7799_v39 = vld [vmem:[#allocation14 + $0x80] sm:$0xff]  ;;  %v7836_v33 = vld [vmem:[#allocation14 + $0x1a8] sm:$0xff] }
0x10e6   :  { %v9751_v5 = vmul.f32 -1.442695, %v12956_v52  ;;  %v7802_v52 = vld [vmem:[#allocation14 + $0x98] sm:$0xff] }
0x10e7   :  { %v9753_v61 = vmul.f32 -1.442695, %v12957_v24  ;;  %v9755_v47 = vmul.f32 -1.442695, %v12973_v8  ;;  %v7803_v24 = vld [vmem:[#allocation14 + $0xa0] sm:$0xff] }
0x10e8   :  { %13657 = vpow2.f32 %v9751_v5  ;;  %v12290_v5 = vpack.c.bf16 %v7806_v62, %v7802_v52  ;;  %v12228_v8 = vpack.c.bf16 %v7803_v24, %v7799_v39  ;;  %v7831_v52 = vld [vmem:[#allocation14 + $0x180] sm:$0xff]  ;;  %v7838_v39 = vld [vmem:[#allocation14 + $0x1b8] sm:$0xff] }
0x10e9   :  { %13659 = vpow2.f32 %v9753_v61  ;;  %v7801_v61 = vld [vmem:[#allocation14 + $0x90] sm:$0xff]  ;;  %v7835_v62 = vld [vmem:[#allocation14 + $0x1a0] sm:$0xff] }
0x10ea   :  { %13661 = vpow2.f32 %v9755_v47  ;;  %v7805_v47 = vld [vmem:[#allocation14 + $0xb0] sm:$0xff]  ;;  %v12244_v24 = vpack.c.bf16 %v7835_v62, %v7831_v52  ;;  %v7867_v52 = vld [vmem:[#allocation14 + $0x2a0] sm:$0xff]  ;;  %v7870_v62 = vld [vmem:[#allocation14 + $0x2b8] sm:$0xff] }
0x10eb   :  { %13663 = vtanh.f32 %v12972_v16  ;;  %v12292_v16 = vpack.c.bf16 %v7805_v47, %v7801_v61  ;;  %v7833_v61 = vld [vmem:[#allocation14 + $0x190] sm:$0xff] }
0x10f2   :  { %v13658_v3 = vpop.eup %13657 }
0x10f3   :  { %v13660_v9 = vpop.eup %13659  ;;  %v7358_v28 = vadd.f32 1.0, %v13658_v3  ;;  %v7808_v3 = vld [vmem:[#allocation14 + $0xc8] sm:$0xff] }
0x10f4   :  { %v7370_v41 = vadd.f32 1.0, %v13660_v9  ;;  %v13662_v45 = vpop.eup %13661  ;;  %v7812_v9 = vld [vmem:[#allocation14 + $0xe8] sm:$0xff] }
0x10f5   :  { %13665 = vrcp.f32 %v7358_v28  ;;  %v13664_v6 = vpop.eup %13663  ;;  %v7384_v49 = vadd.f32 1.0, %v13662_v45  ;;  %v12230_v28 = vpack.c.bf16 %v7812_v9, %v7808_v3  ;;  %v7814_v45 = vld [vmem:[#allocation14 + $0xf8] sm:$0xff]  ;;  %v7844_v3 = vld [vmem:[#allocation14 + $0x1e8] sm:$0xff] }
0x10f6   :  { %13667 = vrcp.f32 %v7370_v41  ;;  %v7810_v41 = vld [vmem:[#allocation14 + $0xd8] sm:$0xff] }
0x10f7   :  { %13669 = vrcp.f32 %v7384_v49  ;;  %v7842_v9 = vld [vmem:[#allocation14 + $0x1d8] sm:$0xff] }
0x10ff   :  { %v13666_v43 = vpop.eup %13665 }
0x1100   :  { %v13668_v2 = vpop.eup %13667  ;;  %v7392_v26 = vmul.f32 %v13666_v43, %v13664_v6  ;;  %v7807_v6 = vld [vmem:[#allocation14 + $0xc0] sm:$0xff] }
0x1101   :  { %v7390_v25 = vmul.f32 %v13668_v2, %v16145_v59  ;;  %v13670_v55 = vpop.eup %13669  ;;  %v7784_v59 = vld [vmem:[#allocation14 + $0x8] sm:$0xff]  ;;  %v7811_v43 = vld [vmem:[#allocation14 + $0xe0] sm:$0xff]  ;;  %v12294_v2 = vpack.c.bf16 %v7814_v45, %v7810_v41 }
0x1102   :  { %v12218_v44 = vpack.c.bf16 %v7788_v53, %v7784_v59  ;;  %v12232_v49 = vpack.c.bf16 %v7811_v43, %v7807_v6  ;;  %v7820_v59 = vld [vmem:[#allocation14 + $0x128] sm:$0xff]  ;;  %v7839_v41 = vld [vmem:[#allocation14 + $0x1c0] sm:$0xff]  ;;  %v7846_v6 = vld [vmem:[#allocation14 + $0x1f8] sm:$0xff] }
0x1103   :  { %v16243_v32 = vadd.f32 %v7392_v26, %v7390_v25  ;;  %v7809_v26 = vld [vmem:[#allocation14 + $0xd0] sm:$0xff]  ;;  %v7843_v45 = vld [vmem:[#allocation14 + $0x1e0] sm:$0xff] }
0x1104   :  { %12219 = vmatprep.subr.bf16.mxu0 %v12218_v44  ;;  %v7813_v25 = vld [vmem:[#allocation14 + $0xf0] sm:$0xff]  ;;  %v7822_v44 = vld [vmem:[#allocation14 + $0x138] sm:$0xff]  ;;  %v12248_v43 = vpack.c.bf16 %v7843_v45, %v7839_v41  ;;  %v7875_v41 = vld [vmem:[#allocation14 + $0x2e0] sm:$0xff] }
0x1105   :  { %13671 = vtanh.f32 %v16243_v32  ;;  %v12298_v23 = vpack.c.bf16 %v7822_v44, %v7818_v56  ;;  %v7847_v56 = vld [vmem:[#allocation14 + $0x200] sm:$0xff]  ;;  %v7878_v45 = vld [vmem:[#allocation14 + $0x2f8] sm:$0xff] }
0x1106   :  { %v7851_v44 = vld [vmem:[#allocation14 + $0x220] sm:$0xff] }
0x1107   :  { %v12252_v27 = vpack.c.bf16 %v7851_v44, %v7847_v56  ;;  %v7882_v56 = vld [vmem:[#allocation14 + $0x318] sm:$0xff] }
0x1108   :  { %v7886_v44 = vld [vmem:[#allocation14 + $0x338] sm:$0xff] }
0x110f   :  { %v13672_v36 = vpop.eup %13671 }
0x1110   :  { %v16246_v20 = vmul.f32 %v13672_v36, %v13670_v55  ;;  %v12296_v55 = vpack.c.bf16 %v7813_v25, %v7809_v26  ;;  %v7816_v36 = vld [vmem:[#allocation14 + $0x108] sm:$0xff]  ;;  %v7841_v26 = vld [vmem:[#allocation14 + $0x1d0] sm:$0xff] }
0x1111   :  { %v12234_v53 = vpack.c.bf16 %v7820_v59, %v7816_v36  ;;  %v7852_v36 = vld [vmem:[#allocation14 + $0x228] sm:$0xff]  ;;  %v7850_v59 = vld [vmem:[#allocation14 + $0x218] sm:$0xff] }
0x1112   :  { %7472 = vmatmul.mubr.f32.gmra.mrb[124].mxu0 %v16246_v20  ;;  %7547 = vmatmul.mubr.f32.gmra.mrb[124].mxu1 %v16246_v20 }
0x1113   :  { %7615 = vmatprep.mubr.f32.mxu0 %v16996_v19  ;;  %7690 = vmatprep.mubr.f32.mxu1 %v16996_v19 }
0x1116   :  { %7616 = vmatmul.mubr.f32.vlgmr.msra.gmra.mrb[126].mxu0 %v16202_v14  ;;  %7691 = vmatmul.mubr.f32.vlgmr.msra.gmra.mrb[126].mxu1 %v16202_v14 }
0x1117   :  { %7619 = vmatprep.mubr.f32.mxu0 %v16996_v19  ;;  %7694 = vmatprep.mubr.f32.mxu1 %v16996_v19 }
0x1118   :  { %12221 = vmatpush1.bf16.msra.mxu0 %v12220_v17  ;;  %12285 = vmatpush1.bf16.msra.mxu1 %v12284_v50  ;;  %v7817_v17 = vld [vmem:[#allocation14 + $0x110] sm:$0xff]  ;;  %v7828_v50 = vld [vmem:[#allocation14 + $0x168] sm:$0xff] }
0x1119   :  { %12223 = vmatprep.subr.bf16.mxu0 %v12222_v40  ;;  %12287 = vmatprep.subr.bf16.mxu1 %v12286_v0  ;;  %v12300_v18 = vpack.c.bf16 %v7821_v30, %v7817_v17  ;;  %v12238_v34 = vpack.c.bf16 %v7828_v50, %v7824_v57  ;;  %v7827_v40 = vld [vmem:[#allocation14 + $0x160] sm:$0xff]  ;;  %v7829_v0 = vld [vmem:[#allocation14 + $0x170] sm:$0xff]  ;;  %v7860_v57 = vld [vmem:[#allocation14 + $0x268] sm:$0xff] }
0x111a   :  { %7620 = vmatmul.mubr.f32.gmra.mrb[80].mxu0 %v16246_v20  ;;  %7695 = vmatmul.mubr.f32.gmra.mrb[80].mxu1 %v16246_v20  ;;  %v12240_v38 = vpack.c.bf16 %v7827_v40, %v7823_v37  ;;  %v12304_v12 = vpack.c.bf16 %v7829_v0, %v7825_v58  ;;  %v7849_v17 = vld [vmem:[#allocation14 + $0x210] sm:$0xff]  ;;  %v7858_v50 = vld [vmem:[#allocation14 + $0x258] sm:$0xff]  ;;  %v7859_v37 = vld [vmem:[#allocation14 + $0x260] sm:$0xff] }
0x111b   :  { %v7862_v40 = vld [vmem:[#allocation14 + $0x278] sm:$0xff]  ;;  %v7861_v58 = vld [vmem:[#allocation14 + $0x270] sm:$0xff] }
0x111c   :  { %12225 = vmatpush1.bf16.msra.mxu0 %v12224_v7  ;;  %12289 = vmatpush1.bf16.msra.mxu1 %v12288_v13  ;;  %v7830_v7 = vld [vmem:[#allocation14 + $0x178] sm:$0xff] }
0x111d   :  { %12227 = vmatprep.subr.bf16.mxu0 %v12226_v63  ;;  %12291 = vmatprep.subr.bf16.mxu1 %v12290_v5  ;;  %v12302_v60 = vpack.c.bf16 %v7830_v7, %v7826_v31  ;;  %v7834_v13 = vld [vmem:[#allocation14 + $0x198] sm:$0xff]  ;;  %v12242_v63 = vpack.c.bf16 %v7836_v33, %v7832_v15  ;;  %v7868_v15 = vld [vmem:[#allocation14 + $0x2a8] sm:$0xff] }
0x111e   :  { %v12306_v5 = vpack.c.bf16 %v7838_v39, %v7834_v13  ;;  %v7866_v33 = vld [vmem:[#allocation14 + $0x298] sm:$0xff] }
0x1120   :  { %12229 = vmatpush1.bf16.msra.mxu0 %v12228_v8  ;;  %12293 = vmatpush1.bf16.msra.mxu1 %v12292_v16  ;;  %v7837_v8 = vld [vmem:[#allocation14 + $0x1b0] sm:$0xff]  ;;  %v7840_v16 = vld [vmem:[#allocation14 + $0x1c8] sm:$0xff] }
0x1121   :  { %12231 = vmatprep.subr.bf16.mxu0 %v12230_v28  ;;  %12295 = vmatprep.subr.bf16.mxu1 %v12294_v2  ;;  %v12308_v47 = vpack.c.bf16 %v7837_v8, %v7833_v61  ;;  %v12246_v28 = vpack.c.bf16 %v7844_v3, %v7840_v16  ;;  %v12310_v2 = vpack.c.bf16 %v7846_v6, %v7842_v9  ;;  %v7869_v61 = vld [vmem:[#allocation14 + $0x2b0] sm:$0xff]  ;;  %v7876_v16 = vld [vmem:[#allocation14 + $0x2e8] sm:$0xff]  ;;  %v7874_v3 = vld [vmem:[#allocation14 + $0x2d8] sm:$0xff] }
0x1124   :  { %12233 = vmatpush1.bf16.msra.mxu0 %v12232_v49  ;;  %12297 = vmatpush1.bf16.msra.mxu1 %v12296_v55  ;;  %v7845_v49 = vld [vmem:[#allocation14 + $0x1f0] sm:$0xff]  ;;  %v7848_v55 = vld [vmem:[#allocation14 + $0x208] sm:$0xff] }
0x1125   :  { %12235 = vmatprep.subr.bf16.mxu0 %v12234_v53  ;;  %12299 = vmatprep.subr.bf16.mxu1 %v12298_v23  ;;  %v12312_v25 = vpack.c.bf16 %v7845_v49, %v7841_v26  ;;  %v12250_v53 = vpack.c.bf16 %v7852_v36, %v7848_v55  ;;  %v12314_v23 = vpack.c.bf16 %v7854_v1, %v7850_v59  ;;  %v7877_v26 = vld [vmem:[#allocation14 + $0x2f0] sm:$0xff]  ;;  %v7884_v55 = vld [vmem:[#allocation14 + $0x328] sm:$0xff]  ;;  %v7879_v36 = vld [vmem:[#allocation14 + $0x300] sm:$0xff] }
0x1128   :  { %12237 = vmatpush1.bf16.msra.mxu0 %v12236_v10  ;;  %12301 = vmatpush1.bf16.msra.mxu1 %v12300_v18  ;;  %v7853_v10 = vld [vmem:[#allocation14 + $0x230] sm:$0xff]  ;;  %v7856_v18 = vld [vmem:[#allocation14 + $0x248] sm:$0xff] }
0x1129   :  { %12239 = vmatprep.subr.bf16.mxu0 %v12238_v34  ;;  %12303 = vmatprep.subr.bf16.mxu1 %v12302_v60  ;;  %v12316_v30 = vpack.c.bf16 %v7853_v10, %v7849_v17  ;;  %v12254_v31 = vpack.c.bf16 %v7860_v57, %v7856_v18  ;;  %v7855_v34 = vld [vmem:[#allocation14 + $0x240] sm:$0xff]  ;;  %v7857_v60 = vld [vmem:[#allocation14 + $0x250] sm:$0xff]  ;;  %v7888_v10 = vld [vmem:[#allocation14 + $0x348] sm:$0xff] }
0x112a   :  { %v12256_v7 = vpack.c.bf16 %v7859_v37, %v7855_v34  ;;  %v12320_v0 = vpack.c.bf16 %v7861_v58, %v7857_v60  ;;  %v7885_v17 = vld [vmem:[#allocation14 + $0x330] sm:$0xff]  ;;  %v7892_v18 = vld [vmem:[#allocation14 + $0x368] sm:$0xff]  ;;  %v7887_v57 = vld [vmem:[#allocation14 + $0x340] sm:$0xff] }
0x112b   :  { %v7890_v37 = vld [vmem:[#allocation14 + $0x358] sm:$0xff]  ;;  %v7893_v60 = vld [vmem:[#allocation14 + $0x370] sm:$0xff]  ;;  %v7896_v58 = vld [vmem:[#allocation14 + $0x388] sm:$0xff] }
0x112c   :  { %12241 = vmatpush1.bf16.msra.mxu0 %v12240_v38  ;;  %12305 = vmatpush1.bf16.msra.mxu1 %v12304_v12  ;;  %v12318_v38 = vpack.c.bf16 %v7862_v40, %v7858_v50  ;;  %v7864_v12 = vld [vmem:[#allocation14 + $0x288] sm:$0xff]  ;;  %v7891_v50 = vld [vmem:[#allocation14 + $0x360] sm:$0xff]  ;;  %v7894_v40 = vld [vmem:[#allocation14 + $0x378] sm:$0xff] }
0x112d   :  { %12243 = vmatprep.subr.bf16.mxu0 %v12242_v63  ;;  %12307 = vmatprep.subr.bf16.mxu1 %v12306_v5  ;;  %v12258_v13 = vpack.c.bf16 %v7868_v15, %v7864_v12  ;;  %v7863_v63 = vld [vmem:[#allocation14 + $0x280] sm:$0xff]  ;;  %v7865_v5 = vld [vmem:[#allocation14 + $0x290] sm:$0xff]  ;;  %v12272_v34 = vpack.c.bf16 %v7891_v50, %v7887_v57 }
0x112e   :  { %v12260_v39 = vpack.c.bf16 %v7867_v52, %v7863_v63  ;;  %v12324_v8 = vpack.c.bf16 %v7869_v61, %v7865_v5  ;;  %v7895_v63 = vld [vmem:[#allocation14 + $0x380] sm:$0xff]  ;;  %v7902_v61 = vld [vmem:[#allocation14 + $0x3b8] sm:$0xff] }
0x112f   :  { %v7899_v52 = vld [vmem:[#allocation14 + $0x3a0] sm:$0xff] }
0x1130   :  { %12245 = vmatpush1.bf16.msra.mxu0 %v12244_v24  ;;  %12309 = vmatpush1.bf16.msra.mxu1 %v12308_v47  ;;  %v12322_v24 = vpack.c.bf16 %v7870_v62, %v7866_v33  ;;  %v7872_v47 = vld [vmem:[#allocation14 + $0x2c8] sm:$0xff]  ;;  %v7898_v62 = vld [vmem:[#allocation14 + $0x398] sm:$0xff] }
0x1131   :  { %12247 = vmatprep.subr.bf16.mxu0 %v12246_v28  ;;  %12311 = vmatprep.subr.bf16.mxu1 %v12310_v2  ;;  %v12262_v9 = vpack.c.bf16 %v7876_v16, %v7872_v47  ;;  %v7871_v28 = vld [vmem:[#allocation14 + $0x2c0] sm:$0xff]  ;;  %v7873_v2 = vld [vmem:[#allocation14 + $0x2d0] sm:$0xff] }
0x1132   :  { %v12264_v6 = vpack.c.bf16 %v7875_v41, %v7871_v28  ;;  %v12328_v49 = vpack.c.bf16 %v7877_v26, %v7873_v2  ;;  %v7901_v47 = vld [vmem:[#allocation14 + $0x3b0] sm:$0xff]  ;;  %v7904_v28 = vld [vmem:[#allocation14 + $0x3c8] sm:$0xff]  ;;  %v7906_v26 = vld [vmem:[#allocation14 + $0x3d8] sm:$0xff] }
0x1133   :  { %v7908_v41 = vld [vmem:[#allocation14 + $0x3e8] sm:$0xff] }
0x1134   :  { %12249 = vmatpush1.bf16.msra.mxu0 %v12248_v43  ;;  %12313 = vmatpush1.bf16.msra.mxu1 %v12312_v25  ;;  %v12326_v43 = vpack.c.bf16 %v7878_v45, %v7874_v3  ;;  %v7880_v25 = vld [vmem:[#allocation14 + $0x308] sm:$0xff]  ;;  %v12276_v3 = vpack.c.bf16 %v7899_v52, %v7895_v63  ;;  %v7903_v45 = vld [vmem:[#allocation14 + $0x3c0] sm:$0xff]  ;;  %v12278_v2 = vpack.c.bf16 %v7908_v41, %v7904_v28 }
0x1135   :  { %12251 = vmatprep.subr.bf16.mxu0 %v12250_v53  ;;  %12315 = vmatprep.subr.bf16.mxu1 %v12314_v23  ;;  %v12266_v59 = vpack.c.bf16 %v7884_v55, %v7880_v25  ;;  %v7883_v53 = vld [vmem:[#allocation14 + $0x320] sm:$0xff]  ;;  %v7881_v23 = vld [vmem:[#allocation14 + $0x310] sm:$0xff] }
0x1136   :  { %v12268_v1 = vpack.c.bf16 %v7883_v53, %v7879_v36  ;;  %v7905_v36 = vld [vmem:[#allocation14 + $0x3d0] sm:$0xff] }
0x1138   :  { %12253 = vmatpush1.bf16.msra.mxu0 %v12252_v27  ;;  %12317 = vmatpush1.bf16.msra.mxu1 %v12316_v30  ;;  %v12330_v27 = vpack.c.bf16 %v7886_v44, %v7882_v56  ;;  %v12332_v30 = vpack.c.bf16 %v7885_v17, %v7881_v23  ;;  %v8192_v44 = vld [vmem:[#allocation16 + $0x8] sm:$0xff] }
0x1139   :  { %12255 = vmatprep.subr.bf16.mxu0 %v12254_v31  ;;  %12319 = vmatprep.subr.bf16.mxu1 %v12318_v38  ;;  %v12270_v31 = vpack.c.bf16 %v7892_v18, %v7888_v10  ;;  %v12334_v38 = vpack.c.bf16 %v7894_v40, %v7890_v37  ;;  %v8194_v10 = vld [vmem:[#allocation16 + $0x18] sm:$0xff] }
0x113c   :  { %12257 = vmatpush1.bf16.msra.mxu0 %v12256_v7  ;;  %12321 = vmatpush1.bf16.msra.mxu1 %v12320_v0  ;;  %v7889_v7 = vld [vmem:[#allocation14 + $0x350] sm:$0xff]  ;;  %v7900_v0 = vld [vmem:[#allocation14 + $0x3a8] sm:$0xff] }
0x113d   :  { %12259 = vmatprep.subr.bf16.mxu0 %v12258_v13  ;;  %12323 = vmatprep.subr.bf16.mxu1 %v12322_v24  ;;  %v12336_v33 = vpack.c.bf16 %v7893_v60, %v7889_v7  ;;  %v12274_v13 = vpack.c.bf16 %v7900_v0, %v7896_v58 }
0x1140   :  { %12261 = vmatpush1.bf16.msra.mxu0 %v12260_v39  ;;  %12325 = vmatpush1.bf16.msra.mxu1 %v12324_v8  ;;  %v7897_v8 = vld [vmem:[#allocation14 + $0x390] sm:$0xff] }
0x1141   :  { %12263 = vmatprep.subr.bf16.mxu0 %v12262_v9  ;;  %12327 = vmatprep.subr.bf16.mxu1 %v12326_v43  ;;  %v12338_v9 = vpack.c.bf16 %v7902_v61, %v7898_v62  ;;  %v12340_v43 = vpack.c.bf16 %v7901_v47, %v7897_v8 }
0x1144   :  { %12265 = vmatpush1.bf16.msra.mxu0 %v12264_v6  ;;  %12329 = vmatpush1.bf16.msra.mxu1 %v12328_v49  ;;  %v7910_v49 = vld [vmem:[#allocation14 + $0x3f8] sm:$0xff] }
0x1145   :  { %12267 = vmatprep.subr.bf16.mxu0 %v12266_v59  ;;  %12331 = vmatprep.subr.bf16.mxu1 %v12330_v27  ;;  %v12342_v55 = vpack.c.bf16 %v7910_v49, %v7906_v26  ;;  %v7909_v59 = vld [vmem:[#allocation14 + $0x3f0] sm:$0xff] }
0x1146   :  { %v12344_v53 = vpack.c.bf16 %v7909_v59, %v7905_v36 }
0x1148   :  { %12269 = vmatpush1.bf16.msra.mxu0 %v12268_v1  ;;  %12333 = vmatpush1.bf16.msra.mxu1 %v12332_v30  ;;  %v8196_v1 = vld [vmem:[#allocation16 + $0x28] sm:$0xff]  ;;  %v8198_v30 = vld [vmem:[#allocation16 + $0x38] sm:$0xff] }
0x1149   :  { %12271 = vmatprep.subr.bf16.mxu0 %v12270_v31  ;;  %12335 = vmatprep.subr.bf16.mxu1 %v12334_v38  ;;  %v16261_v23 = vpack.c.bf16 %v8196_v1, %v8192_v44  ;;  %v16265_v57 = vpack.c.bf16 %v8198_v30, %v8194_v10  ;;  %v8204_v44 = vld [vmem:[#allocation16 + $0x68] sm:$0xff] }
0x114c   :  { %12273 = vmatpush1.bf16.msra.mxu0 %v12272_v34  ;;  %12337 = vmatpush1.bf16.msra.mxu1 %v12336_v33 }
0x114d   :  { %12275 = vmatprep.subr.bf16.mxu0 %v12274_v13  ;;  %12339 = vmatprep.subr.bf16.mxu1 %v12338_v9 }
0x1150   :  { %12277 = vmatpush1.bf16.msra.mxu0 %v12276_v3  ;;  %12341 = vmatpush1.bf16.msra.mxu1 %v12340_v43 }
0x1151   :  { %12279 = vmatprep.subr.bf16.mxu0 %v12278_v2  ;;  %12343 = vmatprep.subr.bf16.mxu1 %v12342_v55 }
0x1154   :  { %12345 = vmatpush1.bf16.msra.mxu1 %v12344_v53 }
0x1155   :  { %12379 = vmatprep.subr.bf16.mxu1 %v16265_v57 }
0x1191   :  { %v7467_v12 = vpop.f32.mrb[78].mxu0  ;;  %v7542_v15 = vpop.f32.mrb[78].mxu1 }
0x1192   :  { %v12936_v39 = vadd.f32 %v7467_v12, %v17414_v35  ;;  %v7469_v24 = vpop.f32.mrb[79].mxu0  ;;  %v7544_v5 = vpop.f32.mrb[79].mxu1  ;;  %v7907_v35 = vld [vmem:[#allocation14 + $0x3e0] sm:$0xff]  ;;  %v12952_v17 = vadd.f32 %v7542_v15, %v17300_v11 }
0x1193   :  { %v12937_v16 = vadd.f32 %v7469_v24, %v17298_v4  ;;  %v12280_v4 = vpack.c.bf16 %v7907_v35, %v7903_v45  ;;  %v12953_v56 = vadd.f32 %v7544_v5, %v17299_v21 }
0x1194   :  { %v9756_v6 = vmul.f32 -1.442695, %v12936_v39 }
0x1195   :  { %v9758_v25 = vmul.f32 -1.442695, %v12937_v16  ;;  %12281 = vmatpush1.bf16.msra.mxu0 %v12280_v4  ;;  %v9760_v27 = vmul.f32 -1.442695, %v12953_v56  ;;  %v8195_v4 = vld [vmem:[#allocation16 + $0x20] sm:$0xff]  ;;  %v8200_v56 = vld [vmem:[#allocation16 + $0x48] sm:$0xff] }
0x1196   :  { %13673 = vpow2.f32 %v9756_v6  ;;  %12347 = vmatprep.subr.bf16.mxu0 %v16261_v23 }
0x1197   :  { %13675 = vpow2.f32 %v9758_v25 }
0x1198   :  { %13677 = vpow2.f32 %v9760_v27  ;;  %v8193_v27 = vld [vmem:[#allocation16 + $0x10] sm:$0xff] }
0x1199   :  { %13679 = vtanh.f32 %v12952_v17  ;;  %v8197_v17 = vld [vmem:[#allocation16 + $0x30] sm:$0xff] }
0x11a0   :  { %v13674_v18 = vpop.eup %13673 }
0x11a1   :  { %v13676_v50 = vpop.eup %13675  ;;  %v7723_v31 = vadd.f32 1.0, %v13674_v18  ;;  %v16278_v18 = vpack.c.bf16 %v8204_v44, %v8200_v56  ;;  %v17420_v56 = vld [vmem:[#allocation51_spill] sm:$0xff] }
0x11a2   :  { %v7735_v21 = vadd.f32 1.0, %v13676_v50  ;;  %v13678_v34 = vpop.eup %13677  ;;  %v8199_v50 = vld [vmem:[#allocation16 + $0x40] sm:$0xff] }
0x11a3   :  { %13681 = vrcp.f32 %v7723_v31  ;;  %v13680_v37 = vpop.eup %13679  ;;  %v7749_v38 = vadd.f32 1.0, %v13678_v34  ;;  %v8203_v31 = vld [vmem:[#allocation16 + $0x60] sm:$0xff]  ;;  %v8206_v34 = vld [vmem:[#allocation16 + $0x78] sm:$0xff] }
0x11a4   :  { %13683 = vrcp.f32 %v7735_v21  ;;  %v8202_v21 = vld [vmem:[#allocation16 + $0x58] sm:$0xff] }
0x11a5   :  { %13685 = vrcp.f32 %v7749_v38  ;;  %v8205_v38 = vld [vmem:[#allocation16 + $0x70] sm:$0xff] }
0x11ad   :  { %v13682_v40 = vpop.eup %13681 }
0x11ae   :  { %v13684_v11 = vpop.eup %13683  ;;  %v7757_v7 = vmul.f32 %v13682_v40, %v13680_v37  ;;  %v8201_v37 = vld [vmem:[#allocation16 + $0x50] sm:$0xff]  ;;  %v17415_v40 = vld [vmem:[#allocation59_spill] sm:$0xff] }
0x11af   :  { %v7755_v60 = vmul.f32 %v13684_v11, %v16199_v22  ;;  %v13686_v0 = vpop.eup %13685  ;;  %v8208_v11 = vld [vmem:[#allocation16 + $0x88] sm:$0xff] }
0x11b1   :  { %v7759_v58 = vadd.f32 %v7757_v7, %v7755_v60  ;;  %v8212_v7 = vld [vmem:[#allocation16 + $0xa8] sm:$0xff]  ;;  %v16288_v60 = vpack.c.bf16 %v8203_v31, %v8199_v50  ;;  %v8234_v31 = vld [vmem:[#allocation16 + $0x158] sm:$0xff] }
0x11b3   :  { %13687 = vtanh.f32 %v7759_v58  ;;  %v16290_v58 = vpack.c.bf16 %v8206_v34, %v8202_v21  ;;  %v8238_v21 = vld [vmem:[#allocation16 + $0x178] sm:$0xff]  ;;  %v8233_v34 = vld [vmem:[#allocation16 + $0x150] sm:$0xff] }
0x11bd   :  { %v13688_v12 = vpop.eup %13687 }
0x11be   :  { %v16269_v15 = vmul.f32 %v13688_v12, %v13686_v0  ;;  %v8207_v0 = vld [vmem:[#allocation16 + $0x80] sm:$0xff] }
0x11bf   :  { %v8211_v12 = vld [vmem:[#allocation16 + $0xa0] sm:$0xff] }
0x11e5   :  { %v7473_v33 = vpop.f32.mrb[124].mxu0  ;;  %v7548_v13 = vpop.f32.mrb[124].mxu1 }
0x11e6   :  { %v7474_v63 = vpop.f32.mrb[125].mxu0  ;;  %v7549_v52 = vpop.f32.mrb[125].mxu1  ;;  %v16293_v33 = vpack.c.bf16 %v8212_v7, %v8208_v11  ;;  %v16295_v13 = vpack.c.bf16 %v8205_v38, %v8201_v37  ;;  %v17421_v37 = vld [vmem:[#allocation55_spill] sm:$0xff]  ;;  %v17422_v38 = vld [vmem:[#allocation54_spill] sm:$0xff] }
0x11e7   :  { %v8210_v63 = vld [vmem:[#allocation16 + $0x98] sm:$0xff]  ;;  %v8240_v11 = vld [vmem:[#allocation16 + $0x188] sm:$0xff] }
0x11e8   :  { %v8214_v52 = vld [vmem:[#allocation16 + $0xb8] sm:$0xff]  ;;  %v8244_v7 = vld [vmem:[#allocation16 + $0x1a8] sm:$0xff] }
0x11e9   :  { %v7617_v62 = vpop.f32.mrb[126].mxu0  ;;  %v7692_v39 = vpop.f32.mrb[126].mxu1 }
0x11ea   :  { %v7618_v24 = vpop.f32.mrb[127].mxu0  ;;  %v7693_v5 = vpop.f32.mrb[127].mxu1  ;;  %v8209_v62 = vld [vmem:[#allocation16 + $0x90] sm:$0xff] }
0x11eb   :  { %v17416_v39 = vld [vmem:[#allocation44_spill] sm:$0xff]  ;;  %v8220_v24 = vld [vmem:[#allocation16 + $0xe8] sm:$0xff] }
0x11ec   :  { %v8213_v5 = vld [vmem:[#allocation16 + $0xb0] sm:$0xff] }
0x11ed   :  { %v7621_v61 = vpop.f32.mrb[80].mxu0  ;;  %v7696_v8 = vpop.f32.mrb[80].mxu1 }
0x11ee   :  { %v12954_v47 = vadd.f32 %v7621_v61, %v17270_v48  ;;  %v7623_v22 = vpop.f32.mrb[81].mxu0  ;;  %v7698_v16 = vpop.f32.mrb[81].mxu1  ;;  %v12970_v6 = vadd.f32 %v7696_v8, %v17272_v51  ;;  %v8191_v51 = vld [vmem:[#allocation16] sm:$0xff]  ;;  %v16303_v61 = vpack.c.bf16 %v8211_v12, %v8207_v0  ;;  %v16305_v8 = vpack.c.bf16 %v8214_v52, %v8210_v63 }
0x11ef   :  { %v12955_v3 = vadd.f32 %v7623_v22, %v15593_v42  ;;  %v12971_v41 = vadd.f32 %v7698_v16, %v17388_v46  ;;  %v16276_v30 = vpack.c.bf16 %v8195_v4, %v8191_v51  ;;  %v8219_v22 = vld [vmem:[#allocation16 + $0xe0] sm:$0xff]  ;;  %v8229_v51 = vld [vmem:[#allocation16 + $0x130] sm:$0xff]  ;;  %v8232_v4 = vld [vmem:[#allocation16 + $0x148] sm:$0xff]  ;;  %v16353_v12 = vpack.c.bf16 %v8238_v21, %v8234_v31 }
0x11f0   :  { %v9757_v9 = vmul.f32 -1.442695, %v12954_v47  ;;  %v8215_v47 = vld [vmem:[#allocation16 + $0xc0] sm:$0xff] }
0x11f1   :  { %v9759_v28 = vmul.f32 -1.442695, %v12955_v3  ;;  %v9761_v45 = vmul.f32 -1.442695, %v12971_v41  ;;  %v16311_v3 = vpack.c.bf16 %v8213_v5, %v8209_v62  ;;  %v17417_v41 = vld [vmem:[#allocation69_spill] sm:$0xff]  ;;  %v8239_v63 = vld [vmem:[#allocation16 + $0x180] sm:$0xff] }
0x11f2   :  { %13689 = vpow2.f32 %v9757_v9  ;;  %v8218_v9 = vld [vmem:[#allocation16 + $0xd8] sm:$0xff]  ;;  %v8243_v52 = vld [vmem:[#allocation16 + $0x1a0] sm:$0xff]  ;;  %v8241_v5 = vld [vmem:[#allocation16 + $0x190] sm:$0xff] }
0x11f3   :  { %13691 = vpow2.f32 %v9759_v28  ;;  %v8217_v28 = vld [vmem:[#allocation16 + $0xd0] sm:$0xff] }
0x11f4   :  { %13693 = vpow2.f32 %v9761_v45  ;;  %v8224_v45 = vld [vmem:[#allocation16 + $0x108] sm:$0xff] }
0x11f5   :  { %13695 = vtanh.f32 %v12970_v6  ;;  %v8228_v6 = vld [vmem:[#allocation16 + $0x128] sm:$0xff] }
0x11fc   :  { %v13690_v43 = vpop.eup %13689 }
0x11fd   :  { %v13692_v2 = vpop.eup %13691  ;;  %v7724_v35 = vadd.f32 1.0, %v13690_v43  ;;  %v8221_v43 = vld [vmem:[#allocation16 + $0xf0] sm:$0xff] }
0x11fe   :  { %v7736_v26 = vadd.f32 1.0, %v13692_v2  ;;  %v13694_v48 = vpop.eup %13693  ;;  %v17418_v2 = vld [vmem:[#allocation45_spill] sm:$0xff] }
0x11ff   :  { %13697 = vrcp.f32 %v7724_v35  ;;  %v13696_v49 = vpop.eup %13695  ;;  %v7750_v36 = vadd.f32 1.0, %v13694_v48  ;;  %v16319_v35 = vpack.c.bf16 %v8219_v22, %v8215_v47  ;;  %v8223_v48 = vld [vmem:[#allocation16 + $0x100] sm:$0xff]  ;;  %v8245_v47 = vld [vmem:[#allocation16 + $0x1b0] sm:$0xff]  ;;  %v8248_v22 = vld [vmem:[#allocation16 + $0x1c8] sm:$0xff] }
0x1200   :  { %13699 = vrcp.f32 %v7736_v26 }
0x1201   :  { %13701 = vrcp.f32 %v7750_v36  ;;  %v8230_v36 = vld [vmem:[#allocation16 + $0x138] sm:$0xff] }
0x1209   :  { %v13698_v42 = vpop.eup %13697 }
0x120a   :  { %v13700_v25 = vpop.eup %13699  ;;  %v7758_v55 = vmul.f32 %v13698_v42, %v13696_v49  ;;  %v8227_v49 = vld [vmem:[#allocation16 + $0x120] sm:$0xff]  ;;  %v16325_v42 = vpack.c.bf16 %v8228_v6, %v8224_v45  ;;  %v8250_v45 = vld [vmem:[#allocation16 + $0x1d8] sm:$0xff] }
0x120b   :  { %v7756_v59 = vmul.f32 %v13700_v25, %v16243_v32  ;;  %v13702_v53 = vpop.eup %13701  ;;  %v16280_v32 = vpack.c.bf16 %v8197_v17, %v8193_v27  ;;  %v16327_v25 = vpack.c.bf16 %v8221_v43, %v8217_v28  ;;  %v16335_v44 = vpack.c.bf16 %v8227_v49, %v8223_v48  ;;  %v8231_v27 = vld [vmem:[#allocation16 + $0x140] sm:$0xff]  ;;  %v8254_v6 = vld [vmem:[#allocation16 + $0x1f8] sm:$0xff]  ;;  %v8249_v49 = vld [vmem:[#allocation16 + $0x1d0] sm:$0xff] }
0x120c   :  { %v8235_v17 = vld [vmem:[#allocation16 + $0x160] sm:$0xff]  ;;  %v16367_v28 = vpack.c.bf16 %v8243_v52, %v8239_v63 }
0x120d   :  { %v7760_v46 = vadd.f32 %v7758_v55, %v7756_v59  ;;  %v8226_v55 = vld [vmem:[#allocation16 + $0x118] sm:$0xff]  ;;  %v8225_v59 = vld [vmem:[#allocation16 + $0x110] sm:$0xff]  ;;  %v16351_v0 = vpack.c.bf16 %v8235_v17, %v8231_v27  ;;  %v8251_v48 = vld [vmem:[#allocation16 + $0x1e0] sm:$0xff] }
0x120e   :  { %v17428_v52 = vld [vmem:[#allocation66_spill] sm:$0xff] }
0x120f   :  { %13703 = vtanh.f32 %v7760_v46  ;;  %v17419_v46 = vld [vmem:[#allocation56_spill] sm:$0xff] }
0x1219   :  { %v13704_v1 = vpop.eup %13703 }
0x121a   :  { %v7764_v10 = vmul.f32 %v13704_v1, %v13702_v53  ;;  %v8236_v53 = vld [vmem:[#allocation16 + $0x168] sm:$0xff]  ;;  %v16337_v1 = vpack.c.bf16 %v8230_v36, %v8226_v55  ;;  %v8253_v55 = vld [vmem:[#allocation16 + $0x1f0] sm:$0xff] }
0x121b   :  { %v16343_v50 = vpack.c.bf16 %v8236_v53, %v8232_v4  ;;  %v17424_v36 = vld [vmem:[#allocation43_spill] sm:$0xff]  ;;  %v17426_v53 = vld [vmem:[#allocation61_spill] sm:$0xff] }
0x121c   :  { %7997 = vmatprep.mubr.f32.mxu0 %v7764_v10  ;;  %8110 = vmatprep.mubr.f32.mxu1 %v7764_v10  ;;  %v16341_v10 = vpack.c.bf16 %v8229_v51, %v8225_v59  ;;  %v16381_v59 = vpack.c.bf16 %v8254_v6, %v8250_v45  ;;  %v16389_v51 = vpack.c.bf16 %v8253_v55, %v8249_v49 }
0x121d   :  { %7998 = vmatmul.mubr.f32.vlgmr.msra.gmra.mrb[128].mxu0 %v17415_v40  ;;  %8111 = vmatmul.mubr.f32.vlgmr.msra.gmra.mrb[128].mxu1 %v17415_v40  ;;  %v8237_v40 = vld [vmem:[#allocation16 + $0x170] sm:$0xff] }
0x121e   :  { %12349 = vmatpush1.bf16.msra.mxu0 %v16276_v30  ;;  %8003 = vmatprep.mubr.f32.mxu0 %v16246_v20  ;;  %v16357_v62 = vpack.c.bf16 %v8237_v40, %v8233_v34 }
0x121f   :  { %8116 = vmatprep.mubr.f32.mxu1 %v16246_v20  ;;  %12351 = vmatprep.subr.bf16.mxu0 %v16278_v18  ;;  %v8216_v20 = vld [vmem:[#allocation16 + $0xc8] sm:$0xff] }
0x1220   :  { %12381 = vmatpush1.bf16.msra.mxu1 %v16280_v32  ;;  %v16309_v16 = vpack.c.bf16 %v8220_v24, %v8216_v20  ;;  %v8242_v20 = vld [vmem:[#allocation16 + $0x198] sm:$0xff] }
0x1221   :  { %8004 = vmatmul.mubr.f32.gmra.mrb[130].mxu0 %v17416_v39  ;;  %8117 = vmatmul.mubr.f32.gmra.mrb[130].mxu1 %v17416_v39  ;;  %v16359_v39 = vpack.c.bf16 %v8244_v7, %v8240_v11  ;;  %v8246_v24 = vld [vmem:[#allocation16 + $0x1b8] sm:$0xff]  ;;  %v17427_v7 = vld [vmem:[#allocation64_spill] sm:$0xff] }
0x1222   :  { %8009 = vmatprep.mubr.f32.mxu0 %v16148_v54  ;;  %8122 = vmatprep.mubr.f32.mxu1 %v16148_v54  ;;  %v8222_v54 = vld [vmem:[#allocation16 + $0xf8] sm:$0xff] }
0x1223   :  { %12353 = vmatpush1.bf16.msra.mxu0 %v16288_v60  ;;  %12383 = vmatprep.subr.bf16.mxu1 %v16290_v58  ;;  %v16321_v26 = vpack.c.bf16 %v8222_v54, %v8218_v9  ;;  %v8252_v9 = vld [vmem:[#allocation16 + $0x1e8] sm:$0xff] }
0x1224   :  { %12355 = vmatprep.subr.bf16.mxu0 %v16293_v33  ;;  %12385 = vmatpush1.bf16.msra.mxu1 %v16295_v13  ;;  %v17423_v54 = vld [vmem:[#allocation47_spill] sm:$0xff]  ;;  %v16375_v43 = vpack.c.bf16 %v8252_v9, %v8248_v22 }
0x1225   :  { %8010 = vmatmul.mubr.f32.gmra.mrb[132].mxu0 %v17417_v41  ;;  %8123 = vmatmul.mubr.f32.gmra.mrb[132].mxu1 %v17417_v41  ;;  %v16369_v41 = vpack.c.bf16 %v8246_v24, %v8242_v20 }
0x1226   :  { %8015 = vmatprep.mubr.f32.mxu0 %v17418_v2  ;;  %8128 = vmatprep.mubr.f32.mxu1 %v17418_v2  ;;  %v8247_v2 = vld [vmem:[#allocation16 + $0x1c0] sm:$0xff] }
0x1227   :  { %12357 = vmatpush1.bf16.msra.mxu0 %v16303_v61  ;;  %12387 = vmatprep.subr.bf16.mxu1 %v16305_v8 }
0x1228   :  { %12359 = vmatprep.subr.bf16.mxu0 %v16309_v16  ;;  %12389 = vmatpush1.bf16.msra.mxu1 %v16311_v3 }
0x1229   :  { %8016 = vmatmul.mubr.f32.gmra.mrb[134].mxu0 %v17419_v46  ;;  %8129 = vmatmul.mubr.f32.gmra.mrb[134].mxu1 %v17419_v46  ;;  %v16385_v46 = vpack.c.bf16 %v8251_v48, %v8247_v2 }
0x122a   :  { %8021 = vmatprep.mubr.f32.mxu0 %v17420_v56  ;;  %8134 = vmatprep.mubr.f32.mxu1 %v17420_v56 }
0x122b   :  { %12361 = vmatpush1.bf16.msra.mxu0 %v16319_v35  ;;  %12391 = vmatprep.subr.bf16.mxu1 %v16321_v26 }
0x122c   :  { %12363 = vmatprep.subr.bf16.mxu0 %v16325_v42  ;;  %12393 = vmatpush1.bf16.msra.mxu1 %v16327_v25 }
0x122d   :  { %8022 = vmatmul.mubr.f32.gmra.mrb[136].mxu0 %v17421_v37  ;;  %8135 = vmatmul.mubr.f32.gmra.mrb[136].mxu1 %v17421_v37 }
0x122e   :  { %8027 = vmatprep.mubr.f32.mxu0 %v17422_v38  ;;  %8140 = vmatprep.mubr.f32.mxu1 %v17422_v38 }
0x122f   :  { %12365 = vmatpush1.bf16.msra.mxu0 %v16335_v44  ;;  %12395 = vmatprep.subr.bf16.mxu1 %v16337_v1 }
0x1230   :  { %12397 = vmatpush1.bf16.msra.mxu1 %v16341_v10  ;;  %12367 = vmatprep.subr.bf16.mxu0 %v16343_v50 }
0x1231   :  { %8028 = vmatmul.mubr.f32.gmra.mrb[138].mxu0 %v16102_v29  ;;  %8141 = vmatmul.mubr.f32.gmra.mrb[138].mxu1 %v16102_v29  ;;  %v16373_v29 = vpack.c.bf16 %v8245_v47, %v8241_v5 }
0x1232   :  { %8033 = vmatprep.mubr.f32.mxu0 %v17423_v54  ;;  %8146 = vmatprep.mubr.f32.mxu1 %v17423_v54 }
0x1233   :  { %12369 = vmatpush1.bf16.msra.mxu0 %v16351_v0  ;;  %12399 = vmatprep.subr.bf16.mxu1 %v16353_v12 }
0x1234   :  { %12401 = vmatpush1.bf16.msra.mxu1 %v16357_v62  ;;  %12371 = vmatprep.subr.bf16.mxu0 %v16359_v39 }
0x1235   :  { %8034 = vmatmul.mubr.f32.gmra.mrb[140].mxu0 %v16202_v14  ;;  %8147 = vmatmul.mubr.f32.gmra.mrb[140].mxu1 %v16202_v14  ;;  %v7911_v14 = vld [vmem:[%s16730_s9] sm:$0xf]  ;;  %s14033_s9 = smov [#allocation17]  }
0x1236   :  { %8039 = vmatprep.mubr.f32.mxu0 %v17424_v36  ;;  %8152 = vmatprep.mubr.f32.mxu1 %v17424_v36  ;;  %v16443_v56 = vrot.slane %v7911_v14, %v17426_v53  ;;  %v16448_v38 = vrot.slane %v7911_v14, %v17427_v7  ;;  %v16452_v20 = vrot.slane %v7911_v14, %v17428_v52  ;;  %s9654_s12 = sshll.u32 %s14033_s9, 4  ;;  %s9655_s12 = int_to_ptr.vmem [resolvable:$true] %s9654_s12 }
0x1237   :  { %12373 = vmatpush1.bf16.msra.mxu0 %v16367_v28  ;;  %12403 = vmatprep.subr.bf16.mxu1 %v16369_v41  ;;  %s13987_s21 = scalar_lea.vmem %s9655_s12, 128  ;;  %p13992_p1 = scmp.lt.s32.totalorder %s9655_s12, %s9655_s12 }
0x1238   :  { %12405 = vmatpush1.bf16.msra.mxu1 %v16373_v29  ;;  %12375 = vmatprep.subr.bf16.mxu0 %v16375_v43  ;;  %p13988_p0 = scmp.ne.s32.totalorder %s9655_s12, %s13987_s21  ;;  %p13993_p2 = scmp.lt.s32.totalorder %s13987_s21, %s13987_s21 }
0x1239   :  { %8040 = vmatmul.mubr.f32.gmra.mrb[142].mxu0 %v16269_v15  ;;  %8153 = vmatmul.mubr.f32.gmra.mrb[142].mxu1 %v16269_v15  ;;  %v17425_v15 = vld [vmem:[#allocation60_spill] sm:$0xff] }
0x123a   :  { %12407 = vmatprep.subr.bf16.mxu1 %v16381_v59  ;;  %8323 = vmatprep.mubr.f32.mxu0 %v16996_v19  ;;  %v16440_v4 = vrot.slane %v7911_v14, %v17425_v15  ;;  %p13994_p3 = por %p13993_p2, %p13992_p1 }
0x123b   :  { %12377 = vmatpush1.bf16.msra.mxu0 %v16385_v46  ;;  %8394 = vmatprep.mubr.f32.mxu1 %v16996_v19 }
0x123c   :  { %12409 = vmatpush1.bf16.msra.mxu1 %v16389_v51  ;;  %12411 = vmatprep.subr.bf16.mxu0 %v16261_v23  ;;  %p13995_p4 = pnand %p13994_p3, %p13988_p0 }
0x123d   :  { %12443 = vmatprep.subr.bf16.mxu1 %v16265_v57 }
0x1241   :  { %8324 = vmatmul.mubr.f32.vlgmr.msra.gmra.mrb[142].mxu0 %v16996_v19  ;;  %8395 = vmatmul.mubr.f32.vlgmr.msra.gmra.mrb[142].mxu1 %v16996_v19 }
0x1242   :  { %12413 = vmatpush1.bf16.msra.mxu0 %v16276_v30  ;;  %12445 = vmatpush1.bf16.msra.mxu1 %v16280_v32 }
0x1243   :  { %12415 = vmatprep.subr.bf16.mxu0 %v16278_v18  ;;  %12447 = vmatprep.subr.bf16.mxu1 %v16290_v58 }
0x1244   :  { %8497 = vmatprep.mubr.f32.mxu0 %v16996_v19  ;;  %8568 = vmatprep.mubr.f32.mxu1 %v16996_v19 }
0x1246   :  { %12417 = vmatpush1.bf16.msra.mxu0 %v16288_v60  ;;  %12449 = vmatpush1.bf16.msra.mxu1 %v16295_v13 }
0x1247   :  { %12419 = vmatprep.subr.bf16.mxu0 %v16293_v33  ;;  %12451 = vmatprep.subr.bf16.mxu1 %v16305_v8 }
0x124a   :  { %12421 = vmatpush1.bf16.msra.mxu0 %v16303_v61  ;;  %12453 = vmatpush1.bf16.msra.mxu1 %v16311_v3 }
0x124b   :  { %12423 = vmatprep.subr.bf16.mxu0 %v16309_v16  ;;  %12455 = vmatprep.subr.bf16.mxu1 %v16321_v26 }
0x124e   :  { %12425 = vmatpush1.bf16.msra.mxu0 %v16319_v35  ;;  %12457 = vmatpush1.bf16.msra.mxu1 %v16327_v25 }
0x124f   :  { %12427 = vmatprep.subr.bf16.mxu0 %v16325_v42  ;;  %12459 = vmatprep.subr.bf16.mxu1 %v16337_v1 }
0x1252   :  { %12429 = vmatpush1.bf16.msra.mxu0 %v16335_v44  ;;  %12461 = vmatpush1.bf16.msra.mxu1 %v16341_v10 }
0x1253   :  { %12431 = vmatprep.subr.bf16.mxu0 %v16343_v50  ;;  %12463 = vmatprep.subr.bf16.mxu1 %v16353_v12 }
0x1256   :  { %12433 = vmatpush1.bf16.msra.mxu0 %v16351_v0  ;;  %12465 = vmatpush1.bf16.msra.mxu1 %v16357_v62 }
0x1257   :  { %12435 = vmatprep.subr.bf16.mxu0 %v16359_v39  ;;  %12467 = vmatprep.subr.bf16.mxu1 %v16369_v41 }
0x125a   :  { %12437 = vmatpush1.bf16.msra.mxu0 %v16367_v28  ;;  %12469 = vmatpush1.bf16.msra.mxu1 %v16373_v29 }
0x125b   :  { %12439 = vmatprep.subr.bf16.mxu0 %v16375_v43  ;;  %12471 = vmatprep.subr.bf16.mxu1 %v16381_v59 }
0x125e   :  { %12441 = vmatpush1.bf16.msra.mxu0 %v16385_v46  ;;  %12473 = vmatpush1.bf16.msra.mxu1 %v16389_v51 }
0x125f   :  { %12475 = vmatprep.subr.bf16.mxu0 %v16261_v23  ;;  %12507 = vmatprep.subr.bf16.mxu1 %v16265_v57 }
0x1314   :  { %v8325_v27 = vpop.f32.mrb[142].mxu0  ;;  %v8396_v17 = vpop.f32.mrb[142].mxu1 }
0x1315   :  { %v13000_v31 = vadd.f32 %v8325_v27, %v16440_v4  ;;  %v8327_v21 = vpop.f32.mrb[143].mxu0  ;;  %v8398_v34 = vpop.f32.mrb[143].mxu1  ;;  %v13016_v5 = vadd.f32 %v8396_v17, %v16452_v20 }
0x1316   :  { %v13001_v37 = vadd.f32 %v8327_v21, %v16443_v56  ;;  %v13017_v63 = vadd.f32 %v8398_v34, %v16448_v38 }
0x1317   :  { %v9762_v40 = vmul.f32 -1.442695, %v13000_v31 }
0x1318   :  { %v9763_v11 = vmul.f32 -1.442695, %v13001_v37  ;;  %v9764_v24 = vmul.f32 -1.442695, %v13017_v63 }
0x1319   :  { %13705 = vpow2.f32 %v9762_v40 }
0x131a   :  { %13707 = vpow2.f32 %v9763_v11 }
0x131b   :  { %13709 = vpow2.f32 %v9764_v24 }
0x131c   :  { %13711 = vtanh.f32 %v13016_v5 }
0x1323   :  { %v13706_v47 = vpop.eup %13705 }
0x1324   :  { %v13708_v22 = vpop.eup %13707  ;;  %v8408_v9 = vadd.f32 1.0, %v13706_v47 }
0x1325   :  { %v8414_v54 = vadd.f32 1.0, %v13708_v22  ;;  %v13710_v45 = vpop.eup %13709 }
0x1326   :  { %13713 = vrcp.f32 %v8408_v9  ;;  %v13712_v6 = vpop.eup %13711  ;;  %v8421_v55 = vadd.f32 1.0, %v13710_v45 }
0x1327   :  { %13715 = vrcp.f32 %v8414_v54 }
0x1328   :  { %13717 = vrcp.f32 %v8421_v55 }
0x1330   :  { %v13714_v2 = vpop.eup %13713 }
0x1331   :  { %v13716_v48 = vpop.eup %13715  ;;  %v8425_v49 = vmul.f32 %v13714_v2, %v13712_v6 }
0x1332   :  { %v8424_v36 = vmul.f32 0.0, %v13716_v48  ;;  %v13718_v15 = vpop.eup %13717 }
0x1334   :  { %v16455_v14 = vadd.f32 %v8425_v49, %v8424_v36 }
0x1336   :  { %13719 = vtanh.f32 %v16455_v14 }
0x1340   :  { %v13720_v53 = vpop.eup %13719 }
0x1341   :  { %v8428_v27 = vmul.f32 %v13720_v53, %v13718_v15 }
0x1343   :  { %8498 = vmatmul.mubr.f32.vlgmr.msra.gmra.mrb[140].mxu0 %v8428_v27  ;;  %8569 = vmatmul.mubr.f32.vlgmr.msra.gmra.mrb[140].mxu1 %v8428_v27 }
0x1344   :  { %12477 = vmatpush1.bf16.msra.mxu0 %v16276_v30  ;;  %12509 = vmatpush1.bf16.msra.mxu1 %v16280_v32 }
0x1345   :  { %12479 = vmatprep.subr.bf16.mxu0 %v16278_v18  ;;  %12511 = vmatprep.subr.bf16.mxu1 %v16290_v58 }
0x1346   :  { %8671 = vmatprep.mubr.f32.mxu0 %v16996_v19  ;;  %8742 = vmatprep.mubr.f32.mxu1 %v16996_v19 }
0x1348   :  { %12481 = vmatpush1.bf16.msra.mxu0 %v16288_v60  ;;  %12513 = vmatpush1.bf16.msra.mxu1 %v16295_v13 }
0x1349   :  { %12483 = vmatprep.subr.bf16.mxu0 %v16293_v33  ;;  %12515 = vmatprep.subr.bf16.mxu1 %v16305_v8 }
0x134c   :  { %12485 = vmatpush1.bf16.msra.mxu0 %v16303_v61  ;;  %12517 = vmatpush1.bf16.msra.mxu1 %v16311_v3 }
0x134d   :  { %12487 = vmatprep.subr.bf16.mxu0 %v16309_v16  ;;  %12519 = vmatprep.subr.bf16.mxu1 %v16321_v26 }
0x1350   :  { %12489 = vmatpush1.bf16.msra.mxu0 %v16319_v35  ;;  %12521 = vmatpush1.bf16.msra.mxu1 %v16327_v25 }
0x1351   :  { %12491 = vmatprep.subr.bf16.mxu0 %v16325_v42  ;;  %12523 = vmatprep.subr.bf16.mxu1 %v16337_v1 }
0x1354   :  { %12493 = vmatpush1.bf16.msra.mxu0 %v16335_v44  ;;  %12525 = vmatpush1.bf16.msra.mxu1 %v16341_v10 }
0x1355   :  { %12495 = vmatprep.subr.bf16.mxu0 %v16343_v50  ;;  %12527 = vmatprep.subr.bf16.mxu1 %v16353_v12 }
0x1358   :  { %12497 = vmatpush1.bf16.msra.mxu0 %v16351_v0  ;;  %12529 = vmatpush1.bf16.msra.mxu1 %v16357_v62 }
0x1359   :  { %12499 = vmatprep.subr.bf16.mxu0 %v16359_v39  ;;  %12531 = vmatprep.subr.bf16.mxu1 %v16369_v41 }
0x135c   :  { %12501 = vmatpush1.bf16.msra.mxu0 %v16367_v28  ;;  %12533 = vmatpush1.bf16.msra.mxu1 %v16373_v29 }
0x135d   :  { %12503 = vmatprep.subr.bf16.mxu0 %v16375_v43  ;;  %12535 = vmatprep.subr.bf16.mxu1 %v16381_v59 }
0x1360   :  { %12505 = vmatpush1.bf16.msra.mxu0 %v16385_v46  ;;  %12537 = vmatpush1.bf16.msra.mxu1 %v16389_v51 }
0x1361   :  { %12539 = vmatprep.subr.bf16.mxu0 %v16261_v23  ;;  %12571 = vmatprep.subr.bf16.mxu1 %v16265_v57 }
0x1416   :  { %v8499_v17 = vpop.f32.mrb[140].mxu0  ;;  %v8570_v31 = vpop.f32.mrb[140].mxu1 }
0x1417   :  { %v12998_v21 = vadd.f32 %v8499_v17, %v16440_v4  ;;  %v8501_v34 = vpop.f32.mrb[141].mxu0  ;;  %v8572_v37 = vpop.f32.mrb[141].mxu1  ;;  %v13014_v24 = vadd.f32 %v8570_v31, %v16452_v20 }
0x1418   :  { %v12999_v40 = vadd.f32 %v8501_v34, %v16443_v56  ;;  %v13015_v63 = vadd.f32 %v8572_v37, %v16448_v38 }
0x1419   :  { %v9765_v11 = vmul.f32 -1.442695, %v12998_v21 }
0x141a   :  { %v9766_v7 = vmul.f32 -1.442695, %v12999_v40  ;;  %v9767_v52 = vmul.f32 -1.442695, %v13015_v63 }
0x141b   :  { %13721 = vpow2.f32 %v9765_v11 }
0x141c   :  { %13723 = vpow2.f32 %v9766_v7 }
0x141d   :  { %13725 = vpow2.f32 %v9767_v52 }
0x141e   :  { %13727 = vtanh.f32 %v13014_v24 }
0x1425   :  { %v13722_v5 = vpop.eup %13721 }
0x1426   :  { %v13724_v47 = vpop.eup %13723  ;;  %v8582_v22 = vadd.f32 1.0, %v13722_v5 }
0x1427   :  { %v8588_v9 = vadd.f32 1.0, %v13724_v47  ;;  %v13726_v54 = vpop.eup %13725 }
0x1428   :  { %13729 = vrcp.f32 %v8582_v22  ;;  %v13728_v45 = vpop.eup %13727  ;;  %v8595_v49 = vadd.f32 1.0, %v13726_v54 }
0x1429   :  { %13731 = vrcp.f32 %v8588_v9 }
0x142a   :  { %13733 = vrcp.f32 %v8595_v49 }
0x1432   :  { %v13730_v6 = vpop.eup %13729 }
0x1433   :  { %v13732_v2 = vpop.eup %13731  ;;  %v8599_v48 = vmul.f32 %v13730_v6, %v13728_v45 }
0x1434   :  { %v8598_v55 = vmul.f32 %v13732_v2, %v16455_v14  ;;  %v13734_v15 = vpop.eup %13733 }
0x1436   :  { %v16497_v36 = vadd.f32 %v8599_v48, %v8598_v55 }
0x1438   :  { %13735 = vtanh.f32 %v16497_v36 }
0x1442   :  { %v13736_v53 = vpop.eup %13735 }
0x1443   :  { %v8602_v27 = vmul.f32 %v13736_v53, %v13734_v15 }
0x1445   :  { %8672 = vmatmul.mubr.f32.vlgmr.msra.gmra.mrb[138].mxu0 %v8602_v27  ;;  %8743 = vmatmul.mubr.f32.vlgmr.msra.gmra.mrb[138].mxu1 %v8602_v27 }
0x1446   :  { %12541 = vmatpush1.bf16.msra.mxu0 %v16276_v30  ;;  %12573 = vmatpush1.bf16.msra.mxu1 %v16280_v32 }
0x1447   :  { %12543 = vmatprep.subr.bf16.mxu0 %v16278_v18  ;;  %12575 = vmatprep.subr.bf16.mxu1 %v16290_v58 }
0x1448   :  { %8845 = vmatprep.mubr.f32.mxu0 %v16996_v19  ;;  %8916 = vmatprep.mubr.f32.mxu1 %v16996_v19 }
0x144a   :  { %12545 = vmatpush1.bf16.msra.mxu0 %v16288_v60  ;;  %12577 = vmatpush1.bf16.msra.mxu1 %v16295_v13 }
0x144b   :  { %12547 = vmatprep.subr.bf16.mxu0 %v16293_v33  ;;  %12579 = vmatprep.subr.bf16.mxu1 %v16305_v8 }
0x144e   :  { %12549 = vmatpush1.bf16.msra.mxu0 %v16303_v61  ;;  %12581 = vmatpush1.bf16.msra.mxu1 %v16311_v3 }
0x144f   :  { %12551 = vmatprep.subr.bf16.mxu0 %v16309_v16  ;;  %12583 = vmatprep.subr.bf16.mxu1 %v16321_v26 }
0x1452   :  { %12553 = vmatpush1.bf16.msra.mxu0 %v16319_v35  ;;  %12585 = vmatpush1.bf16.msra.mxu1 %v16327_v25 }
0x1453   :  { %12555 = vmatprep.subr.bf16.mxu0 %v16325_v42  ;;  %12587 = vmatprep.subr.bf16.mxu1 %v16337_v1 }
0x1456   :  { %12557 = vmatpush1.bf16.msra.mxu0 %v16335_v44  ;;  %12589 = vmatpush1.bf16.msra.mxu1 %v16341_v10 }
0x1457   :  { %12559 = vmatprep.subr.bf16.mxu0 %v16343_v50  ;;  %12591 = vmatprep.subr.bf16.mxu1 %v16353_v12 }
0x145a   :  { %12561 = vmatpush1.bf16.msra.mxu0 %v16351_v0  ;;  %12593 = vmatpush1.bf16.msra.mxu1 %v16357_v62 }
0x145b   :  { %12563 = vmatprep.subr.bf16.mxu0 %v16359_v39  ;;  %12595 = vmatprep.subr.bf16.mxu1 %v16369_v41 }
0x145e   :  { %12565 = vmatpush1.bf16.msra.mxu0 %v16367_v28  ;;  %12597 = vmatpush1.bf16.msra.mxu1 %v16373_v29 }
0x145f   :  { %12567 = vmatprep.subr.bf16.mxu0 %v16375_v43  ;;  %12599 = vmatprep.subr.bf16.mxu1 %v16381_v59 }
0x1462   :  { %12569 = vmatpush1.bf16.msra.mxu0 %v16385_v46  ;;  %12601 = vmatpush1.bf16.msra.mxu1 %v16389_v51 }
0x1463   :  { %12603 = vmatprep.subr.bf16.mxu0 %v16261_v23  ;;  %12635 = vmatprep.subr.bf16.mxu1 %v16265_v57 }
0x1518   :  { %v8673_v14 = vpop.f32.mrb[138].mxu0  ;;  %v8744_v17 = vpop.f32.mrb[138].mxu1 }
0x1519   :  { %v12996_v31 = vadd.f32 %v8673_v14, %v16440_v4  ;;  %v8675_v21 = vpop.f32.mrb[139].mxu0  ;;  %v8746_v34 = vpop.f32.mrb[139].mxu1  ;;  %v13012_v52 = vadd.f32 %v8744_v17, %v16452_v20 }
0x151a   :  { %v12997_v37 = vadd.f32 %v8675_v21, %v16443_v56  ;;  %v13013_v7 = vadd.f32 %v8746_v34, %v16448_v38 }
0x151b   :  { %v9768_v40 = vmul.f32 -1.442695, %v12996_v31 }
0x151c   :  { %v9769_v11 = vmul.f32 -1.442695, %v12997_v37  ;;  %v9770_v63 = vmul.f32 -1.442695, %v13013_v7 }
0x151d   :  { %13737 = vpow2.f32 %v9768_v40 }
0x151e   :  { %13739 = vpow2.f32 %v9769_v11 }
0x151f   :  { %13741 = vpow2.f32 %v9770_v63 }
0x1520   :  { %13743 = vtanh.f32 %v13012_v52 }
0x1527   :  { %v13738_v24 = vpop.eup %13737 }
0x1528   :  { %v13740_v5 = vpop.eup %13739  ;;  %v8756_v47 = vadd.f32 1.0, %v13738_v24 }
0x1529   :  { %v8762_v22 = vadd.f32 1.0, %v13740_v5  ;;  %v13742_v9 = vpop.eup %13741 }
0x152a   :  { %13745 = vrcp.f32 %v8756_v47  ;;  %v13744_v54 = vpop.eup %13743  ;;  %v8769_v48 = vadd.f32 1.0, %v13742_v9 }
0x152b   :  { %13747 = vrcp.f32 %v8762_v22 }
0x152c   :  { %13749 = vrcp.f32 %v8769_v48 }
0x1534   :  { %v13746_v45 = vpop.eup %13745 }
0x1535   :  { %v13748_v6 = vpop.eup %13747  ;;  %v8773_v2 = vmul.f32 %v13746_v45, %v13744_v54 }
0x1536   :  { %v8772_v49 = vmul.f32 %v13748_v6, %v16497_v36  ;;  %v13750_v15 = vpop.eup %13749 }
0x1538   :  { %v16539_v55 = vadd.f32 %v8773_v2, %v8772_v49 }
0x153a   :  { %13751 = vtanh.f32 %v16539_v55 }
0x1544   :  { %v13752_v53 = vpop.eup %13751 }
0x1545   :  { %v8776_v27 = vmul.f32 %v13752_v53, %v13750_v15 }
0x1547   :  { %8846 = vmatmul.mubr.f32.vlgmr.msra.gmra.mrb[136].mxu0 %v8776_v27  ;;  %8917 = vmatmul.mubr.f32.vlgmr.msra.gmra.mrb[136].mxu1 %v8776_v27 }
0x1548   :  { %12605 = vmatpush1.bf16.msra.mxu0 %v16276_v30  ;;  %12637 = vmatpush1.bf16.msra.mxu1 %v16280_v32 }
0x1549   :  { %12607 = vmatprep.subr.bf16.mxu0 %v16278_v18  ;;  %12639 = vmatprep.subr.bf16.mxu1 %v16290_v58 }
0x154a   :  { %9019 = vmatprep.mubr.f32.mxu0 %v16996_v19  ;;  %9090 = vmatprep.mubr.f32.mxu1 %v16996_v19 }
0x154c   :  { %12609 = vmatpush1.bf16.msra.mxu0 %v16288_v60  ;;  %12641 = vmatpush1.bf16.msra.mxu1 %v16295_v13 }
0x154d   :  { %12611 = vmatprep.subr.bf16.mxu0 %v16293_v33  ;;  %12643 = vmatprep.subr.bf16.mxu1 %v16305_v8 }
0x1550   :  { %12613 = vmatpush1.bf16.msra.mxu0 %v16303_v61  ;;  %12645 = vmatpush1.bf16.msra.mxu1 %v16311_v3 }
0x1551   :  { %12615 = vmatprep.subr.bf16.mxu0 %v16309_v16  ;;  %12647 = vmatprep.subr.bf16.mxu1 %v16321_v26 }
0x1554   :  { %12617 = vmatpush1.bf16.msra.mxu0 %v16319_v35  ;;  %12649 = vmatpush1.bf16.msra.mxu1 %v16327_v25 }
0x1555   :  { %12619 = vmatprep.subr.bf16.mxu0 %v16325_v42  ;;  %12651 = vmatprep.subr.bf16.mxu1 %v16337_v1 }
0x1558   :  { %12621 = vmatpush1.bf16.msra.mxu0 %v16335_v44  ;;  %12653 = vmatpush1.bf16.msra.mxu1 %v16341_v10 }
0x1559   :  { %12623 = vmatprep.subr.bf16.mxu0 %v16343_v50  ;;  %12655 = vmatprep.subr.bf16.mxu1 %v16353_v12 }
0x155c   :  { %12625 = vmatpush1.bf16.msra.mxu0 %v16351_v0  ;;  %12657 = vmatpush1.bf16.msra.mxu1 %v16357_v62 }
0x155d   :  { %12627 = vmatprep.subr.bf16.mxu0 %v16359_v39  ;;  %12659 = vmatprep.subr.bf16.mxu1 %v16369_v41 }
0x1560   :  { %12629 = vmatpush1.bf16.msra.mxu0 %v16367_v28  ;;  %12661 = vmatpush1.bf16.msra.mxu1 %v16373_v29 }
0x1561   :  { %12631 = vmatprep.subr.bf16.mxu0 %v16375_v43  ;;  %12663 = vmatprep.subr.bf16.mxu1 %v16381_v59 }
0x1564   :  { %12633 = vmatpush1.bf16.msra.mxu0 %v16385_v46  ;;  %12665 = vmatpush1.bf16.msra.mxu1 %v16389_v51 }
0x1565   :  { %12667 = vmatprep.subr.bf16.mxu0 %v16261_v23  ;;  %12699 = vmatprep.subr.bf16.mxu1 %v16265_v57 }
0x161a   :  { %v8847_v36 = vpop.f32.mrb[136].mxu0  ;;  %v8918_v14 = vpop.f32.mrb[136].mxu1 }
0x161b   :  { %v12994_v17 = vadd.f32 %v8847_v36, %v16440_v4  ;;  %v8849_v31 = vpop.f32.mrb[137].mxu0  ;;  %v8920_v21 = vpop.f32.mrb[137].mxu1  ;;  %v13010_v63 = vadd.f32 %v8918_v14, %v16452_v20 }
0x161c   :  { %v12995_v34 = vadd.f32 %v8849_v31, %v16443_v56  ;;  %v13011_v11 = vadd.f32 %v8920_v21, %v16448_v38 }
0x161d   :  { %v9771_v37 = vmul.f32 -1.442695, %v12994_v17 }
0x161e   :  { %v9772_v40 = vmul.f32 -1.442695, %v12995_v34  ;;  %v9773_v7 = vmul.f32 -1.442695, %v13011_v11 }
0x161f   :  { %13753 = vpow2.f32 %v9771_v37 }
0x1620   :  { %13755 = vpow2.f32 %v9772_v40 }
0x1621   :  { %13757 = vpow2.f32 %v9773_v7 }
0x1622   :  { %13759 = vtanh.f32 %v13010_v63 }
0x1629   :  { %v13754_v52 = vpop.eup %13753 }
0x162a   :  { %v13756_v24 = vpop.eup %13755  ;;  %v8930_v5 = vadd.f32 1.0, %v13754_v52 }
0x162b   :  { %v8936_v47 = vadd.f32 1.0, %v13756_v24  ;;  %v13758_v22 = vpop.eup %13757 }
0x162c   :  { %13761 = vrcp.f32 %v8930_v5  ;;  %v13760_v9 = vpop.eup %13759  ;;  %v8943_v2 = vadd.f32 1.0, %v13758_v22 }
0x162d   :  { %13763 = vrcp.f32 %v8936_v47 }
0x162e   :  { %13765 = vrcp.f32 %v8943_v2 }
0x1636   :  { %v13762_v54 = vpop.eup %13761 }
0x1637   :  { %v13764_v45 = vpop.eup %13763  ;;  %v8947_v6 = vmul.f32 %v13762_v54, %v13760_v9 }
0x1638   :  { %v8946_v48 = vmul.f32 %v13764_v45, %v16539_v55  ;;  %v13766_v15 = vpop.eup %13765 }
0x163a   :  { %v16581_v49 = vadd.f32 %v8947_v6, %v8946_v48 }
0x163c   :  { %13767 = vtanh.f32 %v16581_v49 }
0x1646   :  { %v13768_v53 = vpop.eup %13767 }
0x1647   :  { %v8950_v27 = vmul.f32 %v13768_v53, %v13766_v15 }
0x1649   :  { %9020 = vmatmul.mubr.f32.vlgmr.msra.gmra.mrb[134].mxu0 %v8950_v27  ;;  %9091 = vmatmul.mubr.f32.vlgmr.msra.gmra.mrb[134].mxu1 %v8950_v27 }
0x164a   :  { %12669 = vmatpush1.bf16.msra.mxu0 %v16276_v30  ;;  %12701 = vmatpush1.bf16.msra.mxu1 %v16280_v32 }
0x164b   :  { %12671 = vmatprep.subr.bf16.mxu0 %v16278_v18  ;;  %12703 = vmatprep.subr.bf16.mxu1 %v16290_v58 }
0x164c   :  { %9193 = vmatprep.mubr.f32.mxu0 %v16996_v19  ;;  %9264 = vmatprep.mubr.f32.mxu1 %v16996_v19 }
0x164e   :  { %12673 = vmatpush1.bf16.msra.mxu0 %v16288_v60  ;;  %12705 = vmatpush1.bf16.msra.mxu1 %v16295_v13 }
0x164f   :  { %12675 = vmatprep.subr.bf16.mxu0 %v16293_v33  ;;  %12707 = vmatprep.subr.bf16.mxu1 %v16305_v8 }
0x1652   :  { %12677 = vmatpush1.bf16.msra.mxu0 %v16303_v61  ;;  %12709 = vmatpush1.bf16.msra.mxu1 %v16311_v3 }
0x1653   :  { %12679 = vmatprep.subr.bf16.mxu0 %v16309_v16  ;;  %12711 = vmatprep.subr.bf16.mxu1 %v16321_v26 }
0x1656   :  { %12681 = vmatpush1.bf16.msra.mxu0 %v16319_v35  ;;  %12713 = vmatpush1.bf16.msra.mxu1 %v16327_v25 }
0x1657   :  { %12683 = vmatprep.subr.bf16.mxu0 %v16325_v42  ;;  %12715 = vmatprep.subr.bf16.mxu1 %v16337_v1 }
0x165a   :  { %12685 = vmatpush1.bf16.msra.mxu0 %v16335_v44  ;;  %12717 = vmatpush1.bf16.msra.mxu1 %v16341_v10 }
0x165b   :  { %12687 = vmatprep.subr.bf16.mxu0 %v16343_v50  ;;  %12719 = vmatprep.subr.bf16.mxu1 %v16353_v12 }
0x165e   :  { %12689 = vmatpush1.bf16.msra.mxu0 %v16351_v0  ;;  %12721 = vmatpush1.bf16.msra.mxu1 %v16357_v62 }
0x165f   :  { %12691 = vmatprep.subr.bf16.mxu0 %v16359_v39  ;;  %12723 = vmatprep.subr.bf16.mxu1 %v16369_v41 }
0x1662   :  { %12693 = vmatpush1.bf16.msra.mxu0 %v16367_v28  ;;  %12725 = vmatpush1.bf16.msra.mxu1 %v16373_v29 }
0x1663   :  { %12695 = vmatprep.subr.bf16.mxu0 %v16375_v43  ;;  %12727 = vmatprep.subr.bf16.mxu1 %v16381_v59 }
0x1666   :  { %12697 = vmatpush1.bf16.msra.mxu0 %v16385_v46  ;;  %12729 = vmatpush1.bf16.msra.mxu1 %v16389_v51 }
0x1667   :  { %12731 = vmatprep.subr.bf16.mxu0 %v16261_v23  ;;  %12763 = vmatprep.subr.bf16.mxu1 %v16265_v57 }
0x171c   :  { %v9021_v55 = vpop.f32.mrb[134].mxu0  ;;  %v9092_v36 = vpop.f32.mrb[134].mxu1 }
0x171d   :  { %v12992_v14 = vadd.f32 %v9021_v55, %v16440_v4  ;;  %v9023_v17 = vpop.f32.mrb[135].mxu0  ;;  %v9094_v31 = vpop.f32.mrb[135].mxu1  ;;  %v13008_v7 = vadd.f32 %v9092_v36, %v16452_v20 }
0x171e   :  { %v12993_v21 = vadd.f32 %v9023_v17, %v16443_v56  ;;  %v13009_v40 = vadd.f32 %v9094_v31, %v16448_v38 }
0x171f   :  { %v9774_v34 = vmul.f32 -1.442695, %v12992_v14 }
0x1720   :  { %v9775_v37 = vmul.f32 -1.442695, %v12993_v21  ;;  %v9776_v11 = vmul.f32 -1.442695, %v13009_v40 }
0x1721   :  { %13769 = vpow2.f32 %v9774_v34 }
0x1722   :  { %13771 = vpow2.f32 %v9775_v37 }
0x1723   :  { %13773 = vpow2.f32 %v9776_v11 }
0x1724   :  { %13775 = vtanh.f32 %v13008_v7 }
0x172b   :  { %v13770_v63 = vpop.eup %13769 }
0x172c   :  { %v13772_v52 = vpop.eup %13771  ;;  %v9104_v24 = vadd.f32 1.0, %v13770_v63 }
0x172d   :  { %v9110_v5 = vadd.f32 1.0, %v13772_v52  ;;  %v13774_v47 = vpop.eup %13773 }
0x172e   :  { %13777 = vrcp.f32 %v9104_v24  ;;  %v13776_v22 = vpop.eup %13775  ;;  %v9117_v6 = vadd.f32 1.0, %v13774_v47 }
0x172f   :  { %13779 = vrcp.f32 %v9110_v5 }
0x1730   :  { %13781 = vrcp.f32 %v9117_v6 }
0x1738   :  { %v13778_v9 = vpop.eup %13777 }
0x1739   :  { %v13780_v54 = vpop.eup %13779  ;;  %v9121_v45 = vmul.f32 %v13778_v9, %v13776_v22 }
0x173a   :  { %v9120_v2 = vmul.f32 %v13780_v54, %v16581_v49  ;;  %v13782_v15 = vpop.eup %13781 }
0x173c   :  { %v16623_v48 = vadd.f32 %v9121_v45, %v9120_v2 }
0x173e   :  { %13783 = vtanh.f32 %v16623_v48 }
0x1748   :  { %v13784_v53 = vpop.eup %13783 }
0x1749   :  { %v9124_v27 = vmul.f32 %v13784_v53, %v13782_v15 }
0x174b   :  { %9194 = vmatmul.mubr.f32.vlgmr.msra.gmra.mrb[132].mxu0 %v9124_v27  ;;  %9265 = vmatmul.mubr.f32.vlgmr.msra.gmra.mrb[132].mxu1 %v9124_v27 }
0x174c   :  { %12733 = vmatpush1.bf16.msra.mxu0 %v16276_v30  ;;  %12765 = vmatpush1.bf16.msra.mxu1 %v16280_v32 }
0x174d   :  { %12735 = vmatprep.subr.bf16.mxu0 %v16278_v18  ;;  %12767 = vmatprep.subr.bf16.mxu1 %v16290_v58 }
0x174e   :  { %9367 = vmatprep.mubr.f32.mxu0 %v16996_v19  ;;  %9438 = vmatprep.mubr.f32.mxu1 %v16996_v19 }
0x1750   :  { %12737 = vmatpush1.bf16.msra.mxu0 %v16288_v60  ;;  %12769 = vmatpush1.bf16.msra.mxu1 %v16295_v13 }
0x1751   :  { %12739 = vmatprep.subr.bf16.mxu0 %v16293_v33  ;;  %12771 = vmatprep.subr.bf16.mxu1 %v16305_v8 }
0x1754   :  { %12741 = vmatpush1.bf16.msra.mxu0 %v16303_v61  ;;  %12773 = vmatpush1.bf16.msra.mxu1 %v16311_v3 }
0x1755   :  { %12743 = vmatprep.subr.bf16.mxu0 %v16309_v16  ;;  %12775 = vmatprep.subr.bf16.mxu1 %v16321_v26 }
0x1758   :  { %12745 = vmatpush1.bf16.msra.mxu0 %v16319_v35  ;;  %12777 = vmatpush1.bf16.msra.mxu1 %v16327_v25 }
0x1759   :  { %12747 = vmatprep.subr.bf16.mxu0 %v16325_v42  ;;  %12779 = vmatprep.subr.bf16.mxu1 %v16337_v1 }
0x175c   :  { %12749 = vmatpush1.bf16.msra.mxu0 %v16335_v44  ;;  %12781 = vmatpush1.bf16.msra.mxu1 %v16341_v10 }
0x175d   :  { %12751 = vmatprep.subr.bf16.mxu0 %v16343_v50  ;;  %12783 = vmatprep.subr.bf16.mxu1 %v16353_v12 }
0x1760   :  { %12753 = vmatpush1.bf16.msra.mxu0 %v16351_v0  ;;  %12785 = vmatpush1.bf16.msra.mxu1 %v16357_v62 }
0x1761   :  { %12755 = vmatprep.subr.bf16.mxu0 %v16359_v39  ;;  %12787 = vmatprep.subr.bf16.mxu1 %v16369_v41 }
0x1764   :  { %12757 = vmatpush1.bf16.msra.mxu0 %v16367_v28  ;;  %12789 = vmatpush1.bf16.msra.mxu1 %v16373_v29 }
0x1765   :  { %12759 = vmatprep.subr.bf16.mxu0 %v16375_v43  ;;  %12791 = vmatprep.subr.bf16.mxu1 %v16381_v59 }
0x1768   :  { %12761 = vmatpush1.bf16.msra.mxu0 %v16385_v46  ;;  %12793 = vmatpush1.bf16.msra.mxu1 %v16389_v51 }
0x1769   :  { %12795 = vmatprep.subr.bf16.mxu0 %v16261_v23  ;;  %12827 = vmatprep.subr.bf16.mxu1 %v16265_v57 }
0x181e   :  { %v9195_v49 = vpop.f32.mrb[132].mxu0  ;;  %v9266_v55 = vpop.f32.mrb[132].mxu1 }
0x181f   :  { %v12990_v36 = vadd.f32 %v9195_v49, %v16440_v4  ;;  %v9197_v14 = vpop.f32.mrb[133].mxu0  ;;  %v9268_v17 = vpop.f32.mrb[133].mxu1  ;;  %v13006_v11 = vadd.f32 %v9266_v55, %v16452_v20 }
0x1820   :  { %v12991_v31 = vadd.f32 %v9197_v14, %v16443_v56  ;;  %v13007_v37 = vadd.f32 %v9268_v17, %v16448_v38 }
0x1821   :  { %v9777_v21 = vmul.f32 -1.442695, %v12990_v36 }
0x1822   :  { %v9778_v34 = vmul.f32 -1.442695, %v12991_v31  ;;  %v9779_v40 = vmul.f32 -1.442695, %v13007_v37 }
0x1823   :  { %13785 = vpow2.f32 %v9777_v21 }
0x1824   :  { %13787 = vpow2.f32 %v9778_v34 }
0x1825   :  { %13789 = vpow2.f32 %v9779_v40 }
0x1826   :  { %13791 = vtanh.f32 %v13006_v11 }
0x182d   :  { %v13786_v23 = vpop.eup %13785 }
0x182e   :  { %v13788_v7 = vpop.eup %13787  ;;  %v9278_v57 = vadd.f32 1.0, %v13786_v23 }
0x182f   :  { %v9284_v63 = vadd.f32 1.0, %v13788_v7  ;;  %v13790_v52 = vpop.eup %13789 }
0x1830   :  { %13793 = vrcp.f32 %v9278_v57  ;;  %v13792_v24 = vpop.eup %13791  ;;  %v9291_v9 = vadd.f32 1.0, %v13790_v52 }
0x1831   :  { %13795 = vrcp.f32 %v9284_v63 }
0x1832   :  { %13797 = vrcp.f32 %v9291_v9 }
0x183a   :  { %v13794_v5 = vpop.eup %13793 }
0x183b   :  { %v13796_v47 = vpop.eup %13795  ;;  %v9295_v22 = vmul.f32 %v13794_v5, %v13792_v24 }
0x183c   :  { %v9294_v54 = vmul.f32 %v13796_v47, %v16623_v48  ;;  %v13798_v6 = vpop.eup %13797 }
0x183e   :  { %v16665_v45 = vadd.f32 %v9295_v22, %v9294_v54 }
0x1840   :  { %13799 = vtanh.f32 %v16665_v45 }
0x184a   :  { %v13800_v2 = vpop.eup %13799 }
0x184b   :  { %v9298_v15 = vmul.f32 %v13800_v2, %v13798_v6 }
0x184d   :  { %9368 = vmatmul.mubr.f32.vlgmr.msra.gmra.mrb[130].mxu0 %v9298_v15  ;;  %9439 = vmatmul.mubr.f32.vlgmr.msra.gmra.mrb[130].mxu1 %v9298_v15 }
0x184e   :  { %12797 = vmatpush1.bf16.msra.mxu0 %v16276_v30  ;;  %12829 = vmatpush1.bf16.msra.mxu1 %v16280_v32 }
0x184f   :  { %12799 = vmatprep.subr.bf16.mxu0 %v16278_v18  ;;  %12831 = vmatprep.subr.bf16.mxu1 %v16290_v58 }
0x1850   :  { %9541 = vmatprep.mubr.f32.mxu0 %v16996_v19  ;;  %9612 = vmatprep.mubr.f32.mxu1 %v16996_v19 }
0x1852   :  { %12801 = vmatpush1.bf16.msra.mxu0 %v16288_v60  ;;  %12833 = vmatpush1.bf16.msra.mxu1 %v16295_v13 }
0x1853   :  { %12803 = vmatprep.subr.bf16.mxu0 %v16293_v33  ;;  %12835 = vmatprep.subr.bf16.mxu1 %v16305_v8 }
0x1856   :  { %12805 = vmatpush1.bf16.msra.mxu0 %v16303_v61  ;;  %12837 = vmatpush1.bf16.msra.mxu1 %v16311_v3 }
0x1857   :  { %12807 = vmatprep.subr.bf16.mxu0 %v16309_v16  ;;  %12839 = vmatprep.subr.bf16.mxu1 %v16321_v26 }
0x185a   :  { %12809 = vmatpush1.bf16.msra.mxu0 %v16319_v35  ;;  %12841 = vmatpush1.bf16.msra.mxu1 %v16327_v25 }
0x185b   :  { %12811 = vmatprep.subr.bf16.mxu0 %v16325_v42  ;;  %12843 = vmatprep.subr.bf16.mxu1 %v16337_v1 }
0x185e   :  { %12813 = vmatpush1.bf16.msra.mxu0 %v16335_v44  ;;  %12845 = vmatpush1.bf16.msra.mxu1 %v16341_v10 }
0x185f   :  { %12815 = vmatprep.subr.bf16.mxu0 %v16343_v50  ;;  %12847 = vmatprep.subr.bf16.mxu1 %v16353_v12 }
0x1862   :  { %12817 = vmatpush1.bf16.msra.mxu0 %v16351_v0  ;;  %12849 = vmatpush1.bf16.msra.mxu1 %v16357_v62 }
0x1863   :  { %12819 = vmatprep.subr.bf16.mxu0 %v16359_v39  ;;  %12851 = vmatprep.subr.bf16.mxu1 %v16369_v41 }
0x1866   :  { %12821 = vmatpush1.bf16.msra.mxu0 %v16367_v28  ;;  %12853 = vmatpush1.bf16.msra.mxu1 %v16373_v29 }
0x1867   :  { %12823 = vmatprep.subr.bf16.mxu0 %v16375_v43  ;;  %12855 = vmatprep.subr.bf16.mxu1 %v16381_v59 }
0x186a   :  { %12825 = vmatpush1.bf16.msra.mxu0 %v16385_v46  ;;  %12857 = vmatpush1.bf16.msra.mxu1 %v16389_v51 }
0x1920   :  { %v9369_v19 = vpop.f32.mrb[130].mxu0  ;;  %v9440_v30 = vpop.f32.mrb[130].mxu1 }
0x1921   :  { %v12988_v18 = vadd.f32 %v9369_v19, %v16440_v4  ;;  %v9371_v32 = vpop.f32.mrb[131].mxu0  ;;  %v9442_v60 = vpop.f32.mrb[131].mxu1  ;;  %v13004_v16 = vadd.f32 %v9440_v30, %v16452_v20 }
0x1922   :  { %v12989_v58 = vadd.f32 %v9371_v32, %v16443_v56  ;;  %v13005_v61 = vadd.f32 %v9442_v60, %v16448_v38 }
0x1923   :  { %v9780_v33 = vmul.f32 -1.442695, %v12988_v18 }
0x1924   :  { %v9781_v13 = vmul.f32 -1.442695, %v12989_v58  ;;  %v9782_v8 = vmul.f32 -1.442695, %v13005_v61 }
0x1925   :  { %13801 = vpow2.f32 %v9780_v33 }
0x1926   :  { %13803 = vpow2.f32 %v9781_v13 }
0x1927   :  { %13805 = vpow2.f32 %v9782_v8 }
0x1928   :  { %13807 = vtanh.f32 %v13004_v16 }
0x192f   :  { %v13802_v3 = vpop.eup %13801 }
0x1930   :  { %v13804_v35 = vpop.eup %13803  ;;  %v9452_v26 = vadd.f32 1.0, %v13802_v3 }
0x1931   :  { %v9458_v42 = vadd.f32 1.0, %v13804_v35  ;;  %v13806_v25 = vpop.eup %13805 }
0x1932   :  { %13809 = vrcp.f32 %v9452_v26  ;;  %v13808_v44 = vpop.eup %13807  ;;  %v9465_v0 = vadd.f32 1.0, %v13806_v25 }
0x1933   :  { %13811 = vrcp.f32 %v9458_v42 }
0x1934   :  { %13813 = vrcp.f32 %v9465_v0 }
0x193c   :  { %v13810_v1 = vpop.eup %13809 }
0x193d   :  { %v13812_v10 = vpop.eup %13811  ;;  %v9469_v50 = vmul.f32 %v13810_v1, %v13808_v44 }
0x193e   :  { %v9468_v12 = vmul.f32 %v13812_v10, %v16665_v45  ;;  %v13814_v39 = vpop.eup %13813 }
0x1940   :  { %v9470_v62 = vadd.f32 %v9469_v50, %v9468_v12 }
0x1942   :  { %13815 = vtanh.f32 %v9470_v62 }
0x194c   :  { %v13816_v28 = vpop.eup %13815 }
0x194d   :  { %v9472_v41 = vmul.f32 %v13816_v28, %v13814_v39 }
0x194f   :  { %9542 = vmatmul.mubr.f32.vlgmr.msra.gmra.mrb[128].mxu0 %v9472_v41  ;;  %9613 = vmatmul.mubr.f32.vlgmr.msra.gmra.mrb[128].mxu1 %v9472_v41 }
0x1a22   :  { %v9543_v29 = vpop.f32.mrb[128].mxu0  ;;  %v9614_v43 = vpop.f32.mrb[128].mxu1 }
0x1a23   :  { %v12986_v59 = vadd.f32 %v9543_v29, %v16440_v4  ;;  %v9545_v46 = vpop.f32.mrb[129].mxu0  ;;  %v9616_v51 = vpop.f32.mrb[129].mxu1  ;;  %v13002_v36 = vadd.f32 %v9614_v43, %v16452_v20 }
0x1a24   :  { %v12987_v48 = vadd.f32 %v9545_v46, %v16443_v56  ;;  %v13003_v49 = vadd.f32 %v9616_v51, %v16448_v38 }
0x1a25   :  { %v9783_v53 = vmul.f32 -1.442695, %v12986_v59 }
0x1a26   :  { %v9784_v27 = vmul.f32 -1.442695, %v12987_v48  ;;  %v9785_v55 = vmul.f32 -1.442695, %v13003_v49 }
0x1a27   :  { %13817 = vpow2.f32 %v9783_v53 }
0x1a28   :  { %13819 = vpow2.f32 %v9784_v27 }
0x1a29   :  { %13821 = vpow2.f32 %v9785_v55 }
0x1a2a   :  { %13823 = vtanh.f32 %v13002_v36 }
0x1a31   :  { %v13818_v14 = vpop.eup %13817 }
0x1a32   :  { %v13820_v17 = vpop.eup %13819  ;;  %v9626_v31 = vadd.f32 1.0, %v13818_v14 }
0x1a33   :  { %v9632_v21 = vadd.f32 1.0, %v13820_v17  ;;  %v13822_v4 = vpop.eup %13821 }
0x1a34   :  { %13825 = vrcp.f32 %v9626_v31  ;;  %v13824_v34 = vpop.eup %13823  ;;  %v9639_v11 = vadd.f32 1.0, %v13822_v4 }
0x1a35   :  { %13827 = vrcp.f32 %v9632_v21 }
0x1a36   :  { %13829 = vrcp.f32 %v9639_v11 }
0x1a3e   :  { %v13826_v56 = vpop.eup %13825 }
0x1a3f   :  { %v13828_v37 = vpop.eup %13827  ;;  %v9643_v40 = vmul.f32 %v13826_v56, %v13824_v34 }
0x1a40   :  { %v9642_v23 = vmul.f32 %v13828_v37, %v9470_v62  ;;  %v13830_v38 = vpop.eup %13829 }
0x1a42   :  { %v9644_v7 = vadd.f32 %v9643_v40, %v9642_v23 }
0x1a44   :  { %13831 = vtanh.f32 %v9644_v7 }
0x1a4e   :  { %v13832_v20 = vpop.eup %13831 }
0x1a4f   :  { %v9646_v57 = vmul.f32 %v13832_v20, %v13830_v38 }
0x1a51   :  { %9647 = vst [vmem:[#allocation17] sm:$0xff] %v9646_v57 }
0x1a52   :  { %13998 = shalt.err (!%p13995_p4)
}
0x1a53   :  { %s13999_s30 = scalar_lea.hbm %s16731_s10, 128 }
0x1a54   :  { %p14000_p5 = scmp.ne.s32.totalorder %s16731_s10, %s13999_s30  ;;  %p14003_p6 = scmp.lt.u32.totalorder %s13999_s30, %s16731_s10 }
0x1a56   :  { %p14005_p7 = pnand %p14003_p6, %p14000_p5 }
0x1a58   :  { %14008 = shalt.err (!%p14005_p7)
}
0x1a59   :  { %9657 = dma.vmem_to_hbm [thread:$0]  %s9655_s12, 128, %s16731_s10, [#allocation7]  }
0x1a5a   :  { %14017 = dma.done.wait [#allocation7], 128  }
0x1a5b   :  { %14018 = vsyncadd [#allocation7], 4294967168 }
0x1a5c   :  { %9661 = vsyncpa [#allocation6], 1 }
0x1a5d   :  { %9662 = vsyncpa [#allocation9], 1 }
0x1a5e   :  { %9663 = vsyncpa [#allocation12], 1 }
0x1a5f   :  { %9664 = vsyncpa [#allocation15], 1 }
0x1a60   :  { %9665 = vsyncpa [#allocation7], 1 }

</bundles_post_ra>
